<compile_context>
chip_gen: v7x
topology: tpu7x:2x2x1
jax: 0.10.0
libtpu: 0.0.40
codegen_flags: <defaults>
</compile_context>

<pallas_src>
import functools
import math

import jax
import jax.numpy as jnp
from jax import lax
from jax.experimental import pallas as pl
from jax.experimental.pallas import tpu as pltpu

LANES = 128                    # channel padding target (lane width)
BN_EPS = 1e-5
VMEM_LIMIT = 32 * 1024 * 1024  # explicit scoped-VMEM budget (safe on v5e/v6e/v7x)


# ----------------------------------------------------------------------------
# Fused conv (im2col-in-VMEM) + BN-statistics kernel
# ----------------------------------------------------------------------------
def _conv_impl(x_ref, w_ref, b_ref, o_ref, stats_ref, *, taps, ho, wo, ht):
    """x_ref: (Hp, Wp, Cin_p) halo-padded image; w_ref: (kh*kw, Cin_p, Cout_p).
    Writes o_ref: (ho*wo, Cout_p) and stats_ref: (2, Cout_p) = [sum; sum of sq]."""
    cp = w_ref.shape[2]
    s = jnp.zeros((1, cp), jnp.float32)
    sq = jnp.zeros((1, cp), jnp.float32)
    for c in range(ho // ht):                       # chunk output rows (reg pressure)
        h0 = c * ht
        acc = jnp.zeros((ht * wo, cp), jnp.float32)
        for t, (di, dj) in enumerate(taps):         # fused im2col: loop over taps
            patch = x_ref[di + h0:di + h0 + ht, dj:dj + wo, :]
            acc = acc + jnp.dot(patch.reshape(ht * wo, -1), w_ref[t],
                                preferred_element_type=jnp.float32)
        if b_ref is not None:
            acc = acc + b_ref[...]
        o_ref[h0 * wo:(h0 + ht) * wo, :] = acc
        s = s + jnp.sum(acc, axis=0, keepdims=True)
        sq = sq + jnp.sum(acc * acc, axis=0, keepdims=True)
    stats_ref[0:1, :] = s
    stats_ref[1:2, :] = sq


def _conv_bias_kernel(x_ref, w_ref, b_ref, o_ref, stats_ref, *, taps, ho, wo, ht):
    _conv_impl(x_ref, w_ref, b_ref, o_ref, stats_ref, taps=taps, ho=ho, wo=wo, ht=ht)


def _conv_kernel(x_ref, w_ref, o_ref, stats_ref, *, taps, ho, wo, ht):
    _conv_impl(x_ref, w_ref, None, o_ref, stats_ref, taps=taps, ho=ho, wo=wo, ht=ht)


def _pick_ht(ho, wo):
    """Largest divisor of ho with ht*wo <= 64 rows (keeps acc/patch in vregs)."""
    best = 1
    for h in range(1, ho + 1):
        if ho % h == 0 and h * wo <= 64:
            best = h
    return best


def conv2d_pallas(x_nhwc, w_taps, bias, *, pad):
    """x_nhwc: (N,H,W,Cp) channel-padded. w_taps: (kh*kw, Cp, Cp). bias: (1,Cp)|None.
    Returns (out [N*Ho*Wo, Cp], stats [N, 2, Cp], (Ho, Wo)).  stride == 1 only."""
    n, h, w, cin_p = x_nhwc.shape
    kk, _, cout_p = w_taps.shape
    k = int(round(math.sqrt(kk)))
    assert k * k == kk
    if pad:
        x_nhwc = jnp.pad(x_nhwc, ((0, 0), (pad, pad), (pad, pad), (0, 0)))
    hp, wp = h + 2 * pad, w + 2 * pad
    ho, wo = hp - k + 1, wp - k + 1
    taps = tuple((di, dj) for di in range(k) for dj in range(k))
    ht = _pick_ht(ho, wo)

    x_spec = pl.BlockSpec((None, hp, wp, cin_p), lambda i: (i, 0, 0, 0))
    w_spec = pl.BlockSpec((kk, cin_p, cout_p), lambda i: (0, 0, 0))
    o_spec = pl.BlockSpec((ho * wo, cout_p), lambda i: (i, 0))
    st_spec = pl.BlockSpec((None, 2, cout_p), lambda i: (i, 0, 0))

    if bias is None:
        kern = functools.partial(_conv_kernel, taps=taps, ho=ho, wo=wo, ht=ht)
        in_specs = [x_spec, w_spec]
        args = (x_nhwc, w_taps)
    else:
        kern = functools.partial(_conv_bias_kernel, taps=taps, ho=ho, wo=wo, ht=ht)
        in_specs = [x_spec, w_spec, pl.BlockSpec((1, cout_p), lambda i: (0, 0))]
        args = (x_nhwc, w_taps, bias)

    out, stats = pl.pallas_call(
        kern,
        out_shape=(jax.ShapeDtypeStruct((n * ho * wo, cout_p), jnp.float32),
                   jax.ShapeDtypeStruct((n, 2, cout_p), jnp.float32)),
        grid=(n,),
        in_specs=in_specs,
        out_specs=(o_spec, st_spec),
        compiler_params=pltpu.CompilerParams(
            dimension_semantics=("parallel",),
            vmem_limit_bytes=VMEM_LIMIT),
    )(*args)
    return out, stats, (ho, wo)


# ----------------------------------------------------------------------------
# Fused BatchNorm (affine folded to scale/shift) elementwise kernels
# ----------------------------------------------------------------------------
def _affine_relu_kernel(x_ref, s_ref, t_ref, o_ref):
    o_ref[...] = jnp.maximum(x_ref[...] * s_ref[...] + t_ref[...], 0.0)


def _dual_affine_add_relu_kernel(x_ref, r_ref, sx_ref, tx_ref, sr_ref, tr_ref, o_ref):
    y = (x_ref[...] * sx_ref[...] + tx_ref[...]
         + r_ref[...] * sr_ref[...] + tr_ref[...])
    o_ref[...] = jnp.maximum(y, 0.0)


def _row_split(m):
    # 2 parallel grid steps when possible (v7x: one per TensorCore), else 1.
    if m % 16 == 0:
        return m // 2, 2
    return m, 1


def _ew_call(kern, row_args, vec_args, m, cp):
    tm, g = _row_split(m)
    row = pl.BlockSpec((tm, cp), lambda i: (i, 0))
    vec = pl.BlockSpec((1, cp), lambda i: (0, 0))
    return pl.pallas_call(
        kern,
        out_shape=jax.ShapeDtypeStruct((m, cp), jnp.float32),
        grid=(g,),
        in_specs=[row] * len(row_args) + [vec] * len(vec_args),
        out_specs=row,
        compiler_params=pltpu.CompilerParams(dimension_semantics=("parallel",)),
    )(*row_args, *vec_args)


def affine_relu(x, scale, shift):
    m, cp = x.shape
    return _ew_call(_affine_relu_kernel, (x,), (scale, shift), m, cp)


def dual_affine_add_relu(x, r, sx, tx, sr, tr):
    m, cp = x.shape
    return _ew_call(_dual_affine_add_relu_kernel, (x, r), (sx, tx, sr, tr), m, cp)


def bn_scale_shift(stats, count, gamma_p, beta_p):
    """Training-mode BN: fold mean/var/gamma/beta into per-channel scale+shift."""
    s = jnp.sum(stats[:, 0, :], axis=0)
    sq = jnp.sum(stats[:, 1, :], axis=0)
    mean = s / count
    var = jnp.maximum(sq / count - mean * mean, 0.0)   # biased variance (train mode)
    scale = gamma_p * lax.rsqrt(var + BN_EPS)
    shift = beta_p - mean * scale
    return scale.reshape(1, -1), shift.reshape(1, -1)


# ----------------------------------------------------------------------------
# AvgPool2d (lane-dense: channels stay on the lane axis)
# ----------------------------------------------------------------------------
def _avgpool_kernel(x_ref, o_ref, *, kk):
    acc = x_ref[0]
    for t in range(1, kk):
        acc = acc + x_ref[t]
    o_ref[...] = acc * (1.0 / kk)


def avg_pool(x_flat, n, h, w, cp, ps):
    hp, wp = h // ps, w // ps
    kk, t = ps * ps, n * hp * wp
    xr = x_flat.reshape(n, hp, ps, wp, ps, cp)
    xr = jnp.transpose(xr, (2, 4, 0, 1, 3, 5)).reshape(kk, t, cp)  # taps leading
    out = pl.pallas_call(
        functools.partial(_avgpool_kernel, kk=kk),
        out_shape=jax.ShapeDtypeStruct((t, cp), jnp.float32),
        grid=(1,),
        in_specs=[pl.BlockSpec((kk, t, cp), lambda i: (0, 0, 0))],
        out_specs=pl.BlockSpec((t, cp), lambda i: (0, 0)),
    )(xr)
    return out.reshape(n, hp, wp, cp)


# ----------------------------------------------------------------------------
# Model composition
# ----------------------------------------------------------------------------
def res_block(x_flat, spatial, p, *, pad):
    n, h, w = spatial
    cp = x_flat.shape[1]
    x_nhwc = x_flat.reshape(n, h, w, cp)
    count = n * h * w
    # conv1 -> bn1 -> relu   (conv bias dropped: cancelled by training-mode BN)
    out1, st1, _ = conv2d_pallas(x_nhwc, p["w1"], None, pad=pad)
    s1, t1 = bn_scale_shift(st1, count, p["g1"], p["be1"])
    hact = affine_relu(out1, s1, t1)
    # conv2 -> bn2
    out2, st2, _ = conv2d_pallas(hact.reshape(n, h, w, cp), p["w2"], None, pad=pad)
    s2, t2 = bn_scale_shift(st2, count, p["g2"], p["be2"])
    # downsample: 1x1 conv -> bn
    ds, std, _ = conv2d_pallas(x_nhwc, p["wd"], None, pad=0)
    sd, td = bn_scale_shift(std, count, p["gd"], p["bed"])
    # fused: relu(bn2(conv2) + bn_d(downsample))
    y = dual_affine_add_relu(out2, ds, s2, t2, sd, td)
    return y, (n, h, w)


def resnet_forward(x_nchw, params, *, arch, pool_size):
    n, c_in, _, _ = x_nchw.shape
    x = jnp.transpose(x_nchw, (0, 2, 3, 1)).astype(jnp.float32)     # NCHW -> NHWC
    x = jnp.pad(x, ((0, 0), (0, 0), (0, 0), (0, LANES - c_in)))     # lane padding
    fc = params["first_conv"]
    out, _, (ho, wo) = conv2d_pallas(x, fc["w"], fc["b"], pad=arch["first_pad"])
    spatial = (n, ho, wo)
    for bp, bpad in zip(params["blocks"], arch["block_pads"]):
        out, spatial = res_block(out, spatial, bp, pad=bpad)
    n, h, w = spatial
    pooled = avg_pool(out, n, h, w, LANES, pool_size)               # (n,hp,wp,128)
    pooled = pooled[..., :arch["out_channels"]]                     # drop lane pad
    pooled = jnp.transpose(pooled, (0, 3, 1, 2))                    # back to NCHW
    return pooled.reshape(n, -1)                                    # flatten(dim=1)


# ----------------------------------------------------------------------------
# Deterministic parameter init (PyTorch shapes -> padded tap layout)
# ----------------------------------------------------------------------------
def _conv_weight_taps(key, cout, cin, k):
    fan_in = cin * k * k
    w = jax.random.normal(key, (cout, cin, k, k), jnp.float32) / jnp.sqrt(fan_in)
    wt = jnp.transpose(w, (2, 3, 1, 0)).reshape(k * k, cin, cout)   # (kk, Cin, Cout)
    return jnp.pad(wt, ((0, 0), (0, LANES - cin), (0, LANES - cout)))


def _pad_vec(v):
    return jnp.pad(v, (0, LANES - v.shape[0]))


def _resolve_pad(padding, k):
    return (k - 1) // 2 if padding == "same" else int(padding)


def init_params(key, first_conv_cfg, block_cfgs):
    keys = jax.random.split(key, 2 + 3 * len(block_cfgs))
    fc = first_conv_cfg
    k = fc["kernel_size"]
    assert fc["in_channels"] <= LANES and fc["out_channels"] <= LANES
    # TODO(synk): stride > 1 convolutions are not implemented in the fused conv
    # kernel (PyTorch padding='same' also requires stride == 1).
    assert fc["stride"] == 1
    b = 0.01 * jax.random.normal(keys[1], (fc["out_channels"],), jnp.float32)
    params = {
        "first_conv": {
            "w": _conv_weight_taps(keys[0], fc["out_channels"], fc["in_channels"], k),
            "b": _pad_vec(b).reshape(1, LANES),
        },
        "blocks": [],
    }
    arch = {"first_pad": _resolve_pad(fc["padding"], k),
            "block_pads": [], "out_channels": fc["out_channels"]}
    for bi, cfg in enumerate(block_cfgs):
        cin, cout, ks = cfg["in_channels"], cfg["out_channels"], cfg["kernel_size"]
        assert cin <= LANES and cout <= LANES
        assert cfg.get("stride", 1) == 1
        k1, k2, k3 = keys[2 + 3 * bi: 5 + 3 * bi]
        params["blocks"].append({
            "w1": _conv_weight_taps(k1, cout, cin, ks),
            "w2": _conv_weight_taps(k2, cout, cout, ks),
            "wd": _conv_weight_taps(k3, cout, cin, 1),
            "g1": _pad_vec(jnp.ones((cout,), jnp.float32)),
            "be1": _pad_vec(jnp.zeros((cout,), jnp.float32)),
            "g2": _pad_vec(jnp.ones((cout,), jnp.float32)),
            "be2": _pad_vec(jnp.zeros((cout,), jnp.float32)),
            "gd": _pad_vec(jnp.ones((cout,), jnp.float32)),
            "bed": _pad_vec(jnp.zeros((cout,), jnp.float32)),
        })
        arch["block_pads"].append(_resolve_pad(cfg.get("padding", "same"), ks))
        arch["out_channels"] = cout
    return params, arch


if __name__ == "__main__":
    first_conv_cfg = dict(in_channels=4, out_channels=8, kernel_size=3,
                          stride=1, padding=1)
    block_cfgs = [
        dict(in_channels=8, out_channels=16, kernel_size=3, stride=1, padding="same"),
        dict(in_channels=16, out_channels=16, kernel_size=3, stride=1, padding="same"),
    ]
    pool_size = 4

    key = jax.random.PRNGKey(0)
    pkey, xkey = jax.random.split(key)
    params, arch = init_params(pkey, first_conv_cfg, block_cfgs)
    x = jax.random.normal(xkey, (2, 4, 16, 16), jnp.float32)   # NCHW, like PyTorch

    fwd = jax.jit(functools.partial(resnet_forward, arch=arch, pool_size=pool_size))
    y = jax.block_until_ready(fwd(x, params))
    assert y.shape == (2, 16 * 4 * 4), y.shape
    assert bool(jnp.all(jnp.isfinite(y)))
    print("KERNEL_OK")
</pallas_src>

<mosaic_0001>
module attributes {stable_mosaic.version = 11 : i64} {
  func.func @_conv_bias_kernel(%arg0: i32, %arg1: memref<1x18x18x128xf32, #tpu.memory_space<vmem>>, %arg2: memref<9x128x128xf32, #tpu.memory_space<vmem>>, %arg3: memref<1x128xf32, #tpu.memory_space<vmem>>, %arg4: memref<256x128xf32, #tpu.memory_space<vmem>>, %arg5: memref<1x2x128xf32, #tpu.memory_space<vmem>>) attributes {dimension_semantics = [#tpu.dimension_semantics<parallel>], iteration_bounds = array<i64: 2>, scalar_prefetch = 0 : i64, scratch_operands = 0 : i64, tpu.core_type = #tpu.core_type<tc>, window_params = [{transform_indices = @transform_0, window_bounds = array<i64: 1, 18, 18, 128>}, {pipeline_mode = #tpu.pipeline_mode<synchronous>, transform_indices = @transform_1, window_bounds = array<i64: 9, 128, 128>}, {pipeline_mode = #tpu.pipeline_mode<synchronous>, transform_indices = @transform_2, window_bounds = array<i64: 1, 128>}, {transform_indices = @transform_3, window_bounds = array<i64: 256, 128>}, {transform_indices = @transform_4, window_bounds = array<i64: 1, 2, 128>}]} {
    %cst = arith.constant 0.000000e+00 : f32
    %0 = vector.broadcast %cst : f32 to vector<1x128xf32>
    %cst_0 = arith.constant 0.000000e+00 : f32
    %1 = vector.broadcast %cst_0 : f32 to vector<1x128xf32>
    %cst_1 = arith.constant 0.000000e+00 : f32
    %2 = vector.broadcast %cst_1 : f32 to vector<64x128xf32>
    %c0 = arith.constant 0 : index
    %c0_2 = arith.constant 0 : index
    %c0_3 = arith.constant 0 : index
    %c0_4 = arith.constant 0 : index
    %3 = vector.load %arg1[%c0, %c0_2, %c0_3, %c0_4] : memref<1x18x18x128xf32, #tpu.memory_space<vmem>>, vector<1x4x16x128xf32>
    %4 = vector.shape_cast %3 : vector<1x4x16x128xf32> to vector<4x16x128xf32>
    %5 = vector.shape_cast %4 : vector<4x16x128xf32> to vector<64x128xf32>
    %c0_5 = arith.constant 0 : index
    %c0_6 = arith.constant 0 : index
    %c0_7 = arith.constant 0 : index
    %6 = vector.load %arg2[%c0_5, %c0_6, %c0_7] : memref<9x128x128xf32, #tpu.memory_space<vmem>>, vector<1x128x128xf32>
    %7 = vector.shape_cast %6 : vector<1x128x128xf32> to vector<128x128xf32>
    %cst_8 = arith.constant dense<0.000000e+00> : vector<64x128xf32>
    %8 = tpu.matmul %5, %7, %cst_8 {dimension_numbers = #tpu.dot_dimension_numbers<[1], [0], [0], [1], [0, 0, 1, 1], [], []>} : vector<64x128xf32>, vector<128x128xf32>, vector<64x128xf32> -> vector<64x128xf32>
    %9 = arith.addf %2, %8 : vector<64x128xf32>
    %c0_9 = arith.constant 0 : index
    %c0_10 = arith.constant 0 : index
    %c1 = arith.constant 1 : index
    %c0_11 = arith.constant 0 : index
    %10 = vector.load %arg1[%c0_9, %c0_10, %c1, %c0_11] : memref<1x18x18x128xf32, #tpu.memory_space<vmem>>, vector<1x4x16x128xf32>
    %11 = vector.shape_cast %10 : vector<1x4x16x128xf32> to vector<4x16x128xf32>
    %12 = vector.shape_cast %11 : vector<4x16x128xf32> to vector<64x128xf32>
    %c1_12 = arith.constant 1 : index
    %c0_13 = arith.constant 0 : index
    %c0_14 = arith.constant 0 : index
    %13 = vector.load %arg2[%c1_12, %c0_13, %c0_14] : memref<9x128x128xf32, #tpu.memory_space<vmem>>, vector<1x128x128xf32>
    %14 = vector.shape_cast %13 : vector<1x128x128xf32> to vector<128x128xf32>
    %cst_15 = arith.constant dense<0.000000e+00> : vector<64x128xf32>
    %15 = tpu.matmul %12, %14, %cst_15 {dimension_numbers = #tpu.dot_dimension_numbers<[1], [0], [0], [1], [0, 0, 1, 1], [], []>} : vector<64x128xf32>, vector<128x128xf32>, vector<64x128xf32> -> vector<64x128xf32>
    %16 = arith.addf %9, %15 : vector<64x128xf32>
    %c0_16 = arith.constant 0 : index
    %c0_17 = arith.constant 0 : index
    %c2 = arith.constant 2 : index
    %c0_18 = arith.constant 0 : index
    %17 = vector.load %arg1[%c0_16, %c0_17, %c2, %c0_18] : memref<1x18x18x128xf32, #tpu.memory_space<vmem>>, vector<1x4x16x128xf32>
    %18 = vector.shape_cast %17 : vector<1x4x16x128xf32> to vector<4x16x128xf32>
    %19 = vector.shape_cast %18 : vector<4x16x128xf32> to vector<64x128xf32>
    %c2_19 = arith.constant 2 : index
    %c0_20 = arith.constant 0 : index
    %c0_21 = arith.constant 0 : index
    %20 = vector.load %arg2[%c2_19, %c0_20, %c0_21] : memref<9x128x128xf32, #tpu.memory_space<vmem>>, vector<1x128x128xf32>
    %21 = vector.shape_cast %20 : vector<1x128x128xf32> to vector<128x128xf32>
    %cst_22 = arith.constant dense<0.000000e+00> : vector<64x128xf32>
    %22 = tpu.matmul %19, %21, %cst_22 {dimension_numbers = #tpu.dot_dimension_numbers<[1], [0], [0], [1], [0, 0, 1, 1], [], []>} : vector<64x128xf32>, vector<128x128xf32>, vector<64x128xf32> -> vector<64x128xf32>
    %23 = arith.addf %16, %22 : vector<64x128xf32>
    %c0_23 = arith.constant 0 : index
    %c1_24 = arith.constant 1 : index
    %c0_25 = arith.constant 0 : index
    %c0_26 = arith.constant 0 : index
    %24 = vector.load %arg1[%c0_23, %c1_24, %c0_25, %c0_26] : memref<1x18x18x128xf32, #tpu.memory_space<vmem>>, vector<1x4x16x128xf32>
    %25 = vector.shape_cast %24 : vector<1x4x16x128xf32> to vector<4x16x128xf32>
    %26 = vector.shape_cast %25 : vector<4x16x128xf32> to vector<64x128xf32>
    %c3 = arith.constant 3 : index
    %c0_27 = arith.constant 0 : index
    %c0_28 = arith.constant 0 : index
    %27 = vector.load %arg2[%c3, %c0_27, %c0_28] : memref<9x128x128xf32, #tpu.memory_space<vmem>>, vector<1x128x128xf32>
    %28 = vector.shape_cast %27 : vector<1x128x128xf32> to vector<128x128xf32>
    %cst_29 = arith.constant dense<0.000000e+00> : vector<64x128xf32>
    %29 = tpu.matmul %26, %28, %cst_29 {dimension_numbers = #tpu.dot_dimension_numbers<[1], [0], [0], [1], [0, 0, 1, 1], [], []>} : vector<64x128xf32>, vector<128x128xf32>, vector<64x128xf32> -> vector<64x128xf32>
    %30 = arith.addf %23, %29 : vector<64x128xf32>
    %c0_30 = arith.constant 0 : index
    %c1_31 = arith.constant 1 : index
    %c1_32 = arith.constant 1 : index
    %c0_33 = arith.constant 0 : index
    %31 = vector.load %arg1[%c0_30, %c1_31, %c1_32, %c0_33] : memref<1x18x18x128xf32, #tpu.memory_space<vmem>>, vector<1x4x16x128xf32>
    %32 = vector.shape_cast %31 : vector<1x4x16x128xf32> to vector<4x16x128xf32>
    %33 = vector.shape_cast %32 : vector<4x16x128xf32> to vector<64x128xf32>
    %c4 = arith.constant 4 : index
    %c0_34 = arith.constant 0 : index
    %c0_35 = arith.constant 0 : index
    %34 = vector.load %arg2[%c4, %c0_34, %c0_35] : memref<9x128x128xf32, #tpu.memory_space<vmem>>, vector<1x128x128xf32>
    %35 = vector.shape_cast %34 : vector<1x128x128xf32> to vector<128x128xf32>
    %cst_36 = arith.constant dense<0.000000e+00> : vector<64x128xf32>
    %36 = tpu.matmul %33, %35, %cst_36 {dimension_numbers = #tpu.dot_dimension_numbers<[1], [0], [0], [1], [0, 0, 1, 1], [], []>} : vector<64x128xf32>, vector<128x128xf32>, vector<64x128xf32> -> vector<64x128xf32>
    %37 = arith.addf %30, %36 : vector<64x128xf32>
    %c0_37 = arith.constant 0 : index
    %c1_38 = arith.constant 1 : index
    %c2_39 = arith.constant 2 : index
    %c0_40 = arith.constant 0 : index
    %38 = vector.load %arg1[%c0_37, %c1_38, %c2_39, %c0_40] : memref<1x18x18x128xf32, #tpu.memory_space<vmem>>, vector<1x4x16x128xf32>
    %39 = vector.shape_cast %38 : vector<1x4x16x128xf32> to vector<4x16x128xf32>
    %40 = vector.shape_cast %39 : vector<4x16x128xf32> to vector<64x128xf32>
    %c5 = arith.constant 5 : index
    %c0_41 = arith.constant 0 : index
    %c0_42 = arith.constant 0 : index
    %41 = vector.load %arg2[%c5, %c0_41, %c0_42] : memref<9x128x128xf32, #tpu.memory_space<vmem>>, vector<1x128x128xf32>
    %42 = vector.shape_cast %41 : vector<1x128x128xf32> to vector<128x128xf32>
    %cst_43 = arith.constant dense<0.000000e+00> : vector<64x128xf32>
    %43 = tpu.matmul %40, %42, %cst_43 {dimension_numbers = #tpu.dot_dimension_numbers<[1], [0], [0], [1], [0, 0, 1, 1], [], []>} : vector<64x128xf32>, vector<128x128xf32>, vector<64x128xf32> -> vector<64x128xf32>
    %44 = arith.addf %37, %43 : vector<64x128xf32>
    %c0_44 = arith.constant 0 : index
    %c2_45 = arith.constant 2 : index
    %c0_46 = arith.constant 0 : index
    %c0_47 = arith.constant 0 : index
    %45 = vector.load %arg1[%c0_44, %c2_45, %c0_46, %c0_47] : memref<1x18x18x128xf32, #tpu.memory_space<vmem>>, vector<1x4x16x128xf32>
    %46 = vector.shape_cast %45 : vector<1x4x16x128xf32> to vector<4x16x128xf32>
    %47 = vector.shape_cast %46 : vector<4x16x128xf32> to vector<64x128xf32>
    %c6 = arith.constant 6 : index
    %c0_48 = arith.constant 0 : index
    %c0_49 = arith.constant 0 : index
    %48 = vector.load %arg2[%c6, %c0_48, %c0_49] : memref<9x128x128xf32, #tpu.memory_space<vmem>>, vector<1x128x128xf32>
    %49 = vector.shape_cast %48 : vector<1x128x128xf32> to vector<128x128xf32>
    %cst_50 = arith.constant dense<0.000000e+00> : vector<64x128xf32>
    %50 = tpu.matmul %47, %49, %cst_50 {dimension_numbers = #tpu.dot_dimension_numbers<[1], [0], [0], [1], [0, 0, 1, 1], [], []>} : vector<64x128xf32>, vector<128x128xf32>, vector<64x128xf32> -> vector<64x128xf32>
    %51 = arith.addf %44, %50 : vector<64x128xf32>
    %c0_51 = arith.constant 0 : index
    %c2_52 = arith.constant 2 : index
    %c1_53 = arith.constant 1 : index
    %c0_54 = arith.constant 0 : index
    %52 = vector.load %arg1[%c0_51, %c2_52, %c1_53, %c0_54] : memref<1x18x18x128xf32, #tpu.memory_space<vmem>>, vector<1x4x16x128xf32>
    %53 = vector.shape_cast %52 : vector<1x4x16x128xf32> to vector<4x16x128xf32>
    %54 = vector.shape_cast %53 : vector<4x16x128xf32> to vector<64x128xf32>
    %c7 = arith.constant 7 : index
    %c0_55 = arith.constant 0 : index
    %c0_56 = arith.constant 0 : index
    %55 = vector.load %arg2[%c7, %c0_55, %c0_56] : memref<9x128x128xf32, #tpu.memory_space<vmem>>, vector<1x128x128xf32>
    %56 = vector.shape_cast %55 : vector<1x128x128xf32> to vector<128x128xf32>
    %cst_57 = arith.constant dense<0.000000e+00> : vector<64x128xf32>
    %57 = tpu.matmul %54, %56, %cst_57 {dimension_numbers = #tpu.dot_dimension_numbers<[1], [0], [0], [1], [0, 0, 1, 1], [], []>} : vector<64x128xf32>, vector<128x128xf32>, vector<64x128xf32> -> vector<64x128xf32>
    %58 = arith.addf %51, %57 : vector<64x128xf32>
    %c0_58 = arith.constant 0 : index
    %c2_59 = arith.constant 2 : index
    %c2_60 = arith.constant 2 : index
    %c0_61 = arith.constant 0 : index
    %59 = vector.load %arg1[%c0_58, %c2_59, %c2_60, %c0_61] : memref<1x18x18x128xf32, #tpu.memory_space<vmem>>, vector<1x4x16x128xf32>
    %60 = vector.shape_cast %59 : vector<1x4x16x128xf32> to vector<4x16x128xf32>
    %61 = vector.shape_cast %60 : vector<4x16x128xf32> to vector<64x128xf32>
    %c8 = arith.constant 8 : index
    %c0_62 = arith.constant 0 : index
    %c0_63 = arith.constant 0 : index
    %62 = vector.load %arg2[%c8, %c0_62, %c0_63] : memref<9x128x128xf32, #tpu.memory_space<vmem>>, vector<1x128x128xf32>
    %63 = vector.shape_cast %62 : vector<1x128x128xf32> to vector<128x128xf32>
    %cst_64 = arith.constant dense<0.000000e+00> : vector<64x128xf32>
    %64 = tpu.matmul %61, %63, %cst_64 {dimension_numbers = #tpu.dot_dimension_numbers<[1], [0], [0], [1], [0, 0, 1, 1], [], []>} : vector<64x128xf32>, vector<128x128xf32>, vector<64x128xf32> -> vector<64x128xf32>
    %65 = arith.addf %58, %64 : vector<64x128xf32>
    %c0_65 = arith.constant 0 : index
    %c0_66 = arith.constant 0 : index
    %66 = vector.load %arg3[%c0_65, %c0_66] : memref<1x128xf32, #tpu.memory_space<vmem>>, vector<1x128xf32>
    %67 = vector.broadcast %66 : vector<1x128xf32> to vector<64x128xf32>
    %68 = arith.addf %65, %67 : vector<64x128xf32>
    %c0_67 = arith.constant 0 : index
    %c0_68 = arith.constant 0 : index
    %69 = vector.load %arg4[%c0_67, %c0_68] : memref<256x128xf32, #tpu.memory_space<vmem>>, vector<64x128xf32>
    tpu.vector_store %arg4[%c0_67, %c0_68], %68 {strides = array<i32>} : memref<256x128xf32, #tpu.memory_space<vmem>>, vector<64x128xf32>,
    %cst_69 = arith.constant dense<0.000000e+00> : vector<128xf32>
    %70 = vector.multi_reduction <add>, %68, %cst_69 [0] : vector<64x128xf32> to vector<128xf32>
    %71 = vector.shape_cast %70 : vector<128xf32> to vector<1x128xf32>
    %72 = arith.addf %0, %71 : vector<1x128xf32>
    %73 = arith.mulf %68, %68 : vector<64x128xf32>
    %cst_70 = arith.constant dense<0.000000e+00> : vector<128xf32>
    %74 = vector.multi_reduction <add>, %73, %cst_70 [0] : vector<64x128xf32> to vector<128xf32>
    %75 = vector.shape_cast %74 : vector<128xf32> to vector<1x128xf32>
    %76 = arith.addf %1, %75 : vector<1x128xf32>
    %cst_71 = arith.constant 0.000000e+00 : f32
    %77 = vector.broadcast %cst_71 : f32 to vector<64x128xf32>
    %c0_72 = arith.constant 0 : index
    %c4_73 = arith.constant 4 : index
    %c0_74 = arith.constant 0 : index
    %c0_75 = arith.constant 0 : index
    %78 = vector.load %arg1[%c0_72, %c4_73, %c0_74, %c0_75] : memref<1x18x18x128xf32, #tpu.memory_space<vmem>>, vector<1x4x16x128xf32>
    %79 = vector.shape_cast %78 : vector<1x4x16x128xf32> to vector<4x16x128xf32>
    %80 = vector.shape_cast %79 : vector<4x16x128xf32> to vector<64x128xf32>
    %c0_76 = arith.constant 0 : index
    %c0_77 = arith.constant 0 : index
    %c0_78 = arith.constant 0 : index
    %81 = vector.load %arg2[%c0_76, %c0_77, %c0_78] : memref<9x128x128xf32, #tpu.memory_space<vmem>>, vector<1x128x128xf32>
    %82 = vector.shape_cast %81 : vector<1x128x128xf32> to vector<128x128xf32>
    %cst_79 = arith.constant dense<0.000000e+00> : vector<64x128xf32>
    %83 = tpu.matmul %80, %82, %cst_79 {dimension_numbers = #tpu.dot_dimension_numbers<[1], [0], [0], [1], [0, 0, 1, 1], [], []>} : vector<64x128xf32>, vector<128x128xf32>, vector<64x128xf32> -> vector<64x128xf32>
    %84 = arith.addf %77, %83 : vector<64x128xf32>
    %c0_80 = arith.constant 0 : index
    %c4_81 = arith.constant 4 : index
    %c1_82 = arith.constant 1 : index
    %c0_83 = arith.constant 0 : index
    %85 = vector.load %arg1[%c0_80, %c4_81, %c1_82, %c0_83] : memref<1x18x18x128xf32, #tpu.memory_space<vmem>>, vector<1x4x16x128xf32>
    %86 = vector.shape_cast %85 : vector<1x4x16x128xf32> to vector<4x16x128xf32>
    %87 = vector.shape_cast %86 : vector<4x16x128xf32> to vector<64x128xf32>
    %c1_84 = arith.constant 1 : index
    %c0_85 = arith.constant 0 : index
    %c0_86 = arith.constant 0 : index
    %88 = vector.load %arg2[%c1_84, %c0_85, %c0_86] : memref<9x128x128xf32, #tpu.memory_space<vmem>>, vector<1x128x128xf32>
    %89 = vector.shape_cast %88 : vector<1x128x128xf32> to vector<128x128xf32>
    %cst_87 = arith.constant dense<0.000000e+00> : vector<64x128xf32>
    %90 = tpu.matmul %87, %89, %cst_87 {dimension_numbers = #tpu.dot_dimension_numbers<[1], [0], [0], [1], [0, 0, 1, 1], [], []>} : vector<64x128xf32>, vector<128x128xf32>, vector<64x128xf32> -> vector<64x128xf32>
    %91 = arith.addf %84, %90 : vector<64x128xf32>
    %c0_88 = arith.constant 0 : index
    %c4_89 = arith.constant 4 : index
    %c2_90 = arith.constant 2 : index
    %c0_91 = arith.constant 0 : index
    %92 = vector.load %arg1[%c0_88, %c4_89, %c2_90, %c0_91] : memref<1x18x18x128xf32, #tpu.memory_space<vmem>>, vector<1x4x16x128xf32>
    %93 = vector.shape_cast %92 : vector<1x4x16x128xf32> to vector<4x16x128xf32>
    %94 = vector.shape_cast %93 : vector<4x16x128xf32> to vector<64x128xf32>
    %c2_92 = arith.constant 2 : index
    %c0_93 = arith.constant 0 : index
    %c0_94 = arith.constant 0 : index
    %95 = vector.load %arg2[%c2_92, %c0_93, %c0_94] : memref<9x128x128xf32, #tpu.memory_space<vmem>>, vector<1x128x128xf32>
    %96 = vector.shape_cast %95 : vector<1x128x128xf32> to vector<128x128xf32>
    %cst_95 = arith.constant dense<0.000000e+00> : vector<64x128xf32>
    %97 = tpu.matmul %94, %96, %cst_95 {dimension_numbers = #tpu.dot_dimension_numbers<[1], [0], [0], [1], [0, 0, 1, 1], [], []>} : vector<64x128xf32>, vector<128x128xf32>, vector<64x128xf32> -> vector<64x128xf32>
    %98 = arith.addf %91, %97 : vector<64x128xf32>
    %c0_96 = arith.constant 0 : index
    %c5_97 = arith.constant 5 : index
    %c0_98 = arith.constant 0 : index
    %c0_99 = arith.constant 0 : index
    %99 = vector.load %arg1[%c0_96, %c5_97, %c0_98, %c0_99] : memref<1x18x18x128xf32, #tpu.memory_space<vmem>>, vector<1x4x16x128xf32>
    %100 = vector.shape_cast %99 : vector<1x4x16x128xf32> to vector<4x16x128xf32>
    %101 = vector.shape_cast %100 : vector<4x16x128xf32> to vector<64x128xf32>
    %c3_100 = arith.constant 3 : index
    %c0_101 = arith.constant 0 : index
    %c0_102 = arith.constant 0 : index
    %102 = vector.load %arg2[%c3_100, %c0_101, %c0_102] : memref<9x128x128xf32, #tpu.memory_space<vmem>>, vector<1x128x128xf32>
    %103 = vector.shape_cast %102 : vector<1x128x128xf32> to vector<128x128xf32>
    %cst_103 = arith.constant dense<0.000000e+00> : vector<64x128xf32>
    %104 = tpu.matmul %101, %103, %cst_103 {dimension_numbers = #tpu.dot_dimension_numbers<[1], [0], [0], [1], [0, 0, 1, 1], [], []>} : vector<64x128xf32>, vector<128x128xf32>, vector<64x128xf32> -> vector<64x128xf32>
    %105 = arith.addf %98, %104 : vector<64x128xf32>
    %c0_104 = arith.constant 0 : index
    %c5_105 = arith.constant 5 : index
    %c1_106 = arith.constant 1 : index
    %c0_107 = arith.constant 0 : index
    %106 = vector.load %arg1[%c0_104, %c5_105, %c1_106, %c0_107] : memref<1x18x18x128xf32, #tpu.memory_space<vmem>>, vector<1x4x16x128xf32>
    %107 = vector.shape_cast %106 : vector<1x4x16x128xf32> to vector<4x16x128xf32>
    %108 = vector.shape_cast %107 : vector<4x16x128xf32> to vector<64x128xf32>
    %c4_108 = arith.constant 4 : index
    %c0_109 = arith.constant 0 : index
    %c0_110 = arith.constant 0 : index
    %109 = vector.load %arg2[%c4_108, %c0_109, %c0_110] : memref<9x128x128xf32, #tpu.memory_space<vmem>>, vector<1x128x128xf32>
    %110 = vector.shape_cast %109 : vector<1x128x128xf32> to vector<128x128xf32>
    %cst_111 = arith.constant dense<0.000000e+00> : vector<64x128xf32>
    %111 = tpu.matmul %108, %110, %cst_111 {dimension_numbers = #tpu.dot_dimension_numbers<[1], [0], [0], [1], [0, 0, 1, 1], [], []>} : vector<64x128xf32>, vector<128x128xf32>, vector<64x128xf32> -> vector<64x128xf32>
    %112 = arith.addf %105, %111 : vector<64x128xf32>
    %c0_112 = arith.constant 0 : index
    %c5_113 = arith.constant 5 : index
    %c2_114 = arith.constant 2 : index
    %c0_115 = arith.constant 0 : index
    %113 = vector.load %arg1[%c0_112, %c5_113, %c2_114, %c0_115] : memref<1x18x18x128xf32, #tpu.memory_space<vmem>>, vector<1x4x16x128xf32>
    %114 = vector.shape_cast %113 : vector<1x4x16x128xf32> to vector<4x16x128xf32>
    %115 = vector.shape_cast %114 : vector<4x16x128xf32> to vector<64x128xf32>
    %c5_116 = arith.constant 5 : index
    %c0_117 = arith.constant 0 : index
    %c0_118 = arith.constant 0 : index
    %116 = vector.load %arg2[%c5_116, %c0_117, %c0_118] : memref<9x128x128xf32, #tpu.memory_space<vmem>>, vector<1x128x128xf32>
    %117 = vector.shape_cast %116 : vector<1x128x128xf32> to vector<128x128xf32>
    %cst_119 = arith.constant dense<0.000000e+00> : vector<64x128xf32>
    %118 = tpu.matmul %115, %117, %cst_119 {dimension_numbers = #tpu.dot_dimension_numbers<[1], [0], [0], [1], [0, 0, 1, 1], [], []>} : vector<64x128xf32>, vector<128x128xf32>, vector<64x128xf32> -> vector<64x128xf32>
    %119 = arith.addf %112, %118 : vector<64x128xf32>
    %c0_120 = arith.constant 0 : index
    %c6_121 = arith.constant 6 : index
    %c0_122 = arith.constant 0 : index
    %c0_123 = arith.constant 0 : index
    %120 = vector.load %arg1[%c0_120, %c6_121, %c0_122, %c0_123] : memref<1x18x18x128xf32, #tpu.memory_space<vmem>>, vector<1x4x16x128xf32>
    %121 = vector.shape_cast %120 : vector<1x4x16x128xf32> to vector<4x16x128xf32>
    %122 = vector.shape_cast %121 : vector<4x16x128xf32> to vector<64x128xf32>
    %c6_124 = arith.constant 6 : index
    %c0_125 = arith.constant 0 : index
    %c0_126 = arith.constant 0 : index
    %123 = vector.load %arg2[%c6_124, %c0_125, %c0_126] : memref<9x128x128xf32, #tpu.memory_space<vmem>>, vector<1x128x128xf32>
    %124 = vector.shape_cast %123 : vector<1x128x128xf32> to vector<128x128xf32>
    %cst_127 = arith.constant dense<0.000000e+00> : vector<64x128xf32>
    %125 = tpu.matmul %122, %124, %cst_127 {dimension_numbers = #tpu.dot_dimension_numbers<[1], [0], [0], [1], [0, 0, 1, 1], [], []>} : vector<64x128xf32>, vector<128x128xf32>, vector<64x128xf32> -> vector<64x128xf32>
    %126 = arith.addf %119, %125 : vector<64x128xf32>
    %c0_128 = arith.constant 0 : index
    %c6_129 = arith.constant 6 : index
    %c1_130 = arith.constant 1 : index
    %c0_131 = arith.constant 0 : index
    %127 = vector.load %arg1[%c0_128, %c6_129, %c1_130, %c0_131] : memref<1x18x18x128xf32, #tpu.memory_space<vmem>>, vector<1x4x16x128xf32>
    %128 = vector.shape_cast %127 : vector<1x4x16x128xf32> to vector<4x16x128xf32>
    %129 = vector.shape_cast %128 : vector<4x16x128xf32> to vector<64x128xf32>
    %c7_132 = arith.constant 7 : index
    %c0_133 = arith.constant 0 : index
    %c0_134 = arith.constant 0 : index
    %130 = vector.load %arg2[%c7_132, %c0_133, %c0_134] : memref<9x128x128xf32, #tpu.memory_space<vmem>>, vector<1x128x128xf32>
    %131 = vector.shape_cast %130 : vector<1x128x128xf32> to vector<128x128xf32>
    %cst_135 = arith.constant dense<0.000000e+00> : vector<64x128xf32>
    %132 = tpu.matmul %129, %131, %cst_135 {dimension_numbers = #tpu.dot_dimension_numbers<[1], [0], [0], [1], [0, 0, 1, 1], [], []>} : vector<64x128xf32>, vector<128x128xf32>, vector<64x128xf32> -> vector<64x128xf32>
    %133 = arith.addf %126, %132 : vector<64x128xf32>
    %c0_136 = arith.constant 0 : index
    %c6_137 = arith.constant 6 : index
    %c2_138 = arith.constant 2 : index
    %c0_139 = arith.constant 0 : index
    %134 = vector.load %arg1[%c0_136, %c6_137, %c2_138, %c0_139] : memref<1x18x18x128xf32, #tpu.memory_space<vmem>>, vector<1x4x16x128xf32>
    %135 = vector.shape_cast %134 : vector<1x4x16x128xf32> to vector<4x16x128xf32>
    %136 = vector.shape_cast %135 : vector<4x16x128xf32> to vector<64x128xf32>
    %c8_140 = arith.constant 8 : index
    %c0_141 = arith.constant 0 : index
    %c0_142 = arith.constant 0 : index
    %137 = vector.load %arg2[%c8_140, %c0_141, %c0_142] : memref<9x128x128xf32, #tpu.memory_space<vmem>>, vector<1x128x128xf32>
    %138 = vector.shape_cast %137 : vector<1x128x128xf32> to vector<128x128xf32>
    %cst_143 = arith.constant dense<0.000000e+00> : vector<64x128xf32>
    %139 = tpu.matmul %136, %138, %cst_143 {dimension_numbers = #tpu.dot_dimension_numbers<[1], [0], [0], [1], [0, 0, 1, 1], [], []>} : vector<64x128xf32>, vector<128x128xf32>, vector<64x128xf32> -> vector<64x128xf32>
    %140 = arith.addf %133, %139 : vector<64x128xf32>
    %c0_144 = arith.constant 0 : index
    %c0_145 = arith.constant 0 : index
    %141 = vector.load %arg3[%c0_144, %c0_145] : memref<1x128xf32, #tpu.memory_space<vmem>>, vector<1x128xf32>
    %142 = vector.broadcast %141 : vector<1x128xf32> to vector<64x128xf32>
    %143 = arith.addf %140, %142 : vector<64x128xf32>
    %c64 = arith.constant 64 : index
    %c0_146 = arith.constant 0 : index
    %144 = vector.load %arg4[%c64, %c0_146] : memref<256x128xf32, #tpu.memory_space<vmem>>, vector<64x128xf32>
    tpu.vector_store %arg4[%c64, %c0_146], %143 {strides = array<i32>} : memref<256x128xf32, #tpu.memory_space<vmem>>, vector<64x128xf32>,
    %cst_147 = arith.constant dense<0.000000e+00> : vector<128xf32>
    %145 = vector.multi_reduction <add>, %143, %cst_147 [0] : vector<64x128xf32> to vector<128xf32>
    %146 = vector.shape_cast %145 : vector<128xf32> to vector<1x128xf32>
    %147 = arith.addf %72, %146 : vector<1x128xf32>
    %148 = arith.mulf %143, %143 : vector<64x128xf32>
    %cst_148 = arith.constant dense<0.000000e+00> : vector<128xf32>
    %149 = vector.multi_reduction <add>, %148, %cst_148 [0] : vector<64x128xf32> to vector<128xf32>
    %150 = vector.shape_cast %149 : vector<128xf32> to vector<1x128xf32>
    %151 = arith.addf %76, %150 : vector<1x128xf32>
    %cst_149 = arith.constant 0.000000e+00 : f32
    %152 = vector.broadcast %cst_149 : f32 to vector<64x128xf32>
    %c0_150 = arith.constant 0 : index
    %c8_151 = arith.constant 8 : index
    %c0_152 = arith.constant 0 : index
    %c0_153 = arith.constant 0 : index
    %153 = vector.load %arg1[%c0_150, %c8_151, %c0_152, %c0_153] : memref<1x18x18x128xf32, #tpu.memory_space<vmem>>, vector<1x4x16x128xf32>
    %154 = vector.shape_cast %153 : vector<1x4x16x128xf32> to vector<4x16x128xf32>
    %155 = vector.shape_cast %154 : vector<4x16x128xf32> to vector<64x128xf32>
    %c0_154 = arith.constant 0 : index
    %c0_155 = arith.constant 0 : index
    %c0_156 = arith.constant 0 : index
    %156 = vector.load %arg2[%c0_154, %c0_155, %c0_156] : memref<9x128x128xf32, #tpu.memory_space<vmem>>, vector<1x128x128xf32>
    %157 = vector.shape_cast %156 : vector<1x128x128xf32> to vector<128x128xf32>
    %cst_157 = arith.constant dense<0.000000e+00> : vector<64x128xf32>
    %158 = tpu.matmul %155, %157, %cst_157 {dimension_numbers = #tpu.dot_dimension_numbers<[1], [0], [0], [1], [0, 0, 1, 1], [], []>} : vector<64x128xf32>, vector<128x128xf32>, vector<64x128xf32> -> vector<64x128xf32>
    %159 = arith.addf %152, %158 : vector<64x128xf32>
    %c0_158 = arith.constant 0 : index
    %c8_159 = arith.constant 8 : index
    %c1_160 = arith.constant 1 : index
    %c0_161 = arith.constant 0 : index
    %160 = vector.load %arg1[%c0_158, %c8_159, %c1_160, %c0_161] : memref<1x18x18x128xf32, #tpu.memory_space<vmem>>, vector<1x4x16x128xf32>
    %161 = vector.shape_cast %160 : vector<1x4x16x128xf32> to vector<4x16x128xf32>
    %162 = vector.shape_cast %161 : vector<4x16x128xf32> to vector<64x128xf32>
    %c1_162 = arith.constant 1 : index
    %c0_163 = arith.constant 0 : index
    %c0_164 = arith.constant 0 : index
    %163 = vector.load %arg2[%c1_162, %c0_163, %c0_164] : memref<9x128x128xf32, #tpu.memory_space<vmem>>, vector<1x128x128xf32>
    %164 = vector.shape_cast %163 : vector<1x128x128xf32> to vector<128x128xf32>
    %cst_165 = arith.constant dense<0.000000e+00> : vector<64x128xf32>
    %165 = tpu.matmul %162, %164, %cst_165 {dimension_numbers = #tpu.dot_dimension_numbers<[1], [0], [0], [1], [0, 0, 1, 1], [], []>} : vector<64x128xf32>, vector<128x128xf32>, vector<64x128xf32> -> vector<64x128xf32>
    %166 = arith.addf %159, %165 : vector<64x128xf32>
    %c0_166 = arith.constant 0 : index
    %c8_167 = arith.constant 8 : index
    %c2_168 = arith.constant 2 : index
    %c0_169 = arith.constant 0 : index
    %167 = vector.load %arg1[%c0_166, %c8_167, %c2_168, %c0_169] : memref<1x18x18x128xf32, #tpu.memory_space<vmem>>, vector<1x4x16x128xf32>
    %168 = vector.shape_cast %167 : vector<1x4x16x128xf32> to vector<4x16x128xf32>
    %169 = vector.shape_cast %168 : vector<4x16x128xf32> to vector<64x128xf32>
    %c2_170 = arith.constant 2 : index
    %c0_171 = arith.constant 0 : index
    %c0_172 = arith.constant 0 : index
    %170 = vector.load %arg2[%c2_170, %c0_171, %c0_172] : memref<9x128x128xf32, #tpu.memory_space<vmem>>, vector<1x128x128xf32>
    %171 = vector.shape_cast %170 : vector<1x128x128xf32> to vector<128x128xf32>
    %cst_173 = arith.constant dense<0.000000e+00> : vector<64x128xf32>
    %172 = tpu.matmul %169, %171, %cst_173 {dimension_numbers = #tpu.dot_dimension_numbers<[1], [0], [0], [1], [0, 0, 1, 1], [], []>} : vector<64x128xf32>, vector<128x128xf32>, vector<64x128xf32> -> vector<64x128xf32>
    %173 = arith.addf %166, %172 : vector<64x128xf32>
    %c0_174 = arith.constant 0 : index
    %c9 = arith.constant 9 : index
    %c0_175 = arith.constant 0 : index
    %c0_176 = arith.constant 0 : index
    %174 = vector.load %arg1[%c0_174, %c9, %c0_175, %c0_176] : memref<1x18x18x128xf32, #tpu.memory_space<vmem>>, vector<1x4x16x128xf32>
    %175 = vector.shape_cast %174 : vector<1x4x16x128xf32> to vector<4x16x128xf32>
    %176 = vector.shape_cast %175 : vector<4x16x128xf32> to vector<64x128xf32>
    %c3_177 = arith.constant 3 : index
    %c0_178 = arith.constant 0 : index
    %c0_179 = arith.constant 0 : index
    %177 = vector.load %arg2[%c3_177, %c0_178, %c0_179] : memref<9x128x128xf32, #tpu.memory_space<vmem>>, vector<1x128x128xf32>
    %178 = vector.shape_cast %177 : vector<1x128x128xf32> to vector<128x128xf32>
    %cst_180 = arith.constant dense<0.000000e+00> : vector<64x128xf32>
    %179 = tpu.matmul %176, %178, %cst_180 {dimension_numbers = #tpu.dot_dimension_numbers<[1], [0], [0], [1], [0, 0, 1, 1], [], []>} : vector<64x128xf32>, vector<128x128xf32>, vector<64x128xf32> -> vector<64x128xf32>
    %180 = arith.addf %173, %179 : vector<64x128xf32>
    %c0_181 = arith.constant 0 : index
    %c9_182 = arith.constant 9 : index
    %c1_183 = arith.constant 1 : index
    %c0_184 = arith.constant 0 : index
    %181 = vector.load %arg1[%c0_181, %c9_182, %c1_183, %c0_184] : memref<1x18x18x128xf32, #tpu.memory_space<vmem>>, vector<1x4x16x128xf32>
    %182 = vector.shape_cast %181 : vector<1x4x16x128xf32> to vector<4x16x128xf32>
    %183 = vector.shape_cast %182 : vector<4x16x128xf32> to vector<64x128xf32>
    %c4_185 = arith.constant 4 : index
    %c0_186 = arith.constant 0 : index
    %c0_187 = arith.constant 0 : index
    %184 = vector.load %arg2[%c4_185, %c0_186, %c0_187] : memref<9x128x128xf32, #tpu.memory_space<vmem>>, vector<1x128x128xf32>
    %185 = vector.shape_cast %184 : vector<1x128x128xf32> to vector<128x128xf32>
    %cst_188 = arith.constant dense<0.000000e+00> : vector<64x128xf32>
    %186 = tpu.matmul %183, %185, %cst_188 {dimension_numbers = #tpu.dot_dimension_numbers<[1], [0], [0], [1], [0, 0, 1, 1], [], []>} : vector<64x128xf32>, vector<128x128xf32>, vector<64x128xf32> -> vector<64x128xf32>
    %187 = arith.addf %180, %186 : vector<64x128xf32>
    %c0_189 = arith.constant 0 : index
    %c9_190 = arith.constant 9 : index
    %c2_191 = arith.constant 2 : index
    %c0_192 = arith.constant 0 : index
    %188 = vector.load %arg1[%c0_189, %c9_190, %c2_191, %c0_192] : memref<1x18x18x128xf32, #tpu.memory_space<vmem>>, vector<1x4x16x128xf32>
    %189 = vector.shape_cast %188 : vector<1x4x16x128xf32> to vector<4x16x128xf32>
    %190 = vector.shape_cast %189 : vector<4x16x128xf32> to vector<64x128xf32>
    %c5_193 = arith.constant 5 : index
    %c0_194 = arith.constant 0 : index
    %c0_195 = arith.constant 0 : index
    %191 = vector.load %arg2[%c5_193, %c0_194, %c0_195] : memref<9x128x128xf32, #tpu.memory_space<vmem>>, vector<1x128x128xf32>
    %192 = vector.shape_cast %191 : vector<1x128x128xf32> to vector<128x128xf32>
    %cst_196 = arith.constant dense<0.000000e+00> : vector<64x128xf32>
    %193 = tpu.matmul %190, %192, %cst_196 {dimension_numbers = #tpu.dot_dimension_numbers<[1], [0], [0], [1], [0, 0, 1, 1], [], []>} : vector<64x128xf32>, vector<128x128xf32>, vector<64x128xf32> -> vector<64x128xf32>
    %194 = arith.addf %187, %193 : vector<64x128xf32>
    %c0_197 = arith.constant 0 : index
    %c10 = arith.constant 10 : index
    %c0_198 = arith.constant 0 : index
    %c0_199 = arith.constant 0 : index
    %195 = vector.load %arg1[%c0_197, %c10, %c0_198, %c0_199] : memref<1x18x18x128xf32, #tpu.memory_space<vmem>>, vector<1x4x16x128xf32>
    %196 = vector.shape_cast %195 : vector<1x4x16x128xf32> to vector<4x16x128xf32>
    %197 = vector.shape_cast %196 : vector<4x16x128xf32> to vector<64x128xf32>
    %c6_200 = arith.constant 6 : index
    %c0_201 = arith.constant 0 : index
    %c0_202 = arith.constant 0 : index
    %198 = vector.load %arg2[%c6_200, %c0_201, %c0_202] : memref<9x128x128xf32, #tpu.memory_space<vmem>>, vector<1x128x128xf32>
    %199 = vector.shape_cast %198 : vector<1x128x128xf32> to vector<128x128xf32>
    %cst_203 = arith.constant dense<0.000000e+00> : vector<64x128xf32>
    %200 = tpu.matmul %197, %199, %cst_203 {dimension_numbers = #tpu.dot_dimension_numbers<[1], [0], [0], [1], [0, 0, 1, 1], [], []>} : vector<64x128xf32>, vector<128x128xf32>, vector<64x128xf32> -> vector<64x128xf32>
    %201 = arith.addf %194, %200 : vector<64x128xf32>
    %c0_204 = arith.constant 0 : index
    %c10_205 = arith.constant 10 : index
    %c1_206 = arith.constant 1 : index
    %c0_207 = arith.constant 0 : index
    %202 = vector.load %arg1[%c0_204, %c10_205, %c1_206, %c0_207] : memref<1x18x18x128xf32, #tpu.memory_space<vmem>>, vector<1x4x16x128xf32>
    %203 = vector.shape_cast %202 : vector<1x4x16x128xf32> to vector<4x16x128xf32>
    %204 = vector.shape_cast %203 : vector<4x16x128xf32> to vector<64x128xf32>
    %c7_208 = arith.constant 7 : index
    %c0_209 = arith.constant 0 : index
    %c0_210 = arith.constant 0 : index
    %205 = vector.load %arg2[%c7_208, %c0_209, %c0_210] : memref<9x128x128xf32, #tpu.memory_space<vmem>>, vector<1x128x128xf32>
    %206 = vector.shape_cast %205 : vector<1x128x128xf32> to vector<128x128xf32>
    %cst_211 = arith.constant dense<0.000000e+00> : vector<64x128xf32>
    %207 = tpu.matmul %204, %206, %cst_211 {dimension_numbers = #tpu.dot_dimension_numbers<[1], [0], [0], [1], [0, 0, 1, 1], [], []>} : vector<64x128xf32>, vector<128x128xf32>, vector<64x128xf32> -> vector<64x128xf32>
    %208 = arith.addf %201, %207 : vector<64x128xf32>
    %c0_212 = arith.constant 0 : index
    %c10_213 = arith.constant 10 : index
    %c2_214 = arith.constant 2 : index
    %c0_215 = arith.constant 0 : index
    %209 = vector.load %arg1[%c0_212, %c10_213, %c2_214, %c0_215] : memref<1x18x18x128xf32, #tpu.memory_space<vmem>>, vector<1x4x16x128xf32>
    %210 = vector.shape_cast %209 : vector<1x4x16x128xf32> to vector<4x16x128xf32>
    %211 = vector.shape_cast %210 : vector<4x16x128xf32> to vector<64x128xf32>
    %c8_216 = arith.constant 8 : index
    %c0_217 = arith.constant 0 : index
    %c0_218 = arith.constant 0 : index
    %212 = vector.load %arg2[%c8_216, %c0_217, %c0_218] : memref<9x128x128xf32, #tpu.memory_space<vmem>>, vector<1x128x128xf32>
    %213 = vector.shape_cast %212 : vector<1x128x128xf32> to vector<128x128xf32>
    %cst_219 = arith.constant dense<0.000000e+00> : vector<64x128xf32>
    %214 = tpu.matmul %211, %213, %cst_219 {dimension_numbers = #tpu.dot_dimension_numbers<[1], [0], [0], [1], [0, 0, 1, 1], [], []>} : vector<64x128xf32>, vector<128x128xf32>, vector<64x128xf32> -> vector<64x128xf32>
    %215 = arith.addf %208, %214 : vector<64x128xf32>
    %c0_220 = arith.constant 0 : index
    %c0_221 = arith.constant 0 : index
    %216 = vector.load %arg3[%c0_220, %c0_221] : memref<1x128xf32, #tpu.memory_space<vmem>>, vector<1x128xf32>
    %217 = vector.broadcast %216 : vector<1x128xf32> to vector<64x128xf32>
    %218 = arith.addf %215, %217 : vector<64x128xf32>
    %c128 = arith.constant 128 : index
    %c0_222 = arith.constant 0 : index
    %219 = vector.load %arg4[%c128, %c0_222] : memref<256x128xf32, #tpu.memory_space<vmem>>, vector<64x128xf32>
    tpu.vector_store %arg4[%c128, %c0_222], %218 {strides = array<i32>} : memref<256x128xf32, #tpu.memory_space<vmem>>, vector<64x128xf32>,
    %cst_223 = arith.constant dense<0.000000e+00> : vector<128xf32>
    %220 = vector.multi_reduction <add>, %218, %cst_223 [0] : vector<64x128xf32> to vector<128xf32>
    %221 = vector.shape_cast %220 : vector<128xf32> to vector<1x128xf32>
    %222 = arith.addf %147, %221 : vector<1x128xf32>
    %223 = arith.mulf %218, %218 : vector<64x128xf32>
    %cst_224 = arith.constant dense<0.000000e+00> : vector<128xf32>
    %224 = vector.multi_reduction <add>, %223, %cst_224 [0] : vector<64x128xf32> to vector<128xf32>
    %225 = vector.shape_cast %224 : vector<128xf32> to vector<1x128xf32>
    %226 = arith.addf %151, %225 : vector<1x128xf32>
    %cst_225 = arith.constant 0.000000e+00 : f32
    %227 = vector.broadcast %cst_225 : f32 to vector<64x128xf32>
    %c0_226 = arith.constant 0 : index
    %c12 = arith.constant 12 : index
    %c0_227 = arith.constant 0 : index
    %c0_228 = arith.constant 0 : index
    %228 = vector.load %arg1[%c0_226, %c12, %c0_227, %c0_228] : memref<1x18x18x128xf32, #tpu.memory_space<vmem>>, vector<1x4x16x128xf32>
    %229 = vector.shape_cast %228 : vector<1x4x16x128xf32> to vector<4x16x128xf32>
    %230 = vector.shape_cast %229 : vector<4x16x128xf32> to vector<64x128xf32>
    %c0_229 = arith.constant 0 : index
    %c0_230 = arith.constant 0 : index
    %c0_231 = arith.constant 0 : index
    %231 = vector.load %arg2[%c0_229, %c0_230, %c0_231] : memref<9x128x128xf32, #tpu.memory_space<vmem>>, vector<1x128x128xf32>
    %232 = vector.shape_cast %231 : vector<1x128x128xf32> to vector<128x128xf32>
    %cst_232 = arith.constant dense<0.000000e+00> : vector<64x128xf32>
    %233 = tpu.matmul %230, %232, %cst_232 {dimension_numbers = #tpu.dot_dimension_numbers<[1], [0], [0], [1], [0, 0, 1, 1], [], []>} : vector<64x128xf32>, vector<128x128xf32>, vector<64x128xf32> -> vector<64x128xf32>
    %234 = arith.addf %227, %233 : vector<64x128xf32>
    %c0_233 = arith.constant 0 : index
    %c12_234 = arith.constant 12 : index
    %c1_235 = arith.constant 1 : index
    %c0_236 = arith.constant 0 : index
    %235 = vector.load %arg1[%c0_233, %c12_234, %c1_235, %c0_236] : memref<1x18x18x128xf32, #tpu.memory_space<vmem>>, vector<1x4x16x128xf32>
    %236 = vector.shape_cast %235 : vector<1x4x16x128xf32> to vector<4x16x128xf32>
    %237 = vector.shape_cast %236 : vector<4x16x128xf32> to vector<64x128xf32>
    %c1_237 = arith.constant 1 : index
    %c0_238 = arith.constant 0 : index
    %c0_239 = arith.constant 0 : index
    %238 = vector.load %arg2[%c1_237, %c0_238, %c0_239] : memref<9x128x128xf32, #tpu.memory_space<vmem>>, vector<1x128x128xf32>
    %239 = vector.shape_cast %238 : vector<1x128x128xf32> to vector<128x128xf32>
    %cst_240 = arith.constant dense<0.000000e+00> : vector<64x128xf32>
    %240 = tpu.matmul %237, %239, %cst_240 {dimension_numbers = #tpu.dot_dimension_numbers<[1], [0], [0], [1], [0, 0, 1, 1], [], []>} : vector<64x128xf32>, vector<128x128xf32>, vector<64x128xf32> -> vector<64x128xf32>
    %241 = arith.addf %234, %240 : vector<64x128xf32>
    %c0_241 = arith.constant 0 : index
    %c12_242 = arith.constant 12 : index
    %c2_243 = arith.constant 2 : index
    %c0_244 = arith.constant 0 : index
    %242 = vector.load %arg1[%c0_241, %c12_242, %c2_243, %c0_244] : memref<1x18x18x128xf32, #tpu.memory_space<vmem>>, vector<1x4x16x128xf32>
    %243 = vector.shape_cast %242 : vector<1x4x16x128xf32> to vector<4x16x128xf32>
    %244 = vector.shape_cast %243 : vector<4x16x128xf32> to vector<64x128xf32>
    %c2_245 = arith.constant 2 : index
    %c0_246 = arith.constant 0 : index
    %c0_247 = arith.constant 0 : index
    %245 = vector.load %arg2[%c2_245, %c0_246, %c0_247] : memref<9x128x128xf32, #tpu.memory_space<vmem>>, vector<1x128x128xf32>
    %246 = vector.shape_cast %245 : vector<1x128x128xf32> to vector<128x128xf32>
    %cst_248 = arith.constant dense<0.000000e+00> : vector<64x128xf32>
    %247 = tpu.matmul %244, %246, %cst_248 {dimension_numbers = #tpu.dot_dimension_numbers<[1], [0], [0], [1], [0, 0, 1, 1], [], []>} : vector<64x128xf32>, vector<128x128xf32>, vector<64x128xf32> -> vector<64x128xf32>
    %248 = arith.addf %241, %247 : vector<64x128xf32>
    %c0_249 = arith.constant 0 : index
    %c13 = arith.constant 13 : index
    %c0_250 = arith.constant 0 : index
    %c0_251 = arith.constant 0 : index
    %249 = vector.load %arg1[%c0_249, %c13, %c0_250, %c0_251] : memref<1x18x18x128xf32, #tpu.memory_space<vmem>>, vector<1x4x16x128xf32>
    %250 = vector.shape_cast %249 : vector<1x4x16x128xf32> to vector<4x16x128xf32>
    %251 = vector.shape_cast %250 : vector<4x16x128xf32> to vector<64x128xf32>
    %c3_252 = arith.constant 3 : index
    %c0_253 = arith.constant 0 : index
    %c0_254 = arith.constant 0 : index
    %252 = vector.load %arg2[%c3_252, %c0_253, %c0_254] : memref<9x128x128xf32, #tpu.memory_space<vmem>>, vector<1x128x128xf32>
    %253 = vector.shape_cast %252 : vector<1x128x128xf32> to vector<128x128xf32>
    %cst_255 = arith.constant dense<0.000000e+00> : vector<64x128xf32>
    %254 = tpu.matmul %251, %253, %cst_255 {dimension_numbers = #tpu.dot_dimension_numbers<[1], [0], [0], [1], [0, 0, 1, 1], [], []>} : vector<64x128xf32>, vector<128x128xf32>, vector<64x128xf32> -> vector<64x128xf32>
    %255 = arith.addf %248, %254 : vector<64x128xf32>
    %c0_256 = arith.constant 0 : index
    %c13_257 = arith.constant 13 : index
    %c1_258 = arith.constant 1 : index
    %c0_259 = arith.constant 0 : index
    %256 = vector.load %arg1[%c0_256, %c13_257, %c1_258, %c0_259] : memref<1x18x18x128xf32, #tpu.memory_space<vmem>>, vector<1x4x16x128xf32>
    %257 = vector.shape_cast %256 : vector<1x4x16x128xf32> to vector<4x16x128xf32>
    %258 = vector.shape_cast %257 : vector<4x16x128xf32> to vector<64x128xf32>
    %c4_260 = arith.constant 4 : index
    %c0_261 = arith.constant 0 : index
    %c0_262 = arith.constant 0 : index
    %259 = vector.load %arg2[%c4_260, %c0_261, %c0_262] : memref<9x128x128xf32, #tpu.memory_space<vmem>>, vector<1x128x128xf32>
    %260 = vector.shape_cast %259 : vector<1x128x128xf32> to vector<128x128xf32>
    %cst_263 = arith.constant dense<0.000000e+00> : vector<64x128xf32>
    %261 = tpu.matmul %258, %260, %cst_263 {dimension_numbers = #tpu.dot_dimension_numbers<[1], [0], [0], [1], [0, 0, 1, 1], [], []>} : vector<64x128xf32>, vector<128x128xf32>, vector<64x128xf32> -> vector<64x128xf32>
    %262 = arith.addf %255, %261 : vector<64x128xf32>
    %c0_264 = arith.constant 0 : index
    %c13_265 = arith.constant 13 : index
    %c2_266 = arith.constant 2 : index
    %c0_267 = arith.constant 0 : index
    %263 = vector.load %arg1[%c0_264, %c13_265, %c2_266, %c0_267] : memref<1x18x18x128xf32, #tpu.memory_space<vmem>>, vector<1x4x16x128xf32>
    %264 = vector.shape_cast %263 : vector<1x4x16x128xf32> to vector<4x16x128xf32>
    %265 = vector.shape_cast %264 : vector<4x16x128xf32> to vector<64x128xf32>
    %c5_268 = arith.constant 5 : index
    %c0_269 = arith.constant 0 : index
    %c0_270 = arith.constant 0 : index
    %266 = vector.load %arg2[%c5_268, %c0_269, %c0_270] : memref<9x128x128xf32, #tpu.memory_space<vmem>>, vector<1x128x128xf32>
    %267 = vector.shape_cast %266 : vector<1x128x128xf32> to vector<128x128xf32>
    %cst_271 = arith.constant dense<0.000000e+00> : vector<64x128xf32>
    %268 = tpu.matmul %265, %267, %cst_271 {dimension_numbers = #tpu.dot_dimension_numbers<[1], [0], [0], [1], [0, 0, 1, 1], [], []>} : vector<64x128xf32>, vector<128x128xf32>, vector<64x128xf32> -> vector<64x128xf32>
    %269 = arith.addf %262, %268 : vector<64x128xf32>
    %c0_272 = arith.constant 0 : index
    %c14 = arith.constant 14 : index
    %c0_273 = arith.constant 0 : index
    %c0_274 = arith.constant 0 : index
    %270 = vector.load %arg1[%c0_272, %c14, %c0_273, %c0_274] : memref<1x18x18x128xf32, #tpu.memory_space<vmem>>, vector<1x4x16x128xf32>
    %271 = vector.shape_cast %270 : vector<1x4x16x128xf32> to vector<4x16x128xf32>
    %272 = vector.shape_cast %271 : vector<4x16x128xf32> to vector<64x128xf32>
    %c6_275 = arith.constant 6 : index
    %c0_276 = arith.constant 0 : index
    %c0_277 = arith.constant 0 : index
    %273 = vector.load %arg2[%c6_275, %c0_276, %c0_277] : memref<9x128x128xf32, #tpu.memory_space<vmem>>, vector<1x128x128xf32>
    %274 = vector.shape_cast %273 : vector<1x128x128xf32> to vector<128x128xf32>
    %cst_278 = arith.constant dense<0.000000e+00> : vector<64x128xf32>
    %275 = tpu.matmul %272, %274, %cst_278 {dimension_numbers = #tpu.dot_dimension_numbers<[1], [0], [0], [1], [0, 0, 1, 1], [], []>} : vector<64x128xf32>, vector<128x128xf32>, vector<64x128xf32> -> vector<64x128xf32>
    %276 = arith.addf %269, %275 : vector<64x128xf32>
    %c0_279 = arith.constant 0 : index
    %c14_280 = arith.constant 14 : index
    %c1_281 = arith.constant 1 : index
    %c0_282 = arith.constant 0 : index
    %277 = vector.load %arg1[%c0_279, %c14_280, %c1_281, %c0_282] : memref<1x18x18x128xf32, #tpu.memory_space<vmem>>, vector<1x4x16x128xf32>
    %278 = vector.shape_cast %277 : vector<1x4x16x128xf32> to vector<4x16x128xf32>
    %279 = vector.shape_cast %278 : vector<4x16x128xf32> to vector<64x128xf32>
    %c7_283 = arith.constant 7 : index
    %c0_284 = arith.constant 0 : index
    %c0_285 = arith.constant 0 : index
    %280 = vector.load %arg2[%c7_283, %c0_284, %c0_285] : memref<9x128x128xf32, #tpu.memory_space<vmem>>, vector<1x128x128xf32>
    %281 = vector.shape_cast %280 : vector<1x128x128xf32> to vector<128x128xf32>
    %cst_286 = arith.constant dense<0.000000e+00> : vector<64x128xf32>
    %282 = tpu.matmul %279, %281, %cst_286 {dimension_numbers = #tpu.dot_dimension_numbers<[1], [0], [0], [1], [0, 0, 1, 1], [], []>} : vector<64x128xf32>, vector<128x128xf32>, vector<64x128xf32> -> vector<64x128xf32>
    %283 = arith.addf %276, %282 : vector<64x128xf32>
    %c0_287 = arith.constant 0 : index
    %c14_288 = arith.constant 14 : index
    %c2_289 = arith.constant 2 : index
    %c0_290 = arith.constant 0 : index
    %284 = vector.load %arg1[%c0_287, %c14_288, %c2_289, %c0_290] : memref<1x18x18x128xf32, #tpu.memory_space<vmem>>, vector<1x4x16x128xf32>
    %285 = vector.shape_cast %284 : vector<1x4x16x128xf32> to vector<4x16x128xf32>
    %286 = vector.shape_cast %285 : vector<4x16x128xf32> to vector<64x128xf32>
    %c8_291 = arith.constant 8 : index
    %c0_292 = arith.constant 0 : index
    %c0_293 = arith.constant 0 : index
    %287 = vector.load %arg2[%c8_291, %c0_292, %c0_293] : memref<9x128x128xf32, #tpu.memory_space<vmem>>, vector<1x128x128xf32>
    %288 = vector.shape_cast %287 : vector<1x128x128xf32> to vector<128x128xf32>
    %cst_294 = arith.constant dense<0.000000e+00> : vector<64x128xf32>
    %289 = tpu.matmul %286, %288, %cst_294 {dimension_numbers = #tpu.dot_dimension_numbers<[1], [0], [0], [1], [0, 0, 1, 1], [], []>} : vector<64x128xf32>, vector<128x128xf32>, vector<64x128xf32> -> vector<64x128xf32>
    %290 = arith.addf %283, %289 : vector<64x128xf32>
    %c0_295 = arith.constant 0 : index
    %c0_296 = arith.constant 0 : index
    %291 = vector.load %arg3[%c0_295, %c0_296] : memref<1x128xf32, #tpu.memory_space<vmem>>, vector<1x128xf32>
    %292 = vector.broadcast %291 : vector<1x128xf32> to vector<64x128xf32>
    %293 = arith.addf %290, %292 : vector<64x128xf32>
    %c192 = arith.constant 192 : index
    %c0_297 = arith.constant 0 : index
    %294 = vector.load %arg4[%c192, %c0_297] : memref<256x128xf32, #tpu.memory_space<vmem>>, vector<64x128xf32>
    tpu.vector_store %arg4[%c192, %c0_297], %293 {strides = array<i32>} : memref<256x128xf32, #tpu.memory_space<vmem>>, vector<64x128xf32>,
    %cst_298 = arith.constant dense<0.000000e+00> : vector<128xf32>
    %295 = vector.multi_reduction <add>, %293, %cst_298 [0] : vector<64x128xf32> to vector<128xf32>
    %296 = vector.shape_cast %295 : vector<128xf32> to vector<1x128xf32>
    %297 = arith.addf %222, %296 : vector<1x128xf32>
    %298 = arith.mulf %293, %293 : vector<64x128xf32>
    %cst_299 = arith.constant dense<0.000000e+00> : vector<128xf32>
    %299 = vector.multi_reduction <add>, %298, %cst_299 [0] : vector<64x128xf32> to vector<128xf32>
    %300 = vector.shape_cast %299 : vector<128xf32> to vector<1x128xf32>
    %301 = arith.addf %226, %300 : vector<1x128xf32>
    %c0_300 = arith.constant 0 : index
    %c0_301 = arith.constant 0 : index
    %c0_302 = arith.constant 0 : index
    %302 = vector.load %arg5[%c0_300, %c0_301, %c0_302] : memref<1x2x128xf32, #tpu.memory_space<vmem>>, vector<1x1x128xf32>
    %303 = vector.shape_cast %302 : vector<1x1x128xf32> to vector<1x128xf32>
    %304 = vector.shape_cast %297 : vector<1x128xf32> to vector<1x1x128xf32>
    tpu.vector_store %arg5[%c0_300, %c0_301, %c0_302], %304 {strides = array<i32>} : memref<1x2x128xf32, #tpu.memory_space<vmem>>, vector<1x1x128xf32>,
    %c0_303 = arith.constant 0 : index
    %c1_304 = arith.constant 1 : index
    %c0_305 = arith.constant 0 : index
    %305 = vector.load %arg5[%c0_303, %c1_304, %c0_305] : memref<1x2x128xf32, #tpu.memory_space<vmem>>, vector<1x1x128xf32>
    %306 = vector.shape_cast %305 : vector<1x1x128xf32> to vector<1x128xf32>
    %307 = vector.shape_cast %301 : vector<1x128xf32> to vector<1x1x128xf32>
    tpu.vector_store %arg5[%c0_303, %c1_304, %c0_305], %307 {strides = array<i32>} : memref<1x2x128xf32, #tpu.memory_space<vmem>>, vector<1x1x128xf32>,
    return
  }
  func.func @transform_0(%arg0: i32) -> (i32, i32, i32, i32) {
    %c0_i32 = arith.constant 0 : i32
    %c0_i32_0 = arith.constant 0 : i32
    %c0_i32_1 = arith.constant 0 : i32
    %c0_i32_2 = arith.constant 0 : i32
    return %arg0, %c0_i32, %c0_i32_0, %c0_i32_1 : i32, i32, i32, i32
  }
  func.func @transform_1(%arg0: i32) -> (i32, i32, i32) {
    %c0_i32 = arith.constant 0 : i32
    %c0_i32_0 = arith.constant 0 : i32
    %c0_i32_1 = arith.constant 0 : i32
    %c0_i32_2 = arith.constant 0 : i32
    return %c0_i32, %c0_i32_0, %c0_i32_1 : i32, i32, i32
  }
  func.func @transform_2(%arg0: i32) -> (i32, i32) {
    %c0_i32 = arith.constant 0 : i32
    %c0_i32_0 = arith.constant 0 : i32
    %c0_i32_1 = arith.constant 0 : i32
    return %c0_i32, %c0_i32_0 : i32, i32
  }
  func.func @transform_3(%arg0: i32) -> (i32, i32) {
    %c0_i32 = arith.constant 0 : i32
    %c0_i32_0 = arith.constant 0 : i32
    return %arg0, %c0_i32 : i32, i32
  }
  func.func @transform_4(%arg0: i32) -> (i32, i32, i32) {
    %c0_i32 = arith.constant 0 : i32
    %c0_i32_0 = arith.constant 0 : i32
    %c0_i32_1 = arith.constant 0 : i32
    return %arg0, %c0_i32, %c0_i32_0 : i32, i32, i32
  }
}

module attributes {stable_mosaic.version = 11 : i64} {
  func.func @_affine_relu_kernel(%arg0: i32, %arg1: memref<256x128xf32, #tpu.memory_space<vmem>>, %arg2: memref<1x128xf32, #tpu.memory_space<vmem>>, %arg3: memref<1x128xf32, #tpu.memory_space<vmem>>, %arg4: memref<256x128xf32, #tpu.memory_space<vmem>>) attributes {dimension_semantics = [#tpu.dimension_semantics<parallel>], iteration_bounds = array<i64: 2>, scalar_prefetch = 0 : i64, scratch_operands = 0 : i64, tpu.core_type = #tpu.core_type<tc>, window_params = [{transform_indices = @transform_0, window_bounds = array<i64: 256, 128>}, {pipeline_mode = #tpu.pipeline_mode<synchronous>, transform_indices = @transform_1, window_bounds = array<i64: 1, 128>}, {pipeline_mode = #tpu.pipeline_mode<synchronous>, transform_indices = @transform_2, window_bounds = array<i64: 1, 128>}, {transform_indices = @transform_3, window_bounds = array<i64: 256, 128>}]} {
    %c0 = arith.constant 0 : index
    %c0_0 = arith.constant 0 : index
    %0 = vector.load %arg1[%c0, %c0_0] : memref<256x128xf32, #tpu.memory_space<vmem>>, vector<256x128xf32>
    %c0_1 = arith.constant 0 : index
    %c0_2 = arith.constant 0 : index
    %1 = vector.load %arg2[%c0_1, %c0_2] : memref<1x128xf32, #tpu.memory_space<vmem>>, vector<1x128xf32>
    %2 = vector.broadcast %1 : vector<1x128xf32> to vector<256x128xf32>
    %3 = arith.mulf %0, %2 : vector<256x128xf32>
    %c0_3 = arith.constant 0 : index
    %c0_4 = arith.constant 0 : index
    %4 = vector.load %arg3[%c0_3, %c0_4] : memref<1x128xf32, #tpu.memory_space<vmem>>, vector<1x128xf32>
    %5 = vector.broadcast %4 : vector<1x128xf32> to vector<256x128xf32>
    %6 = arith.addf %3, %5 : vector<256x128xf32>
    %cst = arith.constant 0.000000e+00 : f32
    %7 = vector.broadcast %cst : f32 to vector<256x128xf32>
    %8 = arith.maximumf %6, %7 : vector<256x128xf32>
    %c0_5 = arith.constant 0 : index
    %c0_6 = arith.constant 0 : index
    %9 = vector.load %arg4[%c0_5, %c0_6] : memref<256x128xf32, #tpu.memory_space<vmem>>, vector<256x128xf32>
    tpu.vector_store %arg4[%c0_5, %c0_6], %8 {strides = array<i32>} : memref<256x128xf32, #tpu.memory_space<vmem>>, vector<256x128xf32>,
    return
  }
  func.func @transform_0(%arg0: i32) -> (i32, i32) {
    %c0_i32 = arith.constant 0 : i32
    %c0_i32_0 = arith.constant 0 : i32
    return %arg0, %c0_i32 : i32, i32
  }
  func.func @transform_1(%arg0: i32) -> (i32, i32) {
    %c0_i32 = arith.constant 0 : i32
    %c0_i32_0 = arith.constant 0 : i32
    %c0_i32_1 = arith.constant 0 : i32
    return %c0_i32, %c0_i32_0 : i32, i32
  }
  func.func @transform_2(%arg0: i32) -> (i32, i32) {
    %c0_i32 = arith.constant 0 : i32
    %c0_i32_0 = arith.constant 0 : i32
    %c0_i32_1 = arith.constant 0 : i32
    return %c0_i32, %c0_i32_0 : i32, i32
  }
  func.func @transform_3(%arg0: i32) -> (i32, i32) {
    %c0_i32 = arith.constant 0 : i32
    %c0_i32_0 = arith.constant 0 : i32
    return %arg0, %c0_i32 : i32, i32
  }
}

module attributes {stable_mosaic.version = 11 : i64} {
  func.func @_conv_kernel(%arg0: i32, %arg1: memref<1x18x18x128xf32, #tpu.memory_space<vmem>>, %arg2: memref<9x128x128xf32, #tpu.memory_space<vmem>>, %arg3: memref<256x128xf32, #tpu.memory_space<vmem>>, %arg4: memref<1x2x128xf32, #tpu.memory_space<vmem>>) attributes {dimension_semantics = [#tpu.dimension_semantics<parallel>], iteration_bounds = array<i64: 2>, scalar_prefetch = 0 : i64, scratch_operands = 0 : i64, tpu.core_type = #tpu.core_type<tc>, window_params = [{transform_indices = @transform_0, window_bounds = array<i64: 1, 18, 18, 128>}, {pipeline_mode = #tpu.pipeline_mode<synchronous>, transform_indices = @transform_1, window_bounds = array<i64: 9, 128, 128>}, {transform_indices = @transform_2, window_bounds = array<i64: 256, 128>}, {transform_indices = @transform_3, window_bounds = array<i64: 1, 2, 128>}]} {
    %cst = arith.constant 0.000000e+00 : f32
    %0 = vector.broadcast %cst : f32 to vector<1x128xf32>
    %cst_0 = arith.constant 0.000000e+00 : f32
    %1 = vector.broadcast %cst_0 : f32 to vector<1x128xf32>
    %cst_1 = arith.constant 0.000000e+00 : f32
    %2 = vector.broadcast %cst_1 : f32 to vector<64x128xf32>
    %c0 = arith.constant 0 : index
    %c0_2 = arith.constant 0 : index
    %c0_3 = arith.constant 0 : index
    %c0_4 = arith.constant 0 : index
    %3 = vector.load %arg1[%c0, %c0_2, %c0_3, %c0_4] : memref<1x18x18x128xf32, #tpu.memory_space<vmem>>, vector<1x4x16x128xf32>
    %4 = vector.shape_cast %3 : vector<1x4x16x128xf32> to vector<4x16x128xf32>
    %5 = vector.shape_cast %4 : vector<4x16x128xf32> to vector<64x128xf32>
    %c0_5 = arith.constant 0 : index
    %c0_6 = arith.constant 0 : index
    %c0_7 = arith.constant 0 : index
    %6 = vector.load %arg2[%c0_5, %c0_6, %c0_7] : memref<9x128x128xf32, #tpu.memory_space<vmem>>, vector<1x128x128xf32>
    %7 = vector.shape_cast %6 : vector<1x128x128xf32> to vector<128x128xf32>
    %cst_8 = arith.constant dense<0.000000e+00> : vector<64x128xf32>
    %8 = tpu.matmul %5, %7, %cst_8 {dimension_numbers = #tpu.dot_dimension_numbers<[1], [0], [0], [1], [0, 0, 1, 1], [], []>} : vector<64x128xf32>, vector<128x128xf32>, vector<64x128xf32> -> vector<64x128xf32>
    %9 = arith.addf %2, %8 : vector<64x128xf32>
    %c0_9 = arith.constant 0 : index
    %c0_10 = arith.constant 0 : index
    %c1 = arith.constant 1 : index
    %c0_11 = arith.constant 0 : index
    %10 = vector.load %arg1[%c0_9, %c0_10, %c1, %c0_11] : memref<1x18x18x128xf32, #tpu.memory_space<vmem>>, vector<1x4x16x128xf32>
    %11 = vector.shape_cast %10 : vector<1x4x16x128xf32> to vector<4x16x128xf32>
    %12 = vector.shape_cast %11 : vector<4x16x128xf32> to vector<64x128xf32>
    %c1_12 = arith.constant 1 : index
    %c0_13 = arith.constant 0 : index
    %c0_14 = arith.constant 0 : index
    %13 = vector.load %arg2[%c1_12, %c0_13, %c0_14] : memref<9x128x128xf32, #tpu.memory_space<vmem>>, vector<1x128x128xf32>
    %14 = vector.shape_cast %13 : vector<1x128x128xf32> to vector<128x128xf32>
    %cst_15 = arith.constant dense<0.000000e+00> : vector<64x128xf32>
    %15 = tpu.matmul %12, %14, %cst_15 {dimension_numbers = #tpu.dot_dimension_numbers<[1], [0], [0], [1], [0, 0, 1, 1], [], []>} : vector<64x128xf32>, vector<128x128xf32>, vector<64x128xf32> -> vector<64x128xf32>
    %16 = arith.addf %9, %15 : vector<64x128xf32>
    %c0_16 = arith.constant 0 : index
    %c0_17 = arith.constant 0 : index
    %c2 = arith.constant 2 : index
    %c0_18 = arith.constant 0 : index
    %17 = vector.load %arg1[%c0_16, %c0_17, %c2, %c0_18] : memref<1x18x18x128xf32, #tpu.memory_space<vmem>>, vector<1x4x16x128xf32>
    %18 = vector.shape_cast %17 : vector<1x4x16x128xf32> to vector<4x16x128xf32>
    %19 = vector.shape_cast %18 : vector<4x16x128xf32> to vector<64x128xf32>
    %c2_19 = arith.constant 2 : index
    %c0_20 = arith.constant 0 : index
    %c0_21 = arith.constant 0 : index
    %20 = vector.load %arg2[%c2_19, %c0_20, %c0_21] : memref<9x128x128xf32, #tpu.memory_space<vmem>>, vector<1x128x128xf32>
    %21 = vector.shape_cast %20 : vector<1x128x128xf32> to vector<128x128xf32>
    %cst_22 = arith.constant dense<0.000000e+00> : vector<64x128xf32>
    %22 = tpu.matmul %19, %21, %cst_22 {dimension_numbers = #tpu.dot_dimension_numbers<[1], [0], [0], [1], [0, 0, 1, 1], [], []>} : vector<64x128xf32>, vector<128x128xf32>, vector<64x128xf32> -> vector<64x128xf32>
    %23 = arith.addf %16, %22 : vector<64x128xf32>
    %c0_23 = arith.constant 0 : index
    %c1_24 = arith.constant 1 : index
    %c0_25 = arith.constant 0 : index
    %c0_26 = arith.constant 0 : index
    %24 = vector.load %arg1[%c0_23, %c1_24, %c0_25, %c0_26] : memref<1x18x18x128xf32, #tpu.memory_space<vmem>>, vector<1x4x16x128xf32>
    %25 = vector.shape_cast %24 : vector<1x4x16x128xf32> to vector<4x16x128xf32>
    %26 = vector.shape_cast %25 : vector<4x16x128xf32> to vector<64x128xf32>
    %c3 = arith.constant 3 : index
    %c0_27 = arith.constant 0 : index
    %c0_28 = arith.constant 0 : index
    %27 = vector.load %arg2[%c3, %c0_27, %c0_28] : memref<9x128x128xf32, #tpu.memory_space<vmem>>, vector<1x128x128xf32>
    %28 = vector.shape_cast %27 : vector<1x128x128xf32> to vector<128x128xf32>
    %cst_29 = arith.constant dense<0.000000e+00> : vector<64x128xf32>
    %29 = tpu.matmul %26, %28, %cst_29 {dimension_numbers = #tpu.dot_dimension_numbers<[1], [0], [0], [1], [0, 0, 1, 1], [], []>} : vector<64x128xf32>, vector<128x128xf32>, vector<64x128xf32> -> vector<64x128xf32>
    %30 = arith.addf %23, %29 : vector<64x128xf32>
    %c0_30 = arith.constant 0 : index
    %c1_31 = arith.constant 1 : index
    %c1_32 = arith.constant 1 : index
    %c0_33 = arith.constant 0 : index
    %31 = vector.load %arg1[%c0_30, %c1_31, %c1_32, %c0_33] : memref<1x18x18x128xf32, #tpu.memory_space<vmem>>, vector<1x4x16x128xf32>
    %32 = vector.shape_cast %31 : vector<1x4x16x128xf32> to vector<4x16x128xf32>
    %33 = vector.shape_cast %32 : vector<4x16x128xf32> to vector<64x128xf32>
    %c4 = arith.constant 4 : index
    %c0_34 = arith.constant 0 : index
    %c0_35 = arith.constant 0 : index
    %34 = vector.load %arg2[%c4, %c0_34, %c0_35] : memref<9x128x128xf32, #tpu.memory_space<vmem>>, vector<1x128x128xf32>
    %35 = vector.shape_cast %34 : vector<1x128x128xf32> to vector<128x128xf32>
    %cst_36 = arith.constant dense<0.000000e+00> : vector<64x128xf32>
    %36 = tpu.matmul %33, %35, %cst_36 {dimension_numbers = #tpu.dot_dimension_numbers<[1], [0], [0], [1], [0, 0, 1, 1], [], []>} : vector<64x128xf32>, vector<128x128xf32>, vector<64x128xf32> -> vector<64x128xf32>
    %37 = arith.addf %30, %36 : vector<64x128xf32>
    %c0_37 = arith.constant 0 : index
    %c1_38 = arith.constant 1 : index
    %c2_39 = arith.constant 2 : index
    %c0_40 = arith.constant 0 : index
    %38 = vector.load %arg1[%c0_37, %c1_38, %c2_39, %c0_40] : memref<1x18x18x128xf32, #tpu.memory_space<vmem>>, vector<1x4x16x128xf32>
    %39 = vector.shape_cast %38 : vector<1x4x16x128xf32> to vector<4x16x128xf32>
    %40 = vector.shape_cast %39 : vector<4x16x128xf32> to vector<64x128xf32>
    %c5 = arith.constant 5 : index
    %c0_41 = arith.constant 0 : index
    %c0_42 = arith.constant 0 : index
    %41 = vector.load %arg2[%c5, %c0_41, %c0_42] : memref<9x128x128xf32, #tpu.memory_space<vmem>>, vector<1x128x128xf32>
    %42 = vector.shape_cast %41 : vector<1x128x128xf32> to vector<128x128xf32>
    %cst_43 = arith.constant dense<0.000000e+00> : vector<64x128xf32>
    %43 = tpu.matmul %40, %42, %cst_43 {dimension_numbers = #tpu.dot_dimension_numbers<[1], [0], [0], [1], [0, 0, 1, 1], [], []>} : vector<64x128xf32>, vector<128x128xf32>, vector<64x128xf32> -> vector<64x128xf32>
    %44 = arith.addf %37, %43 : vector<64x128xf32>
    %c0_44 = arith.constant 0 : index
    %c2_45 = arith.constant 2 : index
    %c0_46 = arith.constant 0 : index
    %c0_47 = arith.constant 0 : index
    %45 = vector.load %arg1[%c0_44, %c2_45, %c0_46, %c0_47] : memref<1x18x18x128xf32, #tpu.memory_space<vmem>>, vector<1x4x16x128xf32>
    %46 = vector.shape_cast %45 : vector<1x4x16x128xf32> to vector<4x16x128xf32>
    %47 = vector.shape_cast %46 : vector<4x16x128xf32> to vector<64x128xf32>
    %c6 = arith.constant 6 : index
    %c0_48 = arith.constant 0 : index
    %c0_49 = arith.constant 0 : index
    %48 = vector.load %arg2[%c6, %c0_48, %c0_49] : memref<9x128x128xf32, #tpu.memory_space<vmem>>, vector<1x128x128xf32>
    %49 = vector.shape_cast %48 : vector<1x128x128xf32> to vector<128x128xf32>
    %cst_50 = arith.constant dense<0.000000e+00> : vector<64x128xf32>
    %50 = tpu.matmul %47, %49, %cst_50 {dimension_numbers = #tpu.dot_dimension_numbers<[1], [0], [0], [1], [0, 0, 1, 1], [], []>} : vector<64x128xf32>, vector<128x128xf32>, vector<64x128xf32> -> vector<64x128xf32>
    %51 = arith.addf %44, %50 : vector<64x128xf32>
    %c0_51 = arith.constant 0 : index
    %c2_52 = arith.constant 2 : index
    %c1_53 = arith.constant 1 : index
    %c0_54 = arith.constant 0 : index
    %52 = vector.load %arg1[%c0_51, %c2_52, %c1_53, %c0_54] : memref<1x18x18x128xf32, #tpu.memory_space<vmem>>, vector<1x4x16x128xf32>
    %53 = vector.shape_cast %52 : vector<1x4x16x128xf32> to vector<4x16x128xf32>
    %54 = vector.shape_cast %53 : vector<4x16x128xf32> to vector<64x128xf32>
    %c7 = arith.constant 7 : index
    %c0_55 = arith.constant 0 : index
    %c0_56 = arith.constant 0 : index
    %55 = vector.load %arg2[%c7, %c0_55, %c0_56] : memref<9x128x128xf32, #tpu.memory_space<vmem>>, vector<1x128x128xf32>
    %56 = vector.shape_cast %55 : vector<1x128x128xf32> to vector<128x128xf32>
    %cst_57 = arith.constant dense<0.000000e+00> : vector<64x128xf32>
    %57 = tpu.matmul %54, %56, %cst_57 {dimension_numbers = #tpu.dot_dimension_numbers<[1], [0], [0], [1], [0, 0, 1, 1], [], []>} : vector<64x128xf32>, vector<128x128xf32>, vector<64x128xf32> -> vector<64x128xf32>
    %58 = arith.addf %51, %57 : vector<64x128xf32>
    %c0_58 = arith.constant 0 : index
    %c2_59 = arith.constant 2 : index
    %c2_60 = arith.constant 2 : index
    %c0_61 = arith.constant 0 : index
    %59 = vector.load %arg1[%c0_58, %c2_59, %c2_60, %c0_61] : memref<1x18x18x128xf32, #tpu.memory_space<vmem>>, vector<1x4x16x128xf32>
    %60 = vector.shape_cast %59 : vector<1x4x16x128xf32> to vector<4x16x128xf32>
    %61 = vector.shape_cast %60 : vector<4x16x128xf32> to vector<64x128xf32>
    %c8 = arith.constant 8 : index
    %c0_62 = arith.constant 0 : index
    %c0_63 = arith.constant 0 : index
    %62 = vector.load %arg2[%c8, %c0_62, %c0_63] : memref<9x128x128xf32, #tpu.memory_space<vmem>>, vector<1x128x128xf32>
    %63 = vector.shape_cast %62 : vector<1x128x128xf32> to vector<128x128xf32>
    %cst_64 = arith.constant dense<0.000000e+00> : vector<64x128xf32>
    %64 = tpu.matmul %61, %63, %cst_64 {dimension_numbers = #tpu.dot_dimension_numbers<[1], [0], [0], [1], [0, 0, 1, 1], [], []>} : vector<64x128xf32>, vector<128x128xf32>, vector<64x128xf32> -> vector<64x128xf32>
    %65 = arith.addf %58, %64 : vector<64x128xf32>
    %c0_65 = arith.constant 0 : index
    %c0_66 = arith.constant 0 : index
    %66 = vector.load %arg3[%c0_65, %c0_66] : memref<256x128xf32, #tpu.memory_space<vmem>>, vector<64x128xf32>
    tpu.vector_store %arg3[%c0_65, %c0_66], %65 {strides = array<i32>} : memref<256x128xf32, #tpu.memory_space<vmem>>, vector<64x128xf32>,
    %cst_67 = arith.constant dense<0.000000e+00> : vector<128xf32>
    %67 = vector.multi_reduction <add>, %65, %cst_67 [0] : vector<64x128xf32> to vector<128xf32>
    %68 = vector.shape_cast %67 : vector<128xf32> to vector<1x128xf32>
    %69 = arith.addf %0, %68 : vector<1x128xf32>
    %70 = arith.mulf %65, %65 : vector<64x128xf32>
    %cst_68 = arith.constant dense<0.000000e+00> : vector<128xf32>
    %71 = vector.multi_reduction <add>, %70, %cst_68 [0] : vector<64x128xf32> to vector<128xf32>
    %72 = vector.shape_cast %71 : vector<128xf32> to vector<1x128xf32>
    %73 = arith.addf %1, %72 : vector<1x128xf32>
    %cst_69 = arith.constant 0.000000e+00 : f32
    %74 = vector.broadcast %cst_69 : f32 to vector<64x128xf32>
    %c0_70 = arith.constant 0 : index
    %c4_71 = arith.constant 4 : index
    %c0_72 = arith.constant 0 : index
    %c0_73 = arith.constant 0 : index
    %75 = vector.load %arg1[%c0_70, %c4_71, %c0_72, %c0_73] : memref<1x18x18x128xf32, #tpu.memory_space<vmem>>, vector<1x4x16x128xf32>
    %76 = vector.shape_cast %75 : vector<1x4x16x128xf32> to vector<4x16x128xf32>
    %77 = vector.shape_cast %76 : vector<4x16x128xf32> to vector<64x128xf32>
    %c0_74 = arith.constant 0 : index
    %c0_75 = arith.constant 0 : index
    %c0_76 = arith.constant 0 : index
    %78 = vector.load %arg2[%c0_74, %c0_75, %c0_76] : memref<9x128x128xf32, #tpu.memory_space<vmem>>, vector<1x128x128xf32>
    %79 = vector.shape_cast %78 : vector<1x128x128xf32> to vector<128x128xf32>
    %cst_77 = arith.constant dense<0.000000e+00> : vector<64x128xf32>
    %80 = tpu.matmul %77, %79, %cst_77 {dimension_numbers = #tpu.dot_dimension_numbers<[1], [0], [0], [1], [0, 0, 1, 1], [], []>} : vector<64x128xf32>, vector<128x128xf32>, vector<64x128xf32> -> vector<64x128xf32>
    %81 = arith.addf %74, %80 : vector<64x128xf32>
    %c0_78 = arith.constant 0 : index
    %c4_79 = arith.constant 4 : index
    %c1_80 = arith.constant 1 : index
    %c0_81 = arith.constant 0 : index
    %82 = vector.load %arg1[%c0_78, %c4_79, %c1_80, %c0_81] : memref<1x18x18x128xf32, #tpu.memory_space<vmem>>, vector<1x4x16x128xf32>
    %83 = vector.shape_cast %82 : vector<1x4x16x128xf32> to vector<4x16x128xf32>
    %84 = vector.shape_cast %83 : vector<4x16x128xf32> to vector<64x128xf32>
    %c1_82 = arith.constant 1 : index
    %c0_83 = arith.constant 0 : index
    %c0_84 = arith.constant 0 : index
    %85 = vector.load %arg2[%c1_82, %c0_83, %c0_84] : memref<9x128x128xf32, #tpu.memory_space<vmem>>, vector<1x128x128xf32>
    %86 = vector.shape_cast %85 : vector<1x128x128xf32> to vector<128x128xf32>
    %cst_85 = arith.constant dense<0.000000e+00> : vector<64x128xf32>
    %87 = tpu.matmul %84, %86, %cst_85 {dimension_numbers = #tpu.dot_dimension_numbers<[1], [0], [0], [1], [0, 0, 1, 1], [], []>} : vector<64x128xf32>, vector<128x128xf32>, vector<64x128xf32> -> vector<64x128xf32>
    %88 = arith.addf %81, %87 : vector<64x128xf32>
    %c0_86 = arith.constant 0 : index
    %c4_87 = arith.constant 4 : index
    %c2_88 = arith.constant 2 : index
    %c0_89 = arith.constant 0 : index
    %89 = vector.load %arg1[%c0_86, %c4_87, %c2_88, %c0_89] : memref<1x18x18x128xf32, #tpu.memory_space<vmem>>, vector<1x4x16x128xf32>
    %90 = vector.shape_cast %89 : vector<1x4x16x128xf32> to vector<4x16x128xf32>
    %91 = vector.shape_cast %90 : vector<4x16x128xf32> to vector<64x128xf32>
    %c2_90 = arith.constant 2 : index
    %c0_91 = arith.constant 0 : index
    %c0_92 = arith.constant 0 : index
    %92 = vector.load %arg2[%c2_90, %c0_91, %c0_92] : memref<9x128x128xf32, #tpu.memory_space<vmem>>, vector<1x128x128xf32>
    %93 = vector.shape_cast %92 : vector<1x128x128xf32> to vector<128x128xf32>
    %cst_93 = arith.constant dense<0.000000e+00> : vector<64x128xf32>
    %94 = tpu.matmul %91, %93, %cst_93 {dimension_numbers = #tpu.dot_dimension_numbers<[1], [0], [0], [1], [0, 0, 1, 1], [], []>} : vector<64x128xf32>, vector<128x128xf32>, vector<64x128xf32> -> vector<64x128xf32>
    %95 = arith.addf %88, %94 : vector<64x128xf32>
    %c0_94 = arith.constant 0 : index
    %c5_95 = arith.constant 5 : index
    %c0_96 = arith.constant 0 : index
    %c0_97 = arith.constant 0 : index
    %96 = vector.load %arg1[%c0_94, %c5_95, %c0_96, %c0_97] : memref<1x18x18x128xf32, #tpu.memory_space<vmem>>, vector<1x4x16x128xf32>
    %97 = vector.shape_cast %96 : vector<1x4x16x128xf32> to vector<4x16x128xf32>
    %98 = vector.shape_cast %97 : vector<4x16x128xf32> to vector<64x128xf32>
    %c3_98 = arith.constant 3 : index
    %c0_99 = arith.constant 0 : index
    %c0_100 = arith.constant 0 : index
    %99 = vector.load %arg2[%c3_98, %c0_99, %c0_100] : memref<9x128x128xf32, #tpu.memory_space<vmem>>, vector<1x128x128xf32>
    %100 = vector.shape_cast %99 : vector<1x128x128xf32> to vector<128x128xf32>
    %cst_101 = arith.constant dense<0.000000e+00> : vector<64x128xf32>
    %101 = tpu.matmul %98, %100, %cst_101 {dimension_numbers = #tpu.dot_dimension_numbers<[1], [0], [0], [1], [0, 0, 1, 1], [], []>} : vector<64x128xf32>, vector<128x128xf32>, vector<64x128xf32> -> vector<64x128xf32>
    %102 = arith.addf %95, %101 : vector<64x128xf32>
    %c0_102 = arith.constant 0 : index
    %c5_103 = arith.constant 5 : index
    %c1_104 = arith.constant 1 : index
    %c0_105 = arith.constant 0 : index
    %103 = vector.load %arg1[%c0_102, %c5_103, %c1_104, %c0_105] : memref<1x18x18x128xf32, #tpu.memory_space<vmem>>, vector<1x4x16x128xf32>
    %104 = vector.shape_cast %103 : vector<1x4x16x128xf32> to vector<4x16x128xf32>
    %105 = vector.shape_cast %104 : vector<4x16x128xf32> to vector<64x128xf32>
    %c4_106 = arith.constant 4 : index
    %c0_107 = arith.constant 0 : index
    %c0_108 = arith.constant 0 : index
    %106 = vector.load %arg2[%c4_106, %c0_107, %c0_108] : memref<9x128x128xf32, #tpu.memory_space<vmem>>, vector<1x128x128xf32>
    %107 = vector.shape_cast %106 : vector<1x128x128xf32> to vector<128x128xf32>
    %cst_109 = arith.constant dense<0.000000e+00> : vector<64x128xf32>
    %108 = tpu.matmul %105, %107, %cst_109 {dimension_numbers = #tpu.dot_dimension_numbers<[1], [0], [0], [1], [0, 0, 1, 1], [], []>} : vector<64x128xf32>, vector<128x128xf32>, vector<64x128xf32> -> vector<64x128xf32>
    %109 = arith.addf %102, %108 : vector<64x128xf32>
    %c0_110 = arith.constant 0 : index
    %c5_111 = arith.constant 5 : index
    %c2_112 = arith.constant 2 : index
    %c0_113 = arith.constant 0 : index
    %110 = vector.load %arg1[%c0_110, %c5_111, %c2_112, %c0_113] : memref<1x18x18x128xf32, #tpu.memory_space<vmem>>, vector<1x4x16x128xf32>
    %111 = vector.shape_cast %110 : vector<1x4x16x128xf32> to vector<4x16x128xf32>
    %112 = vector.shape_cast %111 : vector<4x16x128xf32> to vector<64x128xf32>
    %c5_114 = arith.constant 5 : index
    %c0_115 = arith.constant 0 : index
    %c0_116 = arith.constant 0 : index
    %113 = vector.load %arg2[%c5_114, %c0_115, %c0_116] : memref<9x128x128xf32, #tpu.memory_space<vmem>>, vector<1x128x128xf32>
    %114 = vector.shape_cast %113 : vector<1x128x128xf32> to vector<128x128xf32>
    %cst_117 = arith.constant dense<0.000000e+00> : vector<64x128xf32>
    %115 = tpu.matmul %112, %114, %cst_117 {dimension_numbers = #tpu.dot_dimension_numbers<[1], [0], [0], [1], [0, 0, 1, 1], [], []>} : vector<64x128xf32>, vector<128x128xf32>, vector<64x128xf32> -> vector<64x128xf32>
    %116 = arith.addf %109, %115 : vector<64x128xf32>
    %c0_118 = arith.constant 0 : index
    %c6_119 = arith.constant 6 : index
    %c0_120 = arith.constant 0 : index
    %c0_121 = arith.constant 0 : index
    %117 = vector.load %arg1[%c0_118, %c6_119, %c0_120, %c0_121] : memref<1x18x18x128xf32, #tpu.memory_space<vmem>>, vector<1x4x16x128xf32>
    %118 = vector.shape_cast %117 : vector<1x4x16x128xf32> to vector<4x16x128xf32>
    %119 = vector.shape_cast %118 : vector<4x16x128xf32> to vector<64x128xf32>
    %c6_122 = arith.constant 6 : index
    %c0_123 = arith.constant 0 : index
    %c0_124 = arith.constant 0 : index
    %120 = vector.load %arg2[%c6_122, %c0_123, %c0_124] : memref<9x128x128xf32, #tpu.memory_space<vmem>>, vector<1x128x128xf32>
    %121 = vector.shape_cast %120 : vector<1x128x128xf32> to vector<128x128xf32>
    %cst_125 = arith.constant dense<0.000000e+00> : vector<64x128xf32>
    %122 = tpu.matmul %119, %121, %cst_125 {dimension_numbers = #tpu.dot_dimension_numbers<[1], [0], [0], [1], [0, 0, 1, 1], [], []>} : vector<64x128xf32>, vector<128x128xf32>, vector<64x128xf32> -> vector<64x128xf32>
    %123 = arith.addf %116, %122 : vector<64x128xf32>
    %c0_126 = arith.constant 0 : index
    %c6_127 = arith.constant 6 : index
    %c1_128 = arith.constant 1 : index
    %c0_129 = arith.constant 0 : index
    %124 = vector.load %arg1[%c0_126, %c6_127, %c1_128, %c0_129] : memref<1x18x18x128xf32, #tpu.memory_space<vmem>>, vector<1x4x16x128xf32>
    %125 = vector.shape_cast %124 : vector<1x4x16x128xf32> to vector<4x16x128xf32>
    %126 = vector.shape_cast %125 : vector<4x16x128xf32> to vector<64x128xf32>
    %c7_130 = arith.constant 7 : index
    %c0_131 = arith.constant 0 : index
    %c0_132 = arith.constant 0 : index
    %127 = vector.load %arg2[%c7_130, %c0_131, %c0_132] : memref<9x128x128xf32, #tpu.memory_space<vmem>>, vector<1x128x128xf32>
    %128 = vector.shape_cast %127 : vector<1x128x128xf32> to vector<128x128xf32>
    %cst_133 = arith.constant dense<0.000000e+00> : vector<64x128xf32>
    %129 = tpu.matmul %126, %128, %cst_133 {dimension_numbers = #tpu.dot_dimension_numbers<[1], [0], [0], [1], [0, 0, 1, 1], [], []>} : vector<64x128xf32>, vector<128x128xf32>, vector<64x128xf32> -> vector<64x128xf32>
    %130 = arith.addf %123, %129 : vector<64x128xf32>
    %c0_134 = arith.constant 0 : index
    %c6_135 = arith.constant 6 : index
    %c2_136 = arith.constant 2 : index
    %c0_137 = arith.constant 0 : index
    %131 = vector.load %arg1[%c0_134, %c6_135, %c2_136, %c0_137] : memref<1x18x18x128xf32, #tpu.memory_space<vmem>>, vector<1x4x16x128xf32>
    %132 = vector.shape_cast %131 : vector<1x4x16x128xf32> to vector<4x16x128xf32>
    %133 = vector.shape_cast %132 : vector<4x16x128xf32> to vector<64x128xf32>
    %c8_138 = arith.constant 8 : index
    %c0_139 = arith.constant 0 : index
    %c0_140 = arith.constant 0 : index
    %134 = vector.load %arg2[%c8_138, %c0_139, %c0_140] : memref<9x128x128xf32, #tpu.memory_space<vmem>>, vector<1x128x128xf32>
    %135 = vector.shape_cast %134 : vector<1x128x128xf32> to vector<128x128xf32>
    %cst_141 = arith.constant dense<0.000000e+00> : vector<64x128xf32>
    %136 = tpu.matmul %133, %135, %cst_141 {dimension_numbers = #tpu.dot_dimension_numbers<[1], [0], [0], [1], [0, 0, 1, 1], [], []>} : vector<64x128xf32>, vector<128x128xf32>, vector<64x128xf32> -> vector<64x128xf32>
    %137 = arith.addf %130, %136 : vector<64x128xf32>
    %c64 = arith.constant 64 : index
    %c0_142 = arith.constant 0 : index
    %138 = vector.load %arg3[%c64, %c0_142] : memref<256x128xf32, #tpu.memory_space<vmem>>, vector<64x128xf32>
    tpu.vector_store %arg3[%c64, %c0_142], %137 {strides = array<i32>} : memref<256x128xf32, #tpu.memory_space<vmem>>, vector<64x128xf32>,
    %cst_143 = arith.constant dense<0.000000e+00> : vector<128xf32>
    %139 = vector.multi_reduction <add>, %137, %cst_143 [0] : vector<64x128xf32> to vector<128xf32>
    %140 = vector.shape_cast %139 : vector<128xf32> to vector<1x128xf32>
    %141 = arith.addf %69, %140 : vector<1x128xf32>
    %142 = arith.mulf %137, %137 : vector<64x128xf32>
    %cst_144 = arith.constant dense<0.000000e+00> : vector<128xf32>
    %143 = vector.multi_reduction <add>, %142, %cst_144 [0] : vector<64x128xf32> to vector<128xf32>
    %144 = vector.shape_cast %143 : vector<128xf32> to vector<1x128xf32>
    %145 = arith.addf %73, %144 : vector<1x128xf32>
    %cst_145 = arith.constant 0.000000e+00 : f32
    %146 = vector.broadcast %cst_145 : f32 to vector<64x128xf32>
    %c0_146 = arith.constant 0 : index
    %c8_147 = arith.constant 8 : index
    %c0_148 = arith.constant 0 : index
    %c0_149 = arith.constant 0 : index
    %147 = vector.load %arg1[%c0_146, %c8_147, %c0_148, %c0_149] : memref<1x18x18x128xf32, #tpu.memory_space<vmem>>, vector<1x4x16x128xf32>
    %148 = vector.shape_cast %147 : vector<1x4x16x128xf32> to vector<4x16x128xf32>
    %149 = vector.shape_cast %148 : vector<4x16x128xf32> to vector<64x128xf32>
    %c0_150 = arith.constant 0 : index
    %c0_151 = arith.constant 0 : index
    %c0_152 = arith.constant 0 : index
    %150 = vector.load %arg2[%c0_150, %c0_151, %c0_152] : memref<9x128x128xf32, #tpu.memory_space<vmem>>, vector<1x128x128xf32>
    %151 = vector.shape_cast %150 : vector<1x128x128xf32> to vector<128x128xf32>
    %cst_153 = arith.constant dense<0.000000e+00> : vector<64x128xf32>
    %152 = tpu.matmul %149, %151, %cst_153 {dimension_numbers = #tpu.dot_dimension_numbers<[1], [0], [0], [1], [0, 0, 1, 1], [], []>} : vector<64x128xf32>, vector<128x128xf32>, vector<64x128xf32> -> vector<64x128xf32>
    %153 = arith.addf %146, %152 : vector<64x128xf32>
    %c0_154 = arith.constant 0 : index
    %c8_155 = arith.constant 8 : index
    %c1_156 = arith.constant 1 : index
    %c0_157 = arith.constant 0 : index
    %154 = vector.load %arg1[%c0_154, %c8_155, %c1_156, %c0_157] : memref<1x18x18x128xf32, #tpu.memory_space<vmem>>, vector<1x4x16x128xf32>
    %155 = vector.shape_cast %154 : vector<1x4x16x128xf32> to vector<4x16x128xf32>
    %156 = vector.shape_cast %155 : vector<4x16x128xf32> to vector<64x128xf32>
    %c1_158 = arith.constant 1 : index
    %c0_159 = arith.constant 0 : index
    %c0_160 = arith.constant 0 : index
    %157 = vector.load %arg2[%c1_158, %c0_159, %c0_160] : memref<9x128x128xf32, #tpu.memory_space<vmem>>, vector<1x128x128xf32>
    %158 = vector.shape_cast %157 : vector<1x128x128xf32> to vector<128x128xf32>
    %cst_161 = arith.constant dense<0.000000e+00> : vector<64x128xf32>
    %159 = tpu.matmul %156, %158, %cst_161 {dimension_numbers = #tpu.dot_dimension_numbers<[1], [0], [0], [1], [0, 0, 1, 1], [], []>} : vector<64x128xf32>, vector<128x128xf32>, vector<64x128xf32> -> vector<64x128xf32>
    %160 = arith.addf %153, %159 : vector<64x128xf32>
    %c0_162 = arith.constant 0 : index
    %c8_163 = arith.constant 8 : index
    %c2_164 = arith.constant 2 : index
    %c0_165 = arith.constant 0 : index
    %161 = vector.load %arg1[%c0_162, %c8_163, %c2_164, %c0_165] : memref<1x18x18x128xf32, #tpu.memory_space<vmem>>, vector<1x4x16x128xf32>
    %162 = vector.shape_cast %161 : vector<1x4x16x128xf32> to vector<4x16x128xf32>
    %163 = vector.shape_cast %162 : vector<4x16x128xf32> to vector<64x128xf32>
    %c2_166 = arith.constant 2 : index
    %c0_167 = arith.constant 0 : index
    %c0_168 = arith.constant 0 : index
    %164 = vector.load %arg2[%c2_166, %c0_167, %c0_168] : memref<9x128x128xf32, #tpu.memory_space<vmem>>, vector<1x128x128xf32>
    %165 = vector.shape_cast %164 : vector<1x128x128xf32> to vector<128x128xf32>
    %cst_169 = arith.constant dense<0.000000e+00> : vector<64x128xf32>
    %166 = tpu.matmul %163, %165, %cst_169 {dimension_numbers = #tpu.dot_dimension_numbers<[1], [0], [0], [1], [0, 0, 1, 1], [], []>} : vector<64x128xf32>, vector<128x128xf32>, vector<64x128xf32> -> vector<64x128xf32>
    %167 = arith.addf %160, %166 : vector<64x128xf32>
    %c0_170 = arith.constant 0 : index
    %c9 = arith.constant 9 : index
    %c0_171 = arith.constant 0 : index
    %c0_172 = arith.constant 0 : index
    %168 = vector.load %arg1[%c0_170, %c9, %c0_171, %c0_172] : memref<1x18x18x128xf32, #tpu.memory_space<vmem>>, vector<1x4x16x128xf32>
    %169 = vector.shape_cast %168 : vector<1x4x16x128xf32> to vector<4x16x128xf32>
    %170 = vector.shape_cast %169 : vector<4x16x128xf32> to vector<64x128xf32>
    %c3_173 = arith.constant 3 : index
    %c0_174 = arith.constant 0 : index
    %c0_175 = arith.constant 0 : index
    %171 = vector.load %arg2[%c3_173, %c0_174, %c0_175] : memref<9x128x128xf32, #tpu.memory_space<vmem>>, vector<1x128x128xf32>
    %172 = vector.shape_cast %171 : vector<1x128x128xf32> to vector<128x128xf32>
    %cst_176 = arith.constant dense<0.000000e+00> : vector<64x128xf32>
    %173 = tpu.matmul %170, %172, %cst_176 {dimension_numbers = #tpu.dot_dimension_numbers<[1], [0], [0], [1], [0, 0, 1, 1], [], []>} : vector<64x128xf32>, vector<128x128xf32>, vector<64x128xf32> -> vector<64x128xf32>
    %174 = arith.addf %167, %173 : vector<64x128xf32>
    %c0_177 = arith.constant 0 : index
    %c9_178 = arith.constant 9 : index
    %c1_179 = arith.constant 1 : index
    %c0_180 = arith.constant 0 : index
    %175 = vector.load %arg1[%c0_177, %c9_178, %c1_179, %c0_180] : memref<1x18x18x128xf32, #tpu.memory_space<vmem>>, vector<1x4x16x128xf32>
    %176 = vector.shape_cast %175 : vector<1x4x16x128xf32> to vector<4x16x128xf32>
    %177 = vector.shape_cast %176 : vector<4x16x128xf32> to vector<64x128xf32>
    %c4_181 = arith.constant 4 : index
    %c0_182 = arith.constant 0 : index
    %c0_183 = arith.constant 0 : index
    %178 = vector.load %arg2[%c4_181, %c0_182, %c0_183] : memref<9x128x128xf32, #tpu.memory_space<vmem>>, vector<1x128x128xf32>
    %179 = vector.shape_cast %178 : vector<1x128x128xf32> to vector<128x128xf32>
    %cst_184 = arith.constant dense<0.000000e+00> : vector<64x128xf32>
    %180 = tpu.matmul %177, %179, %cst_184 {dimension_numbers = #tpu.dot_dimension_numbers<[1], [0], [0], [1], [0, 0, 1, 1], [], []>} : vector<64x128xf32>, vector<128x128xf32>, vector<64x128xf32> -> vector<64x128xf32>
    %181 = arith.addf %174, %180 : vector<64x128xf32>
    %c0_185 = arith.constant 0 : index
    %c9_186 = arith.constant 9 : index
    %c2_187 = arith.constant 2 : index
    %c0_188 = arith.constant 0 : index
    %182 = vector.load %arg1[%c0_185, %c9_186, %c2_187, %c0_188] : memref<1x18x18x128xf32, #tpu.memory_space<vmem>>, vector<1x4x16x128xf32>
    %183 = vector.shape_cast %182 : vector<1x4x16x128xf32> to vector<4x16x128xf32>
    %184 = vector.shape_cast %183 : vector<4x16x128xf32> to vector<64x128xf32>
    %c5_189 = arith.constant 5 : index
    %c0_190 = arith.constant 0 : index
    %c0_191 = arith.constant 0 : index
    %185 = vector.load %arg2[%c5_189, %c0_190, %c0_191] : memref<9x128x128xf32, #tpu.memory_space<vmem>>, vector<1x128x128xf32>
    %186 = vector.shape_cast %185 : vector<1x128x128xf32> to vector<128x128xf32>
    %cst_192 = arith.constant dense<0.000000e+00> : vector<64x128xf32>
    %187 = tpu.matmul %184, %186, %cst_192 {dimension_numbers = #tpu.dot_dimension_numbers<[1], [0], [0], [1], [0, 0, 1, 1], [], []>} : vector<64x128xf32>, vector<128x128xf32>, vector<64x128xf32> -> vector<64x128xf32>
    %188 = arith.addf %181, %187 : vector<64x128xf32>
    %c0_193 = arith.constant 0 : index
    %c10 = arith.constant 10 : index
    %c0_194 = arith.constant 0 : index
    %c0_195 = arith.constant 0 : index
    %189 = vector.load %arg1[%c0_193, %c10, %c0_194, %c0_195] : memref<1x18x18x128xf32, #tpu.memory_space<vmem>>, vector<1x4x16x128xf32>
    %190 = vector.shape_cast %189 : vector<1x4x16x128xf32> to vector<4x16x128xf32>
    %191 = vector.shape_cast %190 : vector<4x16x128xf32> to vector<64x128xf32>
    %c6_196 = arith.constant 6 : index
    %c0_197 = arith.constant 0 : index
    %c0_198 = arith.constant 0 : index
    %192 = vector.load %arg2[%c6_196, %c0_197, %c0_198] : memref<9x128x128xf32, #tpu.memory_space<vmem>>, vector<1x128x128xf32>
    %193 = vector.shape_cast %192 : vector<1x128x128xf32> to vector<128x128xf32>
    %cst_199 = arith.constant dense<0.000000e+00> : vector<64x128xf32>
    %194 = tpu.matmul %191, %193, %cst_199 {dimension_numbers = #tpu.dot_dimension_numbers<[1], [0], [0], [1], [0, 0, 1, 1], [], []>} : vector<64x128xf32>, vector<128x128xf32>, vector<64x128xf32> -> vector<64x128xf32>
    %195 = arith.addf %188, %194 : vector<64x128xf32>
    %c0_200 = arith.constant 0 : index
    %c10_201 = arith.constant 10 : index
    %c1_202 = arith.constant 1 : index
    %c0_203 = arith.constant 0 : index
    %196 = vector.load %arg1[%c0_200, %c10_201, %c1_202, %c0_203] : memref<1x18x18x128xf32, #tpu.memory_space<vmem>>, vector<1x4x16x128xf32>
    %197 = vector.shape_cast %196 : vector<1x4x16x128xf32> to vector<4x16x128xf32>
    %198 = vector.shape_cast %197 : vector<4x16x128xf32> to vector<64x128xf32>
    %c7_204 = arith.constant 7 : index
    %c0_205 = arith.constant 0 : index
    %c0_206 = arith.constant 0 : index
    %199 = vector.load %arg2[%c7_204, %c0_205, %c0_206] : memref<9x128x128xf32, #tpu.memory_space<vmem>>, vector<1x128x128xf32>
    %200 = vector.shape_cast %199 : vector<1x128x128xf32> to vector<128x128xf32>
    %cst_207 = arith.constant dense<0.000000e+00> : vector<64x128xf32>
    %201 = tpu.matmul %198, %200, %cst_207 {dimension_numbers = #tpu.dot_dimension_numbers<[1], [0], [0], [1], [0, 0, 1, 1], [], []>} : vector<64x128xf32>, vector<128x128xf32>, vector<64x128xf32> -> vector<64x128xf32>
    %202 = arith.addf %195, %201 : vector<64x128xf32>
    %c0_208 = arith.constant 0 : index
    %c10_209 = arith.constant 10 : index
    %c2_210 = arith.constant 2 : index
    %c0_211 = arith.constant 0 : index
    %203 = vector.load %arg1[%c0_208, %c10_209, %c2_210, %c0_211] : memref<1x18x18x128xf32, #tpu.memory_space<vmem>>, vector<1x4x16x128xf32>
    %204 = vector.shape_cast %203 : vector<1x4x16x128xf32> to vector<4x16x128xf32>
    %205 = vector.shape_cast %204 : vector<4x16x128xf32> to vector<64x128xf32>
    %c8_212 = arith.constant 8 : index
    %c0_213 = arith.constant 0 : index
    %c0_214 = arith.constant 0 : index
    %206 = vector.load %arg2[%c8_212, %c0_213, %c0_214] : memref<9x128x128xf32, #tpu.memory_space<vmem>>, vector<1x128x128xf32>
    %207 = vector.shape_cast %206 : vector<1x128x128xf32> to vector<128x128xf32>
    %cst_215 = arith.constant dense<0.000000e+00> : vector<64x128xf32>
    %208 = tpu.matmul %205, %207, %cst_215 {dimension_numbers = #tpu.dot_dimension_numbers<[1], [0], [0], [1], [0, 0, 1, 1], [], []>} : vector<64x128xf32>, vector<128x128xf32>, vector<64x128xf32> -> vector<64x128xf32>
    %209 = arith.addf %202, %208 : vector<64x128xf32>
    %c128 = arith.constant 128 : index
    %c0_216 = arith.constant 0 : index
    %210 = vector.load %arg3[%c128, %c0_216] : memref<256x128xf32, #tpu.memory_space<vmem>>, vector<64x128xf32>
    tpu.vector_store %arg3[%c128, %c0_216], %209 {strides = array<i32>} : memref<256x128xf32, #tpu.memory_space<vmem>>, vector<64x128xf32>,
    %cst_217 = arith.constant dense<0.000000e+00> : vector<128xf32>
    %211 = vector.multi_reduction <add>, %209, %cst_217 [0] : vector<64x128xf32> to vector<128xf32>
    %212 = vector.shape_cast %211 : vector<128xf32> to vector<1x128xf32>
    %213 = arith.addf %141, %212 : vector<1x128xf32>
    %214 = arith.mulf %209, %209 : vector<64x128xf32>
    %cst_218 = arith.constant dense<0.000000e+00> : vector<128xf32>
    %215 = vector.multi_reduction <add>, %214, %cst_218 [0] : vector<64x128xf32> to vector<128xf32>
    %216 = vector.shape_cast %215 : vector<128xf32> to vector<1x128xf32>
    %217 = arith.addf %145, %216 : vector<1x128xf32>
    %cst_219 = arith.constant 0.000000e+00 : f32
    %218 = vector.broadcast %cst_219 : f32 to vector<64x128xf32>
    %c0_220 = arith.constant 0 : index
    %c12 = arith.constant 12 : index
    %c0_221 = arith.constant 0 : index
    %c0_222 = arith.constant 0 : index
    %219 = vector.load %arg1[%c0_220, %c12, %c0_221, %c0_222] : memref<1x18x18x128xf32, #tpu.memory_space<vmem>>, vector<1x4x16x128xf32>
    %220 = vector.shape_cast %219 : vector<1x4x16x128xf32> to vector<4x16x128xf32>
    %221 = vector.shape_cast %220 : vector<4x16x128xf32> to vector<64x128xf32>
    %c0_223 = arith.constant 0 : index
    %c0_224 = arith.constant 0 : index
    %c0_225 = arith.constant 0 : index
    %222 = vector.load %arg2[%c0_223, %c0_224, %c0_225] : memref<9x128x128xf32, #tpu.memory_space<vmem>>, vector<1x128x128xf32>
    %223 = vector.shape_cast %222 : vector<1x128x128xf32> to vector<128x128xf32>
    %cst_226 = arith.constant dense<0.000000e+00> : vector<64x128xf32>
    %224 = tpu.matmul %221, %223, %cst_226 {dimension_numbers = #tpu.dot_dimension_numbers<[1], [0], [0], [1], [0, 0, 1, 1], [], []>} : vector<64x128xf32>, vector<128x128xf32>, vector<64x128xf32> -> vector<64x128xf32>
    %225 = arith.addf %218, %224 : vector<64x128xf32>
    %c0_227 = arith.constant 0 : index
    %c12_228 = arith.constant 12 : index
    %c1_229 = arith.constant 1 : index
    %c0_230 = arith.constant 0 : index
    %226 = vector.load %arg1[%c0_227, %c12_228, %c1_229, %c0_230] : memref<1x18x18x128xf32, #tpu.memory_space<vmem>>, vector<1x4x16x128xf32>
    %227 = vector.shape_cast %226 : vector<1x4x16x128xf32> to vector<4x16x128xf32>
    %228 = vector.shape_cast %227 : vector<4x16x128xf32> to vector<64x128xf32>
    %c1_231 = arith.constant 1 : index
    %c0_232 = arith.constant 0 : index
    %c0_233 = arith.constant 0 : index
    %229 = vector.load %arg2[%c1_231, %c0_232, %c0_233] : memref<9x128x128xf32, #tpu.memory_space<vmem>>, vector<1x128x128xf32>
    %230 = vector.shape_cast %229 : vector<1x128x128xf32> to vector<128x128xf32>
    %cst_234 = arith.constant dense<0.000000e+00> : vector<64x128xf32>
    %231 = tpu.matmul %228, %230, %cst_234 {dimension_numbers = #tpu.dot_dimension_numbers<[1], [0], [0], [1], [0, 0, 1, 1], [], []>} : vector<64x128xf32>, vector<128x128xf32>, vector<64x128xf32> -> vector<64x128xf32>
    %232 = arith.addf %225, %231 : vector<64x128xf32>
    %c0_235 = arith.constant 0 : index
    %c12_236 = arith.constant 12 : index
    %c2_237 = arith.constant 2 : index
    %c0_238 = arith.constant 0 : index
    %233 = vector.load %arg1[%c0_235, %c12_236, %c2_237, %c0_238] : memref<1x18x18x128xf32, #tpu.memory_space<vmem>>, vector<1x4x16x128xf32>
    %234 = vector.shape_cast %233 : vector<1x4x16x128xf32> to vector<4x16x128xf32>
    %235 = vector.shape_cast %234 : vector<4x16x128xf32> to vector<64x128xf32>
    %c2_239 = arith.constant 2 : index
    %c0_240 = arith.constant 0 : index
    %c0_241 = arith.constant 0 : index
    %236 = vector.load %arg2[%c2_239, %c0_240, %c0_241] : memref<9x128x128xf32, #tpu.memory_space<vmem>>, vector<1x128x128xf32>
    %237 = vector.shape_cast %236 : vector<1x128x128xf32> to vector<128x128xf32>
    %cst_242 = arith.constant dense<0.000000e+00> : vector<64x128xf32>
    %238 = tpu.matmul %235, %237, %cst_242 {dimension_numbers = #tpu.dot_dimension_numbers<[1], [0], [0], [1], [0, 0, 1, 1], [], []>} : vector<64x128xf32>, vector<128x128xf32>, vector<64x128xf32> -> vector<64x128xf32>
    %239 = arith.addf %232, %238 : vector<64x128xf32>
    %c0_243 = arith.constant 0 : index
    %c13 = arith.constant 13 : index
    %c0_244 = arith.constant 0 : index
    %c0_245 = arith.constant 0 : index
    %240 = vector.load %arg1[%c0_243, %c13, %c0_244, %c0_245] : memref<1x18x18x128xf32, #tpu.memory_space<vmem>>, vector<1x4x16x128xf32>
    %241 = vector.shape_cast %240 : vector<1x4x16x128xf32> to vector<4x16x128xf32>
    %242 = vector.shape_cast %241 : vector<4x16x128xf32> to vector<64x128xf32>
    %c3_246 = arith.constant 3 : index
    %c0_247 = arith.constant 0 : index
    %c0_248 = arith.constant 0 : index
    %243 = vector.load %arg2[%c3_246, %c0_247, %c0_248] : memref<9x128x128xf32, #tpu.memory_space<vmem>>, vector<1x128x128xf32>
    %244 = vector.shape_cast %243 : vector<1x128x128xf32> to vector<128x128xf32>
    %cst_249 = arith.constant dense<0.000000e+00> : vector<64x128xf32>
    %245 = tpu.matmul %242, %244, %cst_249 {dimension_numbers = #tpu.dot_dimension_numbers<[1], [0], [0], [1], [0, 0, 1, 1], [], []>} : vector<64x128xf32>, vector<128x128xf32>, vector<64x128xf32> -> vector<64x128xf32>
    %246 = arith.addf %239, %245 : vector<64x128xf32>
    %c0_250 = arith.constant 0 : index
    %c13_251 = arith.constant 13 : index
    %c1_252 = arith.constant 1 : index
    %c0_253 = arith.constant 0 : index
    %247 = vector.load %arg1[%c0_250, %c13_251, %c1_252, %c0_253] : memref<1x18x18x128xf32, #tpu.memory_space<vmem>>, vector<1x4x16x128xf32>
    %248 = vector.shape_cast %247 : vector<1x4x16x128xf32> to vector<4x16x128xf32>
    %249 = vector.shape_cast %248 : vector<4x16x128xf32> to vector<64x128xf32>
    %c4_254 = arith.constant 4 : index
    %c0_255 = arith.constant 0 : index
    %c0_256 = arith.constant 0 : index
    %250 = vector.load %arg2[%c4_254, %c0_255, %c0_256] : memref<9x128x128xf32, #tpu.memory_space<vmem>>, vector<1x128x128xf32>
    %251 = vector.shape_cast %250 : vector<1x128x128xf32> to vector<128x128xf32>
    %cst_257 = arith.constant dense<0.000000e+00> : vector<64x128xf32>
    %252 = tpu.matmul %249, %251, %cst_257 {dimension_numbers = #tpu.dot_dimension_numbers<[1], [0], [0], [1], [0, 0, 1, 1], [], []>} : vector<64x128xf32>, vector<128x128xf32>, vector<64x128xf32> -> vector<64x128xf32>
    %253 = arith.addf %246, %252 : vector<64x128xf32>
    %c0_258 = arith.constant 0 : index
    %c13_259 = arith.constant 13 : index
    %c2_260 = arith.constant 2 : index
    %c0_261 = arith.constant 0 : index
    %254 = vector.load %arg1[%c0_258, %c13_259, %c2_260, %c0_261] : memref<1x18x18x128xf32, #tpu.memory_space<vmem>>, vector<1x4x16x128xf32>
    %255 = vector.shape_cast %254 : vector<1x4x16x128xf32> to vector<4x16x128xf32>
    %256 = vector.shape_cast %255 : vector<4x16x128xf32> to vector<64x128xf32>
    %c5_262 = arith.constant 5 : index
    %c0_263 = arith.constant 0 : index
    %c0_264 = arith.constant 0 : index
    %257 = vector.load %arg2[%c5_262, %c0_263, %c0_264] : memref<9x128x128xf32, #tpu.memory_space<vmem>>, vector<1x128x128xf32>
    %258 = vector.shape_cast %257 : vector<1x128x128xf32> to vector<128x128xf32>
    %cst_265 = arith.constant dense<0.000000e+00> : vector<64x128xf32>
    %259 = tpu.matmul %256, %258, %cst_265 {dimension_numbers = #tpu.dot_dimension_numbers<[1], [0], [0], [1], [0, 0, 1, 1], [], []>} : vector<64x128xf32>, vector<128x128xf32>, vector<64x128xf32> -> vector<64x128xf32>
    %260 = arith.addf %253, %259 : vector<64x128xf32>
    %c0_266 = arith.constant 0 : index
    %c14 = arith.constant 14 : index
    %c0_267 = arith.constant 0 : index
    %c0_268 = arith.constant 0 : index
    %261 = vector.load %arg1[%c0_266, %c14, %c0_267, %c0_268] : memref<1x18x18x128xf32, #tpu.memory_space<vmem>>, vector<1x4x16x128xf32>
    %262 = vector.shape_cast %261 : vector<1x4x16x128xf32> to vector<4x16x128xf32>
    %263 = vector.shape_cast %262 : vector<4x16x128xf32> to vector<64x128xf32>
    %c6_269 = arith.constant 6 : index
    %c0_270 = arith.constant 0 : index
    %c0_271 = arith.constant 0 : index
    %264 = vector.load %arg2[%c6_269, %c0_270, %c0_271] : memref<9x128x128xf32, #tpu.memory_space<vmem>>, vector<1x128x128xf32>
    %265 = vector.shape_cast %264 : vector<1x128x128xf32> to vector<128x128xf32>
    %cst_272 = arith.constant dense<0.000000e+00> : vector<64x128xf32>
    %266 = tpu.matmul %263, %265, %cst_272 {dimension_numbers = #tpu.dot_dimension_numbers<[1], [0], [0], [1], [0, 0, 1, 1], [], []>} : vector<64x128xf32>, vector<128x128xf32>, vector<64x128xf32> -> vector<64x128xf32>
    %267 = arith.addf %260, %266 : vector<64x128xf32>
    %c0_273 = arith.constant 0 : index
    %c14_274 = arith.constant 14 : index
    %c1_275 = arith.constant 1 : index
    %c0_276 = arith.constant 0 : index
    %268 = vector.load %arg1[%c0_273, %c14_274, %c1_275, %c0_276] : memref<1x18x18x128xf32, #tpu.memory_space<vmem>>, vector<1x4x16x128xf32>
    %269 = vector.shape_cast %268 : vector<1x4x16x128xf32> to vector<4x16x128xf32>
    %270 = vector.shape_cast %269 : vector<4x16x128xf32> to vector<64x128xf32>
    %c7_277 = arith.constant 7 : index
    %c0_278 = arith.constant 0 : index
    %c0_279 = arith.constant 0 : index
    %271 = vector.load %arg2[%c7_277, %c0_278, %c0_279] : memref<9x128x128xf32, #tpu.memory_space<vmem>>, vector<1x128x128xf32>
    %272 = vector.shape_cast %271 : vector<1x128x128xf32> to vector<128x128xf32>
    %cst_280 = arith.constant dense<0.000000e+00> : vector<64x128xf32>
    %273 = tpu.matmul %270, %272, %cst_280 {dimension_numbers = #tpu.dot_dimension_numbers<[1], [0], [0], [1], [0, 0, 1, 1], [], []>} : vector<64x128xf32>, vector<128x128xf32>, vector<64x128xf32> -> vector<64x128xf32>
    %274 = arith.addf %267, %273 : vector<64x128xf32>
    %c0_281 = arith.constant 0 : index
    %c14_282 = arith.constant 14 : index
    %c2_283 = arith.constant 2 : index
    %c0_284 = arith.constant 0 : index
    %275 = vector.load %arg1[%c0_281, %c14_282, %c2_283, %c0_284] : memref<1x18x18x128xf32, #tpu.memory_space<vmem>>, vector<1x4x16x128xf32>
    %276 = vector.shape_cast %275 : vector<1x4x16x128xf32> to vector<4x16x128xf32>
    %277 = vector.shape_cast %276 : vector<4x16x128xf32> to vector<64x128xf32>
    %c8_285 = arith.constant 8 : index
    %c0_286 = arith.constant 0 : index
    %c0_287 = arith.constant 0 : index
    %278 = vector.load %arg2[%c8_285, %c0_286, %c0_287] : memref<9x128x128xf32, #tpu.memory_space<vmem>>, vector<1x128x128xf32>
    %279 = vector.shape_cast %278 : vector<1x128x128xf32> to vector<128x128xf32>
    %cst_288 = arith.constant dense<0.000000e+00> : vector<64x128xf32>
    %280 = tpu.matmul %277, %279, %cst_288 {dimension_numbers = #tpu.dot_dimension_numbers<[1], [0], [0], [1], [0, 0, 1, 1], [], []>} : vector<64x128xf32>, vector<128x128xf32>, vector<64x128xf32> -> vector<64x128xf32>
    %281 = arith.addf %274, %280 : vector<64x128xf32>
    %c192 = arith.constant 192 : index
    %c0_289 = arith.constant 0 : index
    %282 = vector.load %arg3[%c192, %c0_289] : memref<256x128xf32, #tpu.memory_space<vmem>>, vector<64x128xf32>
    tpu.vector_store %arg3[%c192, %c0_289], %281 {strides = array<i32>} : memref<256x128xf32, #tpu.memory_space<vmem>>, vector<64x128xf32>,
    %cst_290 = arith.constant dense<0.000000e+00> : vector<128xf32>
    %283 = vector.multi_reduction <add>, %281, %cst_290 [0] : vector<64x128xf32> to vector<128xf32>
    %284 = vector.shape_cast %283 : vector<128xf32> to vector<1x128xf32>
    %285 = arith.addf %213, %284 : vector<1x128xf32>
    %286 = arith.mulf %281, %281 : vector<64x128xf32>
    %cst_291 = arith.constant dense<0.000000e+00> : vector<128xf32>
    %287 = vector.multi_reduction <add>, %286, %cst_291 [0] : vector<64x128xf32> to vector<128xf32>
    %288 = vector.shape_cast %287 : vector<128xf32> to vector<1x128xf32>
    %289 = arith.addf %217, %288 : vector<1x128xf32>
    %c0_292 = arith.constant 0 : index
    %c0_293 = arith.constant 0 : index
    %c0_294 = arith.constant 0 : index
    %290 = vector.load %arg4[%c0_292, %c0_293, %c0_294] : memref<1x2x128xf32, #tpu.memory_space<vmem>>, vector<1x1x128xf32>
    %291 = vector.shape_cast %290 : vector<1x1x128xf32> to vector<1x128xf32>
    %292 = vector.shape_cast %285 : vector<1x128xf32> to vector<1x1x128xf32>
    tpu.vector_store %arg4[%c0_292, %c0_293, %c0_294], %292 {strides = array<i32>} : memref<1x2x128xf32, #tpu.memory_space<vmem>>, vector<1x1x128xf32>,
    %c0_295 = arith.constant 0 : index
    %c1_296 = arith.constant 1 : index
    %c0_297 = arith.constant 0 : index
    %293 = vector.load %arg4[%c0_295, %c1_296, %c0_297] : memref<1x2x128xf32, #tpu.memory_space<vmem>>, vector<1x1x128xf32>
    %294 = vector.shape_cast %293 : vector<1x1x128xf32> to vector<1x128xf32>
    %295 = vector.shape_cast %289 : vector<1x128xf32> to vector<1x1x128xf32>
    tpu.vector_store %arg4[%c0_295, %c1_296, %c0_297], %295 {strides = array<i32>} : memref<1x2x128xf32, #tpu.memory_space<vmem>>, vector<1x1x128xf32>,
    return
  }
  func.func @transform_0(%arg0: i32) -> (i32, i32, i32, i32) {
    %c0_i32 = arith.constant 0 : i32
    %c0_i32_0 = arith.constant 0 : i32
    %c0_i32_1 = arith.constant 0 : i32
    %c0_i32_2 = arith.constant 0 : i32
    return %arg0, %c0_i32, %c0_i32_0, %c0_i32_1 : i32, i32, i32, i32
  }
  func.func @transform_1(%arg0: i32) -> (i32, i32, i32) {
    %c0_i32 = arith.constant 0 : i32
    %c0_i32_0 = arith.constant 0 : i32
    %c0_i32_1 = arith.constant 0 : i32
    %c0_i32_2 = arith.constant 0 : i32
    return %c0_i32, %c0_i32_0, %c0_i32_1 : i32, i32, i32
  }
  func.func @transform_2(%arg0: i32) -> (i32, i32) {
    %c0_i32 = arith.constant 0 : i32
    %c0_i32_0 = arith.constant 0 : i32
    return %arg0, %c0_i32 : i32, i32
  }
  func.func @transform_3(%arg0: i32) -> (i32, i32, i32) {
    %c0_i32 = arith.constant 0 : i32
    %c0_i32_0 = arith.constant 0 : i32
    %c0_i32_1 = arith.constant 0 : i32
    return %arg0, %c0_i32, %c0_i32_0 : i32, i32, i32
  }
}

module attributes {stable_mosaic.version = 11 : i64} {
  func.func @_conv_kernel(%arg0: i32, %arg1: memref<1x16x16x128xf32, #tpu.memory_space<vmem>>, %arg2: memref<1x128x128xf32, #tpu.memory_space<vmem>>, %arg3: memref<256x128xf32, #tpu.memory_space<vmem>>, %arg4: memref<1x2x128xf32, #tpu.memory_space<vmem>>) attributes {dimension_semantics = [#tpu.dimension_semantics<parallel>], iteration_bounds = array<i64: 2>, scalar_prefetch = 0 : i64, scratch_operands = 0 : i64, tpu.core_type = #tpu.core_type<tc>, window_params = [{transform_indices = @transform_0, window_bounds = array<i64: 1, 16, 16, 128>}, {pipeline_mode = #tpu.pipeline_mode<synchronous>, transform_indices = @transform_1, window_bounds = array<i64: 1, 128, 128>}, {transform_indices = @transform_2, window_bounds = array<i64: 256, 128>}, {transform_indices = @transform_3, window_bounds = array<i64: 1, 2, 128>}]} {
    %cst = arith.constant 0.000000e+00 : f32
    %0 = vector.broadcast %cst : f32 to vector<1x128xf32>
    %cst_0 = arith.constant 0.000000e+00 : f32
    %1 = vector.broadcast %cst_0 : f32 to vector<1x128xf32>
    %cst_1 = arith.constant 0.000000e+00 : f32
    %2 = vector.broadcast %cst_1 : f32 to vector<64x128xf32>
    %c0 = arith.constant 0 : index
    %c0_2 = arith.constant 0 : index
    %c0_3 = arith.constant 0 : index
    %c0_4 = arith.constant 0 : index
    %3 = vector.load %arg1[%c0, %c0_2, %c0_3, %c0_4] : memref<1x16x16x128xf32, #tpu.memory_space<vmem>>, vector<1x4x16x128xf32>
    %4 = vector.shape_cast %3 : vector<1x4x16x128xf32> to vector<4x16x128xf32>
    %5 = vector.shape_cast %4 : vector<4x16x128xf32> to vector<64x128xf32>
    %c0_5 = arith.constant 0 : index
    %c0_6 = arith.constant 0 : index
    %c0_7 = arith.constant 0 : index
    %6 = vector.load %arg2[%c0_5, %c0_6, %c0_7] : memref<1x128x128xf32, #tpu.memory_space<vmem>>, vector<1x128x128xf32>
    %7 = vector.shape_cast %6 : vector<1x128x128xf32> to vector<128x128xf32>
    %cst_8 = arith.constant dense<0.000000e+00> : vector<64x128xf32>
    %8 = tpu.matmul %5, %7, %cst_8 {dimension_numbers = #tpu.dot_dimension_numbers<[1], [0], [0], [1], [0, 0, 1, 1], [], []>} : vector<64x128xf32>, vector<128x128xf32>, vector<64x128xf32> -> vector<64x128xf32>
    %9 = arith.addf %2, %8 : vector<64x128xf32>
    %c0_9 = arith.constant 0 : index
    %c0_10 = arith.constant 0 : index
    %10 = vector.load %arg3[%c0_9, %c0_10] : memref<256x128xf32, #tpu.memory_space<vmem>>, vector<64x128xf32>
    tpu.vector_store %arg3[%c0_9, %c0_10], %9 {strides = array<i32>} : memref<256x128xf32, #tpu.memory_space<vmem>>, vector<64x128xf32>,
    %cst_11 = arith.constant dense<0.000000e+00> : vector<128xf32>
    %11 = vector.multi_reduction <add>, %9, %cst_11 [0] : vector<64x128xf32> to vector<128xf32>
    %12 = vector.shape_cast %11 : vector<128xf32> to vector<1x128xf32>
    %13 = arith.addf %0, %12 : vector<1x128xf32>
    %14 = arith.mulf %9, %9 : vector<64x128xf32>
    %cst_12 = arith.constant dense<0.000000e+00> : vector<128xf32>
    %15 = vector.multi_reduction <add>, %14, %cst_12 [0] : vector<64x128xf32> to vector<128xf32>
    %16 = vector.shape_cast %15 : vector<128xf32> to vector<1x128xf32>
    %17 = arith.addf %1, %16 : vector<1x128xf32>
    %cst_13 = arith.constant 0.000000e+00 : f32
    %18 = vector.broadcast %cst_13 : f32 to vector<64x128xf32>
    %c0_14 = arith.constant 0 : index
    %c4 = arith.constant 4 : index
    %c0_15 = arith.constant 0 : index
    %c0_16 = arith.constant 0 : index
    %19 = vector.load %arg1[%c0_14, %c4, %c0_15, %c0_16] : memref<1x16x16x128xf32, #tpu.memory_space<vmem>>, vector<1x4x16x128xf32>
    %20 = vector.shape_cast %19 : vector<1x4x16x128xf32> to vector<4x16x128xf32>
    %21 = vector.shape_cast %20 : vector<4x16x128xf32> to vector<64x128xf32>
    %c0_17 = arith.constant 0 : index
    %c0_18 = arith.constant 0 : index
    %c0_19 = arith.constant 0 : index
    %22 = vector.load %arg2[%c0_17, %c0_18, %c0_19] : memref<1x128x128xf32, #tpu.memory_space<vmem>>, vector<1x128x128xf32>
    %23 = vector.shape_cast %22 : vector<1x128x128xf32> to vector<128x128xf32>
    %cst_20 = arith.constant dense<0.000000e+00> : vector<64x128xf32>
    %24 = tpu.matmul %21, %23, %cst_20 {dimension_numbers = #tpu.dot_dimension_numbers<[1], [0], [0], [1], [0, 0, 1, 1], [], []>} : vector<64x128xf32>, vector<128x128xf32>, vector<64x128xf32> -> vector<64x128xf32>
    %25 = arith.addf %18, %24 : vector<64x128xf32>
    %c64 = arith.constant 64 : index
    %c0_21 = arith.constant 0 : index
    %26 = vector.load %arg3[%c64, %c0_21] : memref<256x128xf32, #tpu.memory_space<vmem>>, vector<64x128xf32>
    tpu.vector_store %arg3[%c64, %c0_21], %25 {strides = array<i32>} : memref<256x128xf32, #tpu.memory_space<vmem>>, vector<64x128xf32>,
    %cst_22 = arith.constant dense<0.000000e+00> : vector<128xf32>
    %27 = vector.multi_reduction <add>, %25, %cst_22 [0] : vector<64x128xf32> to vector<128xf32>
    %28 = vector.shape_cast %27 : vector<128xf32> to vector<1x128xf32>
    %29 = arith.addf %13, %28 : vector<1x128xf32>
    %30 = arith.mulf %25, %25 : vector<64x128xf32>
    %cst_23 = arith.constant dense<0.000000e+00> : vector<128xf32>
    %31 = vector.multi_reduction <add>, %30, %cst_23 [0] : vector<64x128xf32> to vector<128xf32>
    %32 = vector.shape_cast %31 : vector<128xf32> to vector<1x128xf32>
    %33 = arith.addf %17, %32 : vector<1x128xf32>
    %cst_24 = arith.constant 0.000000e+00 : f32
    %34 = vector.broadcast %cst_24 : f32 to vector<64x128xf32>
    %c0_25 = arith.constant 0 : index
    %c8 = arith.constant 8 : index
    %c0_26 = arith.constant 0 : index
    %c0_27 = arith.constant 0 : index
    %35 = vector.load %arg1[%c0_25, %c8, %c0_26, %c0_27] : memref<1x16x16x128xf32, #tpu.memory_space<vmem>>, vector<1x4x16x128xf32>
    %36 = vector.shape_cast %35 : vector<1x4x16x128xf32> to vector<4x16x128xf32>
    %37 = vector.shape_cast %36 : vector<4x16x128xf32> to vector<64x128xf32>
    %c0_28 = arith.constant 0 : index
    %c0_29 = arith.constant 0 : index
    %c0_30 = arith.constant 0 : index
    %38 = vector.load %arg2[%c0_28, %c0_29, %c0_30] : memref<1x128x128xf32, #tpu.memory_space<vmem>>, vector<1x128x128xf32>
    %39 = vector.shape_cast %38 : vector<1x128x128xf32> to vector<128x128xf32>
    %cst_31 = arith.constant dense<0.000000e+00> : vector<64x128xf32>
    %40 = tpu.matmul %37, %39, %cst_31 {dimension_numbers = #tpu.dot_dimension_numbers<[1], [0], [0], [1], [0, 0, 1, 1], [], []>} : vector<64x128xf32>, vector<128x128xf32>, vector<64x128xf32> -> vector<64x128xf32>
    %41 = arith.addf %34, %40 : vector<64x128xf32>
    %c128 = arith.constant 128 : index
    %c0_32 = arith.constant 0 : index
    %42 = vector.load %arg3[%c128, %c0_32] : memref<256x128xf32, #tpu.memory_space<vmem>>, vector<64x128xf32>
    tpu.vector_store %arg3[%c128, %c0_32], %41 {strides = array<i32>} : memref<256x128xf32, #tpu.memory_space<vmem>>, vector<64x128xf32>,
    %cst_33 = arith.constant dense<0.000000e+00> : vector<128xf32>
    %43 = vector.multi_reduction <add>, %41, %cst_33 [0] : vector<64x128xf32> to vector<128xf32>
    %44 = vector.shape_cast %43 : vector<128xf32> to vector<1x128xf32>
    %45 = arith.addf %29, %44 : vector<1x128xf32>
    %46 = arith.mulf %41, %41 : vector<64x128xf32>
    %cst_34 = arith.constant dense<0.000000e+00> : vector<128xf32>
    %47 = vector.multi_reduction <add>, %46, %cst_34 [0] : vector<64x128xf32> to vector<128xf32>
    %48 = vector.shape_cast %47 : vector<128xf32> to vector<1x128xf32>
    %49 = arith.addf %33, %48 : vector<1x128xf32>
    %cst_35 = arith.constant 0.000000e+00 : f32
    %50 = vector.broadcast %cst_35 : f32 to vector<64x128xf32>
    %c0_36 = arith.constant 0 : index
    %c12 = arith.constant 12 : index
    %c0_37 = arith.constant 0 : index
    %c0_38 = arith.constant 0 : index
    %51 = vector.load %arg1[%c0_36, %c12, %c0_37, %c0_38] : memref<1x16x16x128xf32, #tpu.memory_space<vmem>>, vector<1x4x16x128xf32>
    %52 = vector.shape_cast %51 : vector<1x4x16x128xf32> to vector<4x16x128xf32>
    %53 = vector.shape_cast %52 : vector<4x16x128xf32> to vector<64x128xf32>
    %c0_39 = arith.constant 0 : index
    %c0_40 = arith.constant 0 : index
    %c0_41 = arith.constant 0 : index
    %54 = vector.load %arg2[%c0_39, %c0_40, %c0_41] : memref<1x128x128xf32, #tpu.memory_space<vmem>>, vector<1x128x128xf32>
    %55 = vector.shape_cast %54 : vector<1x128x128xf32> to vector<128x128xf32>
    %cst_42 = arith.constant dense<0.000000e+00> : vector<64x128xf32>
    %56 = tpu.matmul %53, %55, %cst_42 {dimension_numbers = #tpu.dot_dimension_numbers<[1], [0], [0], [1], [0, 0, 1, 1], [], []>} : vector<64x128xf32>, vector<128x128xf32>, vector<64x128xf32> -> vector<64x128xf32>
    %57 = arith.addf %50, %56 : vector<64x128xf32>
    %c192 = arith.constant 192 : index
    %c0_43 = arith.constant 0 : index
    %58 = vector.load %arg3[%c192, %c0_43] : memref<256x128xf32, #tpu.memory_space<vmem>>, vector<64x128xf32>
    tpu.vector_store %arg3[%c192, %c0_43], %57 {strides = array<i32>} : memref<256x128xf32, #tpu.memory_space<vmem>>, vector<64x128xf32>,
    %cst_44 = arith.constant dense<0.000000e+00> : vector<128xf32>
    %59 = vector.multi_reduction <add>, %57, %cst_44 [0] : vector<64x128xf32> to vector<128xf32>
    %60 = vector.shape_cast %59 : vector<128xf32> to vector<1x128xf32>
    %61 = arith.addf %45, %60 : vector<1x128xf32>
    %62 = arith.mulf %57, %57 : vector<64x128xf32>
    %cst_45 = arith.constant dense<0.000000e+00> : vector<128xf32>
    %63 = vector.multi_reduction <add>, %62, %cst_45 [0] : vector<64x128xf32> to vector<128xf32>
    %64 = vector.shape_cast %63 : vector<128xf32> to vector<1x128xf32>
    %65 = arith.addf %49, %64 : vector<1x128xf32>
    %c0_46 = arith.constant 0 : index
    %c0_47 = arith.constant 0 : index
    %c0_48 = arith.constant 0 : index
    %66 = vector.load %arg4[%c0_46, %c0_47, %c0_48] : memref<1x2x128xf32, #tpu.memory_space<vmem>>, vector<1x1x128xf32>
    %67 = vector.shape_cast %66 : vector<1x1x128xf32> to vector<1x128xf32>
    %68 = vector.shape_cast %61 : vector<1x128xf32> to vector<1x1x128xf32>
    tpu.vector_store %arg4[%c0_46, %c0_47, %c0_48], %68 {strides = array<i32>} : memref<1x2x128xf32, #tpu.memory_space<vmem>>, vector<1x1x128xf32>,
    %c0_49 = arith.constant 0 : index
    %c1 = arith.constant 1 : index
    %c0_50 = arith.constant 0 : index
    %69 = vector.load %arg4[%c0_49, %c1, %c0_50] : memref<1x2x128xf32, #tpu.memory_space<vmem>>, vector<1x1x128xf32>
    %70 = vector.shape_cast %69 : vector<1x1x128xf32> to vector<1x128xf32>
    %71 = vector.shape_cast %65 : vector<1x128xf32> to vector<1x1x128xf32>
    tpu.vector_store %arg4[%c0_49, %c1, %c0_50], %71 {strides = array<i32>} : memref<1x2x128xf32, #tpu.memory_space<vmem>>, vector<1x1x128xf32>,
    return
  }
  func.func @transform_0(%arg0: i32) -> (i32, i32, i32, i32) {
    %c0_i32 = arith.constant 0 : i32
    %c0_i32_0 = arith.constant 0 : i32
    %c0_i32_1 = arith.constant 0 : i32
    %c0_i32_2 = arith.constant 0 : i32
    return %arg0, %c0_i32, %c0_i32_0, %c0_i32_1 : i32, i32, i32, i32
  }
  func.func @transform_1(%arg0: i32) -> (i32, i32, i32) {
    %c0_i32 = arith.constant 0 : i32
    %c0_i32_0 = arith.constant 0 : i32
    %c0_i32_1 = arith.constant 0 : i32
    %c0_i32_2 = arith.constant 0 : i32
    return %c0_i32, %c0_i32_0, %c0_i32_1 : i32, i32, i32
  }
  func.func @transform_2(%arg0: i32) -> (i32, i32) {
    %c0_i32 = arith.constant 0 : i32
    %c0_i32_0 = arith.constant 0 : i32
    return %arg0, %c0_i32 : i32, i32
  }
  func.func @transform_3(%arg0: i32) -> (i32, i32, i32) {
    %c0_i32 = arith.constant 0 : i32
    %c0_i32_0 = arith.constant 0 : i32
    %c0_i32_1 = arith.constant 0 : i32
    return %arg0, %c0_i32, %c0_i32_0 : i32, i32, i32
  }
}

module attributes {stable_mosaic.version = 11 : i64} {
  func.func @_dual_affine_add_relu_kernel(%arg0: i32, %arg1: memref<256x128xf32, #tpu.memory_space<vmem>>, %arg2: memref<256x128xf32, #tpu.memory_space<vmem>>, %arg3: memref<1x128xf32, #tpu.memory_space<vmem>>, %arg4: memref<1x128xf32, #tpu.memory_space<vmem>>, %arg5: memref<1x128xf32, #tpu.memory_space<vmem>>, %arg6: memref<1x128xf32, #tpu.memory_space<vmem>>, %arg7: memref<256x128xf32, #tpu.memory_space<vmem>>) attributes {dimension_semantics = [#tpu.dimension_semantics<parallel>], iteration_bounds = array<i64: 2>, scalar_prefetch = 0 : i64, scratch_operands = 0 : i64, tpu.core_type = #tpu.core_type<tc>, window_params = [{transform_indices = @transform_0, window_bounds = array<i64: 256, 128>}, {transform_indices = @transform_1, window_bounds = array<i64: 256, 128>}, {pipeline_mode = #tpu.pipeline_mode<synchronous>, transform_indices = @transform_2, window_bounds = array<i64: 1, 128>}, {pipeline_mode = #tpu.pipeline_mode<synchronous>, transform_indices = @transform_3, window_bounds = array<i64: 1, 128>}, {pipeline_mode = #tpu.pipeline_mode<synchronous>, transform_indices = @transform_4, window_bounds = array<i64: 1, 128>}, {pipeline_mode = #tpu.pipeline_mode<synchronous>, transform_indices = @transform_5, window_bounds = array<i64: 1, 128>}, {transform_indices = @transform_6, window_bounds = array<i64: 256, 128>}]} {
    %c0 = arith.constant 0 : index
    %c0_0 = arith.constant 0 : index
    %0 = vector.load %arg1[%c0, %c0_0] : memref<256x128xf32, #tpu.memory_space<vmem>>, vector<256x128xf32>
    %c0_1 = arith.constant 0 : index
    %c0_2 = arith.constant 0 : index
    %1 = vector.load %arg3[%c0_1, %c0_2] : memref<1x128xf32, #tpu.memory_space<vmem>>, vector<1x128xf32>
    %2 = vector.broadcast %1 : vector<1x128xf32> to vector<256x128xf32>
    %3 = arith.mulf %0, %2 : vector<256x128xf32>
    %c0_3 = arith.constant 0 : index
    %c0_4 = arith.constant 0 : index
    %4 = vector.load %arg4[%c0_3, %c0_4] : memref<1x128xf32, #tpu.memory_space<vmem>>, vector<1x128xf32>
    %5 = vector.broadcast %4 : vector<1x128xf32> to vector<256x128xf32>
    %6 = arith.addf %3, %5 : vector<256x128xf32>
    %c0_5 = arith.constant 0 : index
    %c0_6 = arith.constant 0 : index
    %7 = vector.load %arg2[%c0_5, %c0_6] : memref<256x128xf32, #tpu.memory_space<vmem>>, vector<256x128xf32>
    %c0_7 = arith.constant 0 : index
    %c0_8 = arith.constant 0 : index
    %8 = vector.load %arg5[%c0_7, %c0_8] : memref<1x128xf32, #tpu.memory_space<vmem>>, vector<1x128xf32>
    %9 = vector.broadcast %8 : vector<1x128xf32> to vector<256x128xf32>
    %10 = arith.mulf %7, %9 : vector<256x128xf32>
    %11 = arith.addf %6, %10 : vector<256x128xf32>
    %c0_9 = arith.constant 0 : index
    %c0_10 = arith.constant 0 : index
    %12 = vector.load %arg6[%c0_9, %c0_10] : memref<1x128xf32, #tpu.memory_space<vmem>>, vector<1x128xf32>
    %13 = vector.broadcast %12 : vector<1x128xf32> to vector<256x128xf32>
    %14 = arith.addf %11, %13 : vector<256x128xf32>
    %cst = arith.constant 0.000000e+00 : f32
    %15 = vector.broadcast %cst : f32 to vector<256x128xf32>
    %16 = arith.maximumf %14, %15 : vector<256x128xf32>
    %c0_11 = arith.constant 0 : index
    %c0_12 = arith.constant 0 : index
    %17 = vector.load %arg7[%c0_11, %c0_12] : memref<256x128xf32, #tpu.memory_space<vmem>>, vector<256x128xf32>
    tpu.vector_store %arg7[%c0_11, %c0_12], %16 {strides = array<i32>} : memref<256x128xf32, #tpu.memory_space<vmem>>, vector<256x128xf32>,
    return
  }
  func.func @transform_0(%arg0: i32) -> (i32, i32) {
    %c0_i32 = arith.constant 0 : i32
    %c0_i32_0 = arith.constant 0 : i32
    return %arg0, %c0_i32 : i32, i32
  }
  func.func @transform_1(%arg0: i32) -> (i32, i32) {
    %c0_i32 = arith.constant 0 : i32
    %c0_i32_0 = arith.constant 0 : i32
    return %arg0, %c0_i32 : i32, i32
  }
  func.func @transform_2(%arg0: i32) -> (i32, i32) {
    %c0_i32 = arith.constant 0 : i32
    %c0_i32_0 = arith.constant 0 : i32
    %c0_i32_1 = arith.constant 0 : i32
    return %c0_i32, %c0_i32_0 : i32, i32
  }
  func.func @transform_3(%arg0: i32) -> (i32, i32) {
    %c0_i32 = arith.constant 0 : i32
    %c0_i32_0 = arith.constant 0 : i32
    %c0_i32_1 = arith.constant 0 : i32
    return %c0_i32, %c0_i32_0 : i32, i32
  }
  func.func @transform_4(%arg0: i32) -> (i32, i32) {
    %c0_i32 = arith.constant 0 : i32
    %c0_i32_0 = arith.constant 0 : i32
    %c0_i32_1 = arith.constant 0 : i32
    return %c0_i32, %c0_i32_0 : i32, i32
  }
  func.func @transform_5(%arg0: i32) -> (i32, i32) {
    %c0_i32 = arith.constant 0 : i32
    %c0_i32_0 = arith.constant 0 : i32
    %c0_i32_1 = arith.constant 0 : i32
    return %c0_i32, %c0_i32_0 : i32, i32
  }
  func.func @transform_6(%arg0: i32) -> (i32, i32) {
    %c0_i32 = arith.constant 0 : i32
    %c0_i32_0 = arith.constant 0 : i32
    return %arg0, %c0_i32 : i32, i32
  }
}

module attributes {stable_mosaic.version = 11 : i64} {
  func.func @_avgpool_kernel(%arg0: i32, %arg1: memref<16x32x128xf32, #tpu.memory_space<vmem>>, %arg2: memref<32x128xf32, #tpu.memory_space<vmem>>) attributes {dimension_semantics = [#tpu.dimension_semantics<arbitrary>], iteration_bounds = array<i64: 1>, scalar_prefetch = 0 : i64, scratch_operands = 0 : i64, tpu.core_type = #tpu.core_type<tc>, window_params = [{pipeline_mode = #tpu.pipeline_mode<synchronous>, transform_indices = @transform_0, window_bounds = array<i64: 16, 32, 128>}, {pipeline_mode = #tpu.pipeline_mode<synchronous>, transform_indices = @transform_1, window_bounds = array<i64: 32, 128>}]} {
    %c0 = arith.constant 0 : index
    %c0_0 = arith.constant 0 : index
    %c0_1 = arith.constant 0 : index
    %0 = vector.load %arg1[%c0, %c0_0, %c0_1] : memref<16x32x128xf32, #tpu.memory_space<vmem>>, vector<1x32x128xf32>
    %1 = vector.shape_cast %0 : vector<1x32x128xf32> to vector<32x128xf32>
    %c1 = arith.constant 1 : index
    %c0_2 = arith.constant 0 : index
    %c0_3 = arith.constant 0 : index
    %2 = vector.load %arg1[%c1, %c0_2, %c0_3] : memref<16x32x128xf32, #tpu.memory_space<vmem>>, vector<1x32x128xf32>
    %3 = vector.shape_cast %2 : vector<1x32x128xf32> to vector<32x128xf32>
    %4 = arith.addf %1, %3 : vector<32x128xf32>
    %c2 = arith.constant 2 : index
    %c0_4 = arith.constant 0 : index
    %c0_5 = arith.constant 0 : index
    %5 = vector.load %arg1[%c2, %c0_4, %c0_5] : memref<16x32x128xf32, #tpu.memory_space<vmem>>, vector<1x32x128xf32>
    %6 = vector.shape_cast %5 : vector<1x32x128xf32> to vector<32x128xf32>
    %7 = arith.addf %4, %6 : vector<32x128xf32>
    %c3 = arith.constant 3 : index
    %c0_6 = arith.constant 0 : index
    %c0_7 = arith.constant 0 : index
    %8 = vector.load %arg1[%c3, %c0_6, %c0_7] : memref<16x32x128xf32, #tpu.memory_space<vmem>>, vector<1x32x128xf32>
    %9 = vector.shape_cast %8 : vector<1x32x128xf32> to vector<32x128xf32>
    %10 = arith.addf %7, %9 : vector<32x128xf32>
    %c4 = arith.constant 4 : index
    %c0_8 = arith.constant 0 : index
    %c0_9 = arith.constant 0 : index
    %11 = vector.load %arg1[%c4, %c0_8, %c0_9] : memref<16x32x128xf32, #tpu.memory_space<vmem>>, vector<1x32x128xf32>
    %12 = vector.shape_cast %11 : vector<1x32x128xf32> to vector<32x128xf32>
    %13 = arith.addf %10, %12 : vector<32x128xf32>
    %c5 = arith.constant 5 : index
    %c0_10 = arith.constant 0 : index
    %c0_11 = arith.constant 0 : index
    %14 = vector.load %arg1[%c5, %c0_10, %c0_11] : memref<16x32x128xf32, #tpu.memory_space<vmem>>, vector<1x32x128xf32>
    %15 = vector.shape_cast %14 : vector<1x32x128xf32> to vector<32x128xf32>
    %16 = arith.addf %13, %15 : vector<32x128xf32>
    %c6 = arith.constant 6 : index
    %c0_12 = arith.constant 0 : index
    %c0_13 = arith.constant 0 : index
    %17 = vector.load %arg1[%c6, %c0_12, %c0_13] : memref<16x32x128xf32, #tpu.memory_space<vmem>>, vector<1x32x128xf32>
    %18 = vector.shape_cast %17 : vector<1x32x128xf32> to vector<32x128xf32>
    %19 = arith.addf %16, %18 : vector<32x128xf32>
    %c7 = arith.constant 7 : index
    %c0_14 = arith.constant 0 : index
    %c0_15 = arith.constant 0 : index
    %20 = vector.load %arg1[%c7, %c0_14, %c0_15] : memref<16x32x128xf32, #tpu.memory_space<vmem>>, vector<1x32x128xf32>
    %21 = vector.shape_cast %20 : vector<1x32x128xf32> to vector<32x128xf32>
    %22 = arith.addf %19, %21 : vector<32x128xf32>
    %c8 = arith.constant 8 : index
    %c0_16 = arith.constant 0 : index
    %c0_17 = arith.constant 0 : index
    %23 = vector.load %arg1[%c8, %c0_16, %c0_17] : memref<16x32x128xf32, #tpu.memory_space<vmem>>, vector<1x32x128xf32>
    %24 = vector.shape_cast %23 : vector<1x32x128xf32> to vector<32x128xf32>
    %25 = arith.addf %22, %24 : vector<32x128xf32>
    %c9 = arith.constant 9 : index
    %c0_18 = arith.constant 0 : index
    %c0_19 = arith.constant 0 : index
    %26 = vector.load %arg1[%c9, %c0_18, %c0_19] : memref<16x32x128xf32, #tpu.memory_space<vmem>>, vector<1x32x128xf32>
    %27 = vector.shape_cast %26 : vector<1x32x128xf32> to vector<32x128xf32>
    %28 = arith.addf %25, %27 : vector<32x128xf32>
    %c10 = arith.constant 10 : index
    %c0_20 = arith.constant 0 : index
    %c0_21 = arith.constant 0 : index
    %29 = vector.load %arg1[%c10, %c0_20, %c0_21] : memref<16x32x128xf32, #tpu.memory_space<vmem>>, vector<1x32x128xf32>
    %30 = vector.shape_cast %29 : vector<1x32x128xf32> to vector<32x128xf32>
    %31 = arith.addf %28, %30 : vector<32x128xf32>
    %c11 = arith.constant 11 : index
    %c0_22 = arith.constant 0 : index
    %c0_23 = arith.constant 0 : index
    %32 = vector.load %arg1[%c11, %c0_22, %c0_23] : memref<16x32x128xf32, #tpu.memory_space<vmem>>, vector<1x32x128xf32>
    %33 = vector.shape_cast %32 : vector<1x32x128xf32> to vector<32x128xf32>
    %34 = arith.addf %31, %33 : vector<32x128xf32>
    %c12 = arith.constant 12 : index
    %c0_24 = arith.constant 0 : index
    %c0_25 = arith.constant 0 : index
    %35 = vector.load %arg1[%c12, %c0_24, %c0_25] : memref<16x32x128xf32, #tpu.memory_space<vmem>>, vector<1x32x128xf32>
    %36 = vector.shape_cast %35 : vector<1x32x128xf32> to vector<32x128xf32>
    %37 = arith.addf %34, %36 : vector<32x128xf32>
    %c13 = arith.constant 13 : index
    %c0_26 = arith.constant 0 : index
    %c0_27 = arith.constant 0 : index
    %38 = vector.load %arg1[%c13, %c0_26, %c0_27] : memref<16x32x128xf32, #tpu.memory_space<vmem>>, vector<1x32x128xf32>
    %39 = vector.shape_cast %38 : vector<1x32x128xf32> to vector<32x128xf32>
    %40 = arith.addf %37, %39 : vector<32x128xf32>
    %c14 = arith.constant 14 : index
    %c0_28 = arith.constant 0 : index
    %c0_29 = arith.constant 0 : index
    %41 = vector.load %arg1[%c14, %c0_28, %c0_29] : memref<16x32x128xf32, #tpu.memory_space<vmem>>, vector<1x32x128xf32>
    %42 = vector.shape_cast %41 : vector<1x32x128xf32> to vector<32x128xf32>
    %43 = arith.addf %40, %42 : vector<32x128xf32>
    %c15 = arith.constant 15 : index
    %c0_30 = arith.constant 0 : index
    %c0_31 = arith.constant 0 : index
    %44 = vector.load %arg1[%c15, %c0_30, %c0_31] : memref<16x32x128xf32, #tpu.memory_space<vmem>>, vector<1x32x128xf32>
    %45 = vector.shape_cast %44 : vector<1x32x128xf32> to vector<32x128xf32>
    %46 = arith.addf %43, %45 : vector<32x128xf32>
    %cst = arith.constant 6.250000e-02 : f32
    %47 = vector.broadcast %cst : f32 to vector<32x128xf32>
    %48 = arith.mulf %46, %47 : vector<32x128xf32>
    %c0_32 = arith.constant 0 : index
    %c0_33 = arith.constant 0 : index
    %49 = vector.load %arg2[%c0_32, %c0_33] : memref<32x128xf32, #tpu.memory_space<vmem>>, vector<32x128xf32>
    tpu.vector_store %arg2[%c0_32, %c0_33], %48 {strides = array<i32>} : memref<32x128xf32, #tpu.memory_space<vmem>>, vector<32x128xf32>,
    return
  }
  func.func @transform_0(%arg0: i32) -> (i32, i32, i32) {
    %c0_i32 = arith.constant 0 : i32
    %c0_i32_0 = arith.constant 0 : i32
    %c0_i32_1 = arith.constant 0 : i32
    %c0_i32_2 = arith.constant 0 : i32
    return %c0_i32, %c0_i32_0, %c0_i32_1 : i32, i32, i32
  }
  func.func @transform_1(%arg0: i32) -> (i32, i32) {
    %c0_i32 = arith.constant 0 : i32
    %c0_i32_0 = arith.constant 0 : i32
    %c0_i32_1 = arith.constant 0 : i32
    return %c0_i32, %c0_i32_0 : i32, i32
  }
}

</mosaic_0001>

<bundles_post_ra>
// kernel: resnet_forward.14
= control target key start
LH: loop header
LB: loop body
LE: loop exit
PB: predicated region body
PF: predicated region fallthrough
CT: control target
= control target key end

     0   :  { %s453_s12 = smov 0   ;;  %s612_s0 = inlined_call_operand.vmem [shape: f32[512,128], index: 0, kind: input, shape index: {}]   ;;  %s613_s1 = inlined_call_operand.vmem [shape: f32[1,128], index: 1, kind: input, shape index: {}]   ;;  %s614_s2 = inlined_call_operand.vmem [shape: f32[1,128], index: 2, kind: input, shape index: {}]   ;;  %s615_s3 = inlined_call_operand.vmem [shape: f32[512,128], index: 3, kind: output, shape index: {}]  }
   0x1 LB: > { %s404_s13 = sadd.s32 4294967295, %s431_s12   ;;  %p408_p0 = scmp.ge.s32.totalorder %s431_s12, 1  ;;  %s431_s12 = sphi %s453_s12, %s13_s12  }
   0x2   : > { %p138_p1 = scmp.lt.s32.totalorder %s431_s12, 3 }
   0x4   : > { %p139_p2 = pnand %p408_p0, %p138_p1 }
   0x5   : > { %s409_s14 = sshll.u32 (!%p139_p2), %s404_s13, 5  ;;  %v464_v0 = vld [vmem:[%s613_s1] ss:$0 sm:$0xff] (!%p139_p2) }
   0x6   : > { %142 = sbr.rel (%p139_p2) target bundleno = 46 (0x2e), region = 32  ;;  %p163_p3 = scmp.lt.s32.totalorder (!%p139_p2), %s409_s14, 63  ;;  %v474_v1 = vld [vmem:[%s614_s2] ss:$0 sm:$0xff] (!%p139_p2) }
   0xd   : > { %s617_s14 = smov (!%p163_p3, %s409_s14), 63 }
   0xe   : > { %s410_s15 = sshll.u32 %s617_s14, 3 }
   0xf   : > { %s469_s20 = scalar_lea.vmem %s612_s0, %s410_s15  ;;  %s497_s25 = scalar_lea.vmem %s615_s3, %s410_s15 }
  0x10   : > { %v174_v2 = vld [vmem:[%s469_s20] sm:$0xff]  ;;  %v175_v3 = vld [vmem:[%s469_s20 + $0x8] sm:$0xff]  ;;  %v176_v4 = vld [vmem:[%s469_s20 + $0x10] sm:$0xff] }
  0x11   : > { %v213_v5 = vmul.f32 %v464_v0, %v174_v2  ;;  %v214_v6 = vmul.f32 %v464_v0, %v175_v3  ;;  %v215_v7 = vmul.f32 %v464_v0, %v176_v4  ;;  %v177_v8 = vld [vmem:[%s469_s20 + $0x18] sm:$0xff]  ;;  %v178_v9 = vld [vmem:[%s469_s20 + $0x20] sm:$0xff]  ;;  %v179_v10 = vld [vmem:[%s469_s20 + $0x28] sm:$0xff] }
  0x12   : > { %v216_v11 = vmul.f32 %v464_v0, %v177_v8  ;;  %v217_v12 = vmul.f32 %v464_v0, %v178_v9  ;;  %v218_v13 = vmul.f32 %v464_v0, %v179_v10  ;;  %v180_v14 = vld [vmem:[%s469_s20 + $0x30] sm:$0xff]  ;;  %v181_v15 = vld [vmem:[%s469_s20 + $0x38] sm:$0xff]  ;;  %v182_v24 = vld [vmem:[%s469_s20 + $0x40] sm:$0xff] }
  0x13   : > { %v252_v16 = vadd.f32 %v474_v1, %v213_v5  ;;  %v253_v17 = vadd.f32 %v474_v1, %v214_v6  ;;  %v254_v18 = vadd.f32 %v474_v1, %v215_v7  ;;  %v219_v19 = vmul.f32 %v464_v0, %v180_v14  ;;  %v183_v25 = vld [vmem:[%s469_s20 + $0x48] sm:$0xff]  ;;  %v184_v26 = vld [vmem:[%s469_s20 + $0x50] sm:$0xff]  ;;  %v185_v31 = vld [vmem:[%s469_s20 + $0x58] sm:$0xff] }
  0x14   : > { %v255_v20 = vadd.f32 %v474_v1, %v216_v11  ;;  %v256_v21 = vadd.f32 %v474_v1, %v217_v12  ;;  %v257_v22 = vadd.f32 %v474_v1, %v218_v13  ;;  %v220_v23 = vmul.f32 %v464_v0, %v181_v15  ;;  %v186_v32 = vld [vmem:[%s469_s20 + $0x60] sm:$0xff]  ;;  %v187_v33 = vld [vmem:[%s469_s20 + $0x68] sm:$0xff]  ;;  %v188_v38 = vld [vmem:[%s469_s20 + $0x70] sm:$0xff] }
  0x15   : > { %v284_v27 = vmax.f32 %v252_v16, 0.0  ;;  %v285_v28 = vmax.f32 %v253_v17, 0.0  ;;  %v286_v29 = vmax.f32 %v254_v18, 0.0  ;;  %v258_v30 = vadd.f32 %v474_v1, %v219_v19  ;;  %v189_v43 = vld [vmem:[%s469_s20 + $0x78] sm:$0xff]  ;;  %v190_v56 = vld [vmem:[%s469_s20 + $0x80] sm:$0xff]  ;;  %v191_v57 = vld [vmem:[%s469_s20 + $0x88] sm:$0xff] }
  0x16   : > { %v287_v34 = vmax.f32 %v255_v20, 0.0  ;;  %v288_v35 = vmax.f32 %v256_v21, 0.0  ;;  %v289_v36 = vmax.f32 %v257_v22, 0.0  ;;  %v259_v37 = vadd.f32 %v474_v1, %v220_v23  ;;  %v192_v58 = vld [vmem:[%s469_s20 + $0x90] sm:$0xff]  ;;  %v193_v63 = vld [vmem:[%s469_s20 + $0x98] sm:$0xff]  ;;  %v194_v2 = vld [vmem:[%s469_s20 + $0xa0] sm:$0xff] }
  0x17   : > { %316 = vst [vmem:[%s497_s25] sm:$0xff] %v284_v27  ;;  %317 = vst [vmem:[%s497_s25 + $0x8] sm:$0xff] %v285_v28  ;;  %v290_v39 = vmax.f32 %v258_v30, 0.0  ;;  %v221_v40 = vmul.f32 %v464_v0, %v182_v24  ;;  %v222_v41 = vmul.f32 %v464_v0, %v183_v25  ;;  %v223_v42 = vmul.f32 %v464_v0, %v184_v26  ;;  %v195_v3 = vld [vmem:[%s469_s20 + $0xa8] sm:$0xff]  ;;  %v196_v8 = vld [vmem:[%s469_s20 + $0xb0] sm:$0xff] }
  0x18   : > { %318 = vst [vmem:[%s497_s25 + $0x10] sm:$0xff] %v286_v29  ;;  %319 = vst [vmem:[%s497_s25 + $0x18] sm:$0xff] %v287_v34  ;;  %v291_v44 = vmax.f32 %v259_v37, 0.0  ;;  %v224_v45 = vmul.f32 %v464_v0, %v185_v31  ;;  %v225_v46 = vmul.f32 %v464_v0, %v186_v32  ;;  %v226_v47 = vmul.f32 %v464_v0, %v187_v33  ;;  %v197_v13 = vld [vmem:[%s469_s20 + $0xb8] sm:$0xff]  ;;  %v198_v26 = vld [vmem:[%s469_s20 + $0xc0] sm:$0xff] }
  0x19   : > { %320 = vst [vmem:[%s497_s25 + $0x20] sm:$0xff] %v288_v35  ;;  %321 = vst [vmem:[%s497_s25 + $0x28] sm:$0xff] %v289_v36  ;;  %v260_v48 = vadd.f32 %v474_v1, %v221_v40  ;;  %v261_v49 = vadd.f32 %v474_v1, %v222_v41  ;;  %v262_v50 = vadd.f32 %v474_v1, %v223_v42  ;;  %v199_v27 = vld [vmem:[%s469_s20 + $0xc8] sm:$0xff]  ;;  %v200_v28 = vld [vmem:[%s469_s20 + $0xd0] sm:$0xff] }
  0x1a   : > { %322 = vst [vmem:[%s497_s25 + $0x30] sm:$0xff] %v290_v39  ;;  %v227_v51 = vmul.f32 %v464_v0, %v188_v38  ;;  %323 = vst [vmem:[%s497_s25 + $0x38] sm:$0xff] %v291_v44  ;;  %v263_v52 = vadd.f32 %v474_v1, %v224_v45  ;;  %v264_v53 = vadd.f32 %v474_v1, %v225_v46  ;;  %v201_v33 = vld [vmem:[%s469_s20 + $0xd8] sm:$0xff]  ;;  %v202_v34 = vld [vmem:[%s469_s20 + $0xe0] sm:$0xff] }
  0x1b   : > { %v265_v54 = vadd.f32 %v474_v1, %v226_v47  ;;  %v228_v55 = vmul.f32 %v464_v0, %v189_v43  ;;  %v292_v59 = vmax.f32 %v260_v48, 0.0  ;;  %v293_v60 = vmax.f32 %v261_v49, 0.0  ;;  %v203_v35 = vld [vmem:[%s469_s20 + $0xe8] sm:$0xff]  ;;  %v204_v40 = vld [vmem:[%s469_s20 + $0xf0] sm:$0xff]  ;;  %v205_v45 = vld [vmem:[%s469_s20 + $0xf8] sm:$0xff] }
  0x1c   : > { %v294_v61 = vmax.f32 %v262_v50, 0.0  ;;  %v266_v62 = vadd.f32 %v474_v1, %v227_v51  ;;  %v295_v4 = vmax.f32 %v263_v52, 0.0  ;;  %v296_v5 = vmax.f32 %v264_v53, 0.0 }
  0x1d   : > { %v297_v6 = vmax.f32 %v265_v54, 0.0  ;;  %v267_v7 = vadd.f32 %v474_v1, %v228_v55  ;;  %324 = vst [vmem:[%s497_s25 + $0x40] sm:$0xff] %v292_v59  ;;  %325 = vst [vmem:[%s497_s25 + $0x48] sm:$0xff] %v293_v60  ;;  %v229_v10 = vmul.f32 %v464_v0, %v190_v56  ;;  %v230_v11 = vmul.f32 %v464_v0, %v191_v57 }
  0x1e   : > { %326 = vst [vmem:[%s497_s25 + $0x50] sm:$0xff] %v294_v61  ;;  %v298_v9 = vmax.f32 %v266_v62, 0.0  ;;  %v231_v12 = vmul.f32 %v464_v0, %v192_v58  ;;  %327 = vst [vmem:[%s497_s25 + $0x58] sm:$0xff] %v295_v4  ;;  %v232_v15 = vmul.f32 %v464_v0, %v193_v63  ;;  %v233_v16 = vmul.f32 %v464_v0, %v194_v2 }
  0x1f   : > { %328 = vst [vmem:[%s497_s25 + $0x60] sm:$0xff] %v296_v5  ;;  %329 = vst [vmem:[%s497_s25 + $0x68] sm:$0xff] %v297_v6  ;;  %v299_v14 = vmax.f32 %v267_v7, 0.0  ;;  %v234_v17 = vmul.f32 %v464_v0, %v195_v3  ;;  %v268_v18 = vadd.f32 %v474_v1, %v229_v10  ;;  %v269_v19 = vadd.f32 %v474_v1, %v230_v11 }
  0x20   : > { %330 = vst [vmem:[%s497_s25 + $0x70] sm:$0xff] %v298_v9  ;;  %v270_v20 = vadd.f32 %v474_v1, %v231_v12  ;;  %v235_v21 = vmul.f32 %v464_v0, %v196_v8  ;;  %v271_v22 = vadd.f32 %v474_v1, %v232_v15  ;;  %v272_v23 = vadd.f32 %v474_v1, %v233_v16 }
  0x21   : > { %331 = vst [vmem:[%s497_s25 + $0x78] sm:$0xff] %v299_v14  ;;  %v273_v24 = vadd.f32 %v474_v1, %v234_v17  ;;  %v236_v25 = vmul.f32 %v464_v0, %v197_v13  ;;  %v300_v29 = vmax.f32 %v268_v18, 0.0  ;;  %v301_v30 = vmax.f32 %v269_v19, 0.0 }
  0x22   : > { %v302_v31 = vmax.f32 %v270_v20, 0.0  ;;  %v274_v32 = vadd.f32 %v474_v1, %v235_v21  ;;  %v303_v36 = vmax.f32 %v271_v22, 0.0  ;;  %v304_v37 = vmax.f32 %v272_v23, 0.0 }
  0x23   : > { %v305_v38 = vmax.f32 %v273_v24, 0.0  ;;  %v275_v39 = vadd.f32 %v474_v1, %v236_v25  ;;  %332 = vst [vmem:[%s497_s25 + $0x80] sm:$0xff] %v300_v29  ;;  %333 = vst [vmem:[%s497_s25 + $0x88] sm:$0xff] %v301_v30  ;;  %v237_v42 = vmul.f32 %v464_v0, %v198_v26  ;;  %v238_v43 = vmul.f32 %v464_v0, %v199_v27 }
  0x24   : > { %334 = vst [vmem:[%s497_s25 + $0x90] sm:$0xff] %v302_v31  ;;  %v306_v41 = vmax.f32 %v274_v32, 0.0  ;;  %v239_v44 = vmul.f32 %v464_v0, %v200_v28  ;;  %335 = vst [vmem:[%s497_s25 + $0x98] sm:$0xff] %v303_v36  ;;  %v240_v47 = vmul.f32 %v464_v0, %v201_v33  ;;  %v241_v48 = vmul.f32 %v464_v0, %v202_v34 }
  0x25   : > { %336 = vst [vmem:[%s497_s25 + $0xa0] sm:$0xff] %v304_v37  ;;  %337 = vst [vmem:[%s497_s25 + $0xa8] sm:$0xff] %v305_v38  ;;  %v307_v46 = vmax.f32 %v275_v39, 0.0  ;;  %v242_v49 = vmul.f32 %v464_v0, %v203_v35  ;;  %v276_v50 = vadd.f32 %v474_v1, %v237_v42  ;;  %v277_v51 = vadd.f32 %v474_v1, %v238_v43 }
  0x26   : > { %338 = vst [vmem:[%s497_s25 + $0xb0] sm:$0xff] %v306_v41  ;;  %v278_v52 = vadd.f32 %v474_v1, %v239_v44  ;;  %v243_v53 = vmul.f32 %v464_v0, %v204_v40  ;;  %v279_v54 = vadd.f32 %v474_v1, %v240_v47  ;;  %v280_v55 = vadd.f32 %v474_v1, %v241_v48 }
  0x27   : > { %339 = vst [vmem:[%s497_s25 + $0xb8] sm:$0xff] %v307_v46  ;;  %v281_v56 = vadd.f32 %v474_v1, %v242_v49  ;;  %v244_v57 = vmul.f32 %v464_v0, %v205_v45  ;;  %v308_v58 = vmax.f32 %v276_v50, 0.0  ;;  %v309_v59 = vmax.f32 %v277_v51, 0.0 }
  0x28   : > { %v310_v60 = vmax.f32 %v278_v52, 0.0  ;;  %v282_v61 = vadd.f32 %v474_v1, %v243_v53  ;;  %v311_v62 = vmax.f32 %v279_v54, 0.0  ;;  %v312_v63 = vmax.f32 %v280_v55, 0.0 }
  0x29   : > { %v313_v2 = vmax.f32 %v281_v56, 0.0  ;;  %v283_v3 = vadd.f32 %v474_v1, %v244_v57  ;;  %340 = vst [vmem:[%s497_s25 + $0xc0] sm:$0xff] %v308_v58  ;;  %341 = vst [vmem:[%s497_s25 + $0xc8] sm:$0xff] %v309_v59 }
  0x2a   : > { %342 = vst [vmem:[%s497_s25 + $0xd0] sm:$0xff] %v310_v60  ;;  %v314_v4 = vmax.f32 %v282_v61, 0.0  ;;  %343 = vst [vmem:[%s497_s25 + $0xd8] sm:$0xff] %v311_v62 }
  0x2b   : > { %344 = vst [vmem:[%s497_s25 + $0xe0] sm:$0xff] %v312_v63  ;;  %345 = vst [vmem:[%s497_s25 + $0xe8] sm:$0xff] %v313_v2  ;;  %v315_v0 = vmax.f32 %v283_v3, 0.0 }
  0x2c   : > { %346 = vst [vmem:[%s497_s25 + $0xf0] sm:$0xff] %v314_v4 }
  0x2d   : > { %347 = vst [vmem:[%s497_s25 + $0xf8] sm:$0xff] %v315_v0 }
  0x2e PF: > { %s13_s12 = sadd.s32 1, %s431_s12  }
  0x2f   : > { %p10_p4 = scmp.ge.s32.totalorder %s13_s12, 4  }
  0x31   :  { %12 = sbr.rel (!%p10_p4) target bundleno = 1 (0x1), region = 62 }

// kernel: resnet_forward.16
= control target key start
LH: loop header
LB: loop body
LE: loop exit
PB: predicated region body
PF: predicated region fallthrough
CT: control target
= control target key end

     0   :  { %s1440_s12 = smov 0   ;;  %s1671_s0 = inlined_call_operand.vmem [shape: f32[2,16,16,128], index: 0, kind: input, shape index: {}]   ;;  %s1672_s1 = inlined_call_operand.vmem [shape: f32[1,128,128], index: 1, kind: input, shape index: {}]   ;;  %s1673_s2 = inlined_call_operand.vmem [shape: f32[512,128], index: 2, kind: output, shape index: {0}]   ;;  %s1674_s3 = inlined_call_operand.vmem [shape: f32[2,2,128], index: 3, kind: output, shape index: {1}]  }
   0x1 LB: > { %s1446_s13 = sadd.s32 4294967295, %s1418_s12   ;;  %p971_p0 = scmp.ge.s32.totalorder %s1418_s12, 1  ;;  %s1418_s12 = sphi %s1440_s12, %s14_s12  }
   0x2   : > { %p140_p1 = scmp.lt.s32.totalorder %s1418_s12, 3 }
   0x4   : > { %p141_p2 = pnand %p971_p0, %p140_p1 }
   0x5   : > { %v191_v0 = vld [vmem:[%s1672_s1] sm:$0xff] (!%p141_p2)  ;;  %v192_v1 = vld [vmem:[%s1672_s1 + $0x8] sm:$0xff] (!%p141_p2)  ;;  %v193_v2 = vld [vmem:[%s1672_s1 + $0x10] sm:$0xff] (!%p141_p2)  ;;  %p168_p3 = scmp.lt.s32.totalorder (!%p141_p2), %s1446_s13, 1 }
   0x6   : > { %144 = sbr.rel (%p141_p2) target bundleno = 320 (0x140), region = 28  ;;  %v1460_v3 = vpack.c.bf16 (!%p141_p2), %v192_v1, %v191_v0  ;;  %v194_v4 = vld [vmem:[%s1672_s1 + $0x18] sm:$0xff] (!%p141_p2)  ;;  %v195_v6 = vld [vmem:[%s1672_s1 + $0x20] sm:$0xff] (!%p141_p2)  ;;  %v196_v7 = vld [vmem:[%s1672_s1 + $0x28] sm:$0xff] (!%p141_p2) }
   0x7   : > { %v1465_v5 = vpack.c.bf16 (!%p141_p2), %v194_v4, %v193_v2  ;;  %v1483_v8 = vpack.c.bf16 (!%p141_p2), %v196_v7, %v195_v6  ;;  %v197_v9 = vld [vmem:[%s1672_s1 + $0x30] sm:$0xff] (!%p141_p2)  ;;  %v198_v10 = vld [vmem:[%s1672_s1 + $0x38] sm:$0xff] (!%p141_p2)  ;;  %v199_v14 = vld [vmem:[%s1672_s1 + $0x40] sm:$0xff] (!%p141_p2) }
   0x8   : > { %1277 = vmatprep.subr.bf16.mxu0 (!%p141_p2), %v1460_v3  ;;  %1309 = vmatprep.subr.bf16.mxu1 (!%p141_p2), %v1460_v3  ;;  %v1502_v13 = vpack.c.bf16 (!%p141_p2), %v198_v10, %v197_v9  ;;  %v200_v15 = vld [vmem:[%s1672_s1 + $0x48] sm:$0xff] (!%p141_p2)  ;;  %v201_v17 = vld [vmem:[%s1672_s1 + $0x50] sm:$0xff] (!%p141_p2)  ;;  %v202_v18 = vld [vmem:[%s1672_s1 + $0x58] sm:$0xff] (!%p141_p2) }
   0x9   : > { %1279 = vmatpush3.bf16.msra.mxu0 (!%p141_p2), %v1460_v3  ;;  %1311 = vmatpush3.bf16.msra.mxu1 (!%p141_p2), %v1460_v3  ;;  %v1514_v16 = vpack.c.bf16 (!%p141_p2), %v200_v15, %v199_v14  ;;  %v1526_v19 = vpack.c.bf16 (!%p141_p2), %v202_v18, %v201_v17  ;;  %v203_v20 = vld [vmem:[%s1672_s1 + $0x60] sm:$0xff] (!%p141_p2)  ;;  %v204_v21 = vld [vmem:[%s1672_s1 + $0x68] sm:$0xff] (!%p141_p2)  ;;  %v205_v23 = vld [vmem:[%s1672_s1 + $0x70] sm:$0xff] (!%p141_p2) }
   0xa   : > { %1281 = vmatprep.subr.bf16.mxu0 (!%p141_p2), %v1465_v5  ;;  %1313 = vmatprep.subr.bf16.mxu1 (!%p141_p2), %v1465_v5  ;;  %v1538_v22 = vpack.c.bf16 (!%p141_p2), %v204_v21, %v203_v20  ;;  %v206_v24 = vld [vmem:[%s1672_s1 + $0x78] sm:$0xff] (!%p141_p2) }
   0xb   : > { %v1550_v25 = vpack.c.bf16 (!%p141_p2), %v206_v24, %v205_v23 }
   0xd   : > { %s1474_s26 = scalar_select %p168_p3, %s1446_s13, 1  ;;  %1283 = vmatpush3.bf16.msra.mxu0 %v1465_v5  ;;  %1315 = vmatpush3.bf16.msra.mxu1 %v1465_v5 }
   0xe   : > { %1285 = vmatprep.subr.bf16.mxu0 %v1483_v8  ;;  %1317 = vmatprep.subr.bf16.mxu1 %v1483_v8 }
   0xf   : > { %s1003_s27 = sshll.u32 %s1474_s26, 8 }
  0x10   : > { %s1491_s5 = scalar_lea.vmem %s1671_s0, %s1003_s27  ;;  %s974_s27 = sshll.u32 %s1446_s13, 5 }
  0x11   : > { %v183_v11 = vld [vmem:[%s1491_s5] sm:$0xff]  ;;  %1287 = vmatpush3.bf16.msra.mxu0 %v1483_v8  ;;  %1319 = vmatpush3.bf16.msra.mxu1 %v1483_v8  ;;  %v184_v26 = vld [vmem:[%s1491_s5 + $0x8] sm:$0xff]  ;;  %v185_v28 = vld [vmem:[%s1491_s5 + $0x10] sm:$0xff]  ;;  %p174_p4 = scmp.lt.s32.totalorder %s974_s27, 63  ;;  %s976_s13 = sshll.u32 %s1474_s26, 1 }
  0x12   : > { %v977_v12 = vld [vmem:[%s1491_s5 + $0x40] sm:$0xff]  ;;  %1132 = vmatprep.mubr.f32.mxu0 %v183_v11  ;;  %1289 = vmatprep.subr.bf16.mxu0 %v1502_v13  ;;  %v978_v27 = vld [vmem:[%s1491_s5 + $0x48] sm:$0xff]  ;;  %v979_v29 = vld [vmem:[%s1491_s5 + $0x50] sm:$0xff]  ;;  %s182_s7 = scalar_lea.vmem %s1674_s3, %s976_s13 }
  0x13   : > { %1176 = vmatprep.mubr.f32.mxu1 %v977_v12  ;;  %1321 = vmatprep.subr.bf16.mxu1 %v1502_v13  ;;  %v186_v30 = vld [vmem:[%s1491_s5 + $0x18] sm:$0xff]  ;;  %v187_v32 = vld [vmem:[%s1491_s5 + $0x20] sm:$0xff]  ;;  %v188_v34 = vld [vmem:[%s1491_s5 + $0x28] sm:$0xff]  ;;  %s1676_s27 = smov (!%p174_p4, %s974_s27), 63 }
  0x14   : > { %v980_v31 = vld [vmem:[%s1491_s5 + $0x58] sm:$0xff]  ;;  %v981_v33 = vld [vmem:[%s1491_s5 + $0x60] sm:$0xff]  ;;  %v982_v35 = vld [vmem:[%s1491_s5 + $0x68] sm:$0xff]  ;;  %s975_s28 = sshll.u32 %s1676_s27, 3 }
  0x15   : > { %1291 = vmatpush3.bf16.msra.mxu0 %v1502_v13  ;;  %1323 = vmatpush3.bf16.msra.mxu1 %v1502_v13  ;;  %v189_v36 = vld [vmem:[%s1491_s5 + $0x30] sm:$0xff]  ;;  %v190_v38 = vld [vmem:[%s1491_s5 + $0x38] sm:$0xff]  ;;  %v985_v40 = vld [vmem:[%s1491_s5 + $0x80] sm:$0xff]  ;;  %s1624_s4 = scalar_lea.vmem %s1673_s2, %s975_s28 }
  0x16   : > { %1293 = vmatprep.subr.bf16.mxu0 %v1514_v16  ;;  %1325 = vmatprep.subr.bf16.mxu1 %v1514_v16  ;;  %v983_v37 = vld [vmem:[%s1491_s5 + $0x70] sm:$0xff]  ;;  %v984_v39 = vld [vmem:[%s1491_s5 + $0x78] sm:$0xff]  ;;  %v993_v41 = vld [vmem:[%s1491_s5 + $0xc0] sm:$0xff] }
  0x17   : > { %v986_v42 = vld [vmem:[%s1491_s5 + $0x88] sm:$0xff]  ;;  %v987_v44 = vld [vmem:[%s1491_s5 + $0x90] sm:$0xff]  ;;  %v988_v46 = vld [vmem:[%s1491_s5 + $0x98] sm:$0xff] }
  0x18   : > { %v994_v43 = vld [vmem:[%s1491_s5 + $0xc8] sm:$0xff]  ;;  %v995_v45 = vld [vmem:[%s1491_s5 + $0xd0] sm:$0xff]  ;;  %v996_v47 = vld [vmem:[%s1491_s5 + $0xd8] sm:$0xff] }
  0x19   : > { %1295 = vmatpush3.bf16.msra.mxu0 %v1514_v16  ;;  %1327 = vmatpush3.bf16.msra.mxu1 %v1514_v16  ;;  %v989_v48 = vld [vmem:[%s1491_s5 + $0xa0] sm:$0xff]  ;;  %v990_v50 = vld [vmem:[%s1491_s5 + $0xa8] sm:$0xff]  ;;  %v991_v52 = vld [vmem:[%s1491_s5 + $0xb0] sm:$0xff] }
  0x1a   : > { %1297 = vmatprep.subr.bf16.mxu0 %v1526_v19  ;;  %1329 = vmatprep.subr.bf16.mxu1 %v1526_v19  ;;  %v997_v49 = vld [vmem:[%s1491_s5 + $0xe0] sm:$0xff]  ;;  %v998_v51 = vld [vmem:[%s1491_s5 + $0xe8] sm:$0xff]  ;;  %v999_v53 = vld [vmem:[%s1491_s5 + $0xf0] sm:$0xff] }
  0x1b   : > { %v992_v54 = vld [vmem:[%s1491_s5 + $0xb8] sm:$0xff] }
  0x1c   : > { %v1000_v55 = vld [vmem:[%s1491_s5 + $0xf8] sm:$0xff] }
  0x1d   : > { %1299 = vmatpush3.bf16.msra.mxu0 %v1526_v19  ;;  %1331 = vmatpush3.bf16.msra.mxu1 %v1526_v19 }
  0x1e   : > { %1301 = vmatprep.subr.bf16.mxu0 %v1538_v22  ;;  %1333 = vmatprep.subr.bf16.mxu1 %v1538_v22 }
  0x21   : > { %1303 = vmatpush3.bf16.msra.mxu0 %v1538_v22  ;;  %1335 = vmatpush3.bf16.msra.mxu1 %v1538_v22 }
  0x22   : > { %1305 = vmatprep.subr.bf16.mxu0 %v1550_v25  ;;  %1337 = vmatprep.subr.bf16.mxu1 %v1550_v25 }
  0x25   : > { %1307 = vmatpush3.bf16.msra.mxu0 %v1550_v25  ;;  %1339 = vmatpush3.bf16.msra.mxu1 %v1550_v25 }
  0x26   : > { %1341 = vmatprep.subr.bf16.mxu0 %v1460_v3  ;;  %1373 = vmatprep.subr.bf16.mxu1 %v1460_v3 }
  0x28   : > { %1133 = vmatmul.mubr.f32.vlgmr.msra.gmra.mrb[0].mxu0 %v184_v26  ;;  %1177 = vmatmul.mubr.f32.vlgmr.msra.gmra.mrb[0].mxu1 %v978_v27 }
  0x29   : > { %1343 = vmatpush3.bf16.msra.mxu0 %v1460_v3  ;;  %1375 = vmatpush3.bf16.msra.mxu1 %v1460_v3 }
  0x2a   : > { %1135 = vmatprep.mubr.f32.mxu0 %v185_v28  ;;  %1179 = vmatprep.mubr.f32.mxu1 %v979_v29 }
  0x2b   : > { %1345 = vmatprep.subr.bf16.mxu0 %v1465_v5  ;;  %1377 = vmatprep.subr.bf16.mxu1 %v1465_v5 }
  0x2c   : > { %1136 = vmatmul.mubr.f32.gmra.mrb[2].mxu0 %v186_v30  ;;  %1180 = vmatmul.mubr.f32.gmra.mrb[2].mxu1 %v980_v31 }
  0x2d   : > { %1347 = vmatpush3.bf16.msra.mxu0 %v1465_v5  ;;  %1379 = vmatpush3.bf16.msra.mxu1 %v1465_v5 }
  0x2e   : > { %1138 = vmatprep.mubr.f32.mxu0 %v187_v32  ;;  %1182 = vmatprep.mubr.f32.mxu1 %v981_v33 }
  0x2f   : > { %1349 = vmatprep.subr.bf16.mxu0 %v1483_v8  ;;  %1381 = vmatprep.subr.bf16.mxu1 %v1483_v8 }
  0x30   : > { %1139 = vmatmul.mubr.f32.gmra.mrb[4].mxu0 %v188_v34  ;;  %1183 = vmatmul.mubr.f32.gmra.mrb[4].mxu1 %v982_v35 }
  0x31   : > { %1351 = vmatpush3.bf16.msra.mxu0 %v1483_v8  ;;  %1383 = vmatpush3.bf16.msra.mxu1 %v1483_v8 }
  0x32   : > { %1141 = vmatprep.mubr.f32.mxu0 %v189_v36  ;;  %1185 = vmatprep.mubr.f32.mxu1 %v983_v37 }
  0x33   : > { %1353 = vmatprep.subr.bf16.mxu0 %v1502_v13  ;;  %1385 = vmatprep.subr.bf16.mxu1 %v1502_v13 }
  0x34   : > { %1142 = vmatmul.mubr.f32.gmra.mrb[6].mxu0 %v190_v38  ;;  %1186 = vmatmul.mubr.f32.gmra.mrb[6].mxu1 %v984_v39 }
  0x35   : > { %1355 = vmatpush3.bf16.msra.mxu0 %v1502_v13  ;;  %1387 = vmatpush3.bf16.msra.mxu1 %v1502_v13 }
  0x36   : > { %1357 = vmatprep.subr.bf16.mxu0 %v1514_v16  ;;  %1389 = vmatprep.subr.bf16.mxu1 %v1514_v16 }
  0x37   : > { %1220 = vmatprep.mubr.f32.mxu0 %v985_v40  ;;  %1264 = vmatprep.mubr.f32.mxu1 %v993_v41 }
  0x39   : > { %1359 = vmatpush3.bf16.msra.mxu0 %v1514_v16  ;;  %1391 = vmatpush3.bf16.msra.mxu1 %v1514_v16 }
  0x3a   : > { %1361 = vmatprep.subr.bf16.mxu0 %v1526_v19  ;;  %1393 = vmatprep.subr.bf16.mxu1 %v1526_v19 }
  0x3d   : > { %1363 = vmatpush3.bf16.msra.mxu0 %v1526_v19  ;;  %1395 = vmatpush3.bf16.msra.mxu1 %v1526_v19 }
  0x3e   : > { %1365 = vmatprep.subr.bf16.mxu0 %v1538_v22  ;;  %1397 = vmatprep.subr.bf16.mxu1 %v1538_v22 }
  0x41   : > { %1367 = vmatpush3.bf16.msra.mxu0 %v1538_v22  ;;  %1399 = vmatpush3.bf16.msra.mxu1 %v1538_v22 }
  0x42   : > { %1369 = vmatprep.subr.bf16.mxu0 %v1550_v25  ;;  %1401 = vmatprep.subr.bf16.mxu1 %v1550_v25 }
  0x45   : > { %1371 = vmatpush3.bf16.msra.mxu0 %v1550_v25  ;;  %1403 = vmatpush3.bf16.msra.mxu1 %v1550_v25 }
  0x48   : > { %1221 = vmatmul.mubr.f32.vlgmr.msra.gmra.mrb[8].mxu0 %v986_v42  ;;  %1265 = vmatmul.mubr.f32.vlgmr.msra.gmra.mrb[8].mxu1 %v994_v43 }
  0x49   : > { %1223 = vmatprep.mubr.f32.mxu0 %v987_v44  ;;  %1267 = vmatprep.mubr.f32.mxu1 %v995_v45 }
  0x4c   : > { %1224 = vmatmul.mubr.f32.gmra.mrb[10].mxu0 %v988_v46  ;;  %1268 = vmatmul.mubr.f32.gmra.mrb[10].mxu1 %v996_v47 }
  0x4d   : > { %1226 = vmatprep.mubr.f32.mxu0 %v989_v48  ;;  %1270 = vmatprep.mubr.f32.mxu1 %v997_v49 }
  0x50   : > { %1227 = vmatmul.mubr.f32.gmra.mrb[12].mxu0 %v990_v50  ;;  %1271 = vmatmul.mubr.f32.gmra.mrb[12].mxu1 %v998_v51 }
  0x51   : > { %1229 = vmatprep.mubr.f32.mxu0 %v991_v52  ;;  %1273 = vmatprep.mubr.f32.mxu1 %v999_v53 }
  0x54   : > { %1230 = vmatmul.mubr.f32.gmra.mrb[14].mxu0 %v992_v54  ;;  %1274 = vmatmul.mubr.f32.gmra.mrb[14].mxu1 %v1000_v55 }
  0xfb   : > { %v1134_v56 = vpop.f32.mrb[0].mxu0  ;;  %v1178_v57 = vpop.f32.mrb[0].mxu1 }
  0xfc   : > { %313 = vst [vmem:[%s1624_s4 + $0x8] sm:$0xff] %v1134_v56  ;;  %v335_v58 = vmul.f32 %v1134_v56, %v1134_v56  ;;  %v273_v59 = vpop.f32.mrb[1].mxu0  ;;  %487 = vst [vmem:[%s1624_s4 + $0x48] sm:$0xff] %v1178_v57  ;;  %v509_v60 = vmul.f32 %v1178_v57, %v1178_v57  ;;  %v447_v61 = vpop.f32.mrb[1].mxu1 }
  0xfd   : > { %312 = vst [vmem:[%s1624_s4] sm:$0xff] %v273_v59  ;;  %v320_v62 = vadd.f32 %v1134_v56, %v273_v59  ;;  %v334_v63 = vmul.f32 %v273_v59, %v273_v59  ;;  %486 = vst [vmem:[%s1624_s4 + $0x40] sm:$0xff] %v447_v61  ;;  %v494_v0 = vadd.f32 %v1178_v57, %v447_v61 }
  0xfe   : > { %v508_v1 = vmul.f32 %v447_v61, %v447_v61 }
  0xff   : > { %v342_v2 = vadd.f32 %v335_v58, %v334_v63  ;;  %v1137_v4 = vpop.f32.mrb[2].mxu0  ;;  %v1181_v5 = vpop.f32.mrb[2].mxu1 }
 0x100   : > { %v516_v3 = vadd.f32 %v509_v60, %v508_v1  ;;  %315 = vst [vmem:[%s1624_s4 + $0x18] sm:$0xff] %v1137_v4  ;;  %v337_v6 = vmul.f32 %v1137_v4, %v1137_v4  ;;  %489 = vst [vmem:[%s1624_s4 + $0x58] sm:$0xff] %v1181_v5  ;;  %v283_v7 = vpop.f32.mrb[3].mxu0  ;;  %v457_v8 = vpop.f32.mrb[3].mxu1  ;;  %v511_v13 = vmul.f32 %v1181_v5, %v1181_v5 }
 0x101   : > { %314 = vst [vmem:[%s1624_s4 + $0x10] sm:$0xff] %v283_v7  ;;  %v321_v9 = vadd.f32 %v320_v62, %v283_v7  ;;  %v336_v10 = vmul.f32 %v283_v7, %v283_v7  ;;  %488 = vst [vmem:[%s1624_s4 + $0x50] sm:$0xff] %v457_v8  ;;  %v495_v11 = vadd.f32 %v494_v0, %v457_v8 }
 0x102   : > { %v510_v12 = vmul.f32 %v457_v8, %v457_v8 }
 0x103   : > { %v343_v14 = vadd.f32 %v342_v2, %v336_v10  ;;  %v1140_v16 = vpop.f32.mrb[4].mxu0  ;;  %v1184_v17 = vpop.f32.mrb[4].mxu1  ;;  %v322_v18 = vadd.f32 %v1137_v4, %v321_v9  ;;  %v496_v19 = vadd.f32 %v1181_v5, %v495_v11 }
 0x104   : > { %v517_v15 = vadd.f32 %v516_v3, %v510_v12  ;;  %317 = vst [vmem:[%s1624_s4 + $0x28] sm:$0xff] %v1140_v16  ;;  %v339_v20 = vmul.f32 %v1140_v16, %v1140_v16  ;;  %491 = vst [vmem:[%s1624_s4 + $0x68] sm:$0xff] %v1184_v17  ;;  %v293_v21 = vpop.f32.mrb[5].mxu0  ;;  %v467_v22 = vpop.f32.mrb[5].mxu1  ;;  %v513_v27 = vmul.f32 %v1184_v17, %v1184_v17 }
 0x105   : > { %316 = vst [vmem:[%s1624_s4 + $0x20] sm:$0xff] %v293_v21  ;;  %v323_v23 = vadd.f32 %v322_v18, %v293_v21  ;;  %v338_v24 = vmul.f32 %v293_v21, %v293_v21  ;;  %v344_v25 = vadd.f32 %v343_v14, %v337_v6  ;;  %490 = vst [vmem:[%s1624_s4 + $0x60] sm:$0xff] %v467_v22 }
 0x106   : > { %v497_v26 = vadd.f32 %v496_v19, %v467_v22  ;;  %v512_v28 = vmul.f32 %v467_v22, %v467_v22  ;;  %v518_v29 = vadd.f32 %v517_v15, %v511_v13 }
 0x107   : > { %v345_v30 = vadd.f32 %v344_v25, %v338_v24  ;;  %v1143_v31 = vpop.f32.mrb[6].mxu0  ;;  %v1187_v32 = vpop.f32.mrb[6].mxu1  ;;  %v324_v33 = vadd.f32 %v1140_v16, %v323_v23 }
 0x108   : > { %v498_v34 = vadd.f32 %v1184_v17, %v497_v26  ;;  %v519_v35 = vadd.f32 %v518_v29, %v512_v28  ;;  %319 = vst [vmem:[%s1624_s4 + $0x38] sm:$0xff] %v1143_v31  ;;  %v341_v36 = vmul.f32 %v1143_v31, %v1143_v31  ;;  %493 = vst [vmem:[%s1624_s4 + $0x78] sm:$0xff] %v1187_v32  ;;  %v303_v37 = vpop.f32.mrb[7].mxu0  ;;  %v477_v38 = vpop.f32.mrb[7].mxu1 }
 0x109   : > { %318 = vst [vmem:[%s1624_s4 + $0x30] sm:$0xff] %v303_v37  ;;  %v325_v39 = vadd.f32 %v324_v33, %v303_v37  ;;  %v340_v40 = vmul.f32 %v303_v37, %v303_v37  ;;  %v346_v41 = vadd.f32 %v345_v30, %v339_v20  ;;  %492 = vst [vmem:[%s1624_s4 + $0x70] sm:$0xff] %v477_v38 }
 0x10a   : > { %v499_v42 = vadd.f32 %v498_v34, %v477_v38  ;;  %v515_v43 = vmul.f32 %v1187_v32, %v1187_v32  ;;  %v514_v44 = vmul.f32 %v477_v38, %v477_v38  ;;  %v520_v45 = vadd.f32 %v519_v35, %v513_v27 }
 0x10b   : > { %v326_v46 = vadd.f32 %v1143_v31, %v325_v39  ;;  %v347_v47 = vadd.f32 %v346_v41, %v340_v40 }
 0x10c   : > { %v500_v48 = vadd.f32 %v1187_v32, %v499_v42  ;;  %v521_v49 = vadd.f32 %v520_v45, %v514_v44 }
 0x10d   : > { %v327_v50 = vrot.slane %v326_v46, 4  ;;  %v348_v51 = vadd.f32 %v347_v47, %v341_v36 }
 0x10e   : > { %v501_v52 = vrot.slane %v500_v48, 4  ;;  %v522_v53 = vadd.f32 %v521_v49, %v515_v43 }
 0x10f   : > { %v328_v54 = vadd.f32 %v327_v50, %v326_v46  ;;  %v349_v55 = vrot.slane %v348_v51, 4 }
 0x110   : > { %v502_v56 = vadd.f32 %v501_v52, %v500_v48  ;;  %v523_v57 = vrot.slane %v522_v53, 4 }
 0x111   : > { %v329_v58 = vrot.slane %v328_v54, 2  ;;  %v350_v59 = vadd.f32 %v349_v55, %v348_v51 }
 0x112   : > { %v503_v60 = vrot.slane %v502_v56, 2  ;;  %v524_v61 = vadd.f32 %v523_v57, %v522_v53 }
 0x113   : > { %v330_v62 = vadd.f32 %v329_v58, %v328_v54  ;;  %v351_v63 = vrot.slane %v350_v59, 2 }
 0x114   : > { %v504_v0 = vadd.f32 %v503_v60, %v502_v56  ;;  %v525_v1 = vrot.slane %v524_v61, 2 }
 0x115   : > { %v331_v2 = vrot.slane %v330_v62, 1  ;;  %v352_v3 = vadd.f32 %v351_v63, %v350_v59 }
 0x116   : > { %v505_v4 = vrot.slane %v504_v0, 1  ;;  %v526_v5 = vadd.f32 %v525_v1, %v524_v61 }
 0x117   : > { %v332_v6 = vadd.f32 %v331_v2, %v330_v62  ;;  %v353_v7 = vrot.slane %v352_v3, 1 }
 0x118   : > { %v506_v8 = vadd.f32 %v505_v4, %v504_v0  ;;  %v527_v9 = vrot.slane %v526_v5, 1 }
 0x119   : > { %v354_v10 = vadd.f32 %v353_v7, %v352_v3 }
 0x11a   : > { %v1642_v11 = vadd.f32 %v506_v8, %v332_v6  ;;  %v528_v12 = vadd.f32 %v527_v9, %v526_v5 }
 0x11b   : > { %v1222_v13 = vpop.f32.mrb[8].mxu0  ;;  %v1266_v14 = vpop.f32.mrb[8].mxu1 }
 0x11c   : > { %v1644_v15 = vadd.f32 %v528_v12, %v354_v10  ;;  %661 = vst [vmem:[%s1624_s4 + $0x88] sm:$0xff] %v1222_v13  ;;  %v683_v16 = vmul.f32 %v1222_v13, %v1222_v13  ;;  %v621_v17 = vpop.f32.mrb[9].mxu0  ;;  %835 = vst [vmem:[%s1624_s4 + $0xc8] sm:$0xff] %v1266_v14  ;;  %v857_v18 = vmul.f32 %v1266_v14, %v1266_v14  ;;  %v795_v19 = vpop.f32.mrb[9].mxu1 }
 0x11d   : > { %660 = vst [vmem:[%s1624_s4 + $0x80] sm:$0xff] %v621_v17  ;;  %v668_v20 = vadd.f32 %v1222_v13, %v621_v17  ;;  %v682_v21 = vmul.f32 %v621_v17, %v621_v17  ;;  %834 = vst [vmem:[%s1624_s4 + $0xc0] sm:$0xff] %v795_v19  ;;  %v842_v22 = vadd.f32 %v1266_v14, %v795_v19 }
 0x11e   : > { %v856_v23 = vmul.f32 %v795_v19, %v795_v19 }
 0x11f   : > { %v690_v24 = vadd.f32 %v683_v16, %v682_v21  ;;  %v1225_v26 = vpop.f32.mrb[10].mxu0  ;;  %v1269_v27 = vpop.f32.mrb[10].mxu1 }
 0x120   : > { %v864_v25 = vadd.f32 %v857_v18, %v856_v23  ;;  %663 = vst [vmem:[%s1624_s4 + $0x98] sm:$0xff] %v1225_v26  ;;  %837 = vst [vmem:[%s1624_s4 + $0xd8] sm:$0xff] %v1269_v27  ;;  %v631_v28 = vpop.f32.mrb[11].mxu0  ;;  %v805_v29 = vpop.f32.mrb[11].mxu1  ;;  %v685_v34 = vmul.f32 %v1225_v26, %v1225_v26  ;;  %v859_v35 = vmul.f32 %v1269_v27, %v1269_v27 }
 0x121   : > { %662 = vst [vmem:[%s1624_s4 + $0x90] sm:$0xff] %v631_v28  ;;  %v669_v30 = vadd.f32 %v668_v20, %v631_v28  ;;  %v684_v31 = vmul.f32 %v631_v28, %v631_v28  ;;  %836 = vst [vmem:[%s1624_s4 + $0xd0] sm:$0xff] %v805_v29  ;;  %v843_v32 = vadd.f32 %v842_v22, %v805_v29 }
 0x122   : > { %v858_v33 = vmul.f32 %v805_v29, %v805_v29 }
 0x123   : > { %v691_v36 = vadd.f32 %v690_v24, %v684_v31  ;;  %v1228_v38 = vpop.f32.mrb[12].mxu0  ;;  %v1272_v39 = vpop.f32.mrb[12].mxu1  ;;  %v670_v40 = vadd.f32 %v1225_v26, %v669_v30  ;;  %v844_v41 = vadd.f32 %v1269_v27, %v843_v32 }
 0x124   : > { %v865_v37 = vadd.f32 %v864_v25, %v858_v33  ;;  %665 = vst [vmem:[%s1624_s4 + $0xa8] sm:$0xff] %v1228_v38  ;;  %839 = vst [vmem:[%s1624_s4 + $0xe8] sm:$0xff] %v1272_v39  ;;  %v641_v42 = vpop.f32.mrb[13].mxu0  ;;  %v815_v43 = vpop.f32.mrb[13].mxu1  ;;  %v861_v48 = vmul.f32 %v1272_v39, %v1272_v39  ;;  %v687_v51 = vmul.f32 %v1228_v38, %v1228_v38 }
 0x125   : > { %664 = vst [vmem:[%s1624_s4 + $0xa0] sm:$0xff] %v641_v42  ;;  %v671_v44 = vadd.f32 %v670_v40, %v641_v42  ;;  %v686_v45 = vmul.f32 %v641_v42, %v641_v42  ;;  %v692_v46 = vadd.f32 %v691_v36, %v685_v34  ;;  %838 = vst [vmem:[%s1624_s4 + $0xe0] sm:$0xff] %v815_v43 }
 0x126   : > { %v845_v47 = vadd.f32 %v844_v41, %v815_v43  ;;  %v860_v49 = vmul.f32 %v815_v43, %v815_v43  ;;  %v866_v50 = vadd.f32 %v865_v37, %v859_v35 }
 0x127   : > { %v693_v52 = vadd.f32 %v692_v46, %v686_v45  ;;  %v1231_v53 = vpop.f32.mrb[14].mxu0  ;;  %v1275_v54 = vpop.f32.mrb[14].mxu1  ;;  %v672_v55 = vadd.f32 %v1228_v38, %v671_v44 }
 0x128   : > { %v846_v56 = vadd.f32 %v1272_v39, %v845_v47  ;;  %v867_v57 = vadd.f32 %v866_v50, %v860_v49  ;;  %667 = vst [vmem:[%s1624_s4 + $0xb8] sm:$0xff] %v1231_v53  ;;  %841 = vst [vmem:[%s1624_s4 + $0xf8] sm:$0xff] %v1275_v54  ;;  %v651_v58 = vpop.f32.mrb[15].mxu0  ;;  %v825_v59 = vpop.f32.mrb[15].mxu1  ;;  %v863_v0 = vmul.f32 %v1275_v54, %v1275_v54 }
 0x129   : > { %666 = vst [vmem:[%s1624_s4 + $0xb0] sm:$0xff] %v651_v58  ;;  %v673_v60 = vadd.f32 %v672_v55, %v651_v58  ;;  %v688_v61 = vmul.f32 %v651_v58, %v651_v58  ;;  %v694_v62 = vadd.f32 %v693_v52, %v687_v51  ;;  %840 = vst [vmem:[%s1624_s4 + $0xf0] sm:$0xff] %v825_v59 }
 0x12a   : > { %v847_v63 = vadd.f32 %v846_v56, %v825_v59  ;;  %v862_v1 = vmul.f32 %v825_v59, %v825_v59  ;;  %v868_v2 = vadd.f32 %v867_v57, %v861_v48  ;;  %v689_v3 = vmul.f32 %v1231_v53, %v1231_v53 }
 0x12b   : > { %v674_v4 = vadd.f32 %v1231_v53, %v673_v60  ;;  %v695_v5 = vadd.f32 %v694_v62, %v688_v61 }
 0x12c   : > { %v848_v6 = vadd.f32 %v1275_v54, %v847_v63  ;;  %v869_v7 = vadd.f32 %v868_v2, %v862_v1 }
 0x12d   : > { %v675_v8 = vrot.slane %v674_v4, 4  ;;  %v696_v9 = vadd.f32 %v695_v5, %v689_v3 }
 0x12e   : > { %v849_v10 = vrot.slane %v848_v6, 4  ;;  %v870_v12 = vadd.f32 %v869_v7, %v863_v0 }
 0x12f   : > { %v676_v13 = vadd.f32 %v675_v8, %v674_v4  ;;  %v697_v14 = vrot.slane %v696_v9, 4 }
 0x130   : > { %v850_v16 = vadd.f32 %v849_v10, %v848_v6  ;;  %v871_v17 = vrot.slane %v870_v12, 4 }
 0x131   : > { %v677_v18 = vrot.slane %v676_v13, 2  ;;  %v698_v19 = vadd.f32 %v697_v14, %v696_v9 }
 0x132   : > { %v851_v20 = vrot.slane %v850_v16, 2  ;;  %v872_v21 = vadd.f32 %v871_v17, %v870_v12 }
 0x133   : > { %v678_v22 = vadd.f32 %v677_v18, %v676_v13  ;;  %v699_v23 = vrot.slane %v698_v19, 2 }
 0x134   : > { %v852_v24 = vadd.f32 %v851_v20, %v850_v16  ;;  %v873_v25 = vrot.slane %v872_v21, 2 }
 0x135   : > { %v679_v26 = vrot.slane %v678_v22, 1  ;;  %v700_v27 = vadd.f32 %v699_v23, %v698_v19 }
 0x136   : > { %v853_v28 = vrot.slane %v852_v24, 1  ;;  %v874_v29 = vadd.f32 %v873_v25, %v872_v21 }
 0x137   : > { %v680_v30 = vadd.f32 %v679_v26, %v678_v22  ;;  %v701_v31 = vrot.slane %v700_v27, 1 }
 0x138   : > { %v875_v32 = vrot.slane %v874_v29, 1  ;;  %v854_v35 = vadd.f32 %v853_v28, %v852_v24 }
 0x139   : > { %v681_v33 = vadd.f32 %v680_v30, %v1642_v11  ;;  %v702_v34 = vadd.f32 %v701_v31, %v700_v27 }
 0x13a   : > { %v876_v38 = vadd.f32 %v875_v32, %v874_v29 }
 0x13b   : > { %v703_v36 = vadd.f32 %v702_v34, %v1644_v15  ;;  %v855_v37 = vadd.f32 %v854_v35, %v681_v33 }
 0x13d   : > { %v877_v39 = vadd.f32 %v876_v38, %v703_v36  ;;  %878 = vst [vmem:[%s182_s7] sm:$0x1] %v855_v37 }
 0x13f   : > { %879 = vst [vmem:[%s182_s7 + $0x1] sm:$0x1] %v877_v39 }
 0x140 PF: > { %s14_s12 = sadd.s32 1, %s1418_s12  }
 0x141   : > { %p11_p5 = scmp.ge.s32.totalorder %s14_s12, 4  }
 0x143   :  { %13 = sbr.rel (!%p11_p5) target bundleno = 1 (0x1), region = 73 }

// kernel: resnet_forward.17
= control target key start
LH: loop header
LB: loop body
LE: loop exit
PB: predicated region body
PF: predicated region fallthrough
CT: control target
= control target key end

     0   :  { %s729_s21 = smov 0   ;;  %s1004_s0 = inlined_call_operand.vmem [shape: f32[512,128], index: 0, kind: input, shape index: {}]   ;;  %s1005_s1 = inlined_call_operand.vmem [shape: f32[512,128], index: 1, kind: input, shape index: {}]   ;;  %s1006_s2 = inlined_call_operand.vmem [shape: f32[1,128], index: 2, kind: input, shape index: {}]   ;;  %s1007_s3 = inlined_call_operand.vmem [shape: f32[1,128], index: 3, kind: input, shape index: {}]   ;;  %s1008_s4 = inlined_call_operand.vmem [shape: f32[1,128], index: 4, kind: input, shape index: {}]   ;;  %s1009_s5 = inlined_call_operand.vmem [shape: f32[1,128], index: 5, kind: input, shape index: {}]   ;;  %s1010_s6 = inlined_call_operand.vmem [shape: f32[512,128], index: 6, kind: output, shape index: {}]  }
   0x1 LB: > { %s661_s22 = sadd.s32 4294967295, %s692_s21   ;;  %p665_p0 = scmp.ge.s32.totalorder %s692_s21, 1  ;;  %s692_s21 = sphi %s729_s21, %s16_s21  }
   0x2   : > { %p224_p1 = scmp.lt.s32.totalorder %s692_s21, 3 }
   0x4   : > { %p225_p2 = pnand %p665_p0, %p224_p1 }
   0x5   : > { %s666_s23 = sshll.u32 (!%p225_p2), %s661_s22, 5  ;;  %v742_v0 = vld [vmem:[%s1006_s2] ss:$0 sm:$0xff] (!%p225_p2) }
   0x6   : > { %228 = sbr.rel (%p225_p2) target bundleno = 72 (0x48), region = 44  ;;  %p260_p3 = scmp.lt.s32.totalorder (!%p225_p2), %s666_s23, 63  ;;  %v747_v1 = vld [vmem:[%s1008_s4] ss:$0 sm:$0xff] (!%p225_p2) }
   0x7   : > { %v764_v2 = vld [vmem:[%s1007_s3] ss:$0 sm:$0xff] (!%p225_p2) }
   0x8   : > { %v791_v25 = vld [vmem:[%s1009_s5] ss:$0 sm:$0xff] (!%p225_p2) }
   0xd   : > { %s1012_s23 = smov (!%p260_p3, %s666_s23), 63 }
   0xe   : > { %s737_s24 = sshll.u32 %s1012_s23, 3 }
   0xf   : > { %s753_s7 = scalar_lea.vmem %s1004_s0, %s737_s24  ;;  %s759_s10 = scalar_lea.vmem %s1005_s1, %s737_s24 }
  0x10   : > { %v277_v3 = vld [vmem:[%s753_s7] sm:$0xff]  ;;  %v278_v5 = vld [vmem:[%s753_s7 + $0x8] sm:$0xff]  ;;  %v279_v10 = vld [vmem:[%s753_s7 + $0x10] sm:$0xff]  ;;  %s812_s17 = scalar_lea.vmem %s1010_s6, %s737_s24 }
  0x11   : > { %v387_v4 = vld [vmem:[%s759_s10] sm:$0xff]  ;;  %v316_v6 = vmul.f32 %v742_v0, %v277_v3  ;;  %v317_v8 = vmul.f32 %v742_v0, %v278_v5  ;;  %v388_v9 = vld [vmem:[%s759_s10 + $0x8] sm:$0xff]  ;;  %v389_v11 = vld [vmem:[%s759_s10 + $0x10] sm:$0xff]  ;;  %v318_v13 = vmul.f32 %v742_v0, %v279_v10 }
  0x12   : > { %v426_v7 = vmul.f32 %v747_v1, %v387_v4  ;;  %v427_v12 = vmul.f32 %v747_v1, %v388_v9  ;;  %v428_v14 = vmul.f32 %v747_v1, %v389_v11  ;;  %v280_v15 = vld [vmem:[%s753_s7 + $0x18] sm:$0xff]  ;;  %v281_v17 = vld [vmem:[%s753_s7 + $0x20] sm:$0xff]  ;;  %v282_v23 = vld [vmem:[%s753_s7 + $0x28] sm:$0xff] }
  0x13   : > { %v390_v16 = vld [vmem:[%s759_s10 + $0x18] sm:$0xff]  ;;  %v355_v18 = vadd.f32 %v764_v2, %v316_v6  ;;  %v356_v19 = vadd.f32 %v764_v2, %v317_v8  ;;  %v319_v20 = vmul.f32 %v742_v0, %v280_v15  ;;  %v391_v22 = vld [vmem:[%s759_s10 + $0x20] sm:$0xff]  ;;  %v392_v24 = vld [vmem:[%s759_s10 + $0x28] sm:$0xff]  ;;  %v357_v26 = vadd.f32 %v764_v2, %v318_v13 }
  0x14   : > { %v429_v21 = vmul.f32 %v747_v1, %v390_v16  ;;  %v320_v27 = vmul.f32 %v742_v0, %v281_v17  ;;  %v430_v28 = vmul.f32 %v747_v1, %v391_v22  ;;  %v321_v29 = vmul.f32 %v742_v0, %v282_v23  ;;  %v283_v30 = vld [vmem:[%s753_s7 + $0x30] sm:$0xff]  ;;  %v284_v40 = vld [vmem:[%s753_s7 + $0x38] sm:$0xff]  ;;  %v285_v50 = vld [vmem:[%s753_s7 + $0x40] sm:$0xff] }
  0x15   : > { %v393_v31 = vld [vmem:[%s759_s10 + $0x30] sm:$0xff]  ;;  %v458_v32 = vadd.f32 %v426_v7, %v355_v18  ;;  %v459_v33 = vadd.f32 %v427_v12, %v356_v19  ;;  %v358_v34 = vadd.f32 %v764_v2, %v319_v20  ;;  %v431_v35 = vmul.f32 %v747_v1, %v392_v24  ;;  %v394_v49 = vld [vmem:[%s759_s10 + $0x38] sm:$0xff]  ;;  %v395_v55 = vld [vmem:[%s759_s10 + $0x40] sm:$0xff] }
  0x16   : > { %v460_v36 = vadd.f32 %v428_v14, %v357_v26  ;;  %v359_v37 = vadd.f32 %v764_v2, %v320_v27  ;;  %v360_v38 = vadd.f32 %v764_v2, %v321_v29  ;;  %v322_v39 = vmul.f32 %v742_v0, %v283_v30  ;;  %v286_v60 = vld [vmem:[%s753_s7 + $0x48] sm:$0xff]  ;;  %v287_v5 = vld [vmem:[%s753_s7 + $0x50] sm:$0xff]  ;;  %v288_v7 = vld [vmem:[%s753_s7 + $0x58] sm:$0xff] }
  0x17   : > { %v497_v41 = vadd.f32 %v791_v25, %v458_v32  ;;  %v498_v42 = vadd.f32 %v791_v25, %v459_v33  ;;  %v461_v43 = vadd.f32 %v429_v21, %v358_v34  ;;  %v432_v44 = vmul.f32 %v747_v1, %v393_v31  ;;  %v396_v61 = vld [vmem:[%s759_s10 + $0x48] sm:$0xff]  ;;  %v397_v6 = vld [vmem:[%s759_s10 + $0x50] sm:$0xff]  ;;  %v398_v12 = vld [vmem:[%s759_s10 + $0x58] sm:$0xff] }
  0x18   : > { %v499_v45 = vadd.f32 %v791_v25, %v460_v36  ;;  %v462_v46 = vadd.f32 %v430_v28, %v359_v37  ;;  %v463_v47 = vadd.f32 %v431_v35, %v360_v38  ;;  %v361_v48 = vadd.f32 %v764_v2, %v322_v39  ;;  %v289_v17 = vld [vmem:[%s753_s7 + $0x60] sm:$0xff]  ;;  %v290_v23 = vld [vmem:[%s753_s7 + $0x68] sm:$0xff]  ;;  %v291_v34 = vld [vmem:[%s753_s7 + $0x70] sm:$0xff] }
  0x19   : > { %v529_v51 = vmax.f32 %v497_v41, 0.0  ;;  %v530_v52 = vmax.f32 %v498_v42, 0.0  ;;  %v500_v53 = vadd.f32 %v791_v25, %v461_v43  ;;  %v323_v54 = vmul.f32 %v742_v0, %v284_v40  ;;  %v399_v18 = vld [vmem:[%s759_s10 + $0x60] sm:$0xff]  ;;  %v400_v29 = vld [vmem:[%s759_s10 + $0x68] sm:$0xff]  ;;  %v401_v39 = vld [vmem:[%s759_s10 + $0x70] sm:$0xff] }
  0x1a   : > { %v531_v56 = vmax.f32 %v499_v45, 0.0  ;;  %v501_v57 = vadd.f32 %v791_v25, %v462_v46  ;;  %v502_v58 = vadd.f32 %v791_v25, %v463_v47  ;;  %v464_v59 = vadd.f32 %v432_v44, %v361_v48  ;;  %v292_v44 = vld [vmem:[%s753_s7 + $0x78] sm:$0xff] }
  0x1b   : > { %561 = vst [vmem:[%s812_s17] sm:$0xff] %v529_v51  ;;  %562 = vst [vmem:[%s812_s17 + $0x8] sm:$0xff] %v530_v52  ;;  %v532_v62 = vmax.f32 %v500_v53, 0.0  ;;  %v362_v63 = vadd.f32 %v764_v2, %v323_v54  ;;  %v433_v3 = vmul.f32 %v747_v1, %v394_v49  ;;  %v324_v4 = vmul.f32 %v742_v0, %v285_v50  ;;  %v402_v49 = vld [vmem:[%s759_s10 + $0x78] sm:$0xff]  ;;  %v293_v54 = vld [vmem:[%s753_s7 + $0x80] sm:$0xff] }
  0x1c   : > { %563 = vst [vmem:[%s812_s17 + $0x10] sm:$0xff] %v531_v56  ;;  %v533_v8 = vmax.f32 %v501_v57, 0.0  ;;  %v534_v9 = vmax.f32 %v502_v58, 0.0  ;;  %v503_v10 = vadd.f32 %v791_v25, %v464_v59  ;;  %v434_v11 = vmul.f32 %v747_v1, %v395_v55  ;;  %v403_v59 = vld [vmem:[%s759_s10 + $0x80] sm:$0xff] }
  0x1d   : > { %564 = vst [vmem:[%s812_s17 + $0x18] sm:$0xff] %v532_v62  ;;  %v465_v13 = vadd.f32 %v433_v3, %v362_v63  ;;  %v363_v14 = vadd.f32 %v764_v2, %v324_v4  ;;  %v325_v15 = vmul.f32 %v742_v0, %v286_v60  ;;  %v435_v16 = vmul.f32 %v747_v1, %v396_v61  ;;  %v294_v60 = vld [vmem:[%s753_s7 + $0x88] sm:$0xff] }
  0x1e   : > { %565 = vst [vmem:[%s812_s17 + $0x20] sm:$0xff] %v533_v8  ;;  %566 = vst [vmem:[%s812_s17 + $0x28] sm:$0xff] %v534_v9  ;;  %v535_v19 = vmax.f32 %v503_v10, 0.0  ;;  %v326_v20 = vmul.f32 %v742_v0, %v287_v5  ;;  %v436_v21 = vmul.f32 %v747_v1, %v397_v6  ;;  %v327_v22 = vmul.f32 %v742_v0, %v288_v7  ;;  %v404_v61 = vld [vmem:[%s759_s10 + $0x88] sm:$0xff]  ;;  %v295_v9 = vld [vmem:[%s753_s7 + $0x90] sm:$0xff] }
  0x1f   : > { %v504_v24 = vadd.f32 %v791_v25, %v465_v13  ;;  %v466_v26 = vadd.f32 %v434_v11, %v363_v14  ;;  %v364_v27 = vadd.f32 %v764_v2, %v325_v15  ;;  %v437_v28 = vmul.f32 %v747_v1, %v398_v12  ;;  %v405_v10 = vld [vmem:[%s759_s10 + $0x90] sm:$0xff]  ;;  %v296_v11 = vld [vmem:[%s753_s7 + $0x98] sm:$0xff] }
  0x20   : > { %567 = vst [vmem:[%s812_s17 + $0x30] sm:$0xff] %v535_v19  ;;  %v365_v30 = vadd.f32 %v764_v2, %v326_v20  ;;  %v366_v31 = vadd.f32 %v764_v2, %v327_v22  ;;  %v328_v32 = vmul.f32 %v742_v0, %v289_v17  ;;  %v438_v33 = vmul.f32 %v747_v1, %v399_v18 }
  0x21   : > { %v536_v35 = vmax.f32 %v504_v24, 0.0  ;;  %v505_v36 = vadd.f32 %v791_v25, %v466_v26  ;;  %v467_v37 = vadd.f32 %v435_v16, %v364_v27  ;;  %v329_v38 = vmul.f32 %v742_v0, %v290_v23  ;;  %v406_v16 = vld [vmem:[%s759_s10 + $0x98] sm:$0xff]  ;;  %v407_v27 = vld [vmem:[%s759_s10 + $0xa0] sm:$0xff] }
  0x22   : > { %v468_v40 = vadd.f32 %v436_v21, %v365_v30  ;;  %v469_v41 = vadd.f32 %v437_v28, %v366_v31  ;;  %v367_v42 = vadd.f32 %v764_v2, %v328_v32  ;;  %v439_v43 = vmul.f32 %v747_v1, %v400_v29  ;;  %v297_v21 = vld [vmem:[%s753_s7 + $0xa0] sm:$0xff]  ;;  %v298_v28 = vld [vmem:[%s753_s7 + $0xa8] sm:$0xff] }
  0x23   : > { %568 = vst [vmem:[%s812_s17 + $0x38] sm:$0xff] %v536_v35  ;;  %v537_v45 = vmax.f32 %v505_v36, 0.0  ;;  %v506_v46 = vadd.f32 %v791_v25, %v467_v37  ;;  %v368_v47 = vadd.f32 %v764_v2, %v329_v38  ;;  %v330_v48 = vmul.f32 %v742_v0, %v291_v34  ;;  %v408_v37 = vld [vmem:[%s759_s10 + $0xa8] sm:$0xff]  ;;  %v299_v38 = vld [vmem:[%s753_s7 + $0xb0] sm:$0xff] }
  0x24   : > { %v507_v50 = vadd.f32 %v791_v25, %v468_v40  ;;  %v508_v51 = vadd.f32 %v791_v25, %v469_v41  ;;  %v470_v52 = vadd.f32 %v438_v33, %v367_v42  ;;  %v440_v53 = vmul.f32 %v747_v1, %v401_v39 }
  0x25   : > { %569 = vst [vmem:[%s812_s17 + $0x40] sm:$0xff] %v537_v45  ;;  %v538_v55 = vmax.f32 %v506_v46, 0.0  ;;  %v471_v56 = vadd.f32 %v439_v43, %v368_v47  ;;  %v369_v57 = vadd.f32 %v764_v2, %v330_v48  ;;  %v331_v58 = vmul.f32 %v742_v0, %v292_v44  ;;  %v409_v47 = vld [vmem:[%s759_s10 + $0xb0] sm:$0xff]  ;;  %v300_v48 = vld [vmem:[%s753_s7 + $0xb8] sm:$0xff] }
  0x26   : > { %v539_v62 = vmax.f32 %v507_v50, 0.0  ;;  %v540_v63 = vmax.f32 %v508_v51, 0.0  ;;  %v509_v3 = vadd.f32 %v791_v25, %v470_v52  ;;  %v441_v4 = vmul.f32 %v747_v1, %v402_v49 }
  0x27   : > { %570 = vst [vmem:[%s812_s17 + $0x48] sm:$0xff] %v538_v55  ;;  %v510_v5 = vadd.f32 %v791_v25, %v471_v56  ;;  %v472_v6 = vadd.f32 %v440_v53, %v369_v57  ;;  %v370_v7 = vadd.f32 %v764_v2, %v331_v58  ;;  %v332_v8 = vmul.f32 %v742_v0, %v293_v54  ;;  %v410_v53 = vld [vmem:[%s759_s10 + $0xb8] sm:$0xff]  ;;  %v301_v58 = vld [vmem:[%s753_s7 + $0xc0] sm:$0xff] }
  0x28   : > { %571 = vst [vmem:[%s812_s17 + $0x50] sm:$0xff] %v539_v62  ;;  %572 = vst [vmem:[%s812_s17 + $0x58] sm:$0xff] %v540_v63  ;;  %v541_v12 = vmax.f32 %v509_v3, 0.0  ;;  %v442_v13 = vmul.f32 %v747_v1, %v403_v59  ;;  %v333_v14 = vmul.f32 %v742_v0, %v294_v60  ;;  %v443_v15 = vmul.f32 %v747_v1, %v404_v61  ;;  %v411_v63 = vld [vmem:[%s759_s10 + $0xc0] sm:$0xff]  ;;  %v302_v3 = vld [vmem:[%s753_s7 + $0xc8] sm:$0xff] }
  0x29   : > { %v542_v17 = vmax.f32 %v510_v5, 0.0  ;;  %v511_v18 = vadd.f32 %v791_v25, %v472_v6  ;;  %v473_v19 = vadd.f32 %v441_v4, %v370_v7  ;;  %v371_v20 = vadd.f32 %v764_v2, %v332_v8  ;;  %v412_v4 = vld [vmem:[%s759_s10 + $0xc8] sm:$0xff] }
  0x2a   : > { %573 = vst [vmem:[%s812_s17 + $0x60] sm:$0xff] %v541_v12  ;;  %v372_v22 = vadd.f32 %v764_v2, %v333_v14  ;;  %v334_v23 = vmul.f32 %v742_v0, %v295_v9  ;;  %v444_v24 = vmul.f32 %v747_v1, %v405_v10  ;;  %v335_v26 = vmul.f32 %v742_v0, %v296_v11  ;;  %v413_v14 = vld [vmem:[%s759_s10 + $0xd0] sm:$0xff] }
  0x2b   : > { %574 = vst [vmem:[%s812_s17 + $0x68] sm:$0xff] %v542_v17  ;;  %v543_v29 = vmax.f32 %v511_v18, 0.0  ;;  %v512_v30 = vadd.f32 %v791_v25, %v473_v19  ;;  %v474_v31 = vadd.f32 %v442_v13, %v371_v20  ;;  %v445_v32 = vmul.f32 %v747_v1, %v406_v16  ;;  %v303_v13 = vld [vmem:[%s753_s7 + $0xd0] sm:$0xff]  ;;  %v414_v20 = vld [vmem:[%s759_s10 + $0xd8] sm:$0xff] }
  0x2c   : > { %v475_v33 = vadd.f32 %v443_v15, %v372_v22  ;;  %v373_v34 = vadd.f32 %v764_v2, %v334_v23  ;;  %v374_v35 = vadd.f32 %v764_v2, %v335_v26  ;;  %v336_v36 = vmul.f32 %v742_v0, %v297_v21  ;;  %v304_v15 = vld [vmem:[%s753_s7 + $0xd8] sm:$0xff]  ;;  %v305_v26 = vld [vmem:[%s753_s7 + $0xe0] sm:$0xff] }
  0x2d   : > { %575 = vst [vmem:[%s812_s17 + $0x70] sm:$0xff] %v543_v29  ;;  %v544_v39 = vmax.f32 %v512_v30, 0.0  ;;  %v513_v40 = vadd.f32 %v791_v25, %v474_v31  ;;  %v446_v41 = vmul.f32 %v747_v1, %v407_v27  ;;  %v337_v42 = vmul.f32 %v742_v0, %v298_v28  ;;  %v415_v31 = vld [vmem:[%s759_s10 + $0xe0] sm:$0xff] }
  0x2e   : > { %v514_v43 = vadd.f32 %v791_v25, %v475_v33  ;;  %v476_v44 = vadd.f32 %v444_v24, %v373_v34  ;;  %v477_v45 = vadd.f32 %v445_v32, %v374_v35  ;;  %v375_v46 = vadd.f32 %v764_v2, %v336_v36  ;;  %v306_v32 = vld [vmem:[%s753_s7 + $0xe8] sm:$0xff] }
  0x2f   : > { %576 = vst [vmem:[%s812_s17 + $0x78] sm:$0xff] %v544_v39  ;;  %v545_v49 = vmax.f32 %v513_v40, 0.0  ;;  %v376_v50 = vadd.f32 %v764_v2, %v337_v42  ;;  %v447_v51 = vmul.f32 %v747_v1, %v408_v37  ;;  %v338_v52 = vmul.f32 %v742_v0, %v299_v38  ;;  %v307_v42 = vld [vmem:[%s753_s7 + $0xf0] sm:$0xff] }
  0x30   : > { %v546_v54 = vmax.f32 %v514_v43, 0.0  ;;  %v515_v55 = vadd.f32 %v791_v25, %v476_v44  ;;  %v516_v56 = vadd.f32 %v791_v25, %v477_v45  ;;  %v478_v57 = vadd.f32 %v446_v41, %v375_v46  ;;  %v416_v41 = vld [vmem:[%s759_s10 + $0xe8] sm:$0xff] }
  0x31   : > { %577 = vst [vmem:[%s812_s17 + $0x80] sm:$0xff] %v545_v49  ;;  %v479_v59 = vadd.f32 %v447_v51, %v376_v50  ;;  %v377_v60 = vadd.f32 %v764_v2, %v338_v52  ;;  %v448_v61 = vmul.f32 %v747_v1, %v409_v47  ;;  %v339_v62 = vmul.f32 %v742_v0, %v300_v48  ;;  %v417_v51 = vld [vmem:[%s759_s10 + $0xf0] sm:$0xff]  ;;  %v308_v52 = vld [vmem:[%s753_s7 + $0xf8] sm:$0xff] }
  0x32   : > { %578 = vst [vmem:[%s812_s17 + $0x88] sm:$0xff] %v546_v54  ;;  %v547_v5 = vmax.f32 %v515_v55, 0.0  ;;  %v548_v6 = vmax.f32 %v516_v56, 0.0  ;;  %v517_v7 = vadd.f32 %v791_v25, %v478_v57  ;;  %v449_v8 = vmul.f32 %v747_v1, %v410_v53  ;;  %v418_v57 = vld [vmem:[%s759_s10 + $0xf8] sm:$0xff] }
  0x33   : > { %v518_v9 = vadd.f32 %v791_v25, %v479_v59  ;;  %v480_v10 = vadd.f32 %v448_v61, %v377_v60  ;;  %v378_v11 = vadd.f32 %v764_v2, %v339_v62  ;;  %v340_v12 = vmul.f32 %v742_v0, %v301_v58 }
  0x34   : > { %579 = vst [vmem:[%s812_s17 + $0x90] sm:$0xff] %v547_v5  ;;  %580 = vst [vmem:[%s812_s17 + $0x98] sm:$0xff] %v548_v6  ;;  %v549_v16 = vmax.f32 %v517_v7, 0.0  ;;  %v450_v17 = vmul.f32 %v747_v1, %v411_v63  ;;  %v341_v18 = vmul.f32 %v742_v0, %v302_v3  ;;  %v451_v19 = vmul.f32 %v747_v1, %v412_v4 }
  0x35   : > { %v550_v21 = vmax.f32 %v518_v9, 0.0  ;;  %v519_v22 = vadd.f32 %v791_v25, %v480_v10  ;;  %v481_v23 = vadd.f32 %v449_v8, %v378_v11  ;;  %v379_v24 = vadd.f32 %v764_v2, %v340_v12 }
  0x36   : > { %581 = vst [vmem:[%s812_s17 + $0xa0] sm:$0xff] %v549_v16  ;;  %v380_v27 = vadd.f32 %v764_v2, %v341_v18  ;;  %v342_v28 = vmul.f32 %v742_v0, %v303_v13  ;;  %v452_v29 = vmul.f32 %v747_v1, %v413_v14  ;;  %v343_v30 = vmul.f32 %v742_v0, %v304_v15 }
  0x37   : > { %582 = vst [vmem:[%s812_s17 + $0xa8] sm:$0xff] %v550_v21  ;;  %v551_v33 = vmax.f32 %v519_v22, 0.0  ;;  %v520_v34 = vadd.f32 %v791_v25, %v481_v23  ;;  %v482_v35 = vadd.f32 %v450_v17, %v379_v24  ;;  %v453_v36 = vmul.f32 %v747_v1, %v414_v20 }
  0x38   : > { %v483_v37 = vadd.f32 %v451_v19, %v380_v27  ;;  %v381_v38 = vadd.f32 %v764_v2, %v342_v28  ;;  %v382_v39 = vadd.f32 %v764_v2, %v343_v30  ;;  %v344_v40 = vmul.f32 %v742_v0, %v305_v26 }
  0x39   : > { %583 = vst [vmem:[%s812_s17 + $0xb0] sm:$0xff] %v551_v33  ;;  %v552_v43 = vmax.f32 %v520_v34, 0.0  ;;  %v521_v44 = vadd.f32 %v791_v25, %v482_v35  ;;  %v454_v45 = vmul.f32 %v747_v1, %v415_v31  ;;  %v345_v46 = vmul.f32 %v742_v0, %v306_v32 }
  0x3a   : > { %v522_v47 = vadd.f32 %v791_v25, %v483_v37  ;;  %v484_v48 = vadd.f32 %v452_v29, %v381_v38  ;;  %v485_v49 = vadd.f32 %v453_v36, %v382_v39  ;;  %v383_v50 = vadd.f32 %v764_v2, %v344_v40 }
  0x3b   : > { %584 = vst [vmem:[%s812_s17 + $0xb8] sm:$0xff] %v552_v43  ;;  %v553_v53 = vmax.f32 %v521_v44, 0.0  ;;  %v384_v54 = vadd.f32 %v764_v2, %v345_v46  ;;  %v455_v55 = vmul.f32 %v747_v1, %v416_v41  ;;  %v346_v56 = vmul.f32 %v742_v0, %v307_v42 }
  0x3c   : > { %v554_v58 = vmax.f32 %v522_v47, 0.0  ;;  %v523_v59 = vadd.f32 %v791_v25, %v484_v48  ;;  %v524_v60 = vadd.f32 %v791_v25, %v485_v49  ;;  %v486_v61 = vadd.f32 %v454_v45, %v383_v50 }
  0x3d   : > { %585 = vst [vmem:[%s812_s17 + $0xc0] sm:$0xff] %v553_v53  ;;  %v487_v62 = vadd.f32 %v455_v55, %v384_v54  ;;  %v385_v63 = vadd.f32 %v764_v2, %v346_v56  ;;  %v456_v3 = vmul.f32 %v747_v1, %v417_v51  ;;  %v347_v4 = vmul.f32 %v742_v0, %v308_v52 }
  0x3e   : > { %586 = vst [vmem:[%s812_s17 + $0xc8] sm:$0xff] %v554_v58  ;;  %v555_v5 = vmax.f32 %v523_v59, 0.0  ;;  %v556_v6 = vmax.f32 %v524_v60, 0.0  ;;  %v525_v7 = vadd.f32 %v791_v25, %v486_v61  ;;  %v457_v8 = vmul.f32 %v747_v1, %v418_v57 }
  0x3f   : > { %v526_v9 = vadd.f32 %v791_v25, %v487_v62  ;;  %v488_v10 = vadd.f32 %v456_v3, %v385_v63  ;;  %v386_v11 = vadd.f32 %v764_v2, %v347_v4 }
  0x40   : > { %587 = vst [vmem:[%s812_s17 + $0xd0] sm:$0xff] %v555_v5  ;;  %588 = vst [vmem:[%s812_s17 + $0xd8] sm:$0xff] %v556_v6  ;;  %v557_v12 = vmax.f32 %v525_v7, 0.0 }
  0x41   : > { %v558_v13 = vmax.f32 %v526_v9, 0.0  ;;  %v527_v0 = vadd.f32 %v791_v25, %v488_v10  ;;  %v489_v14 = vadd.f32 %v457_v8, %v386_v11 }
  0x42   : > { %589 = vst [vmem:[%s812_s17 + $0xe0] sm:$0xff] %v557_v12 }
  0x43   : > { %590 = vst [vmem:[%s812_s17 + $0xe8] sm:$0xff] %v558_v13  ;;  %v559_v15 = vmax.f32 %v527_v0, 0.0  ;;  %v528_v16 = vadd.f32 %v791_v25, %v489_v14 }
  0x45   : > { %591 = vst [vmem:[%s812_s17 + $0xf0] sm:$0xff] %v559_v15  ;;  %v560_v1 = vmax.f32 %v528_v16, 0.0 }
  0x47   : > { %592 = vst [vmem:[%s812_s17 + $0xf8] sm:$0xff] %v560_v1 }
  0x48 PF: > { %s16_s21 = sadd.s32 1, %s692_s21  }
  0x49   : > { %p13_p4 = scmp.ge.s32.totalorder %s16_s21, 4  }
  0x4b   :  { %15 = sbr.rel (!%p13_p4) target bundleno = 1 (0x1), region = 77 }

// kernel: resnet_forward.23
= control target key start
LH: loop header
LB: loop body
LE: loop exit
PB: predicated region body
PF: predicated region fallthrough
CT: control target
= control target key end

     0   :  { %s433_s0 = inlined_call_operand.vmem [shape: f32[16,32,128], index: 0, kind: input, shape index: {}]   ;;  %s434_s1 = inlined_call_operand.vmem [shape: f32[32,128], index: 1, kind: output, shape index: {}]  }
   0x1   :  { %v8_v0 = vld [vmem:[%s433_s0] sm:$0xff]  ;;  %v9_v8 = vld [vmem:[%s433_s0 + $0x8] sm:$0xff]  ;;  %v10_v21 = vld [vmem:[%s433_s0 + $0x10] sm:$0xff] }
   0x2   :  { %v159_v1 = vld [vmem:[%s433_s0 + $0x20] sm:$0xff]  ;;  %v160_v9 = vld [vmem:[%s433_s0 + $0x28] sm:$0xff]  ;;  %v161_v24 = vld [vmem:[%s433_s0 + $0x30] sm:$0xff] }
   0x3   :  { %v163_v2 = vld [vmem:[%s433_s0 + $0x40] sm:$0xff]  ;;  %v17_v3 = vadd.f32 %v159_v1, %v8_v0  ;;  %v18_v11 = vadd.f32 %v160_v9, %v9_v8  ;;  %v164_v12 = vld [vmem:[%s433_s0 + $0x48] sm:$0xff]  ;;  %v165_v25 = vld [vmem:[%s433_s0 + $0x50] sm:$0xff]  ;;  %v19_v28 = vadd.f32 %v161_v24, %v10_v21 }
   0x4   :  { %v167_v4 = vld [vmem:[%s433_s0 + $0x60] sm:$0xff]  ;;  %v168_v14 = vld [vmem:[%s433_s0 + $0x68] sm:$0xff]  ;;  %v169_v31 = vld [vmem:[%s433_s0 + $0x70] sm:$0xff] }
   0x5   :  { %v26_v5 = vadd.f32 %v163_v2, %v17_v3  ;;  %v171_v6 = vld [vmem:[%s433_s0 + $0x80] sm:$0xff]  ;;  %v27_v16 = vadd.f32 %v164_v12, %v18_v11  ;;  %v172_v18 = vld [vmem:[%s433_s0 + $0x88] sm:$0xff]  ;;  %v28_v34 = vadd.f32 %v165_v25, %v19_v28  ;;  %v173_v38 = vld [vmem:[%s433_s0 + $0x90] sm:$0xff] }
   0x6   :  { %v175_v10 = vld [vmem:[%s433_s0 + $0xa0] sm:$0xff]  ;;  %v176_v23 = vld [vmem:[%s433_s0 + $0xa8] sm:$0xff]  ;;  %v11_v41 = vld [vmem:[%s433_s0 + $0x18] sm:$0xff] }
   0x7   :  { %v35_v7 = vadd.f32 %v167_v4, %v26_v5  ;;  %v179_v15 = vld [vmem:[%s433_s0 + $0xc0] sm:$0xff]  ;;  %v36_v20 = vadd.f32 %v168_v14, %v27_v16  ;;  %v180_v30 = vld [vmem:[%s433_s0 + $0xc8] sm:$0xff]  ;;  %v37_v40 = vadd.f32 %v169_v31, %v28_v34  ;;  %v162_v42 = vld [vmem:[%s433_s0 + $0x38] sm:$0xff] }
   0x8   :  { %v183_v19 = vld [vmem:[%s433_s0 + $0xe0] sm:$0xff]  ;;  %v184_v37 = vld [vmem:[%s433_s0 + $0xe8] sm:$0xff]  ;;  %v166_v43 = vld [vmem:[%s433_s0 + $0x58] sm:$0xff]  ;;  %v20_v47 = vadd.f32 %v162_v42, %v11_v41 }
   0x9   :  { %v44_v13 = vadd.f32 %v171_v6, %v35_v7  ;;  %v187_v26 = vld [vmem:[%s433_s0 + $0x100] sm:$0xff]  ;;  %v45_v27 = vadd.f32 %v172_v18, %v36_v20  ;;  %v188_v45 = vld [vmem:[%s433_s0 + $0x108] sm:$0xff]  ;;  %v177_v46 = vld [vmem:[%s433_s0 + $0xb0] sm:$0xff]  ;;  %v46_v50 = vadd.f32 %v173_v38, %v37_v40 }
   0xa   :  { %v191_v32 = vld [vmem:[%s433_s0 + $0x120] sm:$0xff]  ;;  %v170_v51 = vld [vmem:[%s433_s0 + $0x78] sm:$0xff]  ;;  %v192_v53 = vld [vmem:[%s433_s0 + $0x128] sm:$0xff]  ;;  %v29_v55 = vadd.f32 %v166_v43, %v20_v47 }
   0xb   :  { %v53_v17 = vadd.f32 %v175_v10, %v44_v13  ;;  %v54_v33 = vadd.f32 %v176_v23, %v45_v27  ;;  %v195_v36 = vld [vmem:[%s433_s0 + $0x140] sm:$0xff]  ;;  %v181_v54 = vld [vmem:[%s433_s0 + $0xd0] sm:$0xff]  ;;  %v55_v58 = vadd.f32 %v177_v46, %v46_v50  ;;  %v174_v59 = vld [vmem:[%s433_s0 + $0x98] sm:$0xff] }
   0xc   :  { %v199_v48 = vld [vmem:[%s433_s0 + $0x160] sm:$0xff]  ;;  %v196_v61 = vld [vmem:[%s433_s0 + $0x148] sm:$0xff]  ;;  %v185_v62 = vld [vmem:[%s433_s0 + $0xf0] sm:$0xff]  ;;  %v38_v63 = vadd.f32 %v170_v51, %v29_v55 }
   0xd   :  { %v62_v22 = vadd.f32 %v179_v15, %v53_v17  ;;  %v63_v39 = vadd.f32 %v180_v30, %v54_v33  ;;  %v203_v56 = vld [vmem:[%s433_s0 + $0x180] sm:$0xff]  ;;  %v64_v2 = vadd.f32 %v181_v54, %v55_v58  ;;  %v178_v3 = vld [vmem:[%s433_s0 + $0xb8] sm:$0xff]  ;;  %v200_v5 = vld [vmem:[%s433_s0 + $0x168] sm:$0xff] }
   0xe   :  { %v207_v0 = vld [vmem:[%s433_s0 + $0x1a0] sm:$0xff]  ;;  %v189_v6 = vld [vmem:[%s433_s0 + $0x110] sm:$0xff]  ;;  %v47_v7 = vadd.f32 %v174_v59, %v38_v63  ;;  %v182_v11 = vld [vmem:[%s433_s0 + $0xd8] sm:$0xff] }
   0xf   :  { %v71_v29 = vadd.f32 %v183_v19, %v62_v22  ;;  %v72_v49 = vadd.f32 %v184_v37, %v63_v39  ;;  %v211_v8 = vld [vmem:[%s433_s0 + $0x1c0] sm:$0xff]  ;;  %v73_v10 = vadd.f32 %v185_v62, %v64_v2  ;;  %v204_v13 = vld [vmem:[%s433_s0 + $0x188] sm:$0xff]  ;;  %v193_v14 = vld [vmem:[%s433_s0 + $0x130] sm:$0xff] }
  0x10   :  { %v56_v15 = vadd.f32 %v178_v3, %v47_v7  ;;  %v215_v16 = vld [vmem:[%s433_s0 + $0x1e0] sm:$0xff]  ;;  %v186_v19 = vld [vmem:[%s433_s0 + $0xf8] sm:$0xff]  ;;  %v208_v21 = vld [vmem:[%s433_s0 + $0x1a8] sm:$0xff] }
  0x11   :  { %v80_v35 = vadd.f32 %v187_v26, %v71_v29  ;;  %v81_v57 = vadd.f32 %v188_v45, %v72_v49  ;;  %v82_v18 = vadd.f32 %v189_v6, %v73_v10  ;;  %v197_v22 = vld [vmem:[%s433_s0 + $0x150] sm:$0xff]  ;;  %v190_v26 = vld [vmem:[%s433_s0 + $0x118] sm:$0xff]  ;;  %v212_v28 = vld [vmem:[%s433_s0 + $0x1c8] sm:$0xff] }
  0x12   :  { %v65_v23 = vadd.f32 %v182_v11, %v56_v15  ;;  %v201_v29 = vld [vmem:[%s433_s0 + $0x170] sm:$0xff]  ;;  %v194_v33 = vld [vmem:[%s433_s0 + $0x138] sm:$0xff] }
  0x13   :  { %v89_v44 = vadd.f32 %v191_v32, %v80_v35  ;;  %v90_v1 = vadd.f32 %v192_v53, %v81_v57  ;;  %v91_v25 = vadd.f32 %v193_v14, %v82_v18  ;;  %v216_v35 = vld [vmem:[%s433_s0 + $0x1e8] sm:$0xff]  ;;  %v198_v40 = vld [vmem:[%s433_s0 + $0x158] sm:$0xff]  ;;  %v209_v41 = vld [vmem:[%s433_s0 + $0x1b0] sm:$0xff] }
  0x14   :  { %v74_v30 = vadd.f32 %v186_v19, %v65_v23  ;;  %v202_v45 = vld [vmem:[%s433_s0 + $0x178] sm:$0xff]  ;;  %v213_v46 = vld [vmem:[%s433_s0 + $0x1d0] sm:$0xff] }
  0x15   :  { %v98_v52 = vadd.f32 %v195_v36, %v89_v44  ;;  %v99_v9 = vadd.f32 %v196_v61, %v90_v1  ;;  %v100_v32 = vadd.f32 %v197_v22, %v91_v25  ;;  %v205_v36 = vld [vmem:[%s433_s0 + $0x190] sm:$0xff]  ;;  %v206_v50 = vld [vmem:[%s433_s0 + $0x198] sm:$0xff] }
  0x16   :  { %v83_v37 = vadd.f32 %v190_v26, %v74_v30  ;;  %v217_v51 = vld [vmem:[%s433_s0 + $0x1f0] sm:$0xff]  ;;  %v210_v54 = vld [vmem:[%s433_s0 + $0x1b8] sm:$0xff] }
  0x17   :  { %v107_v60 = vadd.f32 %v199_v48, %v98_v52  ;;  %v108_v17 = vadd.f32 %v200_v5, %v99_v9  ;;  %v109_v39 = vadd.f32 %v201_v29, %v100_v32  ;;  %v214_v57 = vld [vmem:[%s433_s0 + $0x1d8] sm:$0xff] }
  0x18   :  { %v92_v42 = vadd.f32 %v194_v33, %v83_v37 }
  0x19   :  { %v116_v4 = vadd.f32 %v203_v56, %v107_v60  ;;  %v117_v24 = vadd.f32 %v204_v13, %v108_v17  ;;  %v118_v44 = vadd.f32 %v205_v36, %v109_v39  ;;  %v218_v60 = vld [vmem:[%s433_s0 + $0x1f8] sm:$0xff] }
  0x1a   :  { %v101_v47 = vadd.f32 %v198_v40, %v92_v42 }
  0x1b   :  { %v125_v12 = vadd.f32 %v207_v0, %v116_v4  ;;  %v126_v31 = vadd.f32 %v208_v21, %v117_v24  ;;  %v127_v49 = vadd.f32 %v209_v41, %v118_v44 }
  0x1c   :  { %v110_v52 = vadd.f32 %v202_v45, %v101_v47 }
  0x1d   :  { %v134_v20 = vadd.f32 %v211_v8, %v125_v12  ;;  %v135_v38 = vadd.f32 %v212_v28, %v126_v31  ;;  %v136_v53 = vadd.f32 %v213_v46, %v127_v49 }
  0x1e   :  { %v119_v55 = vadd.f32 %v206_v50, %v110_v52 }
  0x1f   :  { %v143_v27 = vadd.f32 %v215_v16, %v134_v20  ;;  %v144_v43 = vadd.f32 %v216_v35, %v135_v38  ;;  %v145_v56 = vadd.f32 %v217_v51, %v136_v53 }
  0x20   :  { %v128_v58 = vadd.f32 %v210_v54, %v119_v55 }
  0x21   :  { %v147_v34 = vmul.f32 0.0625, %v143_v27  ;;  %v148_v48 = vmul.f32 0.0625, %v144_v43  ;;  %v149_v59 = vmul.f32 0.0625, %v145_v56 }
  0x22   :  { %v137_v61 = vadd.f32 %v214_v57, %v128_v58 }
  0x23   :  { %151 = vst [vmem:[%s434_s1] sm:$0xff] %v147_v34  ;;  %152 = vst [vmem:[%s434_s1 + $0x8] sm:$0xff] %v148_v48 }
  0x24   :  { %153 = vst [vmem:[%s434_s1 + $0x10] sm:$0xff] %v149_v59  ;;  %v146_v62 = vadd.f32 %v218_v60, %v137_v61 }
  0x26   :  { %v150_v63 = vmul.f32 0.0625, %v146_v62 }
  0x28   :  { %154 = vst [vmem:[%s434_s1 + $0x18] sm:$0xff] %v150_v63 }

// kernel: resnet_forward.12
= control target key start
LH: loop header
LB: loop body
LE: loop exit
PB: predicated region body
PF: predicated region fallthrough
CT: control target
= control target key end

     0   :  { %10 = vsyncpa [#allocation3], 0  ;;  %s11865_s0 = inlined_call_operand.vmem [shape: f32[2,18,18,128], index: 0, kind: input, shape index: {}]   ;;  %s11866_s1 = inlined_call_operand.vmem [shape: f32[9,128,128], index: 1, kind: input, shape index: {}]   ;;  %s11867_s2 = inlined_call_operand.vmem [shape: f32[1,128], index: 2, kind: input, shape index: {}]   ;;  %s11868_s3 = inlined_call_operand.vmem [shape: f32[512,128], index: 3, kind: output, shape index: {0}]   ;;  %s11869_s4 = inlined_call_operand.hbm [shape: f32[2,2,128], index: 4, kind: output, shape index: {1}]  }
   0x1   :  { %12 = vsyncpa [#allocation3 + $0x1], 0  ;;  %s10220_s15 = smov 0   ;;  %s10222_s16 = smov 0  }
   0x2   :  { %s10224_s17 = smov 0   ;;  %s10226_s18 = smov 0  }
   0x3 LB: > { %s10241_s19 = sadd.s32 4294967295, %s10192_s18   ;;  %s5442_s20 = sadd.s32 4294967294, %s10192_s18   ;;  %s10192_s18 = sphi %s10226_s18, %s11875_s18   ;;  %s10188_s17 = sphi %s10224_s17, %s11874_s17   ;;  %s10184_s16 = sphi %s10222_s16, %s11873_s16   ;;  %s10180_s15 = sphi %s10220_s15, %s11872_s15  }
   0x4   : > { %s10245_s21 = sadd.s32 1, %s10192_s18   ;;  %s119_s22 = sadd.s32 1, %s10188_s17 }
   0x5   : > { %s116_s23 = ssub.s32 %s10192_s18, %s10245_s21  ;;  %p129_p0 = scmp.ne.s32.totalorder %s10188_s17, %s10184_s16 }
   0x6   : > { %p117_p1 = scmp.eq.s32.totalorder %s116_s23, 0  ;;  %p130_p2 = scmp.eq.s32.totalorder %s10241_s19, 1 }
   0x7   : > { %p135_p3 = scmp.ne.s32.totalorder %s10184_s16, %s10180_s15  ;;  %p136_p4 = scmp.eq.s32.totalorder %s5442_s20, 1 }
   0x8   : > { %s10256_s24 = scalar_select %p117_p1, %s10188_s17, %s119_s22  }
   0x9   : > { %p10258_p5 = por %p130_p2, %p129_p0  ;;  %p10262_p6 = por %p136_p4, %p135_p3 }
   0xa   : > { %p5445_p7 = scmp.ge.s32.totalorder %s10192_s18, 1  ;;  %p168_p8 = scmp.lt.s32.totalorder %s10192_s18, 3 }
   0xc   : > { %p169_p9 = pnand %p5445_p7, %p168_p8 }
   0xd   : > { %v5450_v0 = vld [vmem:[%s11866_s1 + $0x80] sm:$0xff] (!%p169_p9)  ;;  %v5451_v1 = vld [vmem:[%s11866_s1 + $0x88] sm:$0xff] (!%p169_p9)  ;;  %v5452_v2 = vld [vmem:[%s11866_s1 + $0x90] sm:$0xff] (!%p169_p9)  ;;  %p199_p10 = scmp.lt.s32.totalorder (!%p169_p9), %s10241_s19, 1  ;;  %s11534_s5 = sshll.u32 (!%p169_p9), %s10241_s19, 5 }
   0xe   : > { %172 = sbr.rel (%p169_p9) target bundleno = 857 (0x359), region = 32  ;;  %v8682_v3 = vpack.c.bf16 (!%p169_p9), %v5451_v1, %v5450_v0  ;;  %v5453_v4 = vld [vmem:[%s11866_s1 + $0x98] sm:$0xff] (!%p169_p9)  ;;  %v5454_v6 = vld [vmem:[%s11866_s1 + $0xa0] sm:$0xff] (!%p169_p9)  ;;  %v5455_v7 = vld [vmem:[%s11866_s1 + $0xa8] sm:$0xff] (!%p169_p9)  ;;  %p205_p11 = scmp.lt.s32.totalorder (!%p169_p9), %s11534_s5, 63 }
   0xf   : > { %v8686_v5 = vpack.c.bf16 (!%p169_p9), %v5453_v4, %v5452_v2  ;;  %v8690_v8 = vpack.c.bf16 (!%p169_p9), %v5455_v7, %v5454_v6  ;;  %v5456_v9 = vld [vmem:[%s11866_s1 + $0xb0] sm:$0xff] (!%p169_p9)  ;;  %v5457_v10 = vld [vmem:[%s11866_s1 + $0xb8] sm:$0xff] (!%p169_p9)  ;;  %v5458_v14 = vld [vmem:[%s11866_s1 + $0xc0] sm:$0xff] (!%p169_p9)  ;;  %s11821_s29 = scalar_lea.hbm (!%p169_p9), %s11869_s4, %s11534_s5  ;;  %s10194_s9 = smov (!%p169_p9), [#allocation2]  }
  0x10   : > { %8683 = vmatprep.subr.bf16.mxu0 (!%p169_p9), %v8682_v3  ;;  %8971 = vmatprep.subr.bf16.mxu1 (!%p169_p9), %v8682_v3  ;;  %v8694_v13 = vpack.c.bf16 (!%p169_p9), %v5457_v10, %v5456_v9  ;;  %v5459_v15 = vld [vmem:[%s11866_s1 + $0xc8] sm:$0xff] (!%p169_p9)  ;;  %v5460_v17 = vld [vmem:[%s11866_s1 + $0xd0] sm:$0xff] (!%p169_p9)  ;;  %v5461_v18 = vld [vmem:[%s11866_s1 + $0xd8] sm:$0xff] (!%p169_p9) }
  0x11   : > { %8685 = vmatpush3.bf16.msra.mxu0 (!%p169_p9), %v8682_v3  ;;  %8973 = vmatpush3.bf16.msra.mxu1 (!%p169_p9), %v8682_v3  ;;  %v8698_v16 = vpack.c.bf16 (!%p169_p9), %v5459_v15, %v5458_v14  ;;  %v8702_v19 = vpack.c.bf16 (!%p169_p9), %v5461_v18, %v5460_v17  ;;  %v5462_v20 = vld [vmem:[%s11866_s1 + $0xe0] sm:$0xff] (!%p169_p9)  ;;  %v5463_v21 = vld [vmem:[%s11866_s1 + $0xe8] sm:$0xff] (!%p169_p9)  ;;  %v5464_v23 = vld [vmem:[%s11866_s1 + $0xf0] sm:$0xff] (!%p169_p9) }
  0x12   : > { %8687 = vmatprep.subr.bf16.mxu0 (!%p169_p9), %v8686_v5  ;;  %8975 = vmatprep.subr.bf16.mxu1 (!%p169_p9), %v8686_v5  ;;  %v8706_v22 = vpack.c.bf16 (!%p169_p9), %v5463_v21, %v5462_v20  ;;  %v5465_v24 = vld [vmem:[%s11866_s1 + $0xf8] sm:$0xff] (!%p169_p9)  ;;  %v218_v26 = vld [vmem:[%s11866_s1] sm:$0xff] (!%p169_p9)  ;;  %v219_v27 = vld [vmem:[%s11866_s1 + $0x8] sm:$0xff] (!%p169_p9) }
  0x13   : > { %v8710_v25 = vpack.c.bf16 (!%p169_p9), %v5465_v24, %v5464_v23  ;;  %v8714_v28 = vpack.c.bf16 (!%p169_p9), %v219_v27, %v218_v26  ;;  %v220_v29 = vld [vmem:[%s11866_s1 + $0x10] sm:$0xff] (!%p169_p9)  ;;  %v221_v30 = vld [vmem:[%s11866_s1 + $0x18] sm:$0xff] (!%p169_p9)  ;;  %v222_v34 = vld [vmem:[%s11866_s1 + $0x20] sm:$0xff] (!%p169_p9) }
  0x14   : > { %v8718_v33 = vpack.c.bf16 (!%p169_p9), %v221_v30, %v220_v29  ;;  %v223_v35 = vld [vmem:[%s11866_s1 + $0x28] sm:$0xff] (!%p169_p9)  ;;  %v224_v41 = vld [vmem:[%s11866_s1 + $0x30] sm:$0xff] (!%p169_p9)  ;;  %v225_v42 = vld [vmem:[%s11866_s1 + $0x38] sm:$0xff] (!%p169_p9) }
  0x15   : > { %s200_s13 = scalar_select %p199_p10, %s10241_s19, 1  ;;  %8689 = vmatpush3.bf16.msra.mxu0 %v8686_v5  ;;  %8977 = vmatpush3.bf16.msra.mxu1 %v8686_v5  ;;  %v8722_v40 = vpack.c.bf16 %v223_v35, %v222_v34  ;;  %v8726_v47 = vpack.c.bf16 %v225_v42, %v224_v41  ;;  %v226_v48 = vld [vmem:[%s11866_s1 + $0x40] sm:$0xff]  ;;  %v227_v49 = vld [vmem:[%s11866_s1 + $0x48] sm:$0xff]  ;;  %v228_v55 = vld [vmem:[%s11866_s1 + $0x50] sm:$0xff] }
  0x16   : > { %8691 = vmatprep.subr.bf16.mxu0 %v8690_v8  ;;  %8979 = vmatprep.subr.bf16.mxu1 %v8690_v8  ;;  %v8730_v54 = vpack.c.bf16 %v227_v49, %v226_v48  ;;  %v229_v56 = vld [vmem:[%s11866_s1 + $0x58] sm:$0xff]  ;;  %v230_v60 = vld [vmem:[%s11866_s1 + $0x60] sm:$0xff]  ;;  %v231_v61 = vld [vmem:[%s11866_s1 + $0x68] sm:$0xff]  ;;  %s10134_s19 = sshll.u32 %s10194_s9, 4  ;;  %s10135_s19 = int_to_ptr.vmem [resolvable:$false] %s10134_s19 }
  0x17   : > { %s10090_s14 = smul.u32 432, %s200_s13  ;;  %v8734_v59 = vpack.c.bf16 %v229_v56, %v228_v55  ;;  %v8738_v62 = vpack.c.bf16 %v231_v61, %v230_v60  ;;  %v232_v63 = vld [vmem:[%s11866_s1 + $0x70] sm:$0xff]  ;;  %v233_v0 = vld [vmem:[%s11866_s1 + $0x78] sm:$0xff]  ;;  %v5466_v2 = vld [vmem:[%s11866_s1 + $0x100] sm:$0xff]  ;;  %s10136_s10 = scalar_lea.vmem %s10135_s19, 64 }
  0x18   : > { %v8742_v1 = vpack.c.bf16 %v233_v0, %v232_v63  ;;  %v5467_v3 = vld [vmem:[%s11866_s1 + $0x108] sm:$0xff]  ;;  %v5468_v5 = vld [vmem:[%s11866_s1 + $0x110] sm:$0xff]  ;;  %v5469_v6 = vld [vmem:[%s11866_s1 + $0x118] sm:$0xff]  ;;  %s206_s13 = scalar_select %p205_p11, %s11534_s5, 63 }
  0x19   : > { %s10297_s30 = scalar_lea.vmem %s11865_s0, %s10090_s14  ;;  %8693 = vmatpush3.bf16.msra.mxu0 %v8690_v8  ;;  %8981 = vmatpush3.bf16.msra.mxu1 %v8690_v8  ;;  %v8746_v4 = vpack.c.bf16 %v5467_v3, %v5466_v2  ;;  %v8750_v9 = vpack.c.bf16 %v5469_v6, %v5468_v5  ;;  %v5470_v10 = vld [vmem:[%s11866_s1 + $0x120] sm:$0xff]  ;;  %v5472_v17 = vld [vmem:[%s11866_s1 + $0x130] sm:$0xff]  ;;  %v5473_v18 = vld [vmem:[%s11866_s1 + $0x138] sm:$0xff] }
  0x1a   : > { %v234_v11 = vld [vmem:[%s10297_s30 + $0x1] sm:$0xff]  ;;  %8695 = vmatprep.subr.bf16.mxu0 %v8694_v13  ;;  %8983 = vmatprep.subr.bf16.mxu1 %v8694_v13  ;;  %v235_v31 = vld [vmem:[%s10297_s30 + $0x9] sm:$0xff]  ;;  %v10346_v36 = vld [vmem:[%s10297_s30 + $0x19] sm:$0xff]  ;;  %v8758_v23 = vpack.c.bf16 %v5473_v18, %v5472_v17  ;;  %s5449_s27 = sshll.u32 %s206_s13, 3 }
  0x1b   : > { %v5635_v12 = vld [vmem:[%s10297_s30 + $0x61] sm:$0xff]  ;;  %7130 = vmatprep.mubr.f32.mxu0 %v234_v11  ;;  %v5636_v32 = vld [vmem:[%s10297_s30 + $0x69] sm:$0xff]  ;;  %v10349_v37 = vld [vmem:[%s10297_s30 + $0x79] sm:$0xff]  ;;  %s11582_s8 = scalar_lea.vmem %s11868_s3, %s5449_s27 }
  0x1c   : > { %7526 = vmatprep.mubr.f32.mxu1 %v5635_v12  ;;  %v10352_v38 = vld [vmem:[%s10297_s30 + $0x21] sm:$0xff]  ;;  %v10368_v43 = vld [vmem:[%s10297_s30 + $0x31] sm:$0xff]  ;;  %v10374_v45 = vld [vmem:[%s10297_s30 + $0x39] sm:$0xff] }
  0x1d   : > { %8697 = vmatpush3.bf16.msra.mxu0 %v8694_v13  ;;  %8985 = vmatpush3.bf16.msra.mxu1 %v8694_v13  ;;  %v10355_v39 = vld [vmem:[%s10297_s30 + $0x81] sm:$0xff]  ;;  %v10371_v44 = vld [vmem:[%s10297_s30 + $0x91] sm:$0xff]  ;;  %v10377_v46 = vld [vmem:[%s10297_s30 + $0x99] sm:$0xff] }
  0x1e   : > { %8699 = vmatprep.subr.bf16.mxu0 %v8698_v16  ;;  %8987 = vmatprep.subr.bf16.mxu1 %v8698_v16  ;;  %v10390_v50 = vld [vmem:[%s10297_s30 + $0x49] sm:$0xff]  ;;  %v10396_v52 = vld [vmem:[%s10297_s30 + $0x51] sm:$0xff]  ;;  %v210_v57 = vld [vmem:[%s10297_s30] sm:$0xff] }
  0x1f   : > { %v10393_v51 = vld [vmem:[%s10297_s30 + $0xa9] sm:$0xff]  ;;  %v10399_v53 = vld [vmem:[%s10297_s30 + $0xb1] sm:$0xff]  ;;  %v10413_v58 = vld [vmem:[%s10297_s30 + $0x60] sm:$0xff] }
  0x20   : > { %v211_v7 = vld [vmem:[%s10297_s30 + $0x8] sm:$0xff]  ;;  %v10452_v12 = vld [vmem:[%s10297_s30 + $0x18] sm:$0xff]  ;;  %v10458_v14 = vld [vmem:[%s10297_s30 + $0x20] sm:$0xff] }
  0x21   : > { %8701 = vmatpush3.bf16.msra.mxu0 %v8698_v16  ;;  %8989 = vmatpush3.bf16.msra.mxu1 %v8698_v16  ;;  %v10442_v8 = vld [vmem:[%s10297_s30 + $0x68] sm:$0xff]  ;;  %v10455_v13 = vld [vmem:[%s10297_s30 + $0x78] sm:$0xff]  ;;  %v10461_v15 = vld [vmem:[%s10297_s30 + $0x80] sm:$0xff] }
  0x22   : > { %8703 = vmatprep.subr.bf16.mxu0 %v8702_v19  ;;  %8991 = vmatprep.subr.bf16.mxu1 %v8702_v19  ;;  %v5471_v11 = vld [vmem:[%s11866_s1 + $0x128] sm:$0xff]  ;;  %v10477_v20 = vld [vmem:[%s10297_s30 + $0x90] sm:$0xff]  ;;  %v10480_v21 = vld [vmem:[%s10297_s30 + $0x38] sm:$0xff] }
  0x23   : > { %v8754_v16 = vpack.c.bf16 %v5471_v11, %v5470_v10  ;;  %v5474_v24 = vld [vmem:[%s11866_s1 + $0x140] sm:$0xff]  ;;  %v10496_v26 = vld [vmem:[%s10297_s30 + $0x48] sm:$0xff]  ;;  %v10505_v29 = vld [vmem:[%s10297_s30 + $0xb0] sm:$0xff] }
  0x24   : > { %v10499_v27 = vld [vmem:[%s10297_s30 + $0xa8] sm:$0xff]  ;;  %v5481_v48 = vld [vmem:[%s11866_s1 + $0x178] sm:$0xff]  ;;  %v5494_v63 = vld [vmem:[%s11866_s1 + $0x1a0] sm:$0xff] }
  0x25   : > { %8705 = vmatpush3.bf16.msra.mxu0 %v8702_v19  ;;  %8993 = vmatpush3.bf16.msra.mxu1 %v8702_v19  ;;  %v10474_v19 = vld [vmem:[%s10297_s30 + $0x30] sm:$0xff]  ;;  %v10519_v34 = vld [vmem:[%s10297_s30 + $0x62] sm:$0xff]  ;;  %v10561_v2 = vld [vmem:[%s10297_s30 + $0x7a] sm:$0xff] }
  0x26   : > { %8707 = vmatprep.subr.bf16.mxu0 %v8706_v22  ;;  %8995 = vmatprep.subr.bf16.mxu1 %v8706_v22  ;;  %v5479_v41 = vld [vmem:[%s11866_s1 + $0x168] sm:$0xff]  ;;  %v5496_v6 = vld [vmem:[%s11866_s1 + $0x1b0] sm:$0xff]  ;;  %v10586_v11 = vld [vmem:[%s10297_s30 + $0x3a] sm:$0xff] }
  0x27   : > { %v5491_v55 = vld [vmem:[%s11866_s1 + $0x188] sm:$0xff]  ;;  %v10583_v10 = vld [vmem:[%s10297_s30 + $0x92] sm:$0xff]  ;;  %v5498_v18 = vld [vmem:[%s11866_s1 + $0x1c0] sm:$0xff] }
  0x28   : > { %v470_v60 = vld [vmem:[%s10297_s30 + $0xa] sm:$0xff]  ;;  %v10564_v3 = vld [vmem:[%s10297_s30 + $0x22] sm:$0xff] }
  0x29   : > { %8709 = vmatpush3.bf16.msra.mxu0 %v8706_v22  ;;  %8997 = vmatpush3.bf16.msra.mxu1 %v8706_v22  ;;  %v10483_v22 = vld [vmem:[%s10297_s30 + $0x98] sm:$0xff]  ;;  %v10548_v61 = vld [vmem:[%s10297_s30 + $0x6a] sm:$0xff] }
  0x2a   : > { %8711 = vmatprep.subr.bf16.mxu0 %v8710_v25  ;;  %8999 = vmatprep.subr.bf16.mxu1 %v8710_v25  ;;  %v5495_v0 = vld [vmem:[%s11866_s1 + $0x1a8] sm:$0xff] }
  0x2b   : > { %v8786_v5 = vpack.c.bf16 %v5495_v0, %v5494_v63  ;;  %v5520_v0 = vld [vmem:[%s11866_s1 + $0x230] sm:$0xff] }
  0x2d   : > { %8713 = vmatpush3.bf16.msra.mxu0 %v8710_v25  ;;  %9001 = vmatpush3.bf16.msra.mxu1 %v8710_v25  ;;  %v5475_v25 = vld [vmem:[%s11866_s1 + $0x148] sm:$0xff] }
  0x2e   : > { %8715 = vmatprep.subr.bf16.mxu0 %v8714_v28  ;;  %9003 = vmatprep.subr.bf16.mxu1 %v8714_v28  ;;  %v8762_v30 = vpack.c.bf16 %v5475_v25, %v5474_v24  ;;  %v10602_v24 = vld [vmem:[%s10297_s30 + $0x4a] sm:$0xff] }
  0x2f   : > { %v10605_v25 = vld [vmem:[%s10297_s30 + $0xaa] sm:$0xff] }
  0x30   : > { %7131 = vmatmul.mubr.f32.vlgmr.msra.gmra.mrb[0].mxu0 %v235_v31  ;;  %7527 = vmatmul.mubr.f32.vlgmr.msra.gmra.mrb[0].mxu1 %v5636_v32  ;;  %v5476_v31 = vld [vmem:[%s11866_s1 + $0x150] sm:$0xff]  ;;  %v5477_v32 = vld [vmem:[%s11866_s1 + $0x158] sm:$0xff] }
  0x31   : > { %8717 = vmatpush3.bf16.msra.mxu0 %v8714_v28  ;;  %9005 = vmatpush3.bf16.msra.mxu1 %v8714_v28  ;;  %v10502_v28 = vld [vmem:[%s10297_s30 + $0x50] sm:$0xff]  ;;  %v8766_v35 = vpack.c.bf16 %v5477_v32, %v5476_v31 }
  0x32   : > { %8719 = vmatprep.subr.bf16.mxu0 %v8718_v33  ;;  %9007 = vmatprep.subr.bf16.mxu1 %v8718_v33  ;;  %v10611_v31 = vld [vmem:[%s10297_s30 + $0xb2] sm:$0xff] }
  0x33   : > { %7133 = vmatprep.mubr.f32.mxu0 %v10346_v36  ;;  %7529 = vmatprep.mubr.f32.mxu1 %v10349_v37 }
  0x34   : > { %7134 = vmatmul.mubr.f32.gmra.mrb[2].mxu0 %v10352_v38  ;;  %7530 = vmatmul.mubr.f32.gmra.mrb[2].mxu1 %v10355_v39 }
  0x35   : > { %8721 = vmatpush3.bf16.msra.mxu0 %v8718_v33  ;;  %9009 = vmatpush3.bf16.msra.mxu1 %v8718_v33  ;;  %v469_v33 = vld [vmem:[%s10297_s30 + $0x2] sm:$0xff] }
  0x36   : > { %8723 = vmatprep.subr.bf16.mxu0 %v8722_v40  ;;  %9011 = vmatprep.subr.bf16.mxu1 %v8722_v40 }
  0x37   : > { %7136 = vmatprep.mubr.f32.mxu0 %v10368_v43  ;;  %7532 = vmatprep.mubr.f32.mxu1 %v10371_v44 }
  0x38   : > { %7137 = vmatmul.mubr.f32.gmra.mrb[4].mxu0 %v10374_v45  ;;  %7533 = vmatmul.mubr.f32.gmra.mrb[4].mxu1 %v10377_v46 }
  0x39   : > { %8725 = vmatpush3.bf16.msra.mxu0 %v8722_v40  ;;  %9013 = vmatpush3.bf16.msra.mxu1 %v8722_v40  ;;  %v5478_v40 = vld [vmem:[%s11866_s1 + $0x160] sm:$0xff] }
  0x3a   : > { %8727 = vmatprep.subr.bf16.mxu0 %v8726_v47  ;;  %9015 = vmatprep.subr.bf16.mxu1 %v8726_v47  ;;  %v8770_v42 = vpack.c.bf16 %v5479_v41, %v5478_v40  ;;  %v5502_v41 = vld [vmem:[%s11866_s1 + $0x1e0] sm:$0xff] }
  0x3b   : > { %7139 = vmatprep.mubr.f32.mxu0 %v10390_v50  ;;  %7535 = vmatprep.mubr.f32.mxu1 %v10393_v51 }
  0x3c   : > { %7140 = vmatmul.mubr.f32.gmra.mrb[6].mxu0 %v10396_v52  ;;  %7536 = vmatmul.mubr.f32.gmra.mrb[6].mxu1 %v10399_v53 }
  0x3d   : > { %8729 = vmatpush3.bf16.msra.mxu0 %v8726_v47  ;;  %9017 = vmatpush3.bf16.msra.mxu1 %v8726_v47  ;;  %v5480_v47 = vld [vmem:[%s11866_s1 + $0x170] sm:$0xff] }
  0x3e   : > { %8731 = vmatprep.subr.bf16.mxu0 %v8730_v54  ;;  %9019 = vmatprep.subr.bf16.mxu1 %v8730_v54  ;;  %v8774_v49 = vpack.c.bf16 %v5481_v48, %v5480_v47  ;;  %v5504_v48 = vld [vmem:[%s11866_s1 + $0x1f0] sm:$0xff] }
  0x3f   : > { %7174 = vmatprep.mubr.f32.mxu0 %v210_v57  ;;  %7570 = vmatprep.mubr.f32.mxu1 %v10413_v58  ;;  %v5492_v57 = vld [vmem:[%s11866_s1 + $0x190] sm:$0xff] }
  0x41   : > { %8733 = vmatpush3.bf16.msra.mxu0 %v8730_v54  ;;  %9021 = vmatpush3.bf16.msra.mxu1 %v8730_v54  ;;  %v5490_v54 = vld [vmem:[%s11866_s1 + $0x180] sm:$0xff] }
  0x42   : > { %8735 = vmatprep.subr.bf16.mxu0 %v8734_v59  ;;  %9023 = vmatprep.subr.bf16.mxu1 %v8734_v59  ;;  %v8778_v56 = vpack.c.bf16 %v5491_v55, %v5490_v54  ;;  %v5515_v54 = vld [vmem:[%s11866_s1 + $0x208] sm:$0xff] }
  0x45   : > { %8737 = vmatpush3.bf16.msra.mxu0 %v8734_v59  ;;  %9025 = vmatpush3.bf16.msra.mxu1 %v8734_v59  ;;  %v5493_v59 = vld [vmem:[%s11866_s1 + $0x198] sm:$0xff] }
  0x46   : > { %8739 = vmatprep.subr.bf16.mxu0 %v8738_v62  ;;  %9027 = vmatprep.subr.bf16.mxu1 %v8738_v62 }
  0x49   : > { %8741 = vmatpush3.bf16.msra.mxu0 %v8738_v62  ;;  %9029 = vmatpush3.bf16.msra.mxu1 %v8738_v62  ;;  %v8782_v62 = vpack.c.bf16 %v5493_v59, %v5492_v57  ;;  %v5517_v57 = vld [vmem:[%s11866_s1 + $0x218] sm:$0xff] }
  0x4a   : > { %8743 = vmatprep.subr.bf16.mxu0 %v8742_v1  ;;  %9031 = vmatprep.subr.bf16.mxu1 %v8742_v1 }
  0x4d   : > { %8745 = vmatpush3.bf16.msra.mxu0 %v8742_v1  ;;  %9033 = vmatpush3.bf16.msra.mxu1 %v8742_v1  ;;  %v10558_v1 = vld [vmem:[%s10297_s30 + $0x1a] sm:$0xff] }
  0x4e   : > { %8747 = vmatprep.subr.bf16.mxu0 %v8746_v4  ;;  %9035 = vmatprep.subr.bf16.mxu1 %v8746_v4 }
  0x50   : > { %7175 = vmatmul.mubr.f32.vlgmr.msra.gmra.mrb[0].mxu0 %v211_v7  ;;  %7571 = vmatmul.mubr.f32.vlgmr.msra.gmra.mrb[0].mxu1 %v10442_v8  ;;  %v5497_v7 = vld [vmem:[%s11866_s1 + $0x1b8] sm:$0xff] }
  0x51   : > { %8749 = vmatpush3.bf16.msra.mxu0 %v8746_v4  ;;  %9037 = vmatpush3.bf16.msra.mxu1 %v8746_v4  ;;  %v10567_v4 = vld [vmem:[%s10297_s30 + $0x82] sm:$0xff]  ;;  %v8790_v17 = vpack.c.bf16 %v5497_v7, %v5496_v6 }
  0x52   : > { %8751 = vmatprep.subr.bf16.mxu0 %v8750_v9  ;;  %9039 = vmatprep.subr.bf16.mxu1 %v8750_v9  ;;  %v5523_v6 = vld [vmem:[%s11866_s1 + $0x248] sm:$0xff]  ;;  %v10678_v7 = vld [vmem:[%s10297_s30 + $0xc0] sm:$0xff] }
  0x53   : > { %7177 = vmatprep.mubr.f32.mxu0 %v10452_v12  ;;  %7573 = vmatprep.mubr.f32.mxu1 %v10455_v13 }
  0x54   : > { %7178 = vmatmul.mubr.f32.gmra.mrb[2].mxu0 %v10458_v14  ;;  %7574 = vmatmul.mubr.f32.gmra.mrb[2].mxu1 %v10461_v15 }
  0x55   : > { %8753 = vmatpush3.bf16.msra.mxu0 %v8750_v9  ;;  %9041 = vmatpush3.bf16.msra.mxu1 %v8750_v9  ;;  %v10580_v9 = vld [vmem:[%s10297_s30 + $0x32] sm:$0xff] }
  0x56   : > { %8755 = vmatprep.subr.bf16.mxu0 %v8754_v16  ;;  %9043 = vmatprep.subr.bf16.mxu1 %v8754_v16 }
  0x57   : > { %7180 = vmatprep.mubr.f32.mxu0 %v10474_v19  ;;  %7576 = vmatprep.mubr.f32.mxu1 %v10477_v20 }
  0x58   : > { %7181 = vmatmul.mubr.f32.gmra.mrb[4].mxu0 %v10480_v21  ;;  %7577 = vmatmul.mubr.f32.gmra.mrb[4].mxu1 %v10483_v22 }
  0x59   : > { %8757 = vmatpush3.bf16.msra.mxu0 %v8754_v16  ;;  %9045 = vmatpush3.bf16.msra.mxu1 %v8754_v16  ;;  %v10589_v16 = vld [vmem:[%s10297_s30 + $0x9a] sm:$0xff] }
  0x5a   : > { %8759 = vmatprep.subr.bf16.mxu0 %v8758_v23  ;;  %9047 = vmatprep.subr.bf16.mxu1 %v8758_v23 }
  0x5b   : > { %7183 = vmatprep.mubr.f32.mxu0 %v10496_v26  ;;  %7579 = vmatprep.mubr.f32.mxu1 %v10499_v27 }
  0x5c   : > { %7184 = vmatmul.mubr.f32.gmra.mrb[6].mxu0 %v10502_v28  ;;  %7580 = vmatmul.mubr.f32.gmra.mrb[6].mxu1 %v10505_v29 }
  0x5d   : > { %8761 = vmatpush3.bf16.msra.mxu0 %v8758_v23  ;;  %9049 = vmatpush3.bf16.msra.mxu1 %v8758_v23  ;;  %v5499_v23 = vld [vmem:[%s11866_s1 + $0x1c8] sm:$0xff] }
  0x5e   : > { %8763 = vmatprep.subr.bf16.mxu0 %v8762_v30  ;;  %9051 = vmatprep.subr.bf16.mxu1 %v8762_v30  ;;  %v8794_v32 = vpack.c.bf16 %v5499_v23, %v5498_v18  ;;  %v5524_v23 = vld [vmem:[%s11866_s1 + $0x250] sm:$0xff] }
  0x5f   : > { %7218 = vmatprep.mubr.f32.mxu0 %v469_v33  ;;  %7614 = vmatprep.mubr.f32.mxu1 %v10519_v34  ;;  %v5500_v33 = vld [vmem:[%s11866_s1 + $0x1d0] sm:$0xff] }
  0x61   : > { %8765 = vmatpush3.bf16.msra.mxu0 %v8762_v30  ;;  %9053 = vmatpush3.bf16.msra.mxu1 %v8762_v30  ;;  %v10608_v30 = vld [vmem:[%s10297_s30 + $0x52] sm:$0xff] }
  0x62   : > { %8767 = vmatprep.subr.bf16.mxu0 %v8766_v35  ;;  %9055 = vmatprep.subr.bf16.mxu1 %v8766_v35 }
  0x65   : > { %8769 = vmatpush3.bf16.msra.mxu0 %v8766_v35  ;;  %9057 = vmatpush3.bf16.msra.mxu1 %v8766_v35  ;;  %v5501_v35 = vld [vmem:[%s11866_s1 + $0x1d8] sm:$0xff] }
  0x66   : > { %8771 = vmatprep.subr.bf16.mxu0 %v8770_v42  ;;  %9059 = vmatprep.subr.bf16.mxu1 %v8770_v42  ;;  %v8798_v40 = vpack.c.bf16 %v5501_v35, %v5500_v33  ;;  %v5539_v33 = vld [vmem:[%s11866_s1 + $0x288] sm:$0xff] }
  0x69   : > { %8773 = vmatpush3.bf16.msra.mxu0 %v8770_v42  ;;  %9061 = vmatpush3.bf16.msra.mxu1 %v8770_v42  ;;  %v5503_v42 = vld [vmem:[%s11866_s1 + $0x1e8] sm:$0xff] }
  0x6a   : > { %8775 = vmatprep.subr.bf16.mxu0 %v8774_v49  ;;  %9063 = vmatprep.subr.bf16.mxu1 %v8774_v49  ;;  %v8802_v47 = vpack.c.bf16 %v5503_v42, %v5502_v41  ;;  %v5541_v41 = vld [vmem:[%s11866_s1 + $0x298] sm:$0xff] }
  0x6d   : > { %8777 = vmatpush3.bf16.msra.mxu0 %v8774_v49  ;;  %9065 = vmatpush3.bf16.msra.mxu1 %v8774_v49  ;;  %v5505_v49 = vld [vmem:[%s11866_s1 + $0x1f8] sm:$0xff] }
  0x6e   : > { %8779 = vmatprep.subr.bf16.mxu0 %v8778_v56  ;;  %9067 = vmatprep.subr.bf16.mxu1 %v8778_v56 }
  0x70   : > { %7219 = vmatmul.mubr.f32.vlgmr.msra.gmra.mrb[0].mxu0 %v470_v60  ;;  %7615 = vmatmul.mubr.f32.vlgmr.msra.gmra.mrb[0].mxu1 %v10548_v61  ;;  %v5518_v60 = vld [vmem:[%s11866_s1 + $0x220] sm:$0xff] }
  0x71   : > { %8781 = vmatpush3.bf16.msra.mxu0 %v8778_v56  ;;  %9069 = vmatpush3.bf16.msra.mxu1 %v8778_v56  ;;  %v5516_v56 = vld [vmem:[%s11866_s1 + $0x210] sm:$0xff] }
  0x72   : > { %8783 = vmatprep.subr.bf16.mxu0 %v8782_v62  ;;  %9071 = vmatprep.subr.bf16.mxu1 %v8782_v62  ;;  %v8814_v59 = vpack.c.bf16 %v5517_v57, %v5516_v56  ;;  %v5551_v56 = vld [vmem:[%s11866_s1 + $0x2e8] sm:$0xff] }
  0x73   : > { %7221 = vmatprep.mubr.f32.mxu0 %v10558_v1  ;;  %7617 = vmatprep.mubr.f32.mxu1 %v10561_v2 }
  0x74   : > { %7222 = vmatmul.mubr.f32.gmra.mrb[2].mxu0 %v10564_v3  ;;  %7618 = vmatmul.mubr.f32.gmra.mrb[2].mxu1 %v10567_v4 }
  0x75   : > { %8785 = vmatpush3.bf16.msra.mxu0 %v8782_v62  ;;  %9073 = vmatpush3.bf16.msra.mxu1 %v8782_v62  ;;  %v5519_v62 = vld [vmem:[%s11866_s1 + $0x228] sm:$0xff] }
  0x76   : > { %8787 = vmatprep.subr.bf16.mxu0 %v8786_v5  ;;  %9075 = vmatprep.subr.bf16.mxu1 %v8786_v5  ;;  %v8818_v63 = vpack.c.bf16 %v5519_v62, %v5518_v60  ;;  %v5553_v60 = vld [vmem:[%s11866_s1 + $0x2f8] sm:$0xff]  ;;  %v5563_v62 = vld [vmem:[%s11866_s1 + $0x308] sm:$0xff] }
  0x77   : > { %7224 = vmatprep.mubr.f32.mxu0 %v10580_v9  ;;  %7620 = vmatprep.mubr.f32.mxu1 %v10583_v10 }
  0x78   : > { %7225 = vmatmul.mubr.f32.gmra.mrb[4].mxu0 %v10586_v11  ;;  %7621 = vmatmul.mubr.f32.gmra.mrb[4].mxu1 %v10589_v16 }
  0x79   : > { %8789 = vmatpush3.bf16.msra.mxu0 %v8786_v5  ;;  %9077 = vmatpush3.bf16.msra.mxu1 %v8786_v5  ;;  %v5521_v5 = vld [vmem:[%s11866_s1 + $0x238] sm:$0xff] }
  0x7a   : > { %8791 = vmatprep.subr.bf16.mxu0 %v8790_v17  ;;  %9079 = vmatprep.subr.bf16.mxu1 %v8790_v17 }
  0x7b   : > { %7227 = vmatprep.mubr.f32.mxu0 %v10602_v24  ;;  %7623 = vmatprep.mubr.f32.mxu1 %v10605_v25 }
  0x7c   : > { %7228 = vmatmul.mubr.f32.gmra.mrb[6].mxu0 %v10608_v30  ;;  %7624 = vmatmul.mubr.f32.gmra.mrb[6].mxu1 %v10611_v31 }
  0x7d   : > { %8793 = vmatpush3.bf16.msra.mxu0 %v8790_v17  ;;  %9081 = vmatpush3.bf16.msra.mxu1 %v8790_v17  ;;  %v10681_v17 = vld [vmem:[%s10297_s30 + $0xc8] sm:$0xff] }
  0x7e   : > { %8795 = vmatprep.subr.bf16.mxu0 %v8794_v32  ;;  %9083 = vmatprep.subr.bf16.mxu1 %v8794_v32 }
  0x7f   : > { %7262 = vmatprep.mubr.f32.mxu0 %v10452_v12  ;;  %7658 = vmatprep.mubr.f32.mxu1 %v10455_v13  ;;  %v8806_v12 = vpack.c.bf16 %v5505_v49, %v5504_v48  ;;  %v5514_v13 = vld [vmem:[%s11866_s1 + $0x200] sm:$0xff]  ;;  %v5543_v48 = vld [vmem:[%s11866_s1 + $0x2a8] sm:$0xff] }
  0x80   : > { %v8810_v55 = vpack.c.bf16 %v5515_v54, %v5514_v13  ;;  %v5545_v13 = vld [vmem:[%s11866_s1 + $0x2b8] sm:$0xff]  ;;  %v10757_v54 = vld [vmem:[%s10297_s30 + $0xc9] sm:$0xff] }
  0x81   : > { %8797 = vmatpush3.bf16.msra.mxu0 %v8794_v32  ;;  %9085 = vmatpush3.bf16.msra.mxu1 %v8794_v32  ;;  %v5529_v32 = vld [vmem:[%s11866_s1 + $0x278] sm:$0xff] }
  0x82   : > { %8799 = vmatprep.subr.bf16.mxu0 %v8798_v40  ;;  %9087 = vmatprep.subr.bf16.mxu1 %v8798_v40 }
  0x85   : > { %8801 = vmatpush3.bf16.msra.mxu0 %v8798_v40  ;;  %9089 = vmatpush3.bf16.msra.mxu1 %v8798_v40  ;;  %v5540_v40 = vld [vmem:[%s11866_s1 + $0x290] sm:$0xff] }
  0x86   : > { %8803 = vmatprep.subr.bf16.mxu0 %v8802_v47  ;;  %9091 = vmatprep.subr.bf16.mxu1 %v8802_v47  ;;  %v8846_v42 = vpack.c.bf16 %v5541_v41, %v5540_v40  ;;  %v5757_v40 = vld [vmem:[%s10297_s30 + $0xa8] sm:$0xff]  ;;  %v5557_v41 = vld [vmem:[%s10297_s30 + $0x50] sm:$0xff] }
  0x89   : > { %8805 = vmatpush3.bf16.msra.mxu0 %v8802_v47  ;;  %9093 = vmatpush3.bf16.msra.mxu1 %v8802_v47  ;;  %v5542_v47 = vld [vmem:[%s11866_s1 + $0x2a0] sm:$0xff] }
  0x8a   : > { %8807 = vmatprep.subr.bf16.mxu0 %v8806_v12  ;;  %9095 = vmatprep.subr.bf16.mxu1 %v8806_v12  ;;  %v8850_v49 = vpack.c.bf16 %v5543_v48, %v5542_v47  ;;  %v5592_v48 = vld [vmem:[%s11866_s1 + $0x3b0] sm:$0xff] }
  0x8d   : > { %8809 = vmatpush3.bf16.msra.mxu0 %v8806_v12  ;;  %9097 = vmatpush3.bf16.msra.mxu1 %v8806_v12  ;;  %v5544_v12 = vld [vmem:[%s11866_s1 + $0x2b0] sm:$0xff] }
  0x8e   : > { %8811 = vmatprep.subr.bf16.mxu0 %v8810_v55  ;;  %9099 = vmatprep.subr.bf16.mxu1 %v8810_v55 }
  0x90   : > { %7263 = vmatmul.mubr.f32.vlgmr.msra.gmra.mrb[0].mxu0 %v10458_v14  ;;  %7659 = vmatmul.mubr.f32.vlgmr.msra.gmra.mrb[0].mxu1 %v10461_v15  ;;  %v8822_v14 = vpack.c.bf16 %v5521_v5, %v5520_v0  ;;  %v5522_v15 = vld [vmem:[%s11866_s1 + $0x240] sm:$0xff]  ;;  %v5564_v0 = vld [vmem:[%s11866_s1 + $0x310] sm:$0xff]  ;;  %v5565_v5 = vld [vmem:[%s11866_s1 + $0x318] sm:$0xff] }
  0x91   : > { %8813 = vmatpush3.bf16.msra.mxu0 %v8810_v55  ;;  %9101 = vmatpush3.bf16.msra.mxu1 %v8810_v55  ;;  %v8826_v18 = vpack.c.bf16 %v5523_v6, %v5522_v15  ;;  %v5566_v15 = vld [vmem:[%s11866_s1 + $0x320] sm:$0xff]  ;;  %v5567_v6 = vld [vmem:[%s11866_s1 + $0x328] sm:$0xff] }
  0x92   : > { %8815 = vmatprep.subr.bf16.mxu0 %v8814_v59  ;;  %9103 = vmatprep.subr.bf16.mxu1 %v8814_v59 }
  0x93   : > { %7265 = vmatprep.mubr.f32.mxu0 %v10474_v19  ;;  %7661 = vmatprep.mubr.f32.mxu1 %v10477_v20 }
  0x94   : > { %7266 = vmatmul.mubr.f32.gmra.mrb[2].mxu0 %v10480_v21  ;;  %7662 = vmatmul.mubr.f32.gmra.mrb[2].mxu1 %v10483_v22 }
  0x95   : > { %8817 = vmatpush3.bf16.msra.mxu0 %v8814_v59  ;;  %9105 = vmatpush3.bf16.msra.mxu1 %v8814_v59  ;;  %v5552_v59 = vld [vmem:[%s11866_s1 + $0x2f0] sm:$0xff] }
  0x96   : > { %8819 = vmatprep.subr.bf16.mxu0 %v8818_v63  ;;  %9107 = vmatprep.subr.bf16.mxu1 %v8818_v63 }
  0x97   : > { %7268 = vmatprep.mubr.f32.mxu0 %v10496_v26  ;;  %7664 = vmatprep.mubr.f32.mxu1 %v10499_v27  ;;  %v5525_v26 = vld [vmem:[%s11866_s1 + $0x258] sm:$0xff] }
  0x98   : > { %7269 = vmatmul.mubr.f32.gmra.mrb[4].mxu0 %v10502_v28  ;;  %7665 = vmatmul.mubr.f32.gmra.mrb[4].mxu1 %v10505_v29  ;;  %v8830_v27 = vpack.c.bf16 %v5525_v26, %v5524_v23  ;;  %v5526_v28 = vld [vmem:[%s11866_s1 + $0x260] sm:$0xff]  ;;  %v5527_v29 = vld [vmem:[%s11866_s1 + $0x268] sm:$0xff]  ;;  %v5568_v23 = vld [vmem:[%s11866_s1 + $0x330] sm:$0xff] }
  0x99   : > { %8821 = vmatpush3.bf16.msra.mxu0 %v8818_v63  ;;  %9109 = vmatpush3.bf16.msra.mxu1 %v8818_v63  ;;  %v5569_v26 = vld [vmem:[%s11866_s1 + $0x338] sm:$0xff] }
  0x9a   : > { %8823 = vmatprep.subr.bf16.mxu0 %v8822_v14  ;;  %9111 = vmatprep.subr.bf16.mxu1 %v8822_v14 }
  0x9b   : > { %7271 = vmatprep.mubr.f32.mxu0 %v10413_v58  ;;  %7667 = vmatprep.mubr.f32.mxu1 %v10678_v7  ;;  %v8834_v58 = vpack.c.bf16 %v5527_v29, %v5526_v28  ;;  %v5577_v28 = vld [vmem:[%s11866_s1 + $0x378] sm:$0xff]  ;;  %v5587_v29 = vld [vmem:[%s11866_s1 + $0x388] sm:$0xff] }
  0x9c   : > { %7272 = vmatmul.mubr.f32.gmra.mrb[6].mxu0 %v10442_v8  ;;  %7668 = vmatmul.mubr.f32.gmra.mrb[6].mxu1 %v10681_v17  ;;  %v5528_v8 = vld [vmem:[%s11866_s1 + $0x270] sm:$0xff] }
  0x9d   : > { %8825 = vmatpush3.bf16.msra.mxu0 %v8822_v14  ;;  %9113 = vmatpush3.bf16.msra.mxu1 %v8822_v14  ;;  %v8878_v14 = vpack.c.bf16 %v5565_v5, %v5564_v0  ;;  %v5611_v0 = vld [vmem:[%s11866_s1 + $0x408] sm:$0xff] }
  0x9e   : > { %8827 = vmatprep.subr.bf16.mxu0 %v8826_v18  ;;  %9115 = vmatprep.subr.bf16.mxu1 %v8826_v18 }
  0x9f   : > { %7306 = vmatprep.mubr.f32.mxu0 %v10346_v36  ;;  %7702 = vmatprep.mubr.f32.mxu1 %v10349_v37  ;;  %v8838_v36 = vpack.c.bf16 %v5529_v32, %v5528_v8  ;;  %v5538_v37 = vld [vmem:[%s11866_s1 + $0x280] sm:$0xff]  ;;  %v5588_v8 = vld [vmem:[%s11866_s1 + $0x390] sm:$0xff]  ;;  %v5589_v32 = vld [vmem:[%s11866_s1 + $0x398] sm:$0xff] }
  0xa0   : > { %v8842_v35 = vpack.c.bf16 %v5539_v33, %v5538_v37  ;;  %v5590_v37 = vld [vmem:[%s11866_s1 + $0x3a0] sm:$0xff]  ;;  %v5591_v33 = vld [vmem:[%s11866_s1 + $0x3a8] sm:$0xff] }
  0xa1   : > { %8829 = vmatpush3.bf16.msra.mxu0 %v8826_v18  ;;  %9117 = vmatpush3.bf16.msra.mxu1 %v8826_v18  ;;  %v8882_v18 = vpack.c.bf16 %v5567_v6, %v5566_v15  ;;  %v8914_v47 = vpack.c.bf16 %v5591_v33, %v5590_v37  ;;  %v5613_v15 = vld [vmem:[%s11866_s1 + $0x418] sm:$0xff]  ;;  %v5622_v37 = vld [vmem:[%s11866_s1 + $0x460] sm:$0xff]  ;;  %v5623_v33 = vld [vmem:[%s11866_s1 + $0x468] sm:$0xff] }
  0xa2   : > { %8831 = vmatprep.subr.bf16.mxu0 %v8830_v27  ;;  %9119 = vmatprep.subr.bf16.mxu1 %v8830_v27  ;;  %v5579_v6 = vld [vmem:[%s10297_s30 + $0x39] sm:$0xff] }
  0xa5   : > { %8833 = vmatpush3.bf16.msra.mxu0 %v8830_v27  ;;  %9121 = vmatpush3.bf16.msra.mxu1 %v8830_v27  ;;  %v5572_v27 = vld [vmem:[%s11866_s1 + $0x350] sm:$0xff] }
  0xa6   : > { %8835 = vmatprep.subr.bf16.mxu0 %v8834_v58  ;;  %9123 = vmatprep.subr.bf16.mxu1 %v8834_v58 }
  0xa9   : > { %8837 = vmatpush3.bf16.msra.mxu0 %v8834_v58  ;;  %9125 = vmatpush3.bf16.msra.mxu1 %v8834_v58 }
  0xaa   : > { %8839 = vmatprep.subr.bf16.mxu0 %v8838_v36  ;;  %9127 = vmatprep.subr.bf16.mxu1 %v8838_v36 }
  0xad   : > { %8841 = vmatpush3.bf16.msra.mxu0 %v8838_v36  ;;  %9129 = vmatpush3.bf16.msra.mxu1 %v8838_v36  ;;  %v8910_v36 = vpack.c.bf16 %v5589_v32, %v5588_v8  ;;  %v5602_v8 = vld [vmem:[%s10297_s30 + $0x32] sm:$0xff] }
  0xae   : > { %8843 = vmatprep.subr.bf16.mxu0 %v8842_v35  ;;  %9131 = vmatprep.subr.bf16.mxu1 %v8842_v35  ;;  %v5803_v32 = vld [vmem:[%s10297_s30 + $0x92] sm:$0xff] }
  0xb0   : > { %7307 = vmatmul.mubr.f32.vlgmr.msra.gmra.mrb[0].mxu0 %v10352_v38  ;;  %7703 = vmatmul.mubr.f32.vlgmr.msra.gmra.mrb[0].mxu1 %v10355_v39  ;;  %v8854_v38 = vpack.c.bf16 %v5545_v13, %v5544_v12  ;;  %v5546_v39 = vld [vmem:[%s11866_s1 + $0x2c0] sm:$0xff] }
  0xb1   : > { %8845 = vmatpush3.bf16.msra.mxu0 %v8842_v35  ;;  %9133 = vmatpush3.bf16.msra.mxu1 %v8842_v35  ;;  %v5556_v35 = vld [vmem:[%s10297_s30 + $0x48] sm:$0xff]  ;;  %v5594_v13 = vld [vmem:[%s11866_s1 + $0x3c0] sm:$0xff] }
  0xb2   : > { %8847 = vmatprep.subr.bf16.mxu0 %v8846_v42  ;;  %9135 = vmatprep.subr.bf16.mxu1 %v8846_v42 }
  0xb3   : > { %7309 = vmatprep.mubr.f32.mxu0 %v10368_v43  ;;  %7705 = vmatprep.mubr.f32.mxu1 %v10371_v44  ;;  %v5547_v43 = vld [vmem:[%s11866_s1 + $0x2c8] sm:$0xff] }
  0xb4   : > { %7310 = vmatmul.mubr.f32.gmra.mrb[2].mxu0 %v10374_v45  ;;  %7706 = vmatmul.mubr.f32.gmra.mrb[2].mxu1 %v10377_v46  ;;  %v10748_v44 = vld [vmem:[%s10297_s30 + $0x61] sm:$0xff]  ;;  %v10754_v46 = vld [vmem:[%s10297_s30 + $0x69] sm:$0xff]  ;;  %v8858_v55 = vpack.c.bf16 %v5547_v43, %v5546_v39  ;;  %v5560_v39 = vld [vmem:[%s10297_s30 + $0x78] sm:$0xff] }
  0xb5   : > { %8849 = vmatpush3.bf16.msra.mxu0 %v8846_v42  ;;  %9137 = vmatpush3.bf16.msra.mxu1 %v8846_v42  ;;  %v10751_v45 = vld [vmem:[%s10297_s30 + $0xc1] sm:$0xff]  ;;  %v5758_v42 = vld [vmem:[%s10297_s30 + $0xb0] sm:$0xff]  ;;  %v10895_v43 = vld [vmem:[%s10297_s30 + $0xd8] sm:$0xff] }
  0xb6   : > { %8851 = vmatprep.subr.bf16.mxu0 %v8850_v49  ;;  %9139 = vmatprep.subr.bf16.mxu1 %v8850_v49 }
  0xb7   : > { %7312 = vmatprep.mubr.f32.mxu0 %v10390_v50  ;;  %7708 = vmatprep.mubr.f32.mxu1 %v10393_v51  ;;  %v5548_v50 = vld [vmem:[%s11866_s1 + $0x2d0] sm:$0xff]  ;;  %v5549_v51 = vld [vmem:[%s11866_s1 + $0x2d8] sm:$0xff] }
  0xb8   : > { %7313 = vmatmul.mubr.f32.gmra.mrb[4].mxu0 %v10396_v52  ;;  %7709 = vmatmul.mubr.f32.gmra.mrb[4].mxu1 %v10399_v53  ;;  %v8862_v52 = vpack.c.bf16 %v5549_v51, %v5548_v50  ;;  %v5550_v53 = vld [vmem:[%s11866_s1 + $0x2e0] sm:$0xff] }
  0xb9   : > { %8853 = vmatpush3.bf16.msra.mxu0 %v8850_v49  ;;  %9141 = vmatpush3.bf16.msra.mxu1 %v8850_v49  ;;  %v8866_v57 = vpack.c.bf16 %v5551_v56, %v5550_v53  ;;  %v5559_v49 = vld [vmem:[%s10297_s30 + $0x68] sm:$0xff]  ;;  %v10899_v50 = vld [vmem:[%s10297_s30 + $0xe0] sm:$0xff]  ;;  %v5779_v53 = vld [vmem:[%s10297_s30 + $0x91] sm:$0xff] }
  0xba   : > { %8855 = vmatprep.subr.bf16.mxu0 %v8854_v38  ;;  %9143 = vmatprep.subr.bf16.mxu1 %v8854_v38 }
  0xbb   : > { %7315 = vmatprep.mubr.f32.mxu0 %v10748_v44  ;;  %7711 = vmatprep.mubr.f32.mxu1 %v10751_v45 }
  0xbc   : > { %7316 = vmatmul.mubr.f32.gmra.mrb[6].mxu0 %v10754_v46  ;;  %7712 = vmatmul.mubr.f32.gmra.mrb[6].mxu1 %v10757_v54 }
  0xbd   : > { %8857 = vmatpush3.bf16.msra.mxu0 %v8854_v38  ;;  %9145 = vmatpush3.bf16.msra.mxu1 %v8854_v38  ;;  %v5595_v38 = vld [vmem:[%s11866_s1 + $0x3c8] sm:$0xff] }
  0xbe   : > { %8859 = vmatprep.subr.bf16.mxu0 %v8858_v55  ;;  %9147 = vmatprep.subr.bf16.mxu1 %v8858_v55  ;;  %v8922_v51 = vpack.c.bf16 %v5595_v38, %v5594_v13  ;;  %v5804_v13 = vld [vmem:[%s10297_s30 + $0x9a] sm:$0xff]  ;;  %v5604_v38 = vld [vmem:[%s10297_s30 + $0x4a] sm:$0xff] }
  0xbf   : > { %7350 = vmatprep.mubr.f32.mxu0 %v10558_v1  ;;  %7746 = vmatprep.mubr.f32.mxu1 %v10561_v2  ;;  %v8870_v1 = vpack.c.bf16 %v5553_v60, %v5552_v59  ;;  %v5562_v2 = vld [vmem:[%s11866_s1 + $0x300] sm:$0xff]  ;;  %v5599_v59 = vld [vmem:[%s11866_s1 + $0x3e8] sm:$0xff] }
  0xc0   : > { %v8874_v63 = vpack.c.bf16 %v5563_v62, %v5562_v2  ;;  %v5601_v2 = vld [vmem:[%s11866_s1 + $0x3f8] sm:$0xff] }
  0xc1   : > { %8861 = vmatpush3.bf16.msra.mxu0 %v8858_v55  ;;  %9149 = vmatpush3.bf16.msra.mxu1 %v8858_v55  ;;  %v5561_v55 = vld [vmem:[%s10297_s30 + $0x80] sm:$0xff] }
  0xc2   : > { %8863 = vmatprep.subr.bf16.mxu0 %v8862_v52  ;;  %9151 = vmatprep.subr.bf16.mxu1 %v8862_v52 }
  0xc5   : > { %8865 = vmatpush3.bf16.msra.mxu0 %v8862_v52  ;;  %9153 = vmatpush3.bf16.msra.mxu1 %v8862_v52  ;;  %v5578_v52 = vld [vmem:[%s10297_s30 + $0x31] sm:$0xff] }
  0xc6   : > { %8867 = vmatprep.subr.bf16.mxu0 %v8866_v57  ;;  %9155 = vmatprep.subr.bf16.mxu1 %v8866_v57 }
  0xc9   : > { %8869 = vmatpush3.bf16.msra.mxu0 %v8866_v57  ;;  %9157 = vmatpush3.bf16.msra.mxu1 %v8866_v57  ;;  %v5598_v57 = vld [vmem:[%s11866_s1 + $0x3e0] sm:$0xff] }
  0xca   : > { %8871 = vmatprep.subr.bf16.mxu0 %v8870_v1  ;;  %9159 = vmatprep.subr.bf16.mxu1 %v8870_v1  ;;  %v8930_v60 = vpack.c.bf16 %v5599_v59, %v5598_v57  ;;  %v5850_v57 = vld [vmem:[%s11866_s1 + $0xb0] sm:$0xff]  ;;  %v5851_v59 = vld [vmem:[%s11866_s1 + $0xb8] sm:$0xff] }
  0xcd   : > { %8873 = vmatpush3.bf16.msra.mxu0 %v8870_v1  ;;  %9161 = vmatpush3.bf16.msra.mxu1 %v8870_v1  ;;  %v5600_v1 = vld [vmem:[%s11866_s1 + $0x3f0] sm:$0xff] }
  0xce   : > { %8875 = vmatprep.subr.bf16.mxu0 %v8874_v63  ;;  %9163 = vmatprep.subr.bf16.mxu1 %v8874_v63  ;;  %v8934_v62 = vpack.c.bf16 %v5601_v2, %v5600_v1  ;;  %v5608_v1 = vld [vmem:[%s10297_s30 + $0x7a] sm:$0xff] }
  0xcf   : > { %v11028_v2 = vld [vmem:[%s10297_s30 + $0xda] sm:$0xff] }
  0xd0   : > { %7351 = vmatmul.mubr.f32.vlgmr.msra.gmra.mrb[0].mxu0 %v10564_v3  ;;  %7747 = vmatmul.mubr.f32.vlgmr.msra.gmra.mrb[0].mxu1 %v10567_v4  ;;  %v8886_v3 = vpack.c.bf16 %v5569_v26, %v5568_v23  ;;  %v5570_v4 = vld [vmem:[%s11866_s1 + $0x340] sm:$0xff] }
  0xd1   : > { %8877 = vmatpush3.bf16.msra.mxu0 %v8874_v63  ;;  %9165 = vmatpush3.bf16.msra.mxu1 %v8874_v63  ;;  %v5610_v63 = vld [vmem:[%s11866_s1 + $0x400] sm:$0xff] }
  0xd2   : > { %8879 = vmatprep.subr.bf16.mxu0 %v8878_v14  ;;  %9167 = vmatprep.subr.bf16.mxu1 %v8878_v14  ;;  %v8938_v5 = vpack.c.bf16 %v5611_v0, %v5610_v63  ;;  %v5614_v26 = vld [vmem:[%s11866_s1 + $0x420] sm:$0xff]  ;;  %v5853_v0 = vld [vmem:[%s11866_s1 + $0xc8] sm:$0xff] }
  0xd3   : > { %7353 = vmatprep.mubr.f32.mxu0 %v10580_v9  ;;  %7749 = vmatprep.mubr.f32.mxu1 %v10583_v10  ;;  %v5571_v9 = vld [vmem:[%s11866_s1 + $0x348] sm:$0xff]  ;;  %v5852_v63 = vld [vmem:[%s11866_s1 + $0xc0] sm:$0xff] }
  0xd4   : > { %7354 = vmatmul.mubr.f32.gmra.mrb[2].mxu0 %v10586_v11  ;;  %7750 = vmatmul.mubr.f32.gmra.mrb[2].mxu1 %v10589_v16  ;;  %v10824_v10 = vld [vmem:[%s10297_s30 + $0xc2] sm:$0xff]  ;;  %v10827_v11 = vld [vmem:[%s10297_s30 + $0xca] sm:$0xff]  ;;  %v8890_v16 = vpack.c.bf16 %v5571_v9, %v5570_v4 }
  0xd5   : > { %8881 = vmatpush3.bf16.msra.mxu0 %v8878_v14  ;;  %9169 = vmatpush3.bf16.msra.mxu1 %v8878_v14  ;;  %v5612_v14 = vld [vmem:[%s11866_s1 + $0x410] sm:$0xff] }
  0xd6   : > { %8883 = vmatprep.subr.bf16.mxu0 %v8882_v18  ;;  %9171 = vmatprep.subr.bf16.mxu1 %v8882_v18  ;;  %v8942_v23 = vpack.c.bf16 %v5613_v15, %v5612_v14  ;;  %v5580_v4 = vld [vmem:[%s10297_s30 + $0x49] sm:$0xff]  ;;  %v9274_v14 = vpack.c.bf16 %v5853_v0, %v5852_v63  ;;  %v11184_v0 = vld [vmem:[%s10297_s30 + $0x138] sm:$0xff] }
  0xd7   : > { %7356 = vmatprep.mubr.f32.mxu0 %v10602_v24  ;;  %7752 = vmatprep.mubr.f32.mxu1 %v10605_v25  ;;  %v5573_v24 = vld [vmem:[%s11866_s1 + $0x358] sm:$0xff]  ;;  %v5781_v9 = vld [vmem:[%s10297_s30 + $0xa9] sm:$0xff] }
  0xd8   : > { %7357 = vmatmul.mubr.f32.gmra.mrb[4].mxu0 %v10608_v30  ;;  %7753 = vmatmul.mubr.f32.gmra.mrb[4].mxu1 %v10611_v31  ;;  %v8894_v25 = vpack.c.bf16 %v5573_v24, %v5572_v27  ;;  %v5574_v30 = vld [vmem:[%s11866_s1 + $0x360] sm:$0xff]  ;;  %v5575_v31 = vld [vmem:[%s11866_s1 + $0x368] sm:$0xff]  ;;  %v5782_v27 = vld [vmem:[%s10297_s30 + $0xb1] sm:$0xff] }
  0xd9   : > { %8885 = vmatpush3.bf16.msra.mxu0 %v8882_v18  ;;  %9173 = vmatpush3.bf16.msra.mxu1 %v8882_v18  ;;  %v5780_v18 = vld [vmem:[%s10297_s30 + $0x99] sm:$0xff]  ;;  %v5854_v15 = vld [vmem:[%s11866_s1 + $0xd0] sm:$0xff]  ;;  %v5873_v63 = vld [vmem:[%s11866_s1 + $0x128] sm:$0xff] }
  0xda   : > { %8887 = vmatprep.subr.bf16.mxu0 %v8886_v3  ;;  %9175 = vmatprep.subr.bf16.mxu1 %v8886_v3 }
  0xdb   : > { %7359 = vmatprep.mubr.f32.mxu0 %v10519_v34  ;;  %7755 = vmatprep.mubr.f32.mxu1 %v10824_v10  ;;  %v8898_v34 = vpack.c.bf16 %v5575_v31, %v5574_v30  ;;  %v5617_v30 = vld [vmem:[%s11866_s1 + $0x438] sm:$0xff] }
  0xdc   : > { %7360 = vmatmul.mubr.f32.gmra.mrb[6].mxu0 %v10548_v61  ;;  %7756 = vmatmul.mubr.f32.gmra.mrb[6].mxu1 %v10827_v11  ;;  %v5576_v61 = vld [vmem:[%s11866_s1 + $0x370] sm:$0xff] }
  0xdd   : > { %8889 = vmatpush3.bf16.msra.mxu0 %v8886_v3  ;;  %9177 = vmatpush3.bf16.msra.mxu1 %v8886_v3  ;;  %v5615_v3 = vld [vmem:[%s11866_s1 + $0x428] sm:$0xff] }
  0xde   : > { %8891 = vmatprep.subr.bf16.mxu0 %v8890_v16  ;;  %9179 = vmatprep.subr.bf16.mxu1 %v8890_v16  ;;  %v8946_v24 = vpack.c.bf16 %v5615_v3, %v5614_v26  ;;  %v5857_v26 = vld [vmem:[%s11866_s1 + $0xe8] sm:$0xff] }
  0xdf   : > { %7394 = vmatprep.mubr.f32.mxu0 %v10474_v19  ;;  %7790 = vmatprep.mubr.f32.mxu1 %v10477_v20  ;;  %v8902_v19 = vpack.c.bf16 %v5577_v28, %v5576_v61  ;;  %v5586_v20 = vld [vmem:[%s11866_s1 + $0x380] sm:$0xff]  ;;  %v5619_v61 = vld [vmem:[%s11866_s1 + $0x448] sm:$0xff] }
  0xe0   : > { %v8906_v58 = vpack.c.bf16 %v5587_v29, %v5586_v20  ;;  %v5584_v28 = vld [vmem:[%s10297_s30 + $0x79] sm:$0xff]  ;;  %v5585_v20 = vld [vmem:[%s10297_s30 + $0x81] sm:$0xff] }
  0xe1   : > { %8893 = vmatpush3.bf16.msra.mxu0 %v8890_v16  ;;  %9181 = vmatpush3.bf16.msra.mxu1 %v8890_v16  ;;  %v5581_v16 = vld [vmem:[%s10297_s30 + $0x51] sm:$0xff]  ;;  %v10969_v29 = vld [vmem:[%s10297_s30 + $0xe1] sm:$0xff] }
  0xe2   : > { %8895 = vmatprep.subr.bf16.mxu0 %v8894_v25  ;;  %9183 = vmatprep.subr.bf16.mxu1 %v8894_v25 }
  0xe5   : > { %8897 = vmatpush3.bf16.msra.mxu0 %v8894_v25  ;;  %9185 = vmatpush3.bf16.msra.mxu1 %v8894_v25  ;;  %v5616_v25 = vld [vmem:[%s11866_s1 + $0x430] sm:$0xff] }
  0xe6   : > { %8899 = vmatprep.subr.bf16.mxu0 %v8898_v34  ;;  %9187 = vmatprep.subr.bf16.mxu1 %v8898_v34  ;;  %v8950_v31 = vpack.c.bf16 %v5617_v30, %v5616_v25  ;;  %v2786_v25 = vld [vmem:[%s11866_s1 + $0x10] sm:$0xff]  ;;  %v2787_v30 = vld [vmem:[%s11866_s1 + $0x18] sm:$0xff] }
  0xe9   : > { %8901 = vmatpush3.bf16.msra.mxu0 %v8898_v34  ;;  %9189 = vmatpush3.bf16.msra.mxu1 %v8898_v34  ;;  %v5618_v34 = vld [vmem:[%s11866_s1 + $0x440] sm:$0xff] }
  0xea   : > { %8903 = vmatprep.subr.bf16.mxu0 %v8902_v19  ;;  %9191 = vmatprep.subr.bf16.mxu1 %v8902_v19 }
  0xed   : > { %8905 = vmatpush3.bf16.msra.mxu0 %v8902_v19  ;;  %9193 = vmatpush3.bf16.msra.mxu1 %v8902_v19  ;;  %v10965_v19 = vld [vmem:[%s10297_s30 + $0xd9] sm:$0xff] }
  0xee   : > { %8907 = vmatprep.subr.bf16.mxu0 %v8906_v58  ;;  %9195 = vmatprep.subr.bf16.mxu1 %v8906_v58 }
  0xf0   : > { %7395 = vmatmul.mubr.f32.vlgmr.msra.gmra.mrb[0].mxu0 %v10480_v21  ;;  %7791 = vmatmul.mubr.f32.vlgmr.msra.gmra.mrb[0].mxu1 %v10483_v22  ;;  %v5593_v21 = vld [vmem:[%s11866_s1 + $0x3b8] sm:$0xff]  ;;  %v5558_v22 = vld [vmem:[%s10297_s30 + $0x60] sm:$0xff] }
  0xf1   : > { %8909 = vmatpush3.bf16.msra.mxu0 %v8906_v58  ;;  %9197 = vmatpush3.bf16.msra.mxu1 %v8906_v58  ;;  %v8918_v12 = vpack.c.bf16 %v5593_v21, %v5592_v48  ;;  %v8954_v58 = vpack.c.bf16 %v5619_v61, %v5618_v34  ;;  %v5845_v48 = vld [vmem:[%s11866_s1 + $0x88] sm:$0xff]  ;;  %v9294_v34 = vpack.c.bf16 %v2787_v30, %v2786_v25  ;;  %v2788_v61 = vld [vmem:[%s11866_s1 + $0x20] sm:$0xff]  ;;  %v5879_v25 = vld [vmem:[%s11866_s1 + $0x158] sm:$0xff] }
  0xf2   : > { %8911 = vmatprep.subr.bf16.mxu0 %v8910_v36  ;;  %9199 = vmatprep.subr.bf16.mxu1 %v8910_v36  ;;  %v5860_v30 = vld [vmem:[%s10297_s30 + $0xc2] sm:$0xff] }
  0xf3   : > { %7397 = vmatprep.mubr.f32.mxu0 %v5556_v35  ;;  %7793 = vmatprep.mubr.f32.mxu1 %v5757_v40  ;;  %v8962_v35 = vpack.c.bf16 %v5623_v33, %v5622_v37  ;;  %v5624_v40 = vld [vmem:[%s11866_s1 + $0x470] sm:$0xff]  ;;  %v11109_v37 = vld [vmem:[%s10297_s30 + $0x159] sm:$0xff]  ;;  %v2793_v33 = vld [vmem:[%s11866_s1 + $0x48] sm:$0xff] }
  0xf4   : > { %7398 = vmatmul.mubr.f32.gmra.mrb[2].mxu0 %v5557_v41  ;;  %7794 = vmatmul.mubr.f32.gmra.mrb[2].mxu1 %v5758_v42  ;;  %v5625_v41 = vld [vmem:[%s11866_s1 + $0x478] sm:$0xff] }
  0xf5   : > { %8913 = vmatpush3.bf16.msra.mxu0 %v8910_v36  ;;  %9201 = vmatpush3.bf16.msra.mxu1 %v8910_v36  ;;  %v8966_v42 = vpack.c.bf16 %v5625_v41, %v5624_v40  ;;  %v11125_v40 = vld [vmem:[%s10297_s30 + $0x169] sm:$0xff]  ;;  %v11128_v41 = vld [vmem:[%s10297_s30 + $0x111] sm:$0xff] }
  0xf6   : > { %8915 = vmatprep.subr.bf16.mxu0 %v8914_v47  ;;  %9203 = vmatprep.subr.bf16.mxu1 %v8914_v47 }
  0xf7   : > { %7400 = vmatprep.mubr.f32.mxu0 %v5558_v22  ;;  %7796 = vmatprep.mubr.f32.mxu1 %v10678_v7  ;;  %v5596_v7 = vld [vmem:[%s11866_s1 + $0x3d0] sm:$0xff] }
  0xf8   : > { %7401 = vmatmul.mubr.f32.gmra.mrb[4].mxu0 %v5559_v49  ;;  %7797 = vmatmul.mubr.f32.gmra.mrb[4].mxu1 %v10681_v17  ;;  %v5597_v17 = vld [vmem:[%s11866_s1 + $0x3d8] sm:$0xff]  ;;  %v5846_v22 = vld [vmem:[%s11866_s1 + $0x90] sm:$0xff] }
  0xf9   : > { %8917 = vmatpush3.bf16.msra.mxu0 %v8914_v47  ;;  %9205 = vmatpush3.bf16.msra.mxu1 %v8914_v47  ;;  %v8926_v56 = vpack.c.bf16 %v5597_v17, %v5596_v7  ;;  %v5844_v47 = vld [vmem:[%s11866_s1 + $0x80] sm:$0xff]  ;;  %v5847_v49 = vld [vmem:[%s11866_s1 + $0x98] sm:$0xff]  ;;  %v5849_v7 = vld [vmem:[%s11866_s1 + $0xa8] sm:$0xff] }
  0xfa   : > { %8919 = vmatprep.subr.bf16.mxu0 %v8918_v12  ;;  %9207 = vmatprep.subr.bf16.mxu1 %v8918_v12  ;;  %v9258_v21 = vpack.c.bf16 %v5845_v48, %v5844_v47  ;;  %v5605_v17 = vld [vmem:[%s10297_s30 + $0x52] sm:$0xff] }
  0xfb   : > { %7403 = vmatprep.mubr.f32.mxu0 %v5560_v39  ;;  %7799 = vmatprep.mubr.f32.mxu1 %v10895_v43  ;;  %v5805_v39 = vld [vmem:[%s10297_s30 + $0xaa] sm:$0xff] }
  0xfc   : > { %7404 = vmatmul.mubr.f32.gmra.mrb[6].mxu0 %v5561_v55  ;;  %7800 = vmatmul.mubr.f32.gmra.mrb[6].mxu1 %v10899_v50  ;;  %v9262_v55 = vpack.c.bf16 %v5847_v49, %v5846_v22  ;;  %v2794_v48 = vld [vmem:[%s11866_s1 + $0x50] sm:$0xff]  ;;  %v5828_v22 = vld [vmem:[%s10297_s30 + $0xc0] sm:$0xff] }
  0xfd   : > { %8921 = vmatpush3.bf16.msra.mxu0 %v8918_v12  ;;  %9209 = vmatpush3.bf16.msra.mxu1 %v8918_v12  ;;  %v5603_v12 = vld [vmem:[%s10297_s30 + $0x3a] sm:$0xff] }
  0xfe   : > { %8923 = vmatprep.subr.bf16.mxu0 %v8922_v51  ;;  %9211 = vmatprep.subr.bf16.mxu1 %v8922_v51  ;;  %v11145_v49 = vld [vmem:[%s10297_s30 + $0x120] sm:$0xff] }
  0xff   : > { %7438 = vmatprep.mubr.f32.mxu0 %v5578_v52  ;;  %7834 = vmatprep.mubr.f32.mxu1 %v5779_v53  ;;  %v5806_v52 = vld [vmem:[%s10297_s30 + $0xb2] sm:$0xff]  ;;  %v5606_v53 = vld [vmem:[%s10297_s30 + $0x62] sm:$0xff] }
 0x101   : > { %8925 = vmatpush3.bf16.msra.mxu0 %v8922_v51  ;;  %9213 = vmatpush3.bf16.msra.mxu1 %v8922_v51  ;;  %v5848_v51 = vld [vmem:[%s11866_s1 + $0xa0] sm:$0xff] }
 0x102   : > { %8927 = vmatprep.subr.bf16.mxu0 %v8926_v56  ;;  %9215 = vmatprep.subr.bf16.mxu1 %v8926_v56 }
 0x105   : > { %8929 = vmatpush3.bf16.msra.mxu0 %v8926_v56  ;;  %9217 = vmatpush3.bf16.msra.mxu1 %v8926_v56  ;;  %v9266_v56 = vpack.c.bf16 %v5849_v7, %v5848_v51  ;;  %v2799_v51 = vld [vmem:[%s11866_s1 + $0x78] sm:$0xff] }
 0x106   : > { %8931 = vmatprep.subr.bf16.mxu0 %v8930_v60  ;;  %9219 = vmatprep.subr.bf16.mxu1 %v8930_v60 }
 0x109   : > { %8933 = vmatpush3.bf16.msra.mxu0 %v8930_v60  ;;  %9221 = vmatpush3.bf16.msra.mxu1 %v8930_v60  ;;  %v5607_v60 = vld [vmem:[%s10297_s30 + $0x6a] sm:$0xff] }
 0x10a   : > { %8935 = vmatprep.subr.bf16.mxu0 %v8934_v62  ;;  %9223 = vmatprep.subr.bf16.mxu1 %v8934_v62 }
 0x10d   : > { %8937 = vmatpush3.bf16.msra.mxu0 %v8934_v62  ;;  %9225 = vmatpush3.bf16.msra.mxu1 %v8934_v62  ;;  %v9270_v62 = vpack.c.bf16 %v5851_v59, %v5850_v57  ;;  %v5871_v57 = vld [vmem:[%s11866_s1 + $0x118] sm:$0xff]  ;;  %v5829_v59 = vld [vmem:[%s10297_s30 + $0xc8] sm:$0xff] }
 0x10e   : > { %8939 = vmatprep.subr.bf16.mxu0 %v8938_v5  ;;  %9227 = vmatprep.subr.bf16.mxu1 %v8938_v5 }
 0x110   : > { %7439 = vmatmul.mubr.f32.vlgmr.msra.gmra.mrb[0].mxu0 %v5579_v6  ;;  %7835 = vmatmul.mubr.f32.vlgmr.msra.gmra.mrb[0].mxu1 %v5780_v18  ;;  %v5855_v6 = vld [vmem:[%s11866_s1 + $0xd8] sm:$0xff] }
 0x111   : > { %8941 = vmatpush3.bf16.msra.mxu0 %v8938_v5  ;;  %9229 = vmatpush3.bf16.msra.mxu1 %v8938_v5  ;;  %v11039_v5 = vld [vmem:[%s10297_s30 + $0xe2] sm:$0xff]  ;;  %v9278_v18 = vpack.c.bf16 %v5855_v6, %v5854_v15  ;;  %v5874_v15 = vld [vmem:[%s11866_s1 + $0x130] sm:$0xff]  ;;  %v5875_v6 = vld [vmem:[%s11866_s1 + $0x138] sm:$0xff] }
 0x112   : > { %8943 = vmatprep.subr.bf16.mxu0 %v8942_v23  ;;  %9231 = vmatprep.subr.bf16.mxu1 %v8942_v23 }
 0x113   : > { %7441 = vmatprep.mubr.f32.mxu0 %v5580_v4  ;;  %7837 = vmatprep.mubr.f32.mxu1 %v5781_v9  ;;  %v5858_v4 = vld [vmem:[%s11866_s1 + $0xf0] sm:$0xff]  ;;  %v5859_v9 = vld [vmem:[%s11866_s1 + $0xf8] sm:$0xff] }
 0x114   : > { %7442 = vmatmul.mubr.f32.gmra.mrb[2].mxu0 %v5581_v16  ;;  %7838 = vmatmul.mubr.f32.gmra.mrb[2].mxu1 %v5782_v27  ;;  %v2784_v16 = vld [vmem:[%s11866_s1] sm:$0xff]  ;;  %v2785_v27 = vld [vmem:[%s11866_s1 + $0x8] sm:$0xff] }
 0x115   : > { %8945 = vmatpush3.bf16.msra.mxu0 %v8942_v23  ;;  %9233 = vmatpush3.bf16.msra.mxu1 %v8942_v23  ;;  %v5856_v23 = vld [vmem:[%s11866_s1 + $0xe0] sm:$0xff] }
 0x116   : > { %8947 = vmatprep.subr.bf16.mxu0 %v8946_v24  ;;  %9235 = vmatprep.subr.bf16.mxu1 %v8946_v24  ;;  %v9282_v3 = vpack.c.bf16 %v5857_v26, %v5856_v23  ;;  %v11206_v23 = vld [vmem:[%s10297_s30 + $0xf8] sm:$0xff] }
 0x117   : > { %7444 = vmatprep.mubr.f32.mxu0 %v10748_v44  ;;  %7840 = vmatprep.mubr.f32.mxu1 %v10751_v45  ;;  %v5620_v44 = vld [vmem:[%s11866_s1 + $0x450] sm:$0xff]  ;;  %v11209_v26 = vld [vmem:[%s10297_s30 + $0x158] sm:$0xff] }
 0x118   : > { %7445 = vmatmul.mubr.f32.gmra.mrb[4].mxu0 %v10754_v46  ;;  %7841 = vmatmul.mubr.f32.gmra.mrb[4].mxu1 %v10757_v54  ;;  %v5621_v46 = vld [vmem:[%s11866_s1 + $0x458] sm:$0xff] }
 0x119   : > { %8949 = vmatpush3.bf16.msra.mxu0 %v8946_v24  ;;  %9237 = vmatpush3.bf16.msra.mxu1 %v8946_v24  ;;  %v8958_v36 = vpack.c.bf16 %v5621_v46, %v5620_v44  ;;  %v9290_v24 = vpack.c.bf16 %v2785_v27, %v2784_v16  ;;  %v2790_v46 = vld [vmem:[%s11866_s1 + $0x30] sm:$0xff] }
 0x11a   : > { %8951 = vmatprep.subr.bf16.mxu0 %v8950_v31  ;;  %9239 = vmatprep.subr.bf16.mxu1 %v8950_v31  ;;  %v11231_v16 = vld [vmem:[%s10297_s30 + $0x170] sm:$0xff] }
 0x11b   : > { %7447 = vmatprep.mubr.f32.mxu0 %v5584_v28  ;;  %7843 = vmatprep.mubr.f32.mxu1 %v10965_v19  ;;  %v2789_v28 = vld [vmem:[%s11866_s1 + $0x28] sm:$0xff] }
 0x11c   : > { %7448 = vmatmul.mubr.f32.gmra.mrb[6].mxu0 %v5585_v20  ;;  %7844 = vmatmul.mubr.f32.gmra.mrb[6].mxu1 %v10969_v29  ;;  %v11084_v20 = vld [vmem:[%s10297_s30 + $0x139] sm:$0xff]  ;;  %v9298_v44 = vpack.c.bf16 %v2789_v28, %v2788_v61  ;;  %v5881_v28 = vld [vmem:[%s11866_s1 + $0x168] sm:$0xff] }
 0x11d   : > { %8953 = vmatpush3.bf16.msra.mxu0 %v8950_v31  ;;  %9241 = vmatpush3.bf16.msra.mxu1 %v8950_v31  ;;  %v6038_v31 = vld [vmem:[%s10297_s30 + $0x129] sm:$0xff]  ;;  %v5880_v61 = vld [vmem:[%s11866_s1 + $0x160] sm:$0xff] }
 0x11e   : > { %8955 = vmatprep.subr.bf16.mxu0 %v8954_v58  ;;  %9243 = vmatprep.subr.bf16.mxu1 %v8954_v58 }
 0x11f   : > { %7482 = vmatprep.mubr.f32.mxu0 %v5602_v8  ;;  %7878 = vmatprep.mubr.f32.mxu1 %v5803_v32  ;;  %v11100_v8 = vld [vmem:[%s10297_s30 + $0xf1] sm:$0xff] }
 0x120   : > { %v11103_v32 = vld [vmem:[%s10297_s30 + $0x151] sm:$0xff] }
 0x121   : > { %8957 = vmatpush3.bf16.msra.mxu0 %v8954_v58  ;;  %9245 = vmatpush3.bf16.msra.mxu1 %v8954_v58  ;;  %v11087_v58 = vld [vmem:[%s10297_s30 + $0x141] sm:$0xff] }
 0x122   : > { %8959 = vmatprep.subr.bf16.mxu0 %v8958_v36  ;;  %9247 = vmatprep.subr.bf16.mxu1 %v8958_v36 }
 0x125   : > { %8961 = vmatpush3.bf16.msra.mxu0 %v8958_v36  ;;  %9249 = vmatpush3.bf16.msra.mxu1 %v8958_v36  ;;  %v11106_v36 = vld [vmem:[%s10297_s30 + $0xf9] sm:$0xff] }
 0x126   : > { %8963 = vmatprep.subr.bf16.mxu0 %v8962_v35  ;;  %9251 = vmatprep.subr.bf16.mxu1 %v8962_v35 }
 0x129   : > { %8965 = vmatpush3.bf16.msra.mxu0 %v8962_v35  ;;  %9253 = vmatpush3.bf16.msra.mxu1 %v8962_v35  ;;  %v11122_v35 = vld [vmem:[%s10297_s30 + $0x109] sm:$0xff] }
 0x12a   : > { %8967 = vmatprep.subr.bf16.mxu0 %v8966_v42  ;;  %9255 = vmatprep.subr.bf16.mxu1 %v8966_v42 }
 0x12d   : > { %8969 = vmatpush3.bf16.msra.mxu0 %v8966_v42  ;;  %9257 = vmatpush3.bf16.msra.mxu1 %v8966_v42  ;;  %v11131_v42 = vld [vmem:[%s10297_s30 + $0x171] sm:$0xff] }
 0x12e   : > { %9259 = vmatprep.subr.bf16.mxu0 %v9258_v21  ;;  %9547 = vmatprep.subr.bf16.mxu1 %v9258_v21 }
 0x130   : > { %7483 = vmatmul.mubr.f32.vlgmr.msra.gmra.mrb[0].mxu0 %v5603_v12  ;;  %7879 = vmatmul.mubr.f32.vlgmr.msra.gmra.mrb[0].mxu1 %v5804_v13  ;;  %v2796_v13 = vld [vmem:[%s11866_s1 + $0x60] sm:$0xff] }
 0x131   : > { %9261 = vmatpush3.bf16.msra.mxu0 %v9258_v21  ;;  %9549 = vmatpush3.bf16.msra.mxu1 %v9258_v21  ;;  %v2795_v21 = vld [vmem:[%s11866_s1 + $0x58] sm:$0xff] }
 0x132   : > { %7485 = vmatprep.mubr.f32.mxu0 %v5604_v38  ;;  %7881 = vmatprep.mubr.f32.mxu1 %v5805_v39  ;;  %v9310_v12 = vpack.c.bf16 %v2795_v21, %v2794_v48  ;;  %v2797_v38 = vld [vmem:[%s11866_s1 + $0x68] sm:$0xff]  ;;  %v5894_v48 = vld [vmem:[%s11866_s1 + $0x190] sm:$0xff]  ;;  %v5895_v21 = vld [vmem:[%s11866_s1 + $0x198] sm:$0xff] }
 0x133   : > { %9263 = vmatprep.subr.bf16.mxu0 %v9262_v55  ;;  %9551 = vmatprep.subr.bf16.mxu1 %v9262_v55  ;;  %v9314_v39 = vpack.c.bf16 %v2797_v38, %v2796_v13  ;;  %v9358_v13 = vpack.c.bf16 %v5895_v21, %v5894_v48  ;;  %v5896_v38 = vld [vmem:[%s11866_s1 + $0x1a0] sm:$0xff]  ;;  %v5921_v48 = vld [vmem:[%s11866_s1 + $0x228] sm:$0xff] }
 0x134   : > { %7486 = vmatmul.mubr.f32.gmra.mrb[2].mxu0 %v5605_v17  ;;  %7882 = vmatmul.mubr.f32.gmra.mrb[2].mxu1 %v5806_v52  ;;  %v5868_v17 = vld [vmem:[%s11866_s1 + $0x100] sm:$0xff]  ;;  %v5869_v52 = vld [vmem:[%s11866_s1 + $0x108] sm:$0xff] }
 0x135   : > { %9265 = vmatpush3.bf16.msra.mxu0 %v9262_v55  ;;  %9553 = vmatpush3.bf16.msra.mxu1 %v9262_v55  ;;  %v2798_v55 = vld [vmem:[%s11866_s1 + $0x70] sm:$0xff] }
 0x136   : > { %7488 = vmatprep.mubr.f32.mxu0 %v5606_v53  ;;  %7884 = vmatprep.mubr.f32.mxu1 %v10824_v10  ;;  %v5609_v10 = vld [vmem:[%s10297_s30 + $0x82] sm:$0xff]  ;;  %v9318_v7 = vpack.c.bf16 %v2799_v51, %v2798_v55  ;;  %v9322_v53 = vpack.c.bf16 %v5869_v52, %v5868_v17  ;;  %v11284_v55 = vld [vmem:[%s10297_s30 + $0x13a] sm:$0xff]  ;;  %v5898_v17 = vld [vmem:[%s11866_s1 + $0x1b0] sm:$0xff] }
 0x137   : > { %9267 = vmatprep.subr.bf16.mxu0 %v9266_v56  ;;  %9555 = vmatprep.subr.bf16.mxu1 %v9266_v56  ;;  %v11287_v51 = vld [vmem:[%s10297_s30 + $0x142] sm:$0xff]  ;;  %v5899_v52 = vld [vmem:[%s11866_s1 + $0x1b8] sm:$0xff] }
 0x138   : > { %7489 = vmatmul.mubr.f32.gmra.mrb[4].mxu0 %v5607_v60  ;;  %7885 = vmatmul.mubr.f32.gmra.mrb[4].mxu1 %v10827_v11  ;;  %v6037_v11 = vld [vmem:[%s10297_s30 + $0x121] sm:$0xff] }
 0x139   : > { %9269 = vmatpush3.bf16.msra.mxu0 %v9266_v56  ;;  %9557 = vmatpush3.bf16.msra.mxu1 %v9266_v56  ;;  %v5870_v56 = vld [vmem:[%s11866_s1 + $0x110] sm:$0xff]  ;;  %v11174_v60 = vld [vmem:[%s10297_s30 + $0x128] sm:$0xff] }
 0x13a   : > { %7491 = vmatprep.mubr.f32.mxu0 %v5608_v1  ;;  %7887 = vmatprep.mubr.f32.mxu1 %v11028_v2  ;;  %v9326_v1 = vpack.c.bf16 %v5871_v57, %v5870_v56  ;;  %v11303_v56 = vld [vmem:[%s10297_s30 + $0x152] sm:$0xff]  ;;  %v11306_v57 = vld [vmem:[%s10297_s30 + $0xfa] sm:$0xff] }
 0x13b   : > { %9271 = vmatprep.subr.bf16.mxu0 %v9270_v62  ;;  %9559 = vmatprep.subr.bf16.mxu1 %v9270_v62 }
 0x13c   : > { %7492 = vmatmul.mubr.f32.gmra.mrb[6].mxu0 %v5609_v10  ;;  %7888 = vmatmul.mubr.f32.gmra.mrb[6].mxu1 %v11039_v5  ;;  %v11187_v10 = vld [vmem:[%s10297_s30 + $0x140] sm:$0xff] }
 0x13d   : > { %9273 = vmatpush3.bf16.msra.mxu0 %v9270_v62  ;;  %9561 = vmatpush3.bf16.msra.mxu1 %v9270_v62  ;;  %v5872_v62 = vld [vmem:[%s11866_s1 + $0x120] sm:$0xff] }
 0x13e   : > { %9275 = vmatprep.subr.bf16.mxu0 %v9274_v14  ;;  %9563 = vmatprep.subr.bf16.mxu1 %v9274_v14 }
 0x13f   : > { %7922 = vmatprep.mubr.f32.mxu0 %v10751_v45  ;;  %8318 = vmatprep.mubr.f32.mxu1 %v6037_v11  ;;  %v9286_v45 = vpack.c.bf16 %v5859_v9, %v5858_v4  ;;  %v11200_v11 = vld [vmem:[%s10297_s30 + $0xf0] sm:$0xff]  ;;  %v11222_v4 = vld [vmem:[%s10297_s30 + $0x108] sm:$0xff] }
 0x140   : > { %v11225_v9 = vld [vmem:[%s10297_s30 + $0x168] sm:$0xff] }
 0x141   : > { %9277 = vmatpush3.bf16.msra.mxu0 %v9274_v14  ;;  %9565 = vmatpush3.bf16.msra.mxu1 %v9274_v14  ;;  %v9330_v14 = vpack.c.bf16 %v5873_v63, %v5872_v62  ;;  %v11322_v62 = vld [vmem:[%s10297_s30 + $0x10a] sm:$0xff] }
 0x142   : > { %9279 = vmatprep.subr.bf16.mxu0 %v9278_v18  ;;  %9567 = vmatprep.subr.bf16.mxu1 %v9278_v18  ;;  %v11325_v63 = vld [vmem:[%s10297_s30 + $0x16a] sm:$0xff] }
 0x145   : > { %9281 = vmatpush3.bf16.msra.mxu0 %v9278_v18  ;;  %9569 = vmatpush3.bf16.msra.mxu1 %v9278_v18  ;;  %v11203_v18 = vld [vmem:[%s10297_s30 + $0x150] sm:$0xff] }
 0x146   : > { %9283 = vmatprep.subr.bf16.mxu0 %v9282_v3  ;;  %9571 = vmatprep.subr.bf16.mxu1 %v9282_v3 }
 0x149   : > { %9285 = vmatpush3.bf16.msra.mxu0 %v9282_v3  ;;  %9573 = vmatpush3.bf16.msra.mxu1 %v9282_v3  ;;  %v5877_v3 = vld [vmem:[%s11866_s1 + $0x148] sm:$0xff] }
 0x14a   : > { %9287 = vmatprep.subr.bf16.mxu0 %v9286_v45  ;;  %9575 = vmatprep.subr.bf16.mxu1 %v9286_v45 }
 0x14d   : > { %9289 = vmatpush3.bf16.msra.mxu0 %v9286_v45  ;;  %9577 = vmatpush3.bf16.msra.mxu1 %v9286_v45  ;;  %v11228_v45 = vld [vmem:[%s10297_s30 + $0x110] sm:$0xff] }
 0x14e   : > { %9291 = vmatprep.subr.bf16.mxu0 %v9290_v24  ;;  %9579 = vmatprep.subr.bf16.mxu1 %v9290_v24 }
 0x150   : > { %7923 = vmatmul.mubr.f32.vlgmr.msra.gmra.mrb[8].mxu0 %v10757_v54  ;;  %8319 = vmatmul.mubr.f32.vlgmr.msra.gmra.mrb[8].mxu1 %v6038_v31  ;;  %v2791_v54 = vld [vmem:[%s11866_s1 + $0x38] sm:$0xff]  ;;  %v11245_v31 = vld [vmem:[%s10297_s30 + $0x122] sm:$0xff] }
 0x151   : > { %9293 = vmatpush3.bf16.msra.mxu0 %v9290_v24  ;;  %9581 = vmatpush3.bf16.msra.mxu1 %v9290_v24  ;;  %v5878_v24 = vld [vmem:[%s11866_s1 + $0x150] sm:$0xff] }
 0x152   : > { %9295 = vmatprep.subr.bf16.mxu0 %v9294_v34  ;;  %9583 = vmatprep.subr.bf16.mxu1 %v9294_v34 }
 0x153   : > { %7925 = vmatprep.mubr.f32.mxu0 %v10965_v19  ;;  %8321 = vmatprep.mubr.f32.mxu1 %v11084_v20  ;;  %v9302_v19 = vpack.c.bf16 %v2791_v54, %v2790_v46  ;;  %v5882_v46 = vld [vmem:[%s11866_s1 + $0x170] sm:$0xff]  ;;  %v5883_v54 = vld [vmem:[%s11866_s1 + $0x178] sm:$0xff] }
 0x154   : > { %7926 = vmatmul.mubr.f32.gmra.mrb[10].mxu0 %v10969_v29  ;;  %8322 = vmatmul.mubr.f32.gmra.mrb[10].mxu1 %v11087_v58  ;;  %v2792_v29 = vld [vmem:[%s11866_s1 + $0x40] sm:$0xff] }
 0x155   : > { %9297 = vmatpush3.bf16.msra.mxu0 %v9294_v34  ;;  %9585 = vmatpush3.bf16.msra.mxu1 %v9294_v34  ;;  %v9306_v47 = vpack.c.bf16 %v2793_v33, %v2792_v29  ;;  %v9342_v34 = vpack.c.bf16 %v5879_v25, %v5878_v24  ;;  %v5892_v29 = vld [vmem:[%s11866_s1 + $0x180] sm:$0xff]  ;;  %v5893_v33 = vld [vmem:[%s11866_s1 + $0x188] sm:$0xff] }
 0x156   : > { %9299 = vmatprep.subr.bf16.mxu0 %v9298_v44  ;;  %9587 = vmatprep.subr.bf16.mxu1 %v9298_v44  ;;  %v5904_v24 = vld [vmem:[%s11866_s1 + $0x1e0] sm:$0xff]  ;;  %v5905_v25 = vld [vmem:[%s11866_s1 + $0x1e8] sm:$0xff] }
 0x157   : > { %7928 = vmatprep.mubr.f32.mxu0 %v11100_v8  ;;  %8324 = vmatprep.mubr.f32.mxu1 %v11103_v32 }
 0x158   : > { %7929 = vmatmul.mubr.f32.gmra.mrb[12].mxu0 %v11106_v36  ;;  %8325 = vmatmul.mubr.f32.gmra.mrb[12].mxu1 %v11109_v37 }
 0x159   : > { %9301 = vmatpush3.bf16.msra.mxu0 %v9298_v44  ;;  %9589 = vmatpush3.bf16.msra.mxu1 %v9298_v44  ;;  %v9346_v44 = vpack.c.bf16 %v5881_v28, %v5880_v61  ;;  %v5907_v61 = vld [vmem:[%s11866_s1 + $0x1f8] sm:$0xff] }
 0x15a   : > { %9303 = vmatprep.subr.bf16.mxu0 %v9302_v19  ;;  %9591 = vmatprep.subr.bf16.mxu1 %v9302_v19 }
 0x15b   : > { %7931 = vmatprep.mubr.f32.mxu0 %v11122_v35  ;;  %8327 = vmatprep.mubr.f32.mxu1 %v11125_v40 }
 0x15c   : > { %7932 = vmatmul.mubr.f32.gmra.mrb[14].mxu0 %v11128_v41  ;;  %8328 = vmatmul.mubr.f32.gmra.mrb[14].mxu1 %v11131_v42 }
 0x15d   : > { %9305 = vmatpush3.bf16.msra.mxu0 %v9302_v19  ;;  %9593 = vmatpush3.bf16.msra.mxu1 %v9302_v19  ;;  %v9350_v19 = vpack.c.bf16 %v5883_v54, %v5882_v46  ;;  %v5918_v54 = vld [vmem:[%s11866_s1 + $0x210] sm:$0xff] }
 0x15e   : > { %9307 = vmatprep.subr.bf16.mxu0 %v9306_v47  ;;  %9595 = vmatprep.subr.bf16.mxu1 %v9306_v47 }
 0x15f   : > { %7966 = vmatprep.mubr.f32.mxu0 %v5828_v22  ;;  %8362 = vmatprep.mubr.f32.mxu1 %v11145_v49  ;;  %v5861_v22 = vld [vmem:[%s10297_s30 + $0xca] sm:$0xff] }
 0x161   : > { %9309 = vmatpush3.bf16.msra.mxu0 %v9306_v47  ;;  %9597 = vmatpush3.bf16.msra.mxu1 %v9306_v47  ;;  %v9354_v47 = vpack.c.bf16 %v5893_v33, %v5892_v29  ;;  %v5885_v29 = vld [vmem:[%s10297_s30 + $0xe0] sm:$0xff] }
 0x162   : > { %9311 = vmatprep.subr.bf16.mxu0 %v9310_v12  ;;  %9599 = vmatprep.subr.bf16.mxu1 %v9310_v12 }
 0x165   : > { %9313 = vmatpush3.bf16.msra.mxu0 %v9310_v12  ;;  %9601 = vmatpush3.bf16.msra.mxu1 %v9310_v12  ;;  %v11274_v12 = vld [vmem:[%s10297_s30 + $0x12a] sm:$0xff] }
 0x166   : > { %9315 = vmatprep.subr.bf16.mxu0 %v9314_v39  ;;  %9603 = vmatprep.subr.bf16.mxu1 %v9314_v39 }
 0x169   : > { %9317 = vmatpush3.bf16.msra.mxu0 %v9314_v39  ;;  %9605 = vmatpush3.bf16.msra.mxu1 %v9314_v39  ;;  %v5897_v39 = vld [vmem:[%s11866_s1 + $0x1a8] sm:$0xff] }
 0x16a   : > { %9319 = vmatprep.subr.bf16.mxu0 %v9318_v7  ;;  %9607 = vmatprep.subr.bf16.mxu1 %v9318_v7 }
 0x16d   : > { %9321 = vmatpush3.bf16.msra.mxu0 %v9318_v7  ;;  %9609 = vmatpush3.bf16.msra.mxu1 %v9318_v7  ;;  %v9362_v7 = vpack.c.bf16 %v5897_v39, %v5896_v38  ;;  %v5924_v38 = vld [vmem:[%s11866_s1 + $0x240] sm:$0xff] }
 0x16e   : > { %9323 = vmatprep.subr.bf16.mxu0 %v9322_v53  ;;  %9611 = vmatprep.subr.bf16.mxu1 %v9322_v53  ;;  %v5928_v39 = vld [vmem:[%s11866_s1 + $0x260] sm:$0xff] }
 0x170   : > { %7967 = vmatmul.mubr.f32.vlgmr.msra.gmra.mrb[8].mxu0 %v5829_v59  ;;  %8363 = vmatmul.mubr.f32.vlgmr.msra.gmra.mrb[8].mxu1 %v11174_v60  ;;  %v11309_v59 = vld [vmem:[%s10297_s30 + $0x15a] sm:$0xff] }
 0x171   : > { %9325 = vmatpush3.bf16.msra.mxu0 %v9322_v53  ;;  %9613 = vmatpush3.bf16.msra.mxu1 %v9322_v53  ;;  %v11300_v53 = vld [vmem:[%s10297_s30 + $0xf2] sm:$0xff] }
 0x172   : > { %9327 = vmatprep.subr.bf16.mxu0 %v9326_v1  ;;  %9615 = vmatprep.subr.bf16.mxu1 %v9326_v1 }
 0x173   : > { %7969 = vmatprep.mubr.f32.mxu0 %v10895_v43  ;;  %8365 = vmatprep.mubr.f32.mxu1 %v11184_v0  ;;  %v9334_v43 = vpack.c.bf16 %v5875_v6, %v5874_v15  ;;  %v11331_v15 = vld [vmem:[%s10297_s30 + $0x172] sm:$0xff] }
 0x174   : > { %7970 = vmatmul.mubr.f32.gmra.mrb[10].mxu0 %v10899_v50  ;;  %8366 = vmatmul.mubr.f32.gmra.mrb[10].mxu1 %v11187_v10  ;;  %v5876_v50 = vld [vmem:[%s11866_s1 + $0x140] sm:$0xff] }
 0x175   : > { %9329 = vmatpush3.bf16.msra.mxu0 %v9326_v1  ;;  %9617 = vmatpush3.bf16.msra.mxu1 %v9326_v1  ;;  %v9338_v27 = vpack.c.bf16 %v5877_v3, %v5876_v50  ;;  %v5901_v1 = vld [vmem:[%s11866_s1 + $0x1c8] sm:$0xff]  ;;  %v5903_v50 = vld [vmem:[%s11866_s1 + $0x1d8] sm:$0xff] }
 0x176   : > { %9331 = vmatprep.subr.bf16.mxu0 %v9330_v14  ;;  %9619 = vmatprep.subr.bf16.mxu1 %v9330_v14  ;;  %v5884_v3 = vld [vmem:[%s10297_s30 + $0xd8] sm:$0xff] }
 0x177   : > { %7972 = vmatprep.mubr.f32.mxu0 %v11200_v11  ;;  %8368 = vmatprep.mubr.f32.mxu1 %v11203_v18 }
 0x178   : > { %7973 = vmatmul.mubr.f32.gmra.mrb[12].mxu0 %v11206_v23  ;;  %8369 = vmatmul.mubr.f32.gmra.mrb[12].mxu1 %v11209_v26 }
 0x179   : > { %9333 = vmatpush3.bf16.msra.mxu0 %v9330_v14  ;;  %9621 = vmatpush3.bf16.msra.mxu1 %v9330_v14  ;;  %v11328_v14 = vld [vmem:[%s10297_s30 + $0x112] sm:$0xff] }
 0x17a   : > { %9335 = vmatprep.subr.bf16.mxu0 %v9334_v43  ;;  %9623 = vmatprep.subr.bf16.mxu1 %v9334_v43 }
 0x17b   : > { %7975 = vmatprep.mubr.f32.mxu0 %v11222_v4  ;;  %8371 = vmatprep.mubr.f32.mxu1 %v11225_v9 }
 0x17c   : > { %7976 = vmatmul.mubr.f32.gmra.mrb[14].mxu0 %v11228_v45  ;;  %8372 = vmatmul.mubr.f32.gmra.mrb[14].mxu1 %v11231_v16 }
 0x17d   : > { %9337 = vmatpush3.bf16.msra.mxu0 %v9334_v43  ;;  %9625 = vmatpush3.bf16.msra.mxu1 %v9334_v43  ;;  %v5902_v43 = vld [vmem:[%s11866_s1 + $0x1d0] sm:$0xff] }
 0x17e   : > { %9339 = vmatprep.subr.bf16.mxu0 %v9338_v27  ;;  %9627 = vmatprep.subr.bf16.mxu1 %v9338_v27 }
 0x17f   : > { %8010 = vmatprep.mubr.f32.mxu0 %v5860_v30  ;;  %8406 = vmatprep.mubr.f32.mxu1 %v11245_v31  ;;  %v9378_v30 = vpack.c.bf16 %v5905_v25, %v5904_v24  ;;  %v5946_v25 = vld [vmem:[%s11866_s1 + $0x2b0] sm:$0xff] }
 0x181   : > { %9341 = vmatpush3.bf16.msra.mxu0 %v9338_v27  ;;  %9629 = vmatpush3.bf16.msra.mxu1 %v9338_v27  ;;  %v9374_v27 = vpack.c.bf16 %v5903_v50, %v5902_v43  ;;  %v5909_v43 = vld [vmem:[%s10297_s30 + $0xe1] sm:$0xff] }
 0x182   : > { %9343 = vmatprep.subr.bf16.mxu0 %v9342_v34  ;;  %9631 = vmatprep.subr.bf16.mxu1 %v9342_v34 }
 0x185   : > { %9345 = vmatpush3.bf16.msra.mxu0 %v9342_v34  ;;  %9633 = vmatpush3.bf16.msra.mxu1 %v9342_v34  ;;  %v5906_v34 = vld [vmem:[%s11866_s1 + $0x1f0] sm:$0xff] }
 0x186   : > { %9347 = vmatprep.subr.bf16.mxu0 %v9346_v44  ;;  %9635 = vmatprep.subr.bf16.mxu1 %v9346_v44  ;;  %v9382_v28 = vpack.c.bf16 %v5907_v61, %v5906_v34  ;;  %v5948_v34 = vld [vmem:[%s11866_s1 + $0x2c0] sm:$0xff]  ;;  %v11477_v61 = vld [vmem:[%s10297_s30 + $0x189] sm:$0xff] }
 0x189   : > { %9349 = vmatpush3.bf16.msra.mxu0 %v9346_v44  ;;  %9637 = vmatpush3.bf16.msra.mxu1 %v9346_v44  ;;  %v5917_v44 = vld [vmem:[%s11866_s1 + $0x208] sm:$0xff] }
 0x18a   : > { %9351 = vmatprep.subr.bf16.mxu0 %v9350_v19  ;;  %9639 = vmatprep.subr.bf16.mxu1 %v9350_v19 }
 0x18d   : > { %9353 = vmatpush3.bf16.msra.mxu0 %v9350_v19  ;;  %9641 = vmatpush3.bf16.msra.mxu1 %v9350_v19  ;;  %v5919_v19 = vld [vmem:[%s11866_s1 + $0x218] sm:$0xff] }
 0x18e   : > { %9355 = vmatprep.subr.bf16.mxu0 %v9354_v47  ;;  %9643 = vmatprep.subr.bf16.mxu1 %v9354_v47  ;;  %v9390_v33 = vpack.c.bf16 %v5919_v19, %v5918_v54  ;;  %v5954_v54 = vld [vmem:[%s11866_s1 + $0x2f0] sm:$0xff]  ;;  %v5955_v19 = vld [vmem:[%s11866_s1 + $0x2f8] sm:$0xff] }
 0x190   : > { %8011 = vmatmul.mubr.f32.vlgmr.msra.gmra.mrb[8].mxu0 %v5861_v22  ;;  %8407 = vmatmul.mubr.f32.vlgmr.msra.gmra.mrb[8].mxu1 %v11274_v12  ;;  %v5922_v22 = vld [vmem:[%s11866_s1 + $0x230] sm:$0xff] }
 0x191   : > { %9357 = vmatpush3.bf16.msra.mxu0 %v9354_v47  ;;  %9645 = vmatpush3.bf16.msra.mxu1 %v9354_v47  ;;  %v5920_v47 = vld [vmem:[%s11866_s1 + $0x220] sm:$0xff] }
 0x192   : > { %9359 = vmatprep.subr.bf16.mxu0 %v9358_v13  ;;  %9647 = vmatprep.subr.bf16.mxu1 %v9358_v13  ;;  %v9394_v21 = vpack.c.bf16 %v5921_v48, %v5920_v47  ;;  %v5966_v48 = vld [vmem:[%s11866_s1 + $0x310] sm:$0xff] }
 0x193   : > { %8013 = vmatprep.mubr.f32.mxu0 %v11028_v2  ;;  %8409 = vmatprep.mubr.f32.mxu1 %v11284_v55  ;;  %v9366_v2 = vpack.c.bf16 %v5899_v52, %v5898_v17  ;;  %v5931_v17 = vld [vmem:[%s11866_s1 + $0x278] sm:$0xff] }
 0x194   : > { %8014 = vmatmul.mubr.f32.gmra.mrb[10].mxu0 %v11039_v5  ;;  %8410 = vmatmul.mubr.f32.gmra.mrb[10].mxu1 %v11287_v51  ;;  %v5900_v5 = vld [vmem:[%s11866_s1 + $0x1c0] sm:$0xff] }
 0x195   : > { %9361 = vmatpush3.bf16.msra.mxu0 %v9358_v13  ;;  %9649 = vmatpush3.bf16.msra.mxu1 %v9358_v13  ;;  %v9370_v6 = vpack.c.bf16 %v5901_v1, %v5900_v5  ;;  %v5923_v13 = vld [vmem:[%s11866_s1 + $0x238] sm:$0xff]  ;;  %v5942_v1 = vld [vmem:[%s11866_s1 + $0x290] sm:$0xff] }
 0x196   : > { %9363 = vmatprep.subr.bf16.mxu0 %v9362_v7  ;;  %9651 = vmatprep.subr.bf16.mxu1 %v9362_v7 }
 0x197   : > { %8016 = vmatprep.mubr.f32.mxu0 %v11300_v53  ;;  %8412 = vmatprep.mubr.f32.mxu1 %v11303_v56 }
 0x198   : > { %8017 = vmatmul.mubr.f32.gmra.mrb[12].mxu0 %v11306_v57  ;;  %8413 = vmatmul.mubr.f32.gmra.mrb[12].mxu1 %v11309_v59 }
 0x199   : > { %9365 = vmatpush3.bf16.msra.mxu0 %v9362_v7  ;;  %9653 = vmatpush3.bf16.msra.mxu1 %v9362_v7  ;;  %v5930_v7 = vld [vmem:[%s11866_s1 + $0x270] sm:$0xff] }
 0x19a   : > { %9367 = vmatprep.subr.bf16.mxu0 %v9366_v2  ;;  %9655 = vmatprep.subr.bf16.mxu1 %v9366_v2  ;;  %v9414_v52 = vpack.c.bf16 %v5931_v17, %v5930_v7  ;;  %v5978_v7 = vld [vmem:[%s11866_s1 + $0x370] sm:$0xff]  ;;  %v5979_v17 = vld [vmem:[%s11866_s1 + $0x378] sm:$0xff] }
 0x19b   : > { %8019 = vmatprep.mubr.f32.mxu0 %v11322_v62  ;;  %8415 = vmatprep.mubr.f32.mxu1 %v11325_v63 }
 0x19c   : > { %8020 = vmatmul.mubr.f32.gmra.mrb[14].mxu0 %v11328_v14  ;;  %8416 = vmatmul.mubr.f32.gmra.mrb[14].mxu1 %v11331_v15 }
 0x19d   : > { %9369 = vmatpush3.bf16.msra.mxu0 %v9366_v2  ;;  %9657 = vmatpush3.bf16.msra.mxu1 %v9366_v2  ;;  %v5941_v2 = vld [vmem:[%s11866_s1 + $0x288] sm:$0xff] }
 0x19e   : > { %9371 = vmatprep.subr.bf16.mxu0 %v9370_v6  ;;  %9659 = vmatprep.subr.bf16.mxu1 %v9370_v6 }
 0x19f   : > { %8054 = vmatprep.mubr.f32.mxu0 %v5884_v3  ;;  %8450 = vmatprep.mubr.f32.mxu1 %v11184_v0  ;;  %v5916_v0 = vld [vmem:[%s11866_s1 + $0x200] sm:$0xff] }
 0x1a0   : > { %v9386_v46 = vpack.c.bf16 %v5917_v44, %v5916_v0  ;;  %v5944_v3 = vld [vmem:[%s11866_s1 + $0x2a0] sm:$0xff]  ;;  %v5953_v44 = vld [vmem:[%s11866_s1 + $0x2e8] sm:$0xff] }
 0x1a1   : > { %9373 = vmatpush3.bf16.msra.mxu0 %v9370_v6  ;;  %9661 = vmatpush3.bf16.msra.mxu1 %v9370_v6  ;;  %v5943_v6 = vld [vmem:[%s11866_s1 + $0x298] sm:$0xff]  ;;  %v5952_v0 = vld [vmem:[%s11866_s1 + $0x2e0] sm:$0xff] }
 0x1a2   : > { %9375 = vmatprep.subr.bf16.mxu0 %v9374_v27  ;;  %9663 = vmatprep.subr.bf16.mxu1 %v9374_v27  ;;  %v9422_v50 = vpack.c.bf16 %v5943_v6, %v5942_v1 }
 0x1a5   : > { %9377 = vmatpush3.bf16.msra.mxu0 %v9374_v27  ;;  %9665 = vmatpush3.bf16.msra.mxu1 %v9374_v27  ;;  %v5945_v27 = vld [vmem:[%s11866_s1 + $0x2a8] sm:$0xff] }
 0x1a6   : > { %9379 = vmatprep.subr.bf16.mxu0 %v9378_v30  ;;  %9667 = vmatprep.subr.bf16.mxu1 %v9378_v30  ;;  %v9426_v24 = vpack.c.bf16 %v5945_v27, %v5944_v3  ;;  %v9478_v3 = vpack.c.bf16 %v5979_v17, %v5978_v7 }
 0x1a9   : > { %9381 = vmatpush3.bf16.msra.mxu0 %v9378_v30  ;;  %9669 = vmatpush3.bf16.msra.mxu1 %v9378_v30  ;;  %v5947_v30 = vld [vmem:[%s11866_s1 + $0x2b8] sm:$0xff] }
 0x1aa   : > { %9383 = vmatprep.subr.bf16.mxu0 %v9382_v28  ;;  %9671 = vmatprep.subr.bf16.mxu1 %v9382_v28 }
 0x1ad   : > { %9385 = vmatpush3.bf16.msra.mxu0 %v9382_v28  ;;  %9673 = vmatpush3.bf16.msra.mxu1 %v9382_v28 }
 0x1ae   : > { %9387 = vmatprep.subr.bf16.mxu0 %v9386_v46  ;;  %9675 = vmatprep.subr.bf16.mxu1 %v9386_v46 }
 0x1b0   : > { %8055 = vmatmul.mubr.f32.vlgmr.msra.gmra.mrb[8].mxu0 %v5885_v29  ;;  %8451 = vmatmul.mubr.f32.vlgmr.msra.gmra.mrb[8].mxu1 %v11187_v10  ;;  %v9398_v10 = vpack.c.bf16 %v5923_v13, %v5922_v22  ;;  %v9446_v29 = vpack.c.bf16 %v5955_v19, %v5954_v54  ;;  %v5933_v22 = vld [vmem:[%s10297_s30 + $0xe2] sm:$0xff] }
 0x1b1   : > { %9389 = vmatpush3.bf16.msra.mxu0 %v9386_v46  ;;  %9677 = vmatpush3.bf16.msra.mxu1 %v9386_v46  ;;  %v9442_v46 = vpack.c.bf16 %v5953_v44, %v5952_v0 }
 0x1b2   : > { %9391 = vmatprep.subr.bf16.mxu0 %v9390_v33  ;;  %9679 = vmatprep.subr.bf16.mxu1 %v9390_v33 }
 0x1b3   : > { %8057 = vmatprep.mubr.f32.mxu0 %v11200_v11  ;;  %8453 = vmatprep.mubr.f32.mxu1 %v11203_v18  ;;  %v5925_v11 = vld [vmem:[%s11866_s1 + $0x248] sm:$0xff]  ;;  %v11398_v18 = vld [vmem:[%s10297_s30 + $0x180] sm:$0xff] }
 0x1b4   : > { %8058 = vmatmul.mubr.f32.gmra.mrb[10].mxu0 %v11206_v23  ;;  %8454 = vmatmul.mubr.f32.gmra.mrb[10].mxu1 %v11209_v26  ;;  %v11401_v23 = vld [vmem:[%s10297_s30 + $0x188] sm:$0xff]  ;;  %v9402_v26 = vpack.c.bf16 %v5925_v11, %v5924_v38 }
 0x1b5   : > { %9393 = vmatpush3.bf16.msra.mxu0 %v9390_v33  ;;  %9681 = vmatpush3.bf16.msra.mxu1 %v9390_v33  ;;  %v5965_v33 = vld [vmem:[%s11866_s1 + $0x308] sm:$0xff] }
 0x1b6   : > { %9395 = vmatprep.subr.bf16.mxu0 %v9394_v21  ;;  %9683 = vmatprep.subr.bf16.mxu1 %v9394_v21  ;;  %v5969_v38 = vld [vmem:[%s11866_s1 + $0x328] sm:$0xff] }
 0x1b7   : > { %8060 = vmatprep.mubr.f32.mxu0 %v11222_v4  ;;  %8456 = vmatprep.mubr.f32.mxu1 %v11225_v9  ;;  %v5926_v4 = vld [vmem:[%s11866_s1 + $0x250] sm:$0xff]  ;;  %v5927_v9 = vld [vmem:[%s11866_s1 + $0x258] sm:$0xff] }
 0x1b8   : > { %8061 = vmatmul.mubr.f32.gmra.mrb[12].mxu0 %v11228_v45  ;;  %8457 = vmatmul.mubr.f32.gmra.mrb[12].mxu1 %v11231_v16  ;;  %v5908_v45 = vld [vmem:[%s10297_s30 + $0xd9] sm:$0xff]  ;;  %v9406_v16 = vpack.c.bf16 %v5927_v9, %v5926_v4  ;;  %v6157_v9 = vld [vmem:[%s10297_s30 + $0x150] sm:$0xff] }
 0x1b9   : > { %9397 = vmatpush3.bf16.msra.mxu0 %v9394_v21  ;;  %9685 = vmatpush3.bf16.msra.mxu1 %v9394_v21  ;;  %v5967_v21 = vld [vmem:[%s11866_s1 + $0x318] sm:$0xff] }
 0x1ba   : > { %9399 = vmatprep.subr.bf16.mxu0 %v9398_v10  ;;  %9687 = vmatprep.subr.bf16.mxu1 %v9398_v10  ;;  %v9454_v13 = vpack.c.bf16 %v5967_v21, %v5966_v48  ;;  %v5971_v4 = vld [vmem:[%s11866_s1 + $0x338] sm:$0xff] }
 0x1bb   : > { %8063 = vmatprep.mubr.f32.mxu0 %v11145_v49  ;;  %8459 = vmatprep.mubr.f32.mxu1 %v11398_v18  ;;  %v5929_v49 = vld [vmem:[%s11866_s1 + $0x268] sm:$0xff] }
 0x1bc   : > { %8064 = vmatmul.mubr.f32.gmra.mrb[14].mxu0 %v11174_v60  ;;  %8460 = vmatmul.mubr.f32.gmra.mrb[14].mxu1 %v11401_v23  ;;  %v9410_v60 = vpack.c.bf16 %v5929_v49, %v5928_v39 }
 0x1bd   : > { %9401 = vmatpush3.bf16.msra.mxu0 %v9398_v10  ;;  %9689 = vmatpush3.bf16.msra.mxu1 %v9398_v10  ;;  %v5968_v10 = vld [vmem:[%s11866_s1 + $0x320] sm:$0xff] }
 0x1be   : > { %9403 = vmatprep.subr.bf16.mxu0 %v9402_v26  ;;  %9691 = vmatprep.subr.bf16.mxu1 %v9402_v26  ;;  %v9458_v11 = vpack.c.bf16 %v5969_v38, %v5968_v10 }
 0x1bf   : > { %8098 = vmatprep.mubr.f32.mxu0 %v5908_v45  ;;  %8494 = vmatprep.mubr.f32.mxu1 %v11084_v20  ;;  %v5940_v20 = vld [vmem:[%s11866_s1 + $0x280] sm:$0xff] }
 0x1c0   : > { %v9418_v5 = vpack.c.bf16 %v5941_v2, %v5940_v20 }
 0x1c1   : > { %9405 = vmatpush3.bf16.msra.mxu0 %v9402_v26  ;;  %9693 = vmatpush3.bf16.msra.mxu1 %v9402_v26  ;;  %v5970_v26 = vld [vmem:[%s11866_s1 + $0x330] sm:$0xff] }
 0x1c2   : > { %9407 = vmatprep.subr.bf16.mxu0 %v9406_v16  ;;  %9695 = vmatprep.subr.bf16.mxu1 %v9406_v16 }
 0x1c5   : > { %9409 = vmatpush3.bf16.msra.mxu0 %v9406_v16  ;;  %9697 = vmatpush3.bf16.msra.mxu1 %v9406_v16  ;;  %v5976_v16 = vld [vmem:[%s11866_s1 + $0x360] sm:$0xff] }
 0x1c6   : > { %9411 = vmatprep.subr.bf16.mxu0 %v9410_v60  ;;  %9699 = vmatprep.subr.bf16.mxu1 %v9410_v60 }
 0x1c9   : > { %9413 = vmatpush3.bf16.msra.mxu0 %v9410_v60  ;;  %9701 = vmatpush3.bf16.msra.mxu1 %v9410_v60 }
 0x1ca   : > { %9415 = vmatprep.subr.bf16.mxu0 %v9414_v52  ;;  %9703 = vmatprep.subr.bf16.mxu1 %v9414_v52 }
 0x1cd   : > { %9417 = vmatpush3.bf16.msra.mxu0 %v9414_v52  ;;  %9705 = vmatpush3.bf16.msra.mxu1 %v9414_v52 }
 0x1ce   : > { %9419 = vmatprep.subr.bf16.mxu0 %v9418_v5  ;;  %9707 = vmatprep.subr.bf16.mxu1 %v9418_v5 }
 0x1d0   : > { %8099 = vmatmul.mubr.f32.vlgmr.msra.gmra.mrb[8].mxu0 %v5909_v43  ;;  %8495 = vmatmul.mubr.f32.vlgmr.msra.gmra.mrb[8].mxu1 %v11087_v58  ;;  %v9430_v58 = vpack.c.bf16 %v5947_v30, %v5946_v25 }
 0x1d1   : > { %9421 = vmatpush3.bf16.msra.mxu0 %v9418_v5  ;;  %9709 = vmatpush3.bf16.msra.mxu1 %v9418_v5 }
 0x1d2   : > { %9423 = vmatprep.subr.bf16.mxu0 %v9422_v50  ;;  %9711 = vmatprep.subr.bf16.mxu1 %v9422_v50 }
 0x1d3   : > { %8101 = vmatprep.mubr.f32.mxu0 %v11100_v8  ;;  %8497 = vmatprep.mubr.f32.mxu1 %v11103_v32  ;;  %v5949_v8 = vld [vmem:[%s11866_s1 + $0x2c8] sm:$0xff] }
 0x1d4   : > { %8102 = vmatmul.mubr.f32.gmra.mrb[10].mxu0 %v11106_v36  ;;  %8498 = vmatmul.mubr.f32.gmra.mrb[10].mxu1 %v11109_v37  ;;  %v11468_v32 = vld [vmem:[%s10297_s30 + $0x121] sm:$0xff]  ;;  %v11474_v37 = vld [vmem:[%s10297_s30 + $0x129] sm:$0xff] }
 0x1d5   : > { %9425 = vmatpush3.bf16.msra.mxu0 %v9422_v50  ;;  %9713 = vmatpush3.bf16.msra.mxu1 %v9422_v50  ;;  %v11471_v36 = vld [vmem:[%s10297_s30 + $0x181] sm:$0xff] }
 0x1d6   : > { %9427 = vmatprep.subr.bf16.mxu0 %v9426_v24  ;;  %9715 = vmatprep.subr.bf16.mxu1 %v9426_v24 }
 0x1d7   : > { %8104 = vmatprep.mubr.f32.mxu0 %v11122_v35  ;;  %8500 = vmatprep.mubr.f32.mxu1 %v11125_v40  ;;  %v9434_v35 = vpack.c.bf16 %v5949_v8, %v5948_v34  ;;  %v5950_v40 = vld [vmem:[%s11866_s1 + $0x2d0] sm:$0xff]  ;;  %v5988_v8 = vld [vmem:[%s11866_s1 + $0x380] sm:$0xff] }
 0x1d8   : > { %8105 = vmatmul.mubr.f32.gmra.mrb[12].mxu0 %v11128_v41  ;;  %8501 = vmatmul.mubr.f32.gmra.mrb[12].mxu1 %v11131_v42  ;;  %v5951_v41 = vld [vmem:[%s11866_s1 + $0x2d8] sm:$0xff] }
 0x1d9   : > { %9429 = vmatpush3.bf16.msra.mxu0 %v9426_v24  ;;  %9717 = vmatpush3.bf16.msra.mxu1 %v9426_v24  ;;  %v5932_v42 = vld [vmem:[%s10297_s30 + $0xda] sm:$0xff]  ;;  %v9438_v28 = vpack.c.bf16 %v5951_v41, %v5950_v40 }
 0x1da   : > { %9431 = vmatprep.subr.bf16.mxu0 %v9430_v58  ;;  %9719 = vmatprep.subr.bf16.mxu1 %v9430_v58 }
 0x1db   : > { %8107 = vmatprep.mubr.f32.mxu0 %v11468_v32  ;;  %8503 = vmatprep.mubr.f32.mxu1 %v11471_v36 }
 0x1dc   : > { %8108 = vmatmul.mubr.f32.gmra.mrb[14].mxu0 %v11474_v37  ;;  %8504 = vmatmul.mubr.f32.gmra.mrb[14].mxu1 %v11477_v61 }
 0x1dd   : > { %9433 = vmatpush3.bf16.msra.mxu0 %v9430_v58  ;;  %9721 = vmatpush3.bf16.msra.mxu1 %v9430_v58 }
 0x1de   : > { %9435 = vmatprep.subr.bf16.mxu0 %v9434_v35  ;;  %9723 = vmatprep.subr.bf16.mxu1 %v9434_v35 }
 0x1df   : > { %8142 = vmatprep.mubr.f32.mxu0 %v5932_v42  ;;  %8538 = vmatprep.mubr.f32.mxu1 %v11284_v55  ;;  %v5964_v55 = vld [vmem:[%s11866_s1 + $0x300] sm:$0xff] }
 0x1e0   : > { %v9450_v47 = vpack.c.bf16 %v5965_v33, %v5964_v55 }
 0x1e1   : > { %9437 = vmatpush3.bf16.msra.mxu0 %v9434_v35  ;;  %9725 = vmatpush3.bf16.msra.mxu1 %v9434_v35  ;;  %v5989_v35 = vld [vmem:[%s11866_s1 + $0x388] sm:$0xff] }
 0x1e2   : > { %9439 = vmatprep.subr.bf16.mxu0 %v9438_v28  ;;  %9727 = vmatprep.subr.bf16.mxu1 %v9438_v28  ;;  %v11610_v19 = vpack.c.bf16 %v5989_v35, %v5988_v8 }
 0x1e5   : > { %9441 = vmatpush3.bf16.msra.mxu0 %v9438_v28  ;;  %9729 = vmatpush3.bf16.msra.mxu1 %v9438_v28 }
 0x1e6   : > { %9443 = vmatprep.subr.bf16.mxu0 %v9442_v46  ;;  %9731 = vmatprep.subr.bf16.mxu1 %v9442_v46 }
 0x1e9   : > { %9445 = vmatpush3.bf16.msra.mxu0 %v9442_v46  ;;  %9733 = vmatpush3.bf16.msra.mxu1 %v9442_v46 }
 0x1ea   : > { %9447 = vmatprep.subr.bf16.mxu0 %v9446_v29  ;;  %9735 = vmatprep.subr.bf16.mxu1 %v9446_v29 }
 0x1ed   : > { %9449 = vmatpush3.bf16.msra.mxu0 %v9446_v29  ;;  %9737 = vmatpush3.bf16.msra.mxu1 %v9446_v29 }
 0x1ee   : > { %9451 = vmatprep.subr.bf16.mxu0 %v9450_v47  ;;  %9739 = vmatprep.subr.bf16.mxu1 %v9450_v47 }
 0x1f0   : > { %8143 = vmatmul.mubr.f32.vlgmr.msra.gmra.mrb[8].mxu0 %v5933_v22  ;;  %8539 = vmatmul.mubr.f32.vlgmr.msra.gmra.mrb[8].mxu1 %v11287_v51  ;;  %v9462_v51 = vpack.c.bf16 %v5971_v4, %v5970_v26  ;;  %v5990_v22 = vld [vmem:[%s11866_s1 + $0x390] sm:$0xff] }
 0x1f1   : > { %9453 = vmatpush3.bf16.msra.mxu0 %v9450_v47  ;;  %9741 = vmatpush3.bf16.msra.mxu1 %v9450_v47 }
 0x1f2   : > { %9455 = vmatprep.subr.bf16.mxu0 %v9454_v13  ;;  %9743 = vmatprep.subr.bf16.mxu1 %v9454_v13 }
 0x1f3   : > { %8145 = vmatprep.mubr.f32.mxu0 %v11300_v53  ;;  %8541 = vmatprep.mubr.f32.mxu1 %v11303_v56  ;;  %v5972_v53 = vld [vmem:[%s11866_s1 + $0x340] sm:$0xff]  ;;  %v5973_v56 = vld [vmem:[%s11866_s1 + $0x348] sm:$0xff] }
 0x1f4   : > { %8146 = vmatmul.mubr.f32.gmra.mrb[10].mxu0 %v11306_v57  ;;  %8542 = vmatmul.mubr.f32.gmra.mrb[10].mxu1 %v11309_v59  ;;  %v11548_v57 = vld [vmem:[%s10297_s30 + $0x182] sm:$0xff]  ;;  %v11551_v59 = vld [vmem:[%s10297_s30 + $0x18a] sm:$0xff] }
 0x1f5   : > { %9457 = vmatpush3.bf16.msra.mxu0 %v9454_v13  ;;  %9745 = vmatpush3.bf16.msra.mxu1 %v9454_v13  ;;  %v5991_v13 = vld [vmem:[%s11866_s1 + $0x398] sm:$0xff] }
 0x1f6   : > { %9459 = vmatprep.subr.bf16.mxu0 %v9458_v11  ;;  %9747 = vmatprep.subr.bf16.mxu1 %v9458_v11 }
 0x1f7   : > { %8148 = vmatprep.mubr.f32.mxu0 %v11322_v62  ;;  %8544 = vmatprep.mubr.f32.mxu1 %v11325_v63  ;;  %v9466_v62 = vpack.c.bf16 %v5973_v56, %v5972_v53  ;;  %v5974_v63 = vld [vmem:[%s11866_s1 + $0x350] sm:$0xff] }
 0x1f8   : > { %8149 = vmatmul.mubr.f32.gmra.mrb[12].mxu0 %v11328_v14  ;;  %8545 = vmatmul.mubr.f32.gmra.mrb[12].mxu1 %v11331_v15  ;;  %v5975_v14 = vld [vmem:[%s11866_s1 + $0x358] sm:$0xff]  ;;  %v5956_v15 = vld [vmem:[%s10297_s30 + $0xf0] sm:$0xff] }
 0x1f9   : > { %9461 = vmatpush3.bf16.msra.mxu0 %v9458_v11  ;;  %9749 = vmatpush3.bf16.msra.mxu1 %v9458_v11  ;;  %v9470_v45 = vpack.c.bf16 %v5975_v14, %v5974_v63 }
 0x1fa   : > { %9463 = vmatprep.subr.bf16.mxu0 %v9462_v51  ;;  %9751 = vmatprep.subr.bf16.mxu1 %v9462_v51 }
 0x1fb   : > { %8151 = vmatprep.mubr.f32.mxu0 %v11245_v31  ;;  %8547 = vmatprep.mubr.f32.mxu1 %v11548_v57  ;;  %v5977_v31 = vld [vmem:[%s11866_s1 + $0x368] sm:$0xff] }
 0x1fc   : > { %8152 = vmatmul.mubr.f32.gmra.mrb[14].mxu0 %v11274_v12  ;;  %8548 = vmatmul.mubr.f32.gmra.mrb[14].mxu1 %v11551_v59  ;;  %v11577_v12 = vld [vmem:[%s11867_s2] ss:$0 sm:$0xff]  ;;  %v9474_v39 = vpack.c.bf16 %v5977_v31, %v5976_v16  ;;  %v11627_v16 = vpack.c.bf16 %v5991_v13, %v5990_v22 }
 0x1fd   : > { %9465 = vmatpush3.bf16.msra.mxu0 %v9462_v51  ;;  %9753 = vmatpush3.bf16.msra.mxu1 %v9462_v51  ;;  %v5960_v22 = vld [vmem:[%s10297_s30 + $0x120] sm:$0xff] }
 0x1fe   : > { %9467 = vmatprep.subr.bf16.mxu0 %v9466_v62  ;;  %9755 = vmatprep.subr.bf16.mxu1 %v9466_v62 }
 0x1ff   : > { %8186 = vmatprep.mubr.f32.mxu0 %v5956_v15  ;;  %8582 = vmatprep.mubr.f32.mxu1 %v6157_v9 }
 0x201   : > { %9469 = vmatpush3.bf16.msra.mxu0 %v9466_v62  ;;  %9757 = vmatpush3.bf16.msra.mxu1 %v9466_v62 }
 0x202   : > { %9471 = vmatprep.subr.bf16.mxu0 %v9470_v45  ;;  %9759 = vmatprep.subr.bf16.mxu1 %v9470_v45 }
 0x203   : > { %v7484_v49 = vpop.f32.mrb[0].mxu0  ;;  %v7880_v60 = vpop.f32.mrb[0].mxu1 }
 0x204   : > { %v1445_v52 = vadd.f32 %v7484_v49, %v11577_v12  ;;  %v2724_v20 = vadd.f32 %v7880_v60, %v11577_v12  ;;  %v1390_v2 = vpop.f32.mrb[1].mxu0  ;;  %v2669_v5 = vpop.f32.mrb[1].mxu1 }
 0x205   : > { %v1444_v1 = vadd.f32 %v11577_v12, %v1390_v2  ;;  %v2723_v6 = vadd.f32 %v11577_v12, %v2669_v5  ;;  %9473 = vmatpush3.bf16.msra.mxu0 %v9470_v45  ;;  %9761 = vmatpush3.bf16.msra.mxu1 %v9470_v45  ;;  %v5957_v45 = vld [vmem:[%s10297_s30 + $0xf8] sm:$0xff] }
 0x206   : > { %1453 = vst [vmem:[%s11582_s8 + $0x8] sm:$0xff] %v1445_v52  ;;  %v1475_v43 = vmul.f32 %v1445_v52, %v1445_v52  ;;  %2732 = vst [vmem:[%s11582_s8 + $0x48] sm:$0xff] %v2724_v20  ;;  %v2754_v50 = vmul.f32 %v2724_v20, %v2724_v20  ;;  %9475 = vmatprep.subr.bf16.mxu0 %v9474_v39  ;;  %9763 = vmatprep.subr.bf16.mxu1 %v9474_v39 }
 0x207   : > { %1452 = vst [vmem:[%s11582_s8] sm:$0xff] %v1444_v1  ;;  %v1460_v27 = vadd.f32 %v1445_v52, %v1444_v1  ;;  %v1474_v24 = vmul.f32 %v1444_v1, %v1444_v1  ;;  %2731 = vst [vmem:[%s11582_s8 + $0x40] sm:$0xff] %v2723_v6  ;;  %v2739_v25 = vadd.f32 %v2724_v20, %v2723_v6  ;;  %v7487_v58 = vpop.f32.mrb[2].mxu0  ;;  %v7883_v34 = vpop.f32.mrb[2].mxu1  ;;  %v5992_v52 = vld [vmem:[%s11866_s1 + $0x3a0] sm:$0xff]  ;;  %v5993_v20 = vld [vmem:[%s11866_s1 + $0x3a8] sm:$0xff] }
 0x208   : > { %v2753_v30 = vmul.f32 %v2723_v6, %v2723_v6  ;;  %v1447_v40 = vadd.f32 %v7487_v58, %v11577_v12  ;;  %v2726_v41 = vadd.f32 %v7883_v34, %v11577_v12  ;;  %v1400_v42 = vpop.f32.mrb[3].mxu0  ;;  %v2679_v28 = vpop.f32.mrb[3].mxu1  ;;  %v9490_v35 = vpack.c.bf16 %v5993_v20, %v5992_v52  ;;  %v5998_v52 = vld [vmem:[%s11866_s1 + $0x3d0] sm:$0xff]  ;;  %v5999_v20 = vld [vmem:[%s11866_s1 + $0x3d8] sm:$0xff] }
 0x209   : > { %v1482_v0 = vadd.f32 %v1475_v43, %v1474_v24  ;;  %v1446_v46 = vadd.f32 %v11577_v12, %v1400_v42  ;;  %v2725_v54 = vadd.f32 %v11577_v12, %v2679_v28  ;;  %9477 = vmatpush3.bf16.msra.mxu0 %v9474_v39  ;;  %9765 = vmatpush3.bf16.msra.mxu1 %v9474_v39 }
 0x20a   : > { %v2761_v44 = vadd.f32 %v2754_v50, %v2753_v30  ;;  %1455 = vst [vmem:[%s11582_s8 + $0x18] sm:$0xff] %v1447_v40  ;;  %2734 = vst [vmem:[%s11582_s8 + $0x58] sm:$0xff] %v2726_v41  ;;  %9479 = vmatprep.subr.bf16.mxu0 %v9478_v3  ;;  %9767 = vmatprep.subr.bf16.mxu1 %v9478_v3  ;;  %v1477_v10 = vmul.f32 %v1447_v40, %v1447_v40 }
 0x20b   : > { %1454 = vst [vmem:[%s11582_s8 + $0x10] sm:$0xff] %v1446_v46  ;;  %v1461_v29 = vadd.f32 %v1460_v27, %v1446_v46  ;;  %v1476_v55 = vmul.f32 %v1446_v46, %v1446_v46  ;;  %2733 = vst [vmem:[%s11582_s8 + $0x50] sm:$0xff] %v2725_v54  ;;  %v2740_v33 = vadd.f32 %v2739_v25, %v2725_v54  ;;  %v7490_v48 = vpop.f32.mrb[4].mxu0  ;;  %v7886_v21 = vpop.f32.mrb[4].mxu1 }
 0x20c   : > { %v2755_v47 = vmul.f32 %v2725_v54, %v2725_v54  ;;  %v2756_v38 = vmul.f32 %v2726_v41, %v2726_v41  ;;  %v1449_v11 = vadd.f32 %v7490_v48, %v11577_v12  ;;  %v2728_v26 = vadd.f32 %v7886_v21, %v11577_v12  ;;  %v1410_v4 = vpop.f32.mrb[5].mxu0  ;;  %v2689_v51 = vpop.f32.mrb[5].mxu1 }
 0x20d   : > { %v1483_v53 = vadd.f32 %v1482_v0, %v1476_v55  ;;  %v1448_v62 = vadd.f32 %v11577_v12, %v1410_v4  ;;  %v1462_v63 = vadd.f32 %v1461_v29, %v1447_v40  ;;  %9481 = vmatpush3.bf16.msra.mxu0 %v9478_v3  ;;  %v2727_v15 = vadd.f32 %v11577_v12, %v2689_v51  ;;  %v5958_v40 = vld [vmem:[%s10297_s30 + $0x108] sm:$0xff]  ;;  %v5994_v29 = vld [vmem:[%s11866_s1 + $0x3b0] sm:$0xff]  ;;  %v5995_v55 = vld [vmem:[%s11866_s1 + $0x3b8] sm:$0xff] }
 0x20e   : > { %v2762_v56 = vadd.f32 %v2761_v44, %v2755_v47  ;;  %1457 = vst [vmem:[%s11582_s8 + $0x28] sm:$0xff] %v1449_v11  ;;  %v1479_v14 = vmul.f32 %v1449_v11, %v1449_v11  ;;  %2736 = vst [vmem:[%s11582_s8 + $0x68] sm:$0xff] %v2728_v26  ;;  %v2741_v9 = vadd.f32 %v2740_v33, %v2726_v41  ;;  %9769 = vmatpush3.bf16.msra.mxu1 %v9478_v3  ;;  %v6158_v3 = vld [vmem:[%s10297_s30 + $0x158] sm:$0xff]  ;;  %v6159_v44 = vld [vmem:[%s10297_s30 + $0x168] sm:$0xff] }
 0x20f   : > { %1456 = vst [vmem:[%s11582_s8 + $0x20] sm:$0xff] %v1448_v62  ;;  %v1463_v31 = vadd.f32 %v1462_v63, %v1448_v62  ;;  %v1478_v39 = vmul.f32 %v1448_v62, %v1448_v62  ;;  %v1484_v49 = vadd.f32 %v1483_v53, %v1477_v10  ;;  %v7493_v7 = vpop.f32.mrb[6].mxu0  ;;  %v7889_v17 = vpop.f32.mrb[6].mxu1  ;;  %9483 = vmatprep.subr.bf16.mxu0 %v11610_v19  ;;  %2735 = vst [vmem:[%s11582_s8 + $0x60] sm:$0xff] %v2727_v15  ;;  %v5959_v33 = vld [vmem:[%s10297_s30 + $0x110] sm:$0xff]  ;;  %v5997_v62 = vld [vmem:[%s11866_s1 + $0x3c8] sm:$0xff] }
 0x210   : > { %v2763_v60 = vadd.f32 %v2762_v56, %v2756_v38  ;;  %v2742_v2 = vadd.f32 %v2741_v9, %v2727_v15  ;;  %v2757_v5 = vmul.f32 %v2727_v15, %v2727_v15  ;;  %v1451_v1 = vadd.f32 %v7493_v7, %v11577_v12  ;;  %v1420_v43 = vpop.f32.mrb[7].mxu0  ;;  %v2699_v50 = vpop.f32.mrb[7].mxu1  ;;  %9771 = vmatprep.subr.bf16.mxu1 %v11610_v19  ;;  %v6160_v38 = vld [vmem:[%s10297_s30 + $0x170] sm:$0xff]  ;;  %v5996_v56 = vld [vmem:[%s11866_s1 + $0x3c0] sm:$0xff]  ;;  %v5961_v63 = vld [vmem:[%s10297_s30 + $0x128] sm:$0xff] }
 0x211   : > { %v2730_v6 = vadd.f32 %v7889_v17, %v11577_v12  ;;  %v1485_v27 = vadd.f32 %v1484_v49, %v1478_v39  ;;  %v1450_v24 = vadd.f32 %v11577_v12, %v1420_v43  ;;  %v1464_v25 = vadd.f32 %v1463_v31, %v1449_v11  ;;  %8187 = vmatmul.mubr.f32.vlgmr.msra.gmra.mrb[8].mxu0 %v5957_v45  ;;  %v5962_v9 = vld [vmem:[%s10297_s30 + $0x138] sm:$0xff] }
 0x212   : > { %v2729_v30 = vadd.f32 %v11577_v12, %v2699_v50  ;;  %v2758_v58 = vmul.f32 %v2728_v26, %v2728_v26  ;;  %v2764_v34 = vadd.f32 %v2763_v60, %v2757_v5  ;;  %1459 = vst [vmem:[%s11582_s8 + $0x38] sm:$0xff] %v1451_v1  ;;  %v2743_v8 = vadd.f32 %v2742_v2, %v2728_v26  ;;  %v6163_v60 = vld [vmem:[%s10297_s30 + $0x198] sm:$0xff]  ;;  %v6164_v50 = vld [vmem:[%s10297_s30 + $0x1a0] sm:$0xff] }
 0x213   : > { %2738 = vst [vmem:[%s11582_s8 + $0x78] sm:$0xff] %v2730_v6  ;;  %9485 = vmatpush3.bf16.msra.mxu0 %v11610_v19  ;;  %1458 = vst [vmem:[%s11582_s8 + $0x30] sm:$0xff] %v1450_v24  ;;  %v1465_v41 = vadd.f32 %v1464_v25, %v1450_v24  ;;  %v1480_v42 = vmul.f32 %v1450_v24, %v1450_v24  ;;  %v1486_v28 = vadd.f32 %v1485_v27, %v1479_v14  ;;  %v6181_v25 = vld [vmem:[%s10297_s30 + $0x151] sm:$0xff] }
 0x214   : > { %2737 = vst [vmem:[%s11582_s8 + $0x70] sm:$0xff] %v2729_v30  ;;  %v2759_v0 = vmul.f32 %v2729_v30, %v2729_v30  ;;  %8583 = vmatmul.mubr.f32.vlgmr.msra.gmra.mrb[8].mxu1 %v6158_v3  ;;  %v2744_v46 = vadd.f32 %v2743_v8, %v2729_v30  ;;  %v2765_v54 = vadd.f32 %v2764_v34, %v2758_v58  ;;  %v6000_v34 = vld [vmem:[%s11866_s1 + $0x3e0] sm:$0xff] }
 0x215   : > { %9773 = vmatpush3.bf16.msra.mxu1 %v11610_v19  ;;  %9487 = vmatprep.subr.bf16.mxu0 %v11627_v16  ;;  %v1481_v47 = vmul.f32 %v1451_v1, %v1451_v1  ;;  %v1466_v48 = vadd.f32 %v1465_v41, %v1451_v1  ;;  %v1487_v21 = vadd.f32 %v1486_v28, %v1480_v42  ;;  %v5980_v1 = vld [vmem:[%s10297_s30 + $0xf1] sm:$0xff] }
 0x216   : > { %9775 = vmatprep.subr.bf16.mxu1 %v11627_v16  ;;  %8189 = vmatprep.mubr.f32.mxu0 %v5958_v40  ;;  %v2760_v19 = vmul.f32 %v2730_v6, %v2730_v6  ;;  %v2745_v13 = vadd.f32 %v2744_v46, %v2730_v6  ;;  %v2766_v10 = vadd.f32 %v2765_v54, %v2759_v0  ;;  %v6002_v0 = vld [vmem:[%s11866_s1 + $0x3f0] sm:$0xff] }
 0x217   : > { %9489 = vmatpush3.bf16.msra.mxu0 %v11627_v16  ;;  %8585 = vmatprep.mubr.f32.mxu1 %v6159_v44  ;;  %v1467_v11 = vrot.slane %v1466_v48, 4  ;;  %v1488_v26 = vadd.f32 %v1487_v21, %v1481_v47  ;;  %v9494_v4 = vpack.c.bf16 %v5995_v55, %v5994_v29  ;;  %v9498_v49 = vpack.c.bf16 %v5997_v62, %v5996_v56  ;;  %v6003_v44 = vld [vmem:[%s11866_s1 + $0x3f8] sm:$0xff]  ;;  %v6013_v47 = vld [vmem:[%s11866_s1 + $0x408] sm:$0xff]  ;;  %v6014_v21 = vld [vmem:[%s11866_s1 + $0x410] sm:$0xff] }
 0x218   : > { %9491 = vmatprep.subr.bf16.mxu0 %v9490_v35  ;;  %8190 = vmatmul.mubr.f32.gmra.mrb[10].mxu0 %v5959_v33  ;;  %v2746_v51 = vrot.slane %v2745_v13, 4  ;;  %v2767_v53 = vadd.f32 %v2766_v10, %v2760_v19  ;;  %v9502_v24 = vpack.c.bf16 %v5999_v20, %v5998_v52  ;;  %v9510_v55 = vpack.c.bf16 %v6003_v44, %v6002_v0  ;;  %v6012_v33 = vld [vmem:[%s11866_s1 + $0x400] sm:$0xff]  ;;  %v5982_v10 = vld [vmem:[%s10297_s30 + $0x109] sm:$0xff]  ;;  %v6019_v62 = vld [vmem:[%s11866_s1 + $0x438] sm:$0xff] }
 0x219   : > { %9777 = vmatpush3.bf16.msra.mxu1 %v11627_v16  ;;  %8192 = vmatprep.mubr.f32.mxu0 %v5960_v22  ;;  %v1468_v14 = vadd.f32 %v1467_v11, %v1466_v48  ;;  %v1489_v15 = vrot.slane %v1488_v26, 4  ;;  %v9514_v48 = vpack.c.bf16 %v6013_v47, %v6012_v33  ;;  %v6015_v22 = vld [vmem:[%s11866_s1 + $0x418] sm:$0xff]  ;;  %v6016_v11 = vld [vmem:[%s11866_s1 + $0x420] sm:$0xff]  ;;  %v6018_v56 = vld [vmem:[%s11866_s1 + $0x430] sm:$0xff] }
 0x21a   : > { %9779 = vmatprep.subr.bf16.mxu1 %v9490_v35  ;;  %8586 = vmatmul.mubr.f32.gmra.mrb[10].mxu1 %v6160_v38  ;;  %v2747_v45 = vadd.f32 %v2746_v51, %v2745_v13  ;;  %v2768_v31 = vrot.slane %v2767_v53, 4  ;;  %v5981_v19 = vld [vmem:[%s10297_s30 + $0xf9] sm:$0xff]  ;;  %v9518_v13 = vpack.c.bf16 %v6015_v22, %v6014_v21  ;;  %v5983_v51 = vld [vmem:[%s10297_s30 + $0x111] sm:$0xff] }
 0x21b   : > { %9493 = vmatpush3.bf16.msra.mxu0 %v9490_v35  ;;  %8588 = vmatprep.mubr.f32.mxu1 %v11398_v18  ;;  %v1469_v16 = vrot.slane %v1468_v14, 2  ;;  %v1490_v39 = vadd.f32 %v1489_v15, %v1488_v26  ;;  %v5963_v18 = vld [vmem:[%s10297_s30 + $0x140] sm:$0xff]  ;;  %v6017_v26 = vld [vmem:[%s11866_s1 + $0x428] sm:$0xff]  ;;  %v6026_v20 = vld [vmem:[%s11866_s1 + $0x470] sm:$0xff] }
 0x21c   : > { %9495 = vmatprep.subr.bf16.mxu0 %v9494_v4  ;;  %8193 = vmatmul.mubr.f32.gmra.mrb[12].mxu0 %v5961_v63  ;;  %v2748_v7 = vrot.slane %v2747_v45, 2  ;;  %v2769_v17 = vadd.f32 %v2768_v31, %v2767_v53  ;;  %v6182_v38 = vld [vmem:[%s10297_s30 + $0x159] sm:$0xff]  ;;  %v9522_v53 = vpack.c.bf16 %v6017_v26, %v6016_v11  ;;  %v6184_v63 = vld [vmem:[%s10297_s30 + $0x171] sm:$0xff]  ;;  %v5987_v31 = vld [vmem:[%s10297_s30 + $0x141] sm:$0xff] }
 0x21d   : > { %9781 = vmatpush3.bf16.msra.mxu1 %v9490_v35  ;;  %8195 = vmatprep.mubr.f32.mxu0 %v5962_v9  ;;  %v1470_v2 = vadd.f32 %v1469_v16, %v1468_v14  ;;  %v1491_v5 = vrot.slane %v1490_v39, 2  ;;  %v9526_v14 = vpack.c.bf16 %v6019_v62, %v6018_v56  ;;  %v5986_v15 = vld [vmem:[%s10297_s30 + $0x139] sm:$0xff] }
 0x21e   : > { %9783 = vmatprep.subr.bf16.mxu1 %v9494_v4  ;;  %8589 = vmatmul.mubr.f32.gmra.mrb[12].mxu1 %v11401_v23  ;;  %v2749_v6 = vadd.f32 %v2748_v7, %v2747_v45  ;;  %v2770_v43 = vrot.slane %v2769_v17, 2  ;;  %v6001_v23 = vld [vmem:[%s11866_s1 + $0x3e8] sm:$0xff]  ;;  %v6020_v9 = vld [vmem:[%s11866_s1 + $0x440] sm:$0xff] }
 0x21f   : > { %9497 = vmatpush3.bf16.msra.mxu0 %v9494_v4  ;;  %8591 = vmatprep.mubr.f32.mxu1 %v6163_v60  ;;  %v1471_v3 = vrot.slane %v1470_v2, 1  ;;  %v1492_v27 = vadd.f32 %v1491_v5, %v1490_v39  ;;  %v9506_v42 = vpack.c.bf16 %v6001_v23, %v6000_v34  ;;  %v6021_v45 = vld [vmem:[%s11866_s1 + $0x448] sm:$0xff]  ;;  %v6004_v39 = vld [vmem:[%s10297_s30 + $0xf2] sm:$0xff]  ;;  %v6005_v5 = vld [vmem:[%s10297_s30 + $0xfa] sm:$0xff] }
 0x220   : > { %9499 = vmatprep.subr.bf16.mxu0 %v9498_v49  ;;  %8196 = vmatmul.mubr.f32.gmra.mrb[14].mxu0 %v5963_v18  ;;  %v2750_v30 = vrot.slane %v2749_v6, 1  ;;  %v2771_v58 = vadd.f32 %v2770_v43, %v2769_v17  ;;  %v9530_v16 = vpack.c.bf16 %v6021_v45, %v6020_v9  ;;  %v6205_v60 = vld [vmem:[%s10297_s30 + $0x152] sm:$0xff]  ;;  %v6025_v17 = vld [vmem:[%s11866_s1 + $0x468] sm:$0xff] }
 0x221   : > { %9785 = vmatpush3.bf16.msra.mxu1 %v9494_v4  ;;  %8230 = vmatprep.mubr.f32.mxu0 %v5980_v1  ;;  %v1472_v8 = vadd.f32 %v1471_v3, %v1470_v2  ;;  %v1493_v35 = vrot.slane %v1492_v27, 1  ;;  %v6183_v4 = vld [vmem:[%s10297_s30 + $0x169] sm:$0xff]  ;;  %v6027_v18 = vld [vmem:[%s11866_s1 + $0x478] sm:$0xff] }
 0x222   : > { %9787 = vmatprep.subr.bf16.mxu1 %v9498_v49  ;;  %8592 = vmatmul.mubr.f32.gmra.mrb[14].mxu1 %v6164_v50  ;;  %v2751_v40 = vadd.f32 %v2750_v30, %v2749_v6  ;;  %v2772_v41 = vrot.slane %v2771_v58, 1  ;;  %v9542_v2 = vpack.c.bf16 %v6027_v18, %v6026_v20  ;;  %v6006_v1 = vld [vmem:[%s10297_s30 + $0x10a] sm:$0xff]  ;;  %v6206_v6 = vld [vmem:[%s10297_s30 + $0x15a] sm:$0xff]  ;;  %v6007_v50 = vld [vmem:[%s10297_s30 + $0x112] sm:$0xff] }
 0x223   : > { %9501 = vmatpush3.bf16.msra.mxu0 %v9498_v49  ;;  %8626 = vmatprep.mubr.f32.mxu1 %v6181_v25  ;;  %v1494_v28 = vadd.f32 %v1493_v35, %v1492_v27  ;;  %v6207_v43 = vld [vmem:[%s10297_s30 + $0x16a] sm:$0xff]  ;;  %v6008_v3 = vld [vmem:[%s10297_s30 + $0x122] sm:$0xff]  ;;  %v6208_v27 = vld [vmem:[%s10297_s30 + $0x172] sm:$0xff] }
 0x224   : > { %9503 = vmatprep.subr.bf16.mxu0 %v9502_v24  ;;  %v11698_v46 = vadd.f32 %v2751_v40, %v1472_v8  ;;  %v2773_v54 = vadd.f32 %v2772_v41, %v2771_v58  ;;  %v6010_v25 = vld [vmem:[%s10297_s30 + $0x13a] sm:$0xff]  ;;  %v6011_v58 = vld [vmem:[%s10297_s30 + $0x142] sm:$0xff] }
 0x225   : > { %9789 = vmatpush3.bf16.msra.mxu1 %v9498_v49  ;;  %v6022_v49 = vld [vmem:[%s11866_s1 + $0x450] sm:$0xff]  ;;  %v6211_v30 = vld [vmem:[%s10297_s30 + $0x19a] sm:$0xff]  ;;  %v6212_v34 = vld [vmem:[%s10297_s30 + $0x1a2] sm:$0xff] }
 0x226   : > { %9791 = vmatprep.subr.bf16.mxu1 %v9502_v24  ;;  %v11700_v29 = vadd.f32 %v2773_v54, %v1494_v28 }
 0x227   : > { %9505 = vmatpush3.bf16.msra.mxu0 %v9502_v24 }
 0x228   : > { %9507 = vmatprep.subr.bf16.mxu0 %v9506_v42 }
 0x229   : > { %9793 = vmatpush3.bf16.msra.mxu1 %v9502_v24  ;;  %v6009_v24 = vld [vmem:[%s10297_s30 + $0x12a] sm:$0xff] }
 0x22a   : > { %9795 = vmatprep.subr.bf16.mxu1 %v9506_v42 }
 0x22b   : > { %9509 = vmatpush3.bf16.msra.mxu0 %v9506_v42 }
 0x22c   : > { %9511 = vmatprep.subr.bf16.mxu0 %v9510_v55 }
 0x22d   : > { %9797 = vmatpush3.bf16.msra.mxu1 %v9506_v42 }
 0x22e   : > { %9799 = vmatprep.subr.bf16.mxu1 %v9510_v55 }
 0x22f   : > { %9513 = vmatpush3.bf16.msra.mxu0 %v9510_v55 }
 0x230   : > { %9515 = vmatprep.subr.bf16.mxu0 %v9514_v48 }
 0x231   : > { %9801 = vmatpush3.bf16.msra.mxu1 %v9510_v55 }
 0x232   : > { %9803 = vmatprep.subr.bf16.mxu1 %v9514_v48  ;;  %8231 = vmatmul.mubr.f32.vlgmr.msra.gmra.mrb[8].mxu0 %v5981_v19 }
 0x233   : > { %9517 = vmatpush3.bf16.msra.mxu0 %v9514_v48  ;;  %8233 = vmatprep.mubr.f32.mxu0 %v5982_v10 }
 0x234   : > { %8627 = vmatmul.mubr.f32.vlgmr.msra.gmra.mrb[8].mxu1 %v6182_v38  ;;  %9519 = vmatprep.subr.bf16.mxu0 %v9518_v13 }
 0x235   : > { %9805 = vmatpush3.bf16.msra.mxu1 %v9514_v48  ;;  %8629 = vmatprep.mubr.f32.mxu1 %v6183_v4 }
 0x236   : > { %9807 = vmatprep.subr.bf16.mxu1 %v9518_v13  ;;  %8234 = vmatmul.mubr.f32.gmra.mrb[10].mxu0 %v5983_v51 }
 0x237   : > { %9521 = vmatpush3.bf16.msra.mxu0 %v9518_v13  ;;  %8236 = vmatprep.mubr.f32.mxu0 %v11468_v32  ;;  %v6187_v32 = vld [vmem:[%s10297_s30 + $0x199] sm:$0xff] }
 0x238   : > { %9523 = vmatprep.subr.bf16.mxu0 %v9522_v53  ;;  %8630 = vmatmul.mubr.f32.gmra.mrb[10].mxu1 %v6184_v63 }
 0x239   : > { %9809 = vmatpush3.bf16.msra.mxu1 %v9518_v13  ;;  %8632 = vmatprep.mubr.f32.mxu1 %v11471_v36  ;;  %v6023_v36 = vld [vmem:[%s11866_s1 + $0x458] sm:$0xff] }
 0x23a   : > { %9811 = vmatprep.subr.bf16.mxu1 %v9522_v53  ;;  %8237 = vmatmul.mubr.f32.gmra.mrb[12].mxu0 %v11474_v37  ;;  %v6188_v37 = vld [vmem:[%s10297_s30 + $0x1a1] sm:$0xff]  ;;  %v9534_v7 = vpack.c.bf16 %v6023_v36, %v6022_v49  ;;  %s196_s30 = sand.u32 1, %s10184_s16  }
 0x23b   : > { %9525 = vmatpush3.bf16.msra.mxu0 %v9522_v53  ;;  %8239 = vmatprep.mubr.f32.mxu0 %v5986_v15  ;;  %s5341_s6 = scalar_lea.sflag [#allocation3], %s196_s30 }
 0x23c   : > { %9527 = vmatprep.subr.bf16.mxu0 %v9526_v14  ;;  %8633 = vmatmul.mubr.f32.gmra.mrb[12].mxu1 %v11477_v61  ;;  %v6024_v61 = vld [vmem:[%s11866_s1 + $0x460] sm:$0xff] }
 0x23d   : > { %9813 = vmatpush3.bf16.msra.mxu1 %v9522_v53  ;;  %8635 = vmatprep.mubr.f32.mxu1 %v6187_v32  ;;  %v9538_v52 = vpack.c.bf16 %v6025_v17, %v6024_v61 }
 0x23e   : > { %9815 = vmatprep.subr.bf16.mxu1 %v9526_v14  ;;  %8240 = vmatmul.mubr.f32.gmra.mrb[14].mxu0 %v5987_v31 }
 0x23f   : > { %9529 = vmatpush3.bf16.msra.mxu0 %v9526_v14  ;;  %8274 = vmatprep.mubr.f32.mxu0 %v6004_v39 }
 0x240   : > { %9531 = vmatprep.subr.bf16.mxu0 %v9530_v16  ;;  %8636 = vmatmul.mubr.f32.gmra.mrb[14].mxu1 %v6188_v37 }
 0x241   : > { %9817 = vmatpush3.bf16.msra.mxu1 %v9526_v14  ;;  %8670 = vmatprep.mubr.f32.mxu1 %v6205_v60 }
 0x242   : > { %9819 = vmatprep.subr.bf16.mxu1 %v9530_v16 }
 0x243   : > { %9533 = vmatpush3.bf16.msra.mxu0 %v9530_v16 }
 0x244   : > { %9535 = vmatprep.subr.bf16.mxu0 %v9534_v7 }
 0x245   : > { %9821 = vmatpush3.bf16.msra.mxu1 %v9530_v16 }
 0x246   : > { %9823 = vmatprep.subr.bf16.mxu1 %v9534_v7 }
 0x247   : > { %9537 = vmatpush3.bf16.msra.mxu0 %v9534_v7 }
 0x248   : > { %9539 = vmatprep.subr.bf16.mxu0 %v9538_v52 }
 0x249   : > { %9825 = vmatpush3.bf16.msra.mxu1 %v9534_v7 }
 0x24a   : > { %9827 = vmatprep.subr.bf16.mxu1 %v9538_v52 }
 0x24b   : > { %9541 = vmatpush3.bf16.msra.mxu0 %v9538_v52 }
 0x24c   : > { %9543 = vmatprep.subr.bf16.mxu0 %v9542_v2 }
 0x24d   : > { %9829 = vmatpush3.bf16.msra.mxu1 %v9538_v52 }
 0x24e   : > { %9831 = vmatprep.subr.bf16.mxu1 %v9542_v2 }
 0x24f   : > { %9545 = vmatpush3.bf16.msra.mxu0 %v9542_v2 }
 0x251   : > { %9833 = vmatpush3.bf16.msra.mxu1 %v9542_v2 }
 0x252   : > { %8275 = vmatmul.mubr.f32.vlgmr.msra.gmra.mrb[8].mxu0 %v6005_v5 }
 0x253   : > { %8277 = vmatprep.mubr.f32.mxu0 %v6006_v1 }
 0x254   : > { %8671 = vmatmul.mubr.f32.vlgmr.msra.gmra.mrb[8].mxu1 %v6206_v6 }
 0x255   : > { %8673 = vmatprep.mubr.f32.mxu1 %v6207_v43 }
 0x256   : > { %8278 = vmatmul.mubr.f32.gmra.mrb[10].mxu0 %v6007_v50 }
 0x257   : > { %8280 = vmatprep.mubr.f32.mxu0 %v6008_v3 }
 0x258   : > { %8674 = vmatmul.mubr.f32.gmra.mrb[10].mxu1 %v6208_v27 }
 0x259   : > { %8676 = vmatprep.mubr.f32.mxu1 %v11548_v57 }
 0x25a   : > { %8281 = vmatmul.mubr.f32.gmra.mrb[12].mxu0 %v6009_v24 }
 0x25b   : > { %8283 = vmatprep.mubr.f32.mxu0 %v6010_v25 }
 0x25c   : > { %8677 = vmatmul.mubr.f32.gmra.mrb[12].mxu1 %v11551_v59 }
 0x25d   : > { %8679 = vmatprep.mubr.f32.mxu1 %v6211_v30 }
 0x25e   : > { %8284 = vmatmul.mubr.f32.gmra.mrb[14].mxu0 %v6011_v58 }
 0x260   : > { %8680 = vmatmul.mubr.f32.gmra.mrb[14].mxu1 %v6212_v34 }
 0x325   : > { %v8276_v23 = vpop.f32.mrb[8].mxu0 }
 0x326   : > { %v4003_v8 = vadd.f32 %v8276_v23, %v11577_v12  ;;  %v3948_v35 = vpop.f32.mrb[9].mxu0 }
 0x327   : > { %v8672_v40 = vpop.f32.mrb[8].mxu1  ;;  %v4002_v57 = vadd.f32 %v11577_v12, %v3948_v35 }
 0x328   : > { %4011 = vst [vmem:[%s11582_s8 + $0x88] sm:$0xff] %v4003_v8  ;;  %v4033_v41 = vmul.f32 %v4003_v8, %v4003_v8  ;;  %v5282_v42 = vadd.f32 %v8672_v40, %v11577_v12  ;;  %v5227_v28 = vpop.f32.mrb[9].mxu1 }
 0x329   : > { %4010 = vst [vmem:[%s11582_s8 + $0x80] sm:$0xff] %v4002_v57  ;;  %v4018_v59 = vadd.f32 %v4003_v8, %v4002_v57  ;;  %v4032_v0 = vmul.f32 %v4002_v57, %v4002_v57  ;;  %v5281_v44 = vadd.f32 %v11577_v12, %v5227_v28  ;;  %v8279_v54 = vpop.f32.mrb[10].mxu0 }
 0x32a   : > { %5290 = vst [vmem:[%s11582_s8 + $0xc8] sm:$0xff] %v5282_v42  ;;  %v5312_v55 = vmul.f32 %v5282_v42, %v5282_v42  ;;  %v4005_v33 = vadd.f32 %v8279_v54, %v11577_v12  ;;  %v3958_v47 = vpop.f32.mrb[11].mxu0 }
 0x32b   : > { %v4040_v48 = vadd.f32 %v4033_v41, %v4032_v0  ;;  %5289 = vst [vmem:[%s11582_s8 + $0xc0] sm:$0xff] %v5281_v44  ;;  %v5297_v21 = vadd.f32 %v5282_v42, %v5281_v44  ;;  %v5311_v22 = vmul.f32 %v5281_v44, %v5281_v44  ;;  %v8675_v19 = vpop.f32.mrb[10].mxu1  ;;  %v4004_v13 = vadd.f32 %v11577_v12, %v3958_v47 }
 0x32c   : > { %4013 = vst [vmem:[%s11582_s8 + $0x98] sm:$0xff] %v4005_v33  ;;  %v5284_v10 = vadd.f32 %v8675_v19, %v11577_v12  ;;  %v5237_v38 = vpop.f32.mrb[11].mxu1  ;;  %v4035_v56 = vmul.f32 %v4005_v33, %v4005_v33 }
 0x32d   : > { %v5319_v11 = vadd.f32 %v5312_v55, %v5311_v22  ;;  %4012 = vst [vmem:[%s11582_s8 + $0x90] sm:$0xff] %v4004_v13  ;;  %v4019_v26 = vadd.f32 %v4018_v59, %v4004_v13  ;;  %v4034_v4 = vmul.f32 %v4004_v13, %v4004_v13  ;;  %v5283_v51 = vadd.f32 %v11577_v12, %v5237_v38  ;;  %v8282_v53 = vpop.f32.mrb[12].mxu0 }
 0x32e   : > { %5292 = vst [vmem:[%s11582_s8 + $0xd8] sm:$0xff] %v5284_v10  ;;  %v4007_v62 = vadd.f32 %v8282_v53, %v11577_v12  ;;  %v3968_v63 = vpop.f32.mrb[13].mxu0  ;;  %v5314_v31 = vmul.f32 %v5284_v10, %v5284_v10 }
 0x32f   : > { %v4041_v14 = vadd.f32 %v4040_v48, %v4034_v4  ;;  %5291 = vst [vmem:[%s11582_s8 + $0xd0] sm:$0xff] %v5283_v51  ;;  %v5298_v15 = vadd.f32 %v5297_v21, %v5283_v51  ;;  %v5313_v9 = vmul.f32 %v5283_v51, %v5283_v51  ;;  %v8678_v45 = vpop.f32.mrb[12].mxu1  ;;  %v4006_v32 = vadd.f32 %v11577_v12, %v3968_v63 }
 0x330   : > { %4015 = vst [vmem:[%s11582_s8 + $0xa8] sm:$0xff] %v4007_v62  ;;  %v5286_v16 = vadd.f32 %v8678_v45, %v11577_v12  ;;  %v4020_v39 = vadd.f32 %v4019_v26, %v4005_v33  ;;  %v5247_v49 = vpop.f32.mrb[13].mxu1  ;;  %v4037_v17 = vmul.f32 %v4007_v62, %v4007_v62 }
 0x331   : > { %v5320_v36 = vadd.f32 %v5319_v11, %v5313_v9  ;;  %4014 = vst [vmem:[%s11582_s8 + $0xa0] sm:$0xff] %v4006_v32  ;;  %v4036_v37 = vmul.f32 %v4006_v32, %v4006_v32  ;;  %v4042_v60 = vadd.f32 %v4041_v14, %v4035_v56  ;;  %v5285_v7 = vadd.f32 %v11577_v12, %v5247_v49  ;;  %v8285_v61 = vpop.f32.mrb[14].mxu0 }
 0x332   : > { %5294 = vst [vmem:[%s11582_s8 + $0xe8] sm:$0xff] %v5286_v16  ;;  %v4021_v52 = vadd.f32 %v4020_v39, %v4006_v32  ;;  %v5299_v20 = vadd.f32 %v5298_v15, %v5284_v10  ;;  %v4009_v18 = vadd.f32 %v8285_v61, %v11577_v12  ;;  %v3978_v2 = vpop.f32.mrb[15].mxu0  ;;  %v5316_v3 = vmul.f32 %v5286_v16, %v5286_v16 }
 0x333   : > { %v4043_v5 = vadd.f32 %v4042_v60, %v4036_v37  ;;  %5293 = vst [vmem:[%s11582_s8 + $0xe0] sm:$0xff] %v5285_v7  ;;  %v5315_v1 = vmul.f32 %v5285_v7, %v5285_v7  ;;  %v5321_v6 = vadd.f32 %v5320_v36, %v5314_v31  ;;  %v8681_v43 = vpop.f32.mrb[14].mxu1  ;;  %v4008_v50 = vadd.f32 %v11577_v12, %v3978_v2 }
 0x334   : > { %v5300_v27 = vadd.f32 %v5299_v20, %v5285_v7  ;;  %4017 = vst [vmem:[%s11582_s8 + $0xb8] sm:$0xff] %v4009_v18  ;;  %v5288_v24 = vadd.f32 %v8681_v43, %v11577_v12  ;;  %v4022_v25 = vadd.f32 %v4021_v52, %v4007_v62  ;;  %v5257_v30 = vpop.f32.mrb[15].mxu1  ;;  %v4039_v57 = vmul.f32 %v4009_v18, %v4009_v18 }
 0x335   : > { %v5322_v58 = vadd.f32 %v5321_v6, %v5315_v1  ;;  %4016 = vst [vmem:[%s11582_s8 + $0xb0] sm:$0xff] %v4008_v50  ;;  %v4038_v34 = vmul.f32 %v4008_v50, %v4008_v50  ;;  %v4044_v23 = vadd.f32 %v4043_v5, %v4037_v17  ;;  %v5287_v8 = vadd.f32 %v11577_v12, %v5257_v30 }
 0x336   : > { %5296 = vst [vmem:[%s11582_s8 + $0xf8] sm:$0xff] %v5288_v24  ;;  %v4023_v35 = vadd.f32 %v4022_v25, %v4008_v50  ;;  %v5301_v40 = vadd.f32 %v5300_v27, %v5286_v16  ;;  %v5318_v44 = vmul.f32 %v5288_v24, %v5288_v24 }
 0x337   : > { %v4045_v41 = vadd.f32 %v4044_v23, %v4038_v34  ;;  %5295 = vst [vmem:[%s11582_s8 + $0xf0] sm:$0xff] %v5287_v8  ;;  %v5317_v42 = vmul.f32 %v5287_v8, %v5287_v8  ;;  %v5323_v28 = vadd.f32 %v5322_v58, %v5316_v3  ;;  %s5446_s8 = sshll.u32 %s196_s30, 1 }
 0x338   : > { %v4024_v59 = vadd.f32 %v4023_v35, %v4009_v18  ;;  %v5302_v0 = vadd.f32 %v5301_v40, %v5287_v8  ;;  %s198_s22 = scalar_lea.vmem [#allocation2], %s5446_s8 }
 0x339   : > { %v4046_v54 = vadd.f32 %v4045_v41, %v4039_v57  ;;  %v5324_v55 = vadd.f32 %v5323_v28, %v5317_v42  ;;  %s5358_s23 = sshll.u32 %s198_s22, 4  ;;  %s11823_s23 = int_to_ptr.vmem [resolvable:$true] %s5358_s23 }
 0x33a   : > { %v4025_v33 = vrot.slane %v4024_v59, 4  ;;  %v5303_v47 = vadd.f32 %v5302_v0, %v5288_v24  ;;  %s10130_s7 = scalar_lea.vmem %s11823_s23, 32  ;;  %p10137_p1 = scmp.lt.s32.totalorder %s11823_s23, %s10135_s19 }
 0x33b   : > { %v4047_v48 = vrot.slane %v4046_v54, 4  ;;  %v5325_v21 = vadd.f32 %v5324_v55, %v5318_v44  ;;  %p10131_p12 = scmp.ne.s32.totalorder %s11823_s23, %s10130_s7  ;;  %p10138_p2 = scmp.lt.s32.totalorder %s10136_s10, %s10130_s7 }
 0x33c   : > { %v4026_v12 = vadd.f32 %v4025_v33, %v4024_v59  ;;  %v5304_v22 = vrot.slane %v5303_v47, 4 }
 0x33d   : > { %v4048_v19 = vadd.f32 %v4047_v48, %v4046_v54  ;;  %v5326_v13 = vrot.slane %v5325_v21, 4  ;;  %p10132_p13 = pnand %p10131_p12, %p10258_p5  ;;  %p10139_p3 = por %p10138_p2, %p10137_p1 }
 0x33e   : > { %v4027_v10 = vrot.slane %v4026_v12, 2  ;;  %v5305_v38 = vadd.f32 %v5304_v22, %v5303_v47 }
 0x33f   : > { %v4049_v11 = vrot.slane %v4048_v19, 2  ;;  %v5327_v26 = vadd.f32 %v5326_v13, %v5325_v21  ;;  %p10133_p0 = pneg %p10132_p13 }
 0x340   : > { %v4028_v4 = vadd.f32 %v4027_v10, %v4026_v12  ;;  %v5306_v51 = vrot.slane %v5305_v38, 2 }
 0x341   : > { %v4050_v53 = vadd.f32 %v4049_v11, %v4048_v19  ;;  %v5328_v56 = vrot.slane %v5327_v26, 2  ;;  %p10140_p4 = pnand %p10139_p3, %p10133_p0 }
 0x342   : > { %v4029_v62 = vrot.slane %v4028_v4, 1  ;;  %v5307_v63 = vadd.f32 %v5306_v51, %v5305_v38 }
 0x343   : > { %v4051_v14 = vrot.slane %v4050_v53, 1  ;;  %v5329_v15 = vadd.f32 %v5328_v56, %v5327_v26 }
 0x344   : > { %v4030_v9 = vadd.f32 %v4029_v62, %v4028_v4  ;;  %v5308_v45 = vrot.slane %v5307_v63, 1 }
 0x345   : > { %v4052_v32 = vadd.f32 %v4051_v14, %v4050_v53  ;;  %v5330_v31 = vrot.slane %v5329_v15, 1 }
 0x346   : > { %v4031_v16 = vadd.f32 %v4030_v9, %v11698_v46  ;;  %v5309_v39 = vadd.f32 %v5308_v45, %v5307_v63 }
 0x347   : > { %v4053_v49 = vadd.f32 %v4052_v32, %v11700_v29  ;;  %v5331_v36 = vadd.f32 %v5330_v31, %v5329_v15 }
 0x348   : > { %v5310_v37 = vadd.f32 %v5309_v39, %v4031_v16 }
 0x349   : > { %v5332_v60 = vadd.f32 %v5331_v36, %v4053_v49 }
 0x34a   : > { %5333 = vst [vmem:[%s198_s22] sm:$0x1] %v5310_v37 }
 0x34b   : > { %5334 = vst [vmem:[%s198_s22 + $0x1] sm:$0x1] %v5332_v60 }
 0x34c   : > { %10143 = shalt.err (!%p10140_p4)
}
 0x34d   : > { %s10144_s5 = scalar_lea.hbm %s11821_s29, 32  ;;  %s10148_s13 = scalar_lea.hbm %s11869_s4, 64 }
 0x34e   : > { %p10145_p7 = scmp.ne.s32.totalorder %s11821_s29, %s10144_s5  ;;  %p10149_p10 = scmp.lt.u32.totalorder %s11821_s29, %s11869_s4 }
 0x34f   : > { %p10150_p11 = scmp.lt.u32.totalorder %s10148_s13, %s10144_s5  ;;  %p10152_p13 = scmp.lt.u32.totalorder %s10144_s5, %s11821_s29 }
 0x350   : > { %p10146_p8 = pnand %p10145_p7, %p10258_p5 }
 0x351   : > { %p10151_p12 = por %p10150_p11, %p10149_p10 }
 0x352   : > { %p10147_p9 = pneg %p10146_p8 }
 0x353   : > { %p10153_p0 = por %p10152_p13, %p10151_p12 }
 0x355   : > { %p10154_p1 = pnand %p10153_p0, %p10147_p9 }
 0x357   : > { %10157 = shalt.err (!%p10154_p1)
}
 0x358   : > { %10091 = dma.vmem_to_hbm [thread:$0]  (%p10258_p5), %s11823_s23, 32, %s11821_s29, %s5341_s6  }
 0x359 PF: > { %p10097_p2 = scmp.ge.s32.totalorder %s10192_s18, 2  ;;  %s5378_s30 = sand.u32 1, %s10180_s15  }
 0x35a   : > { %s5379_s8 = scalar_lea.sflag [#allocation3], %s5378_s30 }
 0x35b   : > { %p10094_p3 = pnand %p10097_p2, %p10262_p6 }
 0x35d   : > { %10175 = dma.done.wait (!%p10094_p3), %s5379_s8, 32  }
 0x35e   : > { %10177 = vsyncadd (!%p10094_p3), %s5379_s8, 4294967264  ;;  %p15_p4 = scmp.ge.s32.totalorder %s10245_s21, 4   ;;  %s11872_s15 = smov %s10184_s16 }
 0x35f   : > { %s11873_s16 = smov %s10188_s17  ;;  %s11874_s17 = smov %s10256_s24 }
 0x360   : > { %s11875_s18 = smov %s10245_s21  ;;  %17 = sbr.rel (!%p15_p4) target bundleno = 3 (0x3), region = 98 }
 0x367   :  { %5384 = vsyncpa [#allocation3], 1 }
 0x368   :  { %5386 = vsyncpa [#allocation3 + $0x1], 1 }

// kernel: resnet_forward.13
= control target key start
LH: loop header
LB: loop body
LE: loop exit
PB: predicated region body
PF: predicated region fallthrough
CT: control target
= control target key end

     0   :  { %s10015_s12 = smov 0   ;;  %s11538_s0 = inlined_call_operand.vmem [shape: f32[2,18,18,128], index: 0, kind: input, shape index: {}]   ;;  %s11539_s1 = inlined_call_operand.vmem [shape: f32[9,128,128], index: 1, kind: input, shape index: {}]   ;;  %s11540_s2 = inlined_call_operand.vmem [shape: f32[512,128], index: 2, kind: output, shape index: {0}]   ;;  %s11541_s3 = inlined_call_operand.vmem [shape: f32[2,2,128], index: 3, kind: output, shape index: {1}]  }
   0x1 LB: > { %s10021_s13 = sadd.s32 4294967295, %s9993_s12   ;;  %p5339_p0 = scmp.ge.s32.totalorder %s9993_s12, 1  ;;  %s9993_s12 = sphi %s10015_s12, %s14_s12  }
   0x2   : > { %p140_p1 = scmp.lt.s32.totalorder %s9993_s12, 3 }
   0x4   : > { %p141_p2 = pnand %p5339_p0, %p140_p1 }
   0x5   : > { %v5344_v0 = vld [vmem:[%s11539_s1 + $0x80] sm:$0xff] (!%p141_p2)  ;;  %v5345_v1 = vld [vmem:[%s11539_s1 + $0x88] sm:$0xff] (!%p141_p2)  ;;  %v5346_v2 = vld [vmem:[%s11539_s1 + $0x90] sm:$0xff] (!%p141_p2)  ;;  %p168_p3 = scmp.lt.s32.totalorder (!%p141_p2), %s10021_s13, 1  ;;  %s5341_s4 = sshll.u32 (!%p141_p2), %s10021_s13, 5 }
   0x6   : > { %144 = sbr.rel (%p141_p2) target bundleno = 832 (0x340), region = 28  ;;  %v8570_v3 = vpack.c.bf16 (!%p141_p2), %v5345_v1, %v5344_v0  ;;  %v5347_v4 = vld [vmem:[%s11539_s1 + $0x98] sm:$0xff] (!%p141_p2)  ;;  %v5348_v6 = vld [vmem:[%s11539_s1 + $0xa0] sm:$0xff] (!%p141_p2)  ;;  %v5349_v7 = vld [vmem:[%s11539_s1 + $0xa8] sm:$0xff] (!%p141_p2)  ;;  %p11294_p4 = scmp.lt.s32.totalorder (!%p141_p2), %s5341_s4, 63 }
   0x7   : > { %v8574_v5 = vpack.c.bf16 (!%p141_p2), %v5347_v4, %v5346_v2  ;;  %v8578_v8 = vpack.c.bf16 (!%p141_p2), %v5349_v7, %v5348_v6  ;;  %v5350_v9 = vld [vmem:[%s11539_s1 + $0xb0] sm:$0xff] (!%p141_p2)  ;;  %v5351_v10 = vld [vmem:[%s11539_s1 + $0xb8] sm:$0xff] (!%p141_p2)  ;;  %v5352_v14 = vld [vmem:[%s11539_s1 + $0xc0] sm:$0xff] (!%p141_p2) }
   0x8   : > { %8571 = vmatprep.subr.bf16.mxu0 (!%p141_p2), %v8570_v3  ;;  %8859 = vmatprep.subr.bf16.mxu1 (!%p141_p2), %v8570_v3  ;;  %v8582_v13 = vpack.c.bf16 (!%p141_p2), %v5351_v10, %v5350_v9  ;;  %v5353_v15 = vld [vmem:[%s11539_s1 + $0xc8] sm:$0xff] (!%p141_p2)  ;;  %v5354_v17 = vld [vmem:[%s11539_s1 + $0xd0] sm:$0xff] (!%p141_p2)  ;;  %v5355_v18 = vld [vmem:[%s11539_s1 + $0xd8] sm:$0xff] (!%p141_p2) }
   0x9   : > { %8573 = vmatpush3.bf16.msra.mxu0 (!%p141_p2), %v8570_v3  ;;  %8861 = vmatpush3.bf16.msra.mxu1 (!%p141_p2), %v8570_v3  ;;  %v8586_v16 = vpack.c.bf16 (!%p141_p2), %v5353_v15, %v5352_v14  ;;  %v8590_v19 = vpack.c.bf16 (!%p141_p2), %v5355_v18, %v5354_v17  ;;  %v5356_v20 = vld [vmem:[%s11539_s1 + $0xe0] sm:$0xff] (!%p141_p2)  ;;  %v5357_v21 = vld [vmem:[%s11539_s1 + $0xe8] sm:$0xff] (!%p141_p2)  ;;  %v5358_v23 = vld [vmem:[%s11539_s1 + $0xf0] sm:$0xff] (!%p141_p2) }
   0xa   : > { %8575 = vmatprep.subr.bf16.mxu0 (!%p141_p2), %v8574_v5  ;;  %8863 = vmatprep.subr.bf16.mxu1 (!%p141_p2), %v8574_v5  ;;  %v8594_v22 = vpack.c.bf16 (!%p141_p2), %v5357_v21, %v5356_v20  ;;  %v5359_v24 = vld [vmem:[%s11539_s1 + $0xf8] sm:$0xff] (!%p141_p2)  ;;  %v191_v26 = vld [vmem:[%s11539_s1] sm:$0xff] (!%p141_p2)  ;;  %v192_v27 = vld [vmem:[%s11539_s1 + $0x8] sm:$0xff] (!%p141_p2) }
   0xb   : > { %v8598_v25 = vpack.c.bf16 (!%p141_p2), %v5359_v24, %v5358_v23  ;;  %v8602_v28 = vpack.c.bf16 (!%p141_p2), %v192_v27, %v191_v26  ;;  %v193_v29 = vld [vmem:[%s11539_s1 + $0x10] sm:$0xff] (!%p141_p2)  ;;  %v194_v30 = vld [vmem:[%s11539_s1 + $0x18] sm:$0xff] (!%p141_p2)  ;;  %v195_v34 = vld [vmem:[%s11539_s1 + $0x20] sm:$0xff] (!%p141_p2) }
   0xc   : > { %v8606_v33 = vpack.c.bf16 (!%p141_p2), %v194_v30, %v193_v29  ;;  %v196_v35 = vld [vmem:[%s11539_s1 + $0x28] sm:$0xff] (!%p141_p2)  ;;  %v197_v41 = vld [vmem:[%s11539_s1 + $0x30] sm:$0xff] (!%p141_p2)  ;;  %v198_v42 = vld [vmem:[%s11539_s1 + $0x38] sm:$0xff] (!%p141_p2) }
   0xd   : > { %s10045_s26 = scalar_select %p168_p3, %s10021_s13, 1  ;;  %8577 = vmatpush3.bf16.msra.mxu0 %v8574_v5  ;;  %8865 = vmatpush3.bf16.msra.mxu1 %v8574_v5  ;;  %v8610_v40 = vpack.c.bf16 %v196_v35, %v195_v34  ;;  %v8614_v47 = vpack.c.bf16 %v198_v42, %v197_v41  ;;  %v199_v48 = vld [vmem:[%s11539_s1 + $0x40] sm:$0xff]  ;;  %v200_v49 = vld [vmem:[%s11539_s1 + $0x48] sm:$0xff]  ;;  %v201_v55 = vld [vmem:[%s11539_s1 + $0x50] sm:$0xff] }
   0xe   : > { %8579 = vmatprep.subr.bf16.mxu0 %v8578_v8  ;;  %8867 = vmatprep.subr.bf16.mxu1 %v8578_v8  ;;  %v8618_v54 = vpack.c.bf16 %v200_v49, %v199_v48  ;;  %v202_v56 = vld [vmem:[%s11539_s1 + $0x58] sm:$0xff]  ;;  %v203_v60 = vld [vmem:[%s11539_s1 + $0x60] sm:$0xff]  ;;  %v204_v61 = vld [vmem:[%s11539_s1 + $0x68] sm:$0xff]  ;;  %s11544_s4 = smov (!%p11294_p4, %s5341_s4), 63 }
   0xf   : > { %s9978_s27 = smul.u32 432, %s10045_s26  ;;  %v8622_v59 = vpack.c.bf16 %v202_v56, %v201_v55  ;;  %v8626_v62 = vpack.c.bf16 %v204_v61, %v203_v60  ;;  %v205_v63 = vld [vmem:[%s11539_s1 + $0x70] sm:$0xff]  ;;  %v206_v0 = vld [vmem:[%s11539_s1 + $0x78] sm:$0xff]  ;;  %v5360_v2 = vld [vmem:[%s11539_s1 + $0x100] sm:$0xff]  ;;  %s5342_s16 = sshll.u32 %s11544_s4, 3 }
  0x10   : > { %v8630_v1 = vpack.c.bf16 %v206_v0, %v205_v63  ;;  %v5361_v3 = vld [vmem:[%s11539_s1 + $0x108] sm:$0xff]  ;;  %v5362_v5 = vld [vmem:[%s11539_s1 + $0x110] sm:$0xff]  ;;  %v5363_v6 = vld [vmem:[%s11539_s1 + $0x118] sm:$0xff]  ;;  %s11337_s23 = scalar_lea.vmem %s11540_s2, %s5342_s16 }
  0x11   : > { %s10057_s7 = scalar_lea.vmem %s11538_s0, %s9978_s27  ;;  %8581 = vmatpush3.bf16.msra.mxu0 %v8578_v8  ;;  %8869 = vmatpush3.bf16.msra.mxu1 %v8578_v8  ;;  %v8634_v4 = vpack.c.bf16 %v5361_v3, %v5360_v2  ;;  %v8638_v9 = vpack.c.bf16 %v5363_v6, %v5362_v5  ;;  %v5364_v10 = vld [vmem:[%s11539_s1 + $0x120] sm:$0xff]  ;;  %v5366_v17 = vld [vmem:[%s11539_s1 + $0x130] sm:$0xff]  ;;  %v5367_v18 = vld [vmem:[%s11539_s1 + $0x138] sm:$0xff] }
  0x12   : > { %v207_v11 = vld [vmem:[%s10057_s7 + $0x1] sm:$0xff]  ;;  %8583 = vmatprep.subr.bf16.mxu0 %v8582_v13  ;;  %8871 = vmatprep.subr.bf16.mxu1 %v8582_v13  ;;  %v208_v31 = vld [vmem:[%s10057_s7 + $0x9] sm:$0xff]  ;;  %v10106_v36 = vld [vmem:[%s10057_s7 + $0x19] sm:$0xff]  ;;  %v8646_v23 = vpack.c.bf16 %v5367_v18, %v5366_v17 }
  0x13   : > { %v5528_v12 = vld [vmem:[%s10057_s7 + $0x61] sm:$0xff]  ;;  %7018 = vmatprep.mubr.f32.mxu0 %v207_v11  ;;  %v5529_v32 = vld [vmem:[%s10057_s7 + $0x69] sm:$0xff]  ;;  %v10109_v37 = vld [vmem:[%s10057_s7 + $0x79] sm:$0xff] }
  0x14   : > { %7414 = vmatprep.mubr.f32.mxu1 %v5528_v12  ;;  %v10112_v38 = vld [vmem:[%s10057_s7 + $0x21] sm:$0xff]  ;;  %v10128_v43 = vld [vmem:[%s10057_s7 + $0x31] sm:$0xff]  ;;  %v10134_v45 = vld [vmem:[%s10057_s7 + $0x39] sm:$0xff] }
  0x15   : > { %8585 = vmatpush3.bf16.msra.mxu0 %v8582_v13  ;;  %8873 = vmatpush3.bf16.msra.mxu1 %v8582_v13  ;;  %v10115_v39 = vld [vmem:[%s10057_s7 + $0x81] sm:$0xff]  ;;  %v10131_v44 = vld [vmem:[%s10057_s7 + $0x91] sm:$0xff]  ;;  %v10137_v46 = vld [vmem:[%s10057_s7 + $0x99] sm:$0xff] }
  0x16   : > { %8587 = vmatprep.subr.bf16.mxu0 %v8586_v16  ;;  %8875 = vmatprep.subr.bf16.mxu1 %v8586_v16  ;;  %v10150_v50 = vld [vmem:[%s10057_s7 + $0x49] sm:$0xff]  ;;  %v10156_v52 = vld [vmem:[%s10057_s7 + $0x51] sm:$0xff]  ;;  %v183_v57 = vld [vmem:[%s10057_s7] sm:$0xff] }
  0x17   : > { %v10153_v51 = vld [vmem:[%s10057_s7 + $0xa9] sm:$0xff]  ;;  %v10159_v53 = vld [vmem:[%s10057_s7 + $0xb1] sm:$0xff]  ;;  %v10173_v58 = vld [vmem:[%s10057_s7 + $0x60] sm:$0xff] }
  0x18   : > { %v184_v7 = vld [vmem:[%s10057_s7 + $0x8] sm:$0xff]  ;;  %v10212_v12 = vld [vmem:[%s10057_s7 + $0x18] sm:$0xff]  ;;  %v10218_v14 = vld [vmem:[%s10057_s7 + $0x20] sm:$0xff] }
  0x19   : > { %8589 = vmatpush3.bf16.msra.mxu0 %v8586_v16  ;;  %8877 = vmatpush3.bf16.msra.mxu1 %v8586_v16  ;;  %v10202_v8 = vld [vmem:[%s10057_s7 + $0x68] sm:$0xff]  ;;  %v10215_v13 = vld [vmem:[%s10057_s7 + $0x78] sm:$0xff]  ;;  %v10221_v15 = vld [vmem:[%s10057_s7 + $0x80] sm:$0xff] }
  0x1a   : > { %8591 = vmatprep.subr.bf16.mxu0 %v8590_v19  ;;  %8879 = vmatprep.subr.bf16.mxu1 %v8590_v19  ;;  %v5365_v11 = vld [vmem:[%s11539_s1 + $0x128] sm:$0xff]  ;;  %v10237_v20 = vld [vmem:[%s10057_s7 + $0x90] sm:$0xff]  ;;  %v10240_v21 = vld [vmem:[%s10057_s7 + $0x38] sm:$0xff] }
  0x1b   : > { %v8642_v16 = vpack.c.bf16 %v5365_v11, %v5364_v10  ;;  %v5368_v24 = vld [vmem:[%s11539_s1 + $0x140] sm:$0xff]  ;;  %v10256_v26 = vld [vmem:[%s10057_s7 + $0x48] sm:$0xff]  ;;  %v10265_v29 = vld [vmem:[%s10057_s7 + $0xb0] sm:$0xff] }
  0x1c   : > { %v10259_v27 = vld [vmem:[%s10057_s7 + $0xa8] sm:$0xff]  ;;  %v5375_v48 = vld [vmem:[%s11539_s1 + $0x178] sm:$0xff]  ;;  %v5388_v63 = vld [vmem:[%s11539_s1 + $0x1a0] sm:$0xff] }
  0x1d   : > { %8593 = vmatpush3.bf16.msra.mxu0 %v8590_v19  ;;  %8881 = vmatpush3.bf16.msra.mxu1 %v8590_v19  ;;  %v10234_v19 = vld [vmem:[%s10057_s7 + $0x30] sm:$0xff]  ;;  %v10279_v34 = vld [vmem:[%s10057_s7 + $0x62] sm:$0xff]  ;;  %v10321_v2 = vld [vmem:[%s10057_s7 + $0x7a] sm:$0xff] }
  0x1e   : > { %8595 = vmatprep.subr.bf16.mxu0 %v8594_v22  ;;  %8883 = vmatprep.subr.bf16.mxu1 %v8594_v22  ;;  %v5373_v41 = vld [vmem:[%s11539_s1 + $0x168] sm:$0xff]  ;;  %v5390_v6 = vld [vmem:[%s11539_s1 + $0x1b0] sm:$0xff]  ;;  %v10346_v11 = vld [vmem:[%s10057_s7 + $0x3a] sm:$0xff] }
  0x1f   : > { %v5385_v55 = vld [vmem:[%s11539_s1 + $0x188] sm:$0xff]  ;;  %v10343_v10 = vld [vmem:[%s10057_s7 + $0x92] sm:$0xff]  ;;  %v5392_v18 = vld [vmem:[%s11539_s1 + $0x1c0] sm:$0xff] }
  0x20   : > { %v443_v60 = vld [vmem:[%s10057_s7 + $0xa] sm:$0xff]  ;;  %v10324_v3 = vld [vmem:[%s10057_s7 + $0x22] sm:$0xff] }
  0x21   : > { %8597 = vmatpush3.bf16.msra.mxu0 %v8594_v22  ;;  %8885 = vmatpush3.bf16.msra.mxu1 %v8594_v22  ;;  %v10243_v22 = vld [vmem:[%s10057_s7 + $0x98] sm:$0xff]  ;;  %v10308_v61 = vld [vmem:[%s10057_s7 + $0x6a] sm:$0xff] }
  0x22   : > { %8599 = vmatprep.subr.bf16.mxu0 %v8598_v25  ;;  %8887 = vmatprep.subr.bf16.mxu1 %v8598_v25  ;;  %v5389_v0 = vld [vmem:[%s11539_s1 + $0x1a8] sm:$0xff] }
  0x23   : > { %v8674_v5 = vpack.c.bf16 %v5389_v0, %v5388_v63  ;;  %v5414_v0 = vld [vmem:[%s11539_s1 + $0x230] sm:$0xff] }
  0x25   : > { %8601 = vmatpush3.bf16.msra.mxu0 %v8598_v25  ;;  %8889 = vmatpush3.bf16.msra.mxu1 %v8598_v25  ;;  %v5369_v25 = vld [vmem:[%s11539_s1 + $0x148] sm:$0xff] }
  0x26   : > { %8603 = vmatprep.subr.bf16.mxu0 %v8602_v28  ;;  %8891 = vmatprep.subr.bf16.mxu1 %v8602_v28  ;;  %v8650_v30 = vpack.c.bf16 %v5369_v25, %v5368_v24  ;;  %v10362_v24 = vld [vmem:[%s10057_s7 + $0x4a] sm:$0xff] }
  0x27   : > { %v10365_v25 = vld [vmem:[%s10057_s7 + $0xaa] sm:$0xff] }
  0x28   : > { %7019 = vmatmul.mubr.f32.vlgmr.msra.gmra.mrb[0].mxu0 %v208_v31  ;;  %7415 = vmatmul.mubr.f32.vlgmr.msra.gmra.mrb[0].mxu1 %v5529_v32  ;;  %v5370_v31 = vld [vmem:[%s11539_s1 + $0x150] sm:$0xff]  ;;  %v5371_v32 = vld [vmem:[%s11539_s1 + $0x158] sm:$0xff] }
  0x29   : > { %8605 = vmatpush3.bf16.msra.mxu0 %v8602_v28  ;;  %8893 = vmatpush3.bf16.msra.mxu1 %v8602_v28  ;;  %v10262_v28 = vld [vmem:[%s10057_s7 + $0x50] sm:$0xff]  ;;  %v8654_v35 = vpack.c.bf16 %v5371_v32, %v5370_v31 }
  0x2a   : > { %8607 = vmatprep.subr.bf16.mxu0 %v8606_v33  ;;  %8895 = vmatprep.subr.bf16.mxu1 %v8606_v33  ;;  %v10371_v31 = vld [vmem:[%s10057_s7 + $0xb2] sm:$0xff] }
  0x2b   : > { %7021 = vmatprep.mubr.f32.mxu0 %v10106_v36  ;;  %7417 = vmatprep.mubr.f32.mxu1 %v10109_v37 }
  0x2c   : > { %7022 = vmatmul.mubr.f32.gmra.mrb[2].mxu0 %v10112_v38  ;;  %7418 = vmatmul.mubr.f32.gmra.mrb[2].mxu1 %v10115_v39 }
  0x2d   : > { %8609 = vmatpush3.bf16.msra.mxu0 %v8606_v33  ;;  %8897 = vmatpush3.bf16.msra.mxu1 %v8606_v33  ;;  %v442_v33 = vld [vmem:[%s10057_s7 + $0x2] sm:$0xff] }
  0x2e   : > { %8611 = vmatprep.subr.bf16.mxu0 %v8610_v40  ;;  %8899 = vmatprep.subr.bf16.mxu1 %v8610_v40 }
  0x2f   : > { %7024 = vmatprep.mubr.f32.mxu0 %v10128_v43  ;;  %7420 = vmatprep.mubr.f32.mxu1 %v10131_v44 }
  0x30   : > { %7025 = vmatmul.mubr.f32.gmra.mrb[4].mxu0 %v10134_v45  ;;  %7421 = vmatmul.mubr.f32.gmra.mrb[4].mxu1 %v10137_v46 }
  0x31   : > { %8613 = vmatpush3.bf16.msra.mxu0 %v8610_v40  ;;  %8901 = vmatpush3.bf16.msra.mxu1 %v8610_v40  ;;  %v5372_v40 = vld [vmem:[%s11539_s1 + $0x160] sm:$0xff] }
  0x32   : > { %8615 = vmatprep.subr.bf16.mxu0 %v8614_v47  ;;  %8903 = vmatprep.subr.bf16.mxu1 %v8614_v47  ;;  %v8658_v42 = vpack.c.bf16 %v5373_v41, %v5372_v40  ;;  %v5396_v41 = vld [vmem:[%s11539_s1 + $0x1e0] sm:$0xff] }
  0x33   : > { %7027 = vmatprep.mubr.f32.mxu0 %v10150_v50  ;;  %7423 = vmatprep.mubr.f32.mxu1 %v10153_v51 }
  0x34   : > { %7028 = vmatmul.mubr.f32.gmra.mrb[6].mxu0 %v10156_v52  ;;  %7424 = vmatmul.mubr.f32.gmra.mrb[6].mxu1 %v10159_v53 }
  0x35   : > { %8617 = vmatpush3.bf16.msra.mxu0 %v8614_v47  ;;  %8905 = vmatpush3.bf16.msra.mxu1 %v8614_v47  ;;  %v5374_v47 = vld [vmem:[%s11539_s1 + $0x170] sm:$0xff] }
  0x36   : > { %8619 = vmatprep.subr.bf16.mxu0 %v8618_v54  ;;  %8907 = vmatprep.subr.bf16.mxu1 %v8618_v54  ;;  %v8662_v49 = vpack.c.bf16 %v5375_v48, %v5374_v47  ;;  %v5398_v48 = vld [vmem:[%s11539_s1 + $0x1f0] sm:$0xff] }
  0x37   : > { %7062 = vmatprep.mubr.f32.mxu0 %v183_v57  ;;  %7458 = vmatprep.mubr.f32.mxu1 %v10173_v58  ;;  %v5386_v57 = vld [vmem:[%s11539_s1 + $0x190] sm:$0xff] }
  0x39   : > { %8621 = vmatpush3.bf16.msra.mxu0 %v8618_v54  ;;  %8909 = vmatpush3.bf16.msra.mxu1 %v8618_v54  ;;  %v5384_v54 = vld [vmem:[%s11539_s1 + $0x180] sm:$0xff] }
  0x3a   : > { %8623 = vmatprep.subr.bf16.mxu0 %v8622_v59  ;;  %8911 = vmatprep.subr.bf16.mxu1 %v8622_v59  ;;  %v8666_v56 = vpack.c.bf16 %v5385_v55, %v5384_v54  ;;  %v5409_v54 = vld [vmem:[%s11539_s1 + $0x208] sm:$0xff] }
  0x3d   : > { %8625 = vmatpush3.bf16.msra.mxu0 %v8622_v59  ;;  %8913 = vmatpush3.bf16.msra.mxu1 %v8622_v59  ;;  %v5387_v59 = vld [vmem:[%s11539_s1 + $0x198] sm:$0xff] }
  0x3e   : > { %8627 = vmatprep.subr.bf16.mxu0 %v8626_v62  ;;  %8915 = vmatprep.subr.bf16.mxu1 %v8626_v62 }
  0x41   : > { %8629 = vmatpush3.bf16.msra.mxu0 %v8626_v62  ;;  %8917 = vmatpush3.bf16.msra.mxu1 %v8626_v62  ;;  %v8670_v62 = vpack.c.bf16 %v5387_v59, %v5386_v57  ;;  %v5411_v57 = vld [vmem:[%s11539_s1 + $0x218] sm:$0xff] }
  0x42   : > { %8631 = vmatprep.subr.bf16.mxu0 %v8630_v1  ;;  %8919 = vmatprep.subr.bf16.mxu1 %v8630_v1 }
  0x45   : > { %8633 = vmatpush3.bf16.msra.mxu0 %v8630_v1  ;;  %8921 = vmatpush3.bf16.msra.mxu1 %v8630_v1  ;;  %v10318_v1 = vld [vmem:[%s10057_s7 + $0x1a] sm:$0xff] }
  0x46   : > { %8635 = vmatprep.subr.bf16.mxu0 %v8634_v4  ;;  %8923 = vmatprep.subr.bf16.mxu1 %v8634_v4 }
  0x48   : > { %7063 = vmatmul.mubr.f32.vlgmr.msra.gmra.mrb[0].mxu0 %v184_v7  ;;  %7459 = vmatmul.mubr.f32.vlgmr.msra.gmra.mrb[0].mxu1 %v10202_v8  ;;  %v5391_v7 = vld [vmem:[%s11539_s1 + $0x1b8] sm:$0xff] }
  0x49   : > { %8637 = vmatpush3.bf16.msra.mxu0 %v8634_v4  ;;  %8925 = vmatpush3.bf16.msra.mxu1 %v8634_v4  ;;  %v10327_v4 = vld [vmem:[%s10057_s7 + $0x82] sm:$0xff]  ;;  %v8678_v17 = vpack.c.bf16 %v5391_v7, %v5390_v6 }
  0x4a   : > { %8639 = vmatprep.subr.bf16.mxu0 %v8638_v9  ;;  %8927 = vmatprep.subr.bf16.mxu1 %v8638_v9  ;;  %v5417_v6 = vld [vmem:[%s11539_s1 + $0x248] sm:$0xff]  ;;  %v10438_v7 = vld [vmem:[%s10057_s7 + $0xc0] sm:$0xff] }
  0x4b   : > { %7065 = vmatprep.mubr.f32.mxu0 %v10212_v12  ;;  %7461 = vmatprep.mubr.f32.mxu1 %v10215_v13 }
  0x4c   : > { %7066 = vmatmul.mubr.f32.gmra.mrb[2].mxu0 %v10218_v14  ;;  %7462 = vmatmul.mubr.f32.gmra.mrb[2].mxu1 %v10221_v15 }
  0x4d   : > { %8641 = vmatpush3.bf16.msra.mxu0 %v8638_v9  ;;  %8929 = vmatpush3.bf16.msra.mxu1 %v8638_v9  ;;  %v10340_v9 = vld [vmem:[%s10057_s7 + $0x32] sm:$0xff] }
  0x4e   : > { %8643 = vmatprep.subr.bf16.mxu0 %v8642_v16  ;;  %8931 = vmatprep.subr.bf16.mxu1 %v8642_v16 }
  0x4f   : > { %7068 = vmatprep.mubr.f32.mxu0 %v10234_v19  ;;  %7464 = vmatprep.mubr.f32.mxu1 %v10237_v20 }
  0x50   : > { %7069 = vmatmul.mubr.f32.gmra.mrb[4].mxu0 %v10240_v21  ;;  %7465 = vmatmul.mubr.f32.gmra.mrb[4].mxu1 %v10243_v22 }
  0x51   : > { %8645 = vmatpush3.bf16.msra.mxu0 %v8642_v16  ;;  %8933 = vmatpush3.bf16.msra.mxu1 %v8642_v16  ;;  %v10349_v16 = vld [vmem:[%s10057_s7 + $0x9a] sm:$0xff] }
  0x52   : > { %8647 = vmatprep.subr.bf16.mxu0 %v8646_v23  ;;  %8935 = vmatprep.subr.bf16.mxu1 %v8646_v23 }
  0x53   : > { %7071 = vmatprep.mubr.f32.mxu0 %v10256_v26  ;;  %7467 = vmatprep.mubr.f32.mxu1 %v10259_v27 }
  0x54   : > { %7072 = vmatmul.mubr.f32.gmra.mrb[6].mxu0 %v10262_v28  ;;  %7468 = vmatmul.mubr.f32.gmra.mrb[6].mxu1 %v10265_v29 }
  0x55   : > { %8649 = vmatpush3.bf16.msra.mxu0 %v8646_v23  ;;  %8937 = vmatpush3.bf16.msra.mxu1 %v8646_v23  ;;  %v5393_v23 = vld [vmem:[%s11539_s1 + $0x1c8] sm:$0xff] }
  0x56   : > { %8651 = vmatprep.subr.bf16.mxu0 %v8650_v30  ;;  %8939 = vmatprep.subr.bf16.mxu1 %v8650_v30  ;;  %v8682_v32 = vpack.c.bf16 %v5393_v23, %v5392_v18  ;;  %v5418_v23 = vld [vmem:[%s11539_s1 + $0x250] sm:$0xff] }
  0x57   : > { %7106 = vmatprep.mubr.f32.mxu0 %v442_v33  ;;  %7502 = vmatprep.mubr.f32.mxu1 %v10279_v34  ;;  %v5394_v33 = vld [vmem:[%s11539_s1 + $0x1d0] sm:$0xff] }
  0x59   : > { %8653 = vmatpush3.bf16.msra.mxu0 %v8650_v30  ;;  %8941 = vmatpush3.bf16.msra.mxu1 %v8650_v30  ;;  %v10368_v30 = vld [vmem:[%s10057_s7 + $0x52] sm:$0xff] }
  0x5a   : > { %8655 = vmatprep.subr.bf16.mxu0 %v8654_v35  ;;  %8943 = vmatprep.subr.bf16.mxu1 %v8654_v35 }
  0x5d   : > { %8657 = vmatpush3.bf16.msra.mxu0 %v8654_v35  ;;  %8945 = vmatpush3.bf16.msra.mxu1 %v8654_v35  ;;  %v5395_v35 = vld [vmem:[%s11539_s1 + $0x1d8] sm:$0xff] }
  0x5e   : > { %8659 = vmatprep.subr.bf16.mxu0 %v8658_v42  ;;  %8947 = vmatprep.subr.bf16.mxu1 %v8658_v42  ;;  %v8686_v40 = vpack.c.bf16 %v5395_v35, %v5394_v33  ;;  %v5433_v33 = vld [vmem:[%s11539_s1 + $0x288] sm:$0xff] }
  0x61   : > { %8661 = vmatpush3.bf16.msra.mxu0 %v8658_v42  ;;  %8949 = vmatpush3.bf16.msra.mxu1 %v8658_v42  ;;  %v5397_v42 = vld [vmem:[%s11539_s1 + $0x1e8] sm:$0xff] }
  0x62   : > { %8663 = vmatprep.subr.bf16.mxu0 %v8662_v49  ;;  %8951 = vmatprep.subr.bf16.mxu1 %v8662_v49  ;;  %v8690_v47 = vpack.c.bf16 %v5397_v42, %v5396_v41  ;;  %v5435_v41 = vld [vmem:[%s11539_s1 + $0x298] sm:$0xff] }
  0x65   : > { %8665 = vmatpush3.bf16.msra.mxu0 %v8662_v49  ;;  %8953 = vmatpush3.bf16.msra.mxu1 %v8662_v49  ;;  %v5399_v49 = vld [vmem:[%s11539_s1 + $0x1f8] sm:$0xff] }
  0x66   : > { %8667 = vmatprep.subr.bf16.mxu0 %v8666_v56  ;;  %8955 = vmatprep.subr.bf16.mxu1 %v8666_v56 }
  0x68   : > { %7107 = vmatmul.mubr.f32.vlgmr.msra.gmra.mrb[0].mxu0 %v443_v60  ;;  %7503 = vmatmul.mubr.f32.vlgmr.msra.gmra.mrb[0].mxu1 %v10308_v61  ;;  %v5412_v60 = vld [vmem:[%s11539_s1 + $0x220] sm:$0xff] }
  0x69   : > { %8669 = vmatpush3.bf16.msra.mxu0 %v8666_v56  ;;  %8957 = vmatpush3.bf16.msra.mxu1 %v8666_v56  ;;  %v5410_v56 = vld [vmem:[%s11539_s1 + $0x210] sm:$0xff] }
  0x6a   : > { %8671 = vmatprep.subr.bf16.mxu0 %v8670_v62  ;;  %8959 = vmatprep.subr.bf16.mxu1 %v8670_v62  ;;  %v8702_v59 = vpack.c.bf16 %v5411_v57, %v5410_v56  ;;  %v5445_v56 = vld [vmem:[%s11539_s1 + $0x2e8] sm:$0xff] }
  0x6b   : > { %7109 = vmatprep.mubr.f32.mxu0 %v10318_v1  ;;  %7505 = vmatprep.mubr.f32.mxu1 %v10321_v2 }
  0x6c   : > { %7110 = vmatmul.mubr.f32.gmra.mrb[2].mxu0 %v10324_v3  ;;  %7506 = vmatmul.mubr.f32.gmra.mrb[2].mxu1 %v10327_v4 }
  0x6d   : > { %8673 = vmatpush3.bf16.msra.mxu0 %v8670_v62  ;;  %8961 = vmatpush3.bf16.msra.mxu1 %v8670_v62  ;;  %v5413_v62 = vld [vmem:[%s11539_s1 + $0x228] sm:$0xff] }
  0x6e   : > { %8675 = vmatprep.subr.bf16.mxu0 %v8674_v5  ;;  %8963 = vmatprep.subr.bf16.mxu1 %v8674_v5  ;;  %v8706_v63 = vpack.c.bf16 %v5413_v62, %v5412_v60  ;;  %v5447_v60 = vld [vmem:[%s11539_s1 + $0x2f8] sm:$0xff]  ;;  %v5457_v62 = vld [vmem:[%s11539_s1 + $0x308] sm:$0xff] }
  0x6f   : > { %7112 = vmatprep.mubr.f32.mxu0 %v10340_v9  ;;  %7508 = vmatprep.mubr.f32.mxu1 %v10343_v10 }
  0x70   : > { %7113 = vmatmul.mubr.f32.gmra.mrb[4].mxu0 %v10346_v11  ;;  %7509 = vmatmul.mubr.f32.gmra.mrb[4].mxu1 %v10349_v16 }
  0x71   : > { %8677 = vmatpush3.bf16.msra.mxu0 %v8674_v5  ;;  %8965 = vmatpush3.bf16.msra.mxu1 %v8674_v5  ;;  %v5415_v5 = vld [vmem:[%s11539_s1 + $0x238] sm:$0xff] }
  0x72   : > { %8679 = vmatprep.subr.bf16.mxu0 %v8678_v17  ;;  %8967 = vmatprep.subr.bf16.mxu1 %v8678_v17 }
  0x73   : > { %7115 = vmatprep.mubr.f32.mxu0 %v10362_v24  ;;  %7511 = vmatprep.mubr.f32.mxu1 %v10365_v25 }
  0x74   : > { %7116 = vmatmul.mubr.f32.gmra.mrb[6].mxu0 %v10368_v30  ;;  %7512 = vmatmul.mubr.f32.gmra.mrb[6].mxu1 %v10371_v31 }
  0x75   : > { %8681 = vmatpush3.bf16.msra.mxu0 %v8678_v17  ;;  %8969 = vmatpush3.bf16.msra.mxu1 %v8678_v17  ;;  %v10441_v17 = vld [vmem:[%s10057_s7 + $0xc8] sm:$0xff] }
  0x76   : > { %8683 = vmatprep.subr.bf16.mxu0 %v8682_v32  ;;  %8971 = vmatprep.subr.bf16.mxu1 %v8682_v32 }
  0x77   : > { %7150 = vmatprep.mubr.f32.mxu0 %v10212_v12  ;;  %7546 = vmatprep.mubr.f32.mxu1 %v10215_v13  ;;  %v8694_v12 = vpack.c.bf16 %v5399_v49, %v5398_v48  ;;  %v5408_v13 = vld [vmem:[%s11539_s1 + $0x200] sm:$0xff]  ;;  %v5437_v48 = vld [vmem:[%s11539_s1 + $0x2a8] sm:$0xff] }
  0x78   : > { %v8698_v55 = vpack.c.bf16 %v5409_v54, %v5408_v13  ;;  %v5439_v13 = vld [vmem:[%s11539_s1 + $0x2b8] sm:$0xff]  ;;  %v10517_v54 = vld [vmem:[%s10057_s7 + $0xc9] sm:$0xff] }
  0x79   : > { %8685 = vmatpush3.bf16.msra.mxu0 %v8682_v32  ;;  %8973 = vmatpush3.bf16.msra.mxu1 %v8682_v32  ;;  %v5423_v32 = vld [vmem:[%s11539_s1 + $0x278] sm:$0xff] }
  0x7a   : > { %8687 = vmatprep.subr.bf16.mxu0 %v8686_v40  ;;  %8975 = vmatprep.subr.bf16.mxu1 %v8686_v40 }
  0x7d   : > { %8689 = vmatpush3.bf16.msra.mxu0 %v8686_v40  ;;  %8977 = vmatpush3.bf16.msra.mxu1 %v8686_v40  ;;  %v5434_v40 = vld [vmem:[%s11539_s1 + $0x290] sm:$0xff] }
  0x7e   : > { %8691 = vmatprep.subr.bf16.mxu0 %v8690_v47  ;;  %8979 = vmatprep.subr.bf16.mxu1 %v8690_v47  ;;  %v8734_v42 = vpack.c.bf16 %v5435_v41, %v5434_v40  ;;  %v5650_v40 = vld [vmem:[%s10057_s7 + $0xa8] sm:$0xff]  ;;  %v5451_v41 = vld [vmem:[%s10057_s7 + $0x50] sm:$0xff] }
  0x81   : > { %8693 = vmatpush3.bf16.msra.mxu0 %v8690_v47  ;;  %8981 = vmatpush3.bf16.msra.mxu1 %v8690_v47  ;;  %v5436_v47 = vld [vmem:[%s11539_s1 + $0x2a0] sm:$0xff] }
  0x82   : > { %8695 = vmatprep.subr.bf16.mxu0 %v8694_v12  ;;  %8983 = vmatprep.subr.bf16.mxu1 %v8694_v12  ;;  %v8738_v49 = vpack.c.bf16 %v5437_v48, %v5436_v47  ;;  %v5486_v48 = vld [vmem:[%s11539_s1 + $0x3b0] sm:$0xff] }
  0x85   : > { %8697 = vmatpush3.bf16.msra.mxu0 %v8694_v12  ;;  %8985 = vmatpush3.bf16.msra.mxu1 %v8694_v12  ;;  %v5438_v12 = vld [vmem:[%s11539_s1 + $0x2b0] sm:$0xff] }
  0x86   : > { %8699 = vmatprep.subr.bf16.mxu0 %v8698_v55  ;;  %8987 = vmatprep.subr.bf16.mxu1 %v8698_v55 }
  0x88   : > { %7151 = vmatmul.mubr.f32.vlgmr.msra.gmra.mrb[0].mxu0 %v10218_v14  ;;  %7547 = vmatmul.mubr.f32.vlgmr.msra.gmra.mrb[0].mxu1 %v10221_v15  ;;  %v8710_v14 = vpack.c.bf16 %v5415_v5, %v5414_v0  ;;  %v5416_v15 = vld [vmem:[%s11539_s1 + $0x240] sm:$0xff]  ;;  %v5458_v0 = vld [vmem:[%s11539_s1 + $0x310] sm:$0xff]  ;;  %v5459_v5 = vld [vmem:[%s11539_s1 + $0x318] sm:$0xff] }
  0x89   : > { %8701 = vmatpush3.bf16.msra.mxu0 %v8698_v55  ;;  %8989 = vmatpush3.bf16.msra.mxu1 %v8698_v55  ;;  %v8714_v18 = vpack.c.bf16 %v5417_v6, %v5416_v15  ;;  %v5460_v15 = vld [vmem:[%s11539_s1 + $0x320] sm:$0xff]  ;;  %v5461_v6 = vld [vmem:[%s11539_s1 + $0x328] sm:$0xff] }
  0x8a   : > { %8703 = vmatprep.subr.bf16.mxu0 %v8702_v59  ;;  %8991 = vmatprep.subr.bf16.mxu1 %v8702_v59 }
  0x8b   : > { %7153 = vmatprep.mubr.f32.mxu0 %v10234_v19  ;;  %7549 = vmatprep.mubr.f32.mxu1 %v10237_v20 }
  0x8c   : > { %7154 = vmatmul.mubr.f32.gmra.mrb[2].mxu0 %v10240_v21  ;;  %7550 = vmatmul.mubr.f32.gmra.mrb[2].mxu1 %v10243_v22 }
  0x8d   : > { %8705 = vmatpush3.bf16.msra.mxu0 %v8702_v59  ;;  %8993 = vmatpush3.bf16.msra.mxu1 %v8702_v59  ;;  %v5446_v59 = vld [vmem:[%s11539_s1 + $0x2f0] sm:$0xff] }
  0x8e   : > { %8707 = vmatprep.subr.bf16.mxu0 %v8706_v63  ;;  %8995 = vmatprep.subr.bf16.mxu1 %v8706_v63 }
  0x8f   : > { %7156 = vmatprep.mubr.f32.mxu0 %v10256_v26  ;;  %7552 = vmatprep.mubr.f32.mxu1 %v10259_v27  ;;  %v5419_v26 = vld [vmem:[%s11539_s1 + $0x258] sm:$0xff] }
  0x90   : > { %7157 = vmatmul.mubr.f32.gmra.mrb[4].mxu0 %v10262_v28  ;;  %7553 = vmatmul.mubr.f32.gmra.mrb[4].mxu1 %v10265_v29  ;;  %v8718_v27 = vpack.c.bf16 %v5419_v26, %v5418_v23  ;;  %v5420_v28 = vld [vmem:[%s11539_s1 + $0x260] sm:$0xff]  ;;  %v5421_v29 = vld [vmem:[%s11539_s1 + $0x268] sm:$0xff]  ;;  %v5462_v23 = vld [vmem:[%s11539_s1 + $0x330] sm:$0xff] }
  0x91   : > { %8709 = vmatpush3.bf16.msra.mxu0 %v8706_v63  ;;  %8997 = vmatpush3.bf16.msra.mxu1 %v8706_v63  ;;  %v5463_v26 = vld [vmem:[%s11539_s1 + $0x338] sm:$0xff] }
  0x92   : > { %8711 = vmatprep.subr.bf16.mxu0 %v8710_v14  ;;  %8999 = vmatprep.subr.bf16.mxu1 %v8710_v14 }
  0x93   : > { %7159 = vmatprep.mubr.f32.mxu0 %v10173_v58  ;;  %7555 = vmatprep.mubr.f32.mxu1 %v10438_v7  ;;  %v8722_v58 = vpack.c.bf16 %v5421_v29, %v5420_v28  ;;  %v5471_v28 = vld [vmem:[%s11539_s1 + $0x378] sm:$0xff]  ;;  %v5481_v29 = vld [vmem:[%s11539_s1 + $0x388] sm:$0xff] }
  0x94   : > { %7160 = vmatmul.mubr.f32.gmra.mrb[6].mxu0 %v10202_v8  ;;  %7556 = vmatmul.mubr.f32.gmra.mrb[6].mxu1 %v10441_v17  ;;  %v5422_v8 = vld [vmem:[%s11539_s1 + $0x270] sm:$0xff] }
  0x95   : > { %8713 = vmatpush3.bf16.msra.mxu0 %v8710_v14  ;;  %9001 = vmatpush3.bf16.msra.mxu1 %v8710_v14  ;;  %v8766_v14 = vpack.c.bf16 %v5459_v5, %v5458_v0  ;;  %v5505_v0 = vld [vmem:[%s11539_s1 + $0x408] sm:$0xff] }
  0x96   : > { %8715 = vmatprep.subr.bf16.mxu0 %v8714_v18  ;;  %9003 = vmatprep.subr.bf16.mxu1 %v8714_v18 }
  0x97   : > { %7194 = vmatprep.mubr.f32.mxu0 %v10106_v36  ;;  %7590 = vmatprep.mubr.f32.mxu1 %v10109_v37  ;;  %v8726_v36 = vpack.c.bf16 %v5423_v32, %v5422_v8  ;;  %v5432_v37 = vld [vmem:[%s11539_s1 + $0x280] sm:$0xff]  ;;  %v5482_v8 = vld [vmem:[%s11539_s1 + $0x390] sm:$0xff]  ;;  %v5483_v32 = vld [vmem:[%s11539_s1 + $0x398] sm:$0xff] }
  0x98   : > { %v8730_v35 = vpack.c.bf16 %v5433_v33, %v5432_v37  ;;  %v5484_v37 = vld [vmem:[%s11539_s1 + $0x3a0] sm:$0xff]  ;;  %v5485_v33 = vld [vmem:[%s11539_s1 + $0x3a8] sm:$0xff] }
  0x99   : > { %8717 = vmatpush3.bf16.msra.mxu0 %v8714_v18  ;;  %9005 = vmatpush3.bf16.msra.mxu1 %v8714_v18  ;;  %v8770_v18 = vpack.c.bf16 %v5461_v6, %v5460_v15  ;;  %v8802_v47 = vpack.c.bf16 %v5485_v33, %v5484_v37  ;;  %v5507_v15 = vld [vmem:[%s11539_s1 + $0x418] sm:$0xff]  ;;  %v5516_v37 = vld [vmem:[%s11539_s1 + $0x460] sm:$0xff]  ;;  %v5517_v33 = vld [vmem:[%s11539_s1 + $0x468] sm:$0xff] }
  0x9a   : > { %8719 = vmatprep.subr.bf16.mxu0 %v8718_v27  ;;  %9007 = vmatprep.subr.bf16.mxu1 %v8718_v27  ;;  %v5473_v6 = vld [vmem:[%s10057_s7 + $0x39] sm:$0xff] }
  0x9d   : > { %8721 = vmatpush3.bf16.msra.mxu0 %v8718_v27  ;;  %9009 = vmatpush3.bf16.msra.mxu1 %v8718_v27  ;;  %v5466_v27 = vld [vmem:[%s11539_s1 + $0x350] sm:$0xff] }
  0x9e   : > { %8723 = vmatprep.subr.bf16.mxu0 %v8722_v58  ;;  %9011 = vmatprep.subr.bf16.mxu1 %v8722_v58 }
  0xa1   : > { %8725 = vmatpush3.bf16.msra.mxu0 %v8722_v58  ;;  %9013 = vmatpush3.bf16.msra.mxu1 %v8722_v58 }
  0xa2   : > { %8727 = vmatprep.subr.bf16.mxu0 %v8726_v36  ;;  %9015 = vmatprep.subr.bf16.mxu1 %v8726_v36 }
  0xa5   : > { %8729 = vmatpush3.bf16.msra.mxu0 %v8726_v36  ;;  %9017 = vmatpush3.bf16.msra.mxu1 %v8726_v36  ;;  %v8798_v36 = vpack.c.bf16 %v5483_v32, %v5482_v8  ;;  %v5496_v8 = vld [vmem:[%s10057_s7 + $0x32] sm:$0xff] }
  0xa6   : > { %8731 = vmatprep.subr.bf16.mxu0 %v8730_v35  ;;  %9019 = vmatprep.subr.bf16.mxu1 %v8730_v35  ;;  %v5696_v32 = vld [vmem:[%s10057_s7 + $0x92] sm:$0xff] }
  0xa8   : > { %7195 = vmatmul.mubr.f32.vlgmr.msra.gmra.mrb[0].mxu0 %v10112_v38  ;;  %7591 = vmatmul.mubr.f32.vlgmr.msra.gmra.mrb[0].mxu1 %v10115_v39  ;;  %v8742_v38 = vpack.c.bf16 %v5439_v13, %v5438_v12  ;;  %v5440_v39 = vld [vmem:[%s11539_s1 + $0x2c0] sm:$0xff] }
  0xa9   : > { %8733 = vmatpush3.bf16.msra.mxu0 %v8730_v35  ;;  %9021 = vmatpush3.bf16.msra.mxu1 %v8730_v35  ;;  %v5450_v35 = vld [vmem:[%s10057_s7 + $0x48] sm:$0xff]  ;;  %v5488_v13 = vld [vmem:[%s11539_s1 + $0x3c0] sm:$0xff] }
  0xaa   : > { %8735 = vmatprep.subr.bf16.mxu0 %v8734_v42  ;;  %9023 = vmatprep.subr.bf16.mxu1 %v8734_v42 }
  0xab   : > { %7197 = vmatprep.mubr.f32.mxu0 %v10128_v43  ;;  %7593 = vmatprep.mubr.f32.mxu1 %v10131_v44  ;;  %v5441_v43 = vld [vmem:[%s11539_s1 + $0x2c8] sm:$0xff] }
  0xac   : > { %7198 = vmatmul.mubr.f32.gmra.mrb[2].mxu0 %v10134_v45  ;;  %7594 = vmatmul.mubr.f32.gmra.mrb[2].mxu1 %v10137_v46  ;;  %v10508_v44 = vld [vmem:[%s10057_s7 + $0x61] sm:$0xff]  ;;  %v10514_v46 = vld [vmem:[%s10057_s7 + $0x69] sm:$0xff]  ;;  %v8746_v55 = vpack.c.bf16 %v5441_v43, %v5440_v39  ;;  %v5454_v39 = vld [vmem:[%s10057_s7 + $0x78] sm:$0xff] }
  0xad   : > { %8737 = vmatpush3.bf16.msra.mxu0 %v8734_v42  ;;  %9025 = vmatpush3.bf16.msra.mxu1 %v8734_v42  ;;  %v10511_v45 = vld [vmem:[%s10057_s7 + $0xc1] sm:$0xff]  ;;  %v5651_v42 = vld [vmem:[%s10057_s7 + $0xb0] sm:$0xff]  ;;  %v10655_v43 = vld [vmem:[%s10057_s7 + $0xd8] sm:$0xff] }
  0xae   : > { %8739 = vmatprep.subr.bf16.mxu0 %v8738_v49  ;;  %9027 = vmatprep.subr.bf16.mxu1 %v8738_v49 }
  0xaf   : > { %7200 = vmatprep.mubr.f32.mxu0 %v10150_v50  ;;  %7596 = vmatprep.mubr.f32.mxu1 %v10153_v51  ;;  %v5442_v50 = vld [vmem:[%s11539_s1 + $0x2d0] sm:$0xff]  ;;  %v5443_v51 = vld [vmem:[%s11539_s1 + $0x2d8] sm:$0xff] }
  0xb0   : > { %7201 = vmatmul.mubr.f32.gmra.mrb[4].mxu0 %v10156_v52  ;;  %7597 = vmatmul.mubr.f32.gmra.mrb[4].mxu1 %v10159_v53  ;;  %v8750_v52 = vpack.c.bf16 %v5443_v51, %v5442_v50  ;;  %v5444_v53 = vld [vmem:[%s11539_s1 + $0x2e0] sm:$0xff] }
  0xb1   : > { %8741 = vmatpush3.bf16.msra.mxu0 %v8738_v49  ;;  %9029 = vmatpush3.bf16.msra.mxu1 %v8738_v49  ;;  %v8754_v57 = vpack.c.bf16 %v5445_v56, %v5444_v53  ;;  %v5453_v49 = vld [vmem:[%s10057_s7 + $0x68] sm:$0xff]  ;;  %v10659_v50 = vld [vmem:[%s10057_s7 + $0xe0] sm:$0xff]  ;;  %v5672_v53 = vld [vmem:[%s10057_s7 + $0x91] sm:$0xff] }
  0xb2   : > { %8743 = vmatprep.subr.bf16.mxu0 %v8742_v38  ;;  %9031 = vmatprep.subr.bf16.mxu1 %v8742_v38 }
  0xb3   : > { %7203 = vmatprep.mubr.f32.mxu0 %v10508_v44  ;;  %7599 = vmatprep.mubr.f32.mxu1 %v10511_v45 }
  0xb4   : > { %7204 = vmatmul.mubr.f32.gmra.mrb[6].mxu0 %v10514_v46  ;;  %7600 = vmatmul.mubr.f32.gmra.mrb[6].mxu1 %v10517_v54 }
  0xb5   : > { %8745 = vmatpush3.bf16.msra.mxu0 %v8742_v38  ;;  %9033 = vmatpush3.bf16.msra.mxu1 %v8742_v38  ;;  %v5489_v38 = vld [vmem:[%s11539_s1 + $0x3c8] sm:$0xff] }
  0xb6   : > { %8747 = vmatprep.subr.bf16.mxu0 %v8746_v55  ;;  %9035 = vmatprep.subr.bf16.mxu1 %v8746_v55  ;;  %v8810_v51 = vpack.c.bf16 %v5489_v38, %v5488_v13  ;;  %v5697_v13 = vld [vmem:[%s10057_s7 + $0x9a] sm:$0xff]  ;;  %v5498_v38 = vld [vmem:[%s10057_s7 + $0x4a] sm:$0xff] }
  0xb7   : > { %7238 = vmatprep.mubr.f32.mxu0 %v10318_v1  ;;  %7634 = vmatprep.mubr.f32.mxu1 %v10321_v2  ;;  %v8758_v1 = vpack.c.bf16 %v5447_v60, %v5446_v59  ;;  %v5456_v2 = vld [vmem:[%s11539_s1 + $0x300] sm:$0xff]  ;;  %v5493_v59 = vld [vmem:[%s11539_s1 + $0x3e8] sm:$0xff] }
  0xb8   : > { %v8762_v63 = vpack.c.bf16 %v5457_v62, %v5456_v2  ;;  %v5495_v2 = vld [vmem:[%s11539_s1 + $0x3f8] sm:$0xff] }
  0xb9   : > { %8749 = vmatpush3.bf16.msra.mxu0 %v8746_v55  ;;  %9037 = vmatpush3.bf16.msra.mxu1 %v8746_v55  ;;  %v5455_v55 = vld [vmem:[%s10057_s7 + $0x80] sm:$0xff] }
  0xba   : > { %8751 = vmatprep.subr.bf16.mxu0 %v8750_v52  ;;  %9039 = vmatprep.subr.bf16.mxu1 %v8750_v52 }
  0xbd   : > { %8753 = vmatpush3.bf16.msra.mxu0 %v8750_v52  ;;  %9041 = vmatpush3.bf16.msra.mxu1 %v8750_v52  ;;  %v5472_v52 = vld [vmem:[%s10057_s7 + $0x31] sm:$0xff] }
  0xbe   : > { %8755 = vmatprep.subr.bf16.mxu0 %v8754_v57  ;;  %9043 = vmatprep.subr.bf16.mxu1 %v8754_v57 }
  0xc1   : > { %8757 = vmatpush3.bf16.msra.mxu0 %v8754_v57  ;;  %9045 = vmatpush3.bf16.msra.mxu1 %v8754_v57  ;;  %v5492_v57 = vld [vmem:[%s11539_s1 + $0x3e0] sm:$0xff] }
  0xc2   : > { %8759 = vmatprep.subr.bf16.mxu0 %v8758_v1  ;;  %9047 = vmatprep.subr.bf16.mxu1 %v8758_v1  ;;  %v8818_v60 = vpack.c.bf16 %v5493_v59, %v5492_v57  ;;  %v5742_v57 = vld [vmem:[%s11539_s1 + $0xb0] sm:$0xff]  ;;  %v5743_v59 = vld [vmem:[%s11539_s1 + $0xb8] sm:$0xff] }
  0xc5   : > { %8761 = vmatpush3.bf16.msra.mxu0 %v8758_v1  ;;  %9049 = vmatpush3.bf16.msra.mxu1 %v8758_v1  ;;  %v5494_v1 = vld [vmem:[%s11539_s1 + $0x3f0] sm:$0xff] }
  0xc6   : > { %8763 = vmatprep.subr.bf16.mxu0 %v8762_v63  ;;  %9051 = vmatprep.subr.bf16.mxu1 %v8762_v63  ;;  %v8822_v62 = vpack.c.bf16 %v5495_v2, %v5494_v1  ;;  %v5502_v1 = vld [vmem:[%s10057_s7 + $0x7a] sm:$0xff] }
  0xc7   : > { %v10788_v2 = vld [vmem:[%s10057_s7 + $0xda] sm:$0xff] }
  0xc8   : > { %7239 = vmatmul.mubr.f32.vlgmr.msra.gmra.mrb[0].mxu0 %v10324_v3  ;;  %7635 = vmatmul.mubr.f32.vlgmr.msra.gmra.mrb[0].mxu1 %v10327_v4  ;;  %v8774_v3 = vpack.c.bf16 %v5463_v26, %v5462_v23  ;;  %v5464_v4 = vld [vmem:[%s11539_s1 + $0x340] sm:$0xff] }
  0xc9   : > { %8765 = vmatpush3.bf16.msra.mxu0 %v8762_v63  ;;  %9053 = vmatpush3.bf16.msra.mxu1 %v8762_v63  ;;  %v5504_v63 = vld [vmem:[%s11539_s1 + $0x400] sm:$0xff] }
  0xca   : > { %8767 = vmatprep.subr.bf16.mxu0 %v8766_v14  ;;  %9055 = vmatprep.subr.bf16.mxu1 %v8766_v14  ;;  %v8826_v5 = vpack.c.bf16 %v5505_v0, %v5504_v63  ;;  %v5508_v26 = vld [vmem:[%s11539_s1 + $0x420] sm:$0xff]  ;;  %v5745_v0 = vld [vmem:[%s11539_s1 + $0xc8] sm:$0xff] }
  0xcb   : > { %7241 = vmatprep.mubr.f32.mxu0 %v10340_v9  ;;  %7637 = vmatprep.mubr.f32.mxu1 %v10343_v10  ;;  %v5465_v9 = vld [vmem:[%s11539_s1 + $0x348] sm:$0xff]  ;;  %v5744_v63 = vld [vmem:[%s11539_s1 + $0xc0] sm:$0xff] }
  0xcc   : > { %7242 = vmatmul.mubr.f32.gmra.mrb[2].mxu0 %v10346_v11  ;;  %7638 = vmatmul.mubr.f32.gmra.mrb[2].mxu1 %v10349_v16  ;;  %v10584_v10 = vld [vmem:[%s10057_s7 + $0xc2] sm:$0xff]  ;;  %v10587_v11 = vld [vmem:[%s10057_s7 + $0xca] sm:$0xff]  ;;  %v8778_v16 = vpack.c.bf16 %v5465_v9, %v5464_v4 }
  0xcd   : > { %8769 = vmatpush3.bf16.msra.mxu0 %v8766_v14  ;;  %9057 = vmatpush3.bf16.msra.mxu1 %v8766_v14  ;;  %v5506_v14 = vld [vmem:[%s11539_s1 + $0x410] sm:$0xff] }
  0xce   : > { %8771 = vmatprep.subr.bf16.mxu0 %v8770_v18  ;;  %9059 = vmatprep.subr.bf16.mxu1 %v8770_v18  ;;  %v8830_v23 = vpack.c.bf16 %v5507_v15, %v5506_v14  ;;  %v5474_v4 = vld [vmem:[%s10057_s7 + $0x49] sm:$0xff]  ;;  %v9162_v14 = vpack.c.bf16 %v5745_v0, %v5744_v63  ;;  %v10944_v0 = vld [vmem:[%s10057_s7 + $0x138] sm:$0xff] }
  0xcf   : > { %7244 = vmatprep.mubr.f32.mxu0 %v10362_v24  ;;  %7640 = vmatprep.mubr.f32.mxu1 %v10365_v25  ;;  %v5467_v24 = vld [vmem:[%s11539_s1 + $0x358] sm:$0xff]  ;;  %v5674_v9 = vld [vmem:[%s10057_s7 + $0xa9] sm:$0xff] }
  0xd0   : > { %7245 = vmatmul.mubr.f32.gmra.mrb[4].mxu0 %v10368_v30  ;;  %7641 = vmatmul.mubr.f32.gmra.mrb[4].mxu1 %v10371_v31  ;;  %v8782_v25 = vpack.c.bf16 %v5467_v24, %v5466_v27  ;;  %v5468_v30 = vld [vmem:[%s11539_s1 + $0x360] sm:$0xff]  ;;  %v5469_v31 = vld [vmem:[%s11539_s1 + $0x368] sm:$0xff]  ;;  %v5675_v27 = vld [vmem:[%s10057_s7 + $0xb1] sm:$0xff] }
  0xd1   : > { %8773 = vmatpush3.bf16.msra.mxu0 %v8770_v18  ;;  %9061 = vmatpush3.bf16.msra.mxu1 %v8770_v18  ;;  %v5673_v18 = vld [vmem:[%s10057_s7 + $0x99] sm:$0xff]  ;;  %v5746_v15 = vld [vmem:[%s11539_s1 + $0xd0] sm:$0xff]  ;;  %v5765_v63 = vld [vmem:[%s11539_s1 + $0x128] sm:$0xff] }
  0xd2   : > { %8775 = vmatprep.subr.bf16.mxu0 %v8774_v3  ;;  %9063 = vmatprep.subr.bf16.mxu1 %v8774_v3 }
  0xd3   : > { %7247 = vmatprep.mubr.f32.mxu0 %v10279_v34  ;;  %7643 = vmatprep.mubr.f32.mxu1 %v10584_v10  ;;  %v8786_v34 = vpack.c.bf16 %v5469_v31, %v5468_v30  ;;  %v5511_v30 = vld [vmem:[%s11539_s1 + $0x438] sm:$0xff] }
  0xd4   : > { %7248 = vmatmul.mubr.f32.gmra.mrb[6].mxu0 %v10308_v61  ;;  %7644 = vmatmul.mubr.f32.gmra.mrb[6].mxu1 %v10587_v11  ;;  %v5470_v61 = vld [vmem:[%s11539_s1 + $0x370] sm:$0xff] }
  0xd5   : > { %8777 = vmatpush3.bf16.msra.mxu0 %v8774_v3  ;;  %9065 = vmatpush3.bf16.msra.mxu1 %v8774_v3  ;;  %v5509_v3 = vld [vmem:[%s11539_s1 + $0x428] sm:$0xff] }
  0xd6   : > { %8779 = vmatprep.subr.bf16.mxu0 %v8778_v16  ;;  %9067 = vmatprep.subr.bf16.mxu1 %v8778_v16  ;;  %v8834_v24 = vpack.c.bf16 %v5509_v3, %v5508_v26  ;;  %v5749_v26 = vld [vmem:[%s11539_s1 + $0xe8] sm:$0xff] }
  0xd7   : > { %7282 = vmatprep.mubr.f32.mxu0 %v10234_v19  ;;  %7678 = vmatprep.mubr.f32.mxu1 %v10237_v20  ;;  %v8790_v19 = vpack.c.bf16 %v5471_v28, %v5470_v61  ;;  %v5480_v20 = vld [vmem:[%s11539_s1 + $0x380] sm:$0xff]  ;;  %v5513_v61 = vld [vmem:[%s11539_s1 + $0x448] sm:$0xff] }
  0xd8   : > { %v8794_v58 = vpack.c.bf16 %v5481_v29, %v5480_v20  ;;  %v5478_v28 = vld [vmem:[%s10057_s7 + $0x79] sm:$0xff]  ;;  %v5479_v20 = vld [vmem:[%s10057_s7 + $0x81] sm:$0xff] }
  0xd9   : > { %8781 = vmatpush3.bf16.msra.mxu0 %v8778_v16  ;;  %9069 = vmatpush3.bf16.msra.mxu1 %v8778_v16  ;;  %v5475_v16 = vld [vmem:[%s10057_s7 + $0x51] sm:$0xff]  ;;  %v10729_v29 = vld [vmem:[%s10057_s7 + $0xe1] sm:$0xff] }
  0xda   : > { %8783 = vmatprep.subr.bf16.mxu0 %v8782_v25  ;;  %9071 = vmatprep.subr.bf16.mxu1 %v8782_v25 }
  0xdd   : > { %8785 = vmatpush3.bf16.msra.mxu0 %v8782_v25  ;;  %9073 = vmatpush3.bf16.msra.mxu1 %v8782_v25  ;;  %v5510_v25 = vld [vmem:[%s11539_s1 + $0x430] sm:$0xff] }
  0xde   : > { %8787 = vmatprep.subr.bf16.mxu0 %v8786_v34  ;;  %9075 = vmatprep.subr.bf16.mxu1 %v8786_v34  ;;  %v8838_v31 = vpack.c.bf16 %v5511_v30, %v5510_v25  ;;  %v2729_v25 = vld [vmem:[%s11539_s1 + $0x10] sm:$0xff]  ;;  %v2730_v30 = vld [vmem:[%s11539_s1 + $0x18] sm:$0xff] }
  0xe1   : > { %8789 = vmatpush3.bf16.msra.mxu0 %v8786_v34  ;;  %9077 = vmatpush3.bf16.msra.mxu1 %v8786_v34  ;;  %v5512_v34 = vld [vmem:[%s11539_s1 + $0x440] sm:$0xff] }
  0xe2   : > { %8791 = vmatprep.subr.bf16.mxu0 %v8790_v19  ;;  %9079 = vmatprep.subr.bf16.mxu1 %v8790_v19 }
  0xe5   : > { %8793 = vmatpush3.bf16.msra.mxu0 %v8790_v19  ;;  %9081 = vmatpush3.bf16.msra.mxu1 %v8790_v19  ;;  %v10725_v19 = vld [vmem:[%s10057_s7 + $0xd9] sm:$0xff] }
  0xe6   : > { %8795 = vmatprep.subr.bf16.mxu0 %v8794_v58  ;;  %9083 = vmatprep.subr.bf16.mxu1 %v8794_v58 }
  0xe8   : > { %7283 = vmatmul.mubr.f32.vlgmr.msra.gmra.mrb[0].mxu0 %v10240_v21  ;;  %7679 = vmatmul.mubr.f32.vlgmr.msra.gmra.mrb[0].mxu1 %v10243_v22  ;;  %v5487_v21 = vld [vmem:[%s11539_s1 + $0x3b8] sm:$0xff]  ;;  %v5452_v22 = vld [vmem:[%s10057_s7 + $0x60] sm:$0xff] }
  0xe9   : > { %8797 = vmatpush3.bf16.msra.mxu0 %v8794_v58  ;;  %9085 = vmatpush3.bf16.msra.mxu1 %v8794_v58  ;;  %v8806_v12 = vpack.c.bf16 %v5487_v21, %v5486_v48  ;;  %v8842_v58 = vpack.c.bf16 %v5513_v61, %v5512_v34  ;;  %v5737_v48 = vld [vmem:[%s11539_s1 + $0x88] sm:$0xff]  ;;  %v9182_v34 = vpack.c.bf16 %v2730_v30, %v2729_v25  ;;  %v2731_v61 = vld [vmem:[%s11539_s1 + $0x20] sm:$0xff]  ;;  %v5771_v25 = vld [vmem:[%s11539_s1 + $0x158] sm:$0xff] }
  0xea   : > { %8799 = vmatprep.subr.bf16.mxu0 %v8798_v36  ;;  %9087 = vmatprep.subr.bf16.mxu1 %v8798_v36  ;;  %v5752_v30 = vld [vmem:[%s10057_s7 + $0xc2] sm:$0xff] }
  0xeb   : > { %7285 = vmatprep.mubr.f32.mxu0 %v5450_v35  ;;  %7681 = vmatprep.mubr.f32.mxu1 %v5650_v40  ;;  %v8850_v35 = vpack.c.bf16 %v5517_v33, %v5516_v37  ;;  %v5518_v40 = vld [vmem:[%s11539_s1 + $0x470] sm:$0xff]  ;;  %v10869_v37 = vld [vmem:[%s10057_s7 + $0x159] sm:$0xff]  ;;  %v2736_v33 = vld [vmem:[%s11539_s1 + $0x48] sm:$0xff] }
  0xec   : > { %7286 = vmatmul.mubr.f32.gmra.mrb[2].mxu0 %v5451_v41  ;;  %7682 = vmatmul.mubr.f32.gmra.mrb[2].mxu1 %v5651_v42  ;;  %v5519_v41 = vld [vmem:[%s11539_s1 + $0x478] sm:$0xff] }
  0xed   : > { %8801 = vmatpush3.bf16.msra.mxu0 %v8798_v36  ;;  %9089 = vmatpush3.bf16.msra.mxu1 %v8798_v36  ;;  %v8854_v42 = vpack.c.bf16 %v5519_v41, %v5518_v40  ;;  %v10885_v40 = vld [vmem:[%s10057_s7 + $0x169] sm:$0xff]  ;;  %v10888_v41 = vld [vmem:[%s10057_s7 + $0x111] sm:$0xff] }
  0xee   : > { %8803 = vmatprep.subr.bf16.mxu0 %v8802_v47  ;;  %9091 = vmatprep.subr.bf16.mxu1 %v8802_v47 }
  0xef   : > { %7288 = vmatprep.mubr.f32.mxu0 %v5452_v22  ;;  %7684 = vmatprep.mubr.f32.mxu1 %v10438_v7  ;;  %v5490_v7 = vld [vmem:[%s11539_s1 + $0x3d0] sm:$0xff] }
  0xf0   : > { %7289 = vmatmul.mubr.f32.gmra.mrb[4].mxu0 %v5453_v49  ;;  %7685 = vmatmul.mubr.f32.gmra.mrb[4].mxu1 %v10441_v17  ;;  %v5491_v17 = vld [vmem:[%s11539_s1 + $0x3d8] sm:$0xff]  ;;  %v5738_v22 = vld [vmem:[%s11539_s1 + $0x90] sm:$0xff] }
  0xf1   : > { %8805 = vmatpush3.bf16.msra.mxu0 %v8802_v47  ;;  %9093 = vmatpush3.bf16.msra.mxu1 %v8802_v47  ;;  %v8814_v56 = vpack.c.bf16 %v5491_v17, %v5490_v7  ;;  %v5736_v47 = vld [vmem:[%s11539_s1 + $0x80] sm:$0xff]  ;;  %v5739_v49 = vld [vmem:[%s11539_s1 + $0x98] sm:$0xff]  ;;  %v5741_v7 = vld [vmem:[%s11539_s1 + $0xa8] sm:$0xff] }
  0xf2   : > { %8807 = vmatprep.subr.bf16.mxu0 %v8806_v12  ;;  %9095 = vmatprep.subr.bf16.mxu1 %v8806_v12  ;;  %v9146_v21 = vpack.c.bf16 %v5737_v48, %v5736_v47  ;;  %v5499_v17 = vld [vmem:[%s10057_s7 + $0x52] sm:$0xff] }
  0xf3   : > { %7291 = vmatprep.mubr.f32.mxu0 %v5454_v39  ;;  %7687 = vmatprep.mubr.f32.mxu1 %v10655_v43  ;;  %v5698_v39 = vld [vmem:[%s10057_s7 + $0xaa] sm:$0xff] }
  0xf4   : > { %7292 = vmatmul.mubr.f32.gmra.mrb[6].mxu0 %v5455_v55  ;;  %7688 = vmatmul.mubr.f32.gmra.mrb[6].mxu1 %v10659_v50  ;;  %v9150_v55 = vpack.c.bf16 %v5739_v49, %v5738_v22  ;;  %v2737_v48 = vld [vmem:[%s11539_s1 + $0x50] sm:$0xff]  ;;  %v5720_v22 = vld [vmem:[%s10057_s7 + $0xc0] sm:$0xff] }
  0xf5   : > { %8809 = vmatpush3.bf16.msra.mxu0 %v8806_v12  ;;  %9097 = vmatpush3.bf16.msra.mxu1 %v8806_v12  ;;  %v5497_v12 = vld [vmem:[%s10057_s7 + $0x3a] sm:$0xff] }
  0xf6   : > { %8811 = vmatprep.subr.bf16.mxu0 %v8810_v51  ;;  %9099 = vmatprep.subr.bf16.mxu1 %v8810_v51  ;;  %v10905_v49 = vld [vmem:[%s10057_s7 + $0x120] sm:$0xff] }
  0xf7   : > { %7326 = vmatprep.mubr.f32.mxu0 %v5472_v52  ;;  %7722 = vmatprep.mubr.f32.mxu1 %v5672_v53  ;;  %v5699_v52 = vld [vmem:[%s10057_s7 + $0xb2] sm:$0xff]  ;;  %v5500_v53 = vld [vmem:[%s10057_s7 + $0x62] sm:$0xff] }
  0xf9   : > { %8813 = vmatpush3.bf16.msra.mxu0 %v8810_v51  ;;  %9101 = vmatpush3.bf16.msra.mxu1 %v8810_v51  ;;  %v5740_v51 = vld [vmem:[%s11539_s1 + $0xa0] sm:$0xff] }
  0xfa   : > { %8815 = vmatprep.subr.bf16.mxu0 %v8814_v56  ;;  %9103 = vmatprep.subr.bf16.mxu1 %v8814_v56 }
  0xfd   : > { %8817 = vmatpush3.bf16.msra.mxu0 %v8814_v56  ;;  %9105 = vmatpush3.bf16.msra.mxu1 %v8814_v56  ;;  %v9154_v56 = vpack.c.bf16 %v5741_v7, %v5740_v51  ;;  %v2742_v51 = vld [vmem:[%s11539_s1 + $0x78] sm:$0xff] }
  0xfe   : > { %8819 = vmatprep.subr.bf16.mxu0 %v8818_v60  ;;  %9107 = vmatprep.subr.bf16.mxu1 %v8818_v60 }
 0x101   : > { %8821 = vmatpush3.bf16.msra.mxu0 %v8818_v60  ;;  %9109 = vmatpush3.bf16.msra.mxu1 %v8818_v60  ;;  %v5501_v60 = vld [vmem:[%s10057_s7 + $0x6a] sm:$0xff] }
 0x102   : > { %8823 = vmatprep.subr.bf16.mxu0 %v8822_v62  ;;  %9111 = vmatprep.subr.bf16.mxu1 %v8822_v62 }
 0x105   : > { %8825 = vmatpush3.bf16.msra.mxu0 %v8822_v62  ;;  %9113 = vmatpush3.bf16.msra.mxu1 %v8822_v62  ;;  %v9158_v62 = vpack.c.bf16 %v5743_v59, %v5742_v57  ;;  %v5763_v57 = vld [vmem:[%s11539_s1 + $0x118] sm:$0xff]  ;;  %v5721_v59 = vld [vmem:[%s10057_s7 + $0xc8] sm:$0xff] }
 0x106   : > { %8827 = vmatprep.subr.bf16.mxu0 %v8826_v5  ;;  %9115 = vmatprep.subr.bf16.mxu1 %v8826_v5 }
 0x108   : > { %7327 = vmatmul.mubr.f32.vlgmr.msra.gmra.mrb[0].mxu0 %v5473_v6  ;;  %7723 = vmatmul.mubr.f32.vlgmr.msra.gmra.mrb[0].mxu1 %v5673_v18  ;;  %v5747_v6 = vld [vmem:[%s11539_s1 + $0xd8] sm:$0xff] }
 0x109   : > { %8829 = vmatpush3.bf16.msra.mxu0 %v8826_v5  ;;  %9117 = vmatpush3.bf16.msra.mxu1 %v8826_v5  ;;  %v10799_v5 = vld [vmem:[%s10057_s7 + $0xe2] sm:$0xff]  ;;  %v9166_v18 = vpack.c.bf16 %v5747_v6, %v5746_v15  ;;  %v5766_v15 = vld [vmem:[%s11539_s1 + $0x130] sm:$0xff]  ;;  %v5767_v6 = vld [vmem:[%s11539_s1 + $0x138] sm:$0xff] }
 0x10a   : > { %8831 = vmatprep.subr.bf16.mxu0 %v8830_v23  ;;  %9119 = vmatprep.subr.bf16.mxu1 %v8830_v23 }
 0x10b   : > { %7329 = vmatprep.mubr.f32.mxu0 %v5474_v4  ;;  %7725 = vmatprep.mubr.f32.mxu1 %v5674_v9  ;;  %v5750_v4 = vld [vmem:[%s11539_s1 + $0xf0] sm:$0xff]  ;;  %v5751_v9 = vld [vmem:[%s11539_s1 + $0xf8] sm:$0xff] }
 0x10c   : > { %7330 = vmatmul.mubr.f32.gmra.mrb[2].mxu0 %v5475_v16  ;;  %7726 = vmatmul.mubr.f32.gmra.mrb[2].mxu1 %v5675_v27  ;;  %v2727_v16 = vld [vmem:[%s11539_s1] sm:$0xff]  ;;  %v2728_v27 = vld [vmem:[%s11539_s1 + $0x8] sm:$0xff] }
 0x10d   : > { %8833 = vmatpush3.bf16.msra.mxu0 %v8830_v23  ;;  %9121 = vmatpush3.bf16.msra.mxu1 %v8830_v23  ;;  %v5748_v23 = vld [vmem:[%s11539_s1 + $0xe0] sm:$0xff] }
 0x10e   : > { %8835 = vmatprep.subr.bf16.mxu0 %v8834_v24  ;;  %9123 = vmatprep.subr.bf16.mxu1 %v8834_v24  ;;  %v9170_v3 = vpack.c.bf16 %v5749_v26, %v5748_v23  ;;  %v10966_v23 = vld [vmem:[%s10057_s7 + $0xf8] sm:$0xff] }
 0x10f   : > { %7332 = vmatprep.mubr.f32.mxu0 %v10508_v44  ;;  %7728 = vmatprep.mubr.f32.mxu1 %v10511_v45  ;;  %v5514_v44 = vld [vmem:[%s11539_s1 + $0x450] sm:$0xff]  ;;  %v10969_v26 = vld [vmem:[%s10057_s7 + $0x158] sm:$0xff] }
 0x110   : > { %7333 = vmatmul.mubr.f32.gmra.mrb[4].mxu0 %v10514_v46  ;;  %7729 = vmatmul.mubr.f32.gmra.mrb[4].mxu1 %v10517_v54  ;;  %v5515_v46 = vld [vmem:[%s11539_s1 + $0x458] sm:$0xff] }
 0x111   : > { %8837 = vmatpush3.bf16.msra.mxu0 %v8834_v24  ;;  %9125 = vmatpush3.bf16.msra.mxu1 %v8834_v24  ;;  %v8846_v36 = vpack.c.bf16 %v5515_v46, %v5514_v44  ;;  %v9178_v24 = vpack.c.bf16 %v2728_v27, %v2727_v16  ;;  %v2733_v46 = vld [vmem:[%s11539_s1 + $0x30] sm:$0xff] }
 0x112   : > { %8839 = vmatprep.subr.bf16.mxu0 %v8838_v31  ;;  %9127 = vmatprep.subr.bf16.mxu1 %v8838_v31  ;;  %v10991_v16 = vld [vmem:[%s10057_s7 + $0x170] sm:$0xff] }
 0x113   : > { %7335 = vmatprep.mubr.f32.mxu0 %v5478_v28  ;;  %7731 = vmatprep.mubr.f32.mxu1 %v10725_v19  ;;  %v2732_v28 = vld [vmem:[%s11539_s1 + $0x28] sm:$0xff] }
 0x114   : > { %7336 = vmatmul.mubr.f32.gmra.mrb[6].mxu0 %v5479_v20  ;;  %7732 = vmatmul.mubr.f32.gmra.mrb[6].mxu1 %v10729_v29  ;;  %v10844_v20 = vld [vmem:[%s10057_s7 + $0x139] sm:$0xff]  ;;  %v9186_v44 = vpack.c.bf16 %v2732_v28, %v2731_v61  ;;  %v5773_v28 = vld [vmem:[%s11539_s1 + $0x168] sm:$0xff] }
 0x115   : > { %8841 = vmatpush3.bf16.msra.mxu0 %v8838_v31  ;;  %9129 = vmatpush3.bf16.msra.mxu1 %v8838_v31  ;;  %v5929_v31 = vld [vmem:[%s10057_s7 + $0x129] sm:$0xff]  ;;  %v5772_v61 = vld [vmem:[%s11539_s1 + $0x160] sm:$0xff] }
 0x116   : > { %8843 = vmatprep.subr.bf16.mxu0 %v8842_v58  ;;  %9131 = vmatprep.subr.bf16.mxu1 %v8842_v58 }
 0x117   : > { %7370 = vmatprep.mubr.f32.mxu0 %v5496_v8  ;;  %7766 = vmatprep.mubr.f32.mxu1 %v5696_v32  ;;  %v10860_v8 = vld [vmem:[%s10057_s7 + $0xf1] sm:$0xff] }
 0x118   : > { %v10863_v32 = vld [vmem:[%s10057_s7 + $0x151] sm:$0xff] }
 0x119   : > { %8845 = vmatpush3.bf16.msra.mxu0 %v8842_v58  ;;  %9133 = vmatpush3.bf16.msra.mxu1 %v8842_v58  ;;  %v10847_v58 = vld [vmem:[%s10057_s7 + $0x141] sm:$0xff] }
 0x11a   : > { %8847 = vmatprep.subr.bf16.mxu0 %v8846_v36  ;;  %9135 = vmatprep.subr.bf16.mxu1 %v8846_v36 }
 0x11d   : > { %8849 = vmatpush3.bf16.msra.mxu0 %v8846_v36  ;;  %9137 = vmatpush3.bf16.msra.mxu1 %v8846_v36  ;;  %v10866_v36 = vld [vmem:[%s10057_s7 + $0xf9] sm:$0xff] }
 0x11e   : > { %8851 = vmatprep.subr.bf16.mxu0 %v8850_v35  ;;  %9139 = vmatprep.subr.bf16.mxu1 %v8850_v35 }
 0x121   : > { %8853 = vmatpush3.bf16.msra.mxu0 %v8850_v35  ;;  %9141 = vmatpush3.bf16.msra.mxu1 %v8850_v35  ;;  %v10882_v35 = vld [vmem:[%s10057_s7 + $0x109] sm:$0xff] }
 0x122   : > { %8855 = vmatprep.subr.bf16.mxu0 %v8854_v42  ;;  %9143 = vmatprep.subr.bf16.mxu1 %v8854_v42 }
 0x125   : > { %8857 = vmatpush3.bf16.msra.mxu0 %v8854_v42  ;;  %9145 = vmatpush3.bf16.msra.mxu1 %v8854_v42  ;;  %v10891_v42 = vld [vmem:[%s10057_s7 + $0x171] sm:$0xff] }
 0x126   : > { %9147 = vmatprep.subr.bf16.mxu0 %v9146_v21  ;;  %9435 = vmatprep.subr.bf16.mxu1 %v9146_v21 }
 0x128   : > { %7371 = vmatmul.mubr.f32.vlgmr.msra.gmra.mrb[0].mxu0 %v5497_v12  ;;  %7767 = vmatmul.mubr.f32.vlgmr.msra.gmra.mrb[0].mxu1 %v5697_v13  ;;  %v2739_v13 = vld [vmem:[%s11539_s1 + $0x60] sm:$0xff] }
 0x129   : > { %9149 = vmatpush3.bf16.msra.mxu0 %v9146_v21  ;;  %9437 = vmatpush3.bf16.msra.mxu1 %v9146_v21  ;;  %v2738_v21 = vld [vmem:[%s11539_s1 + $0x58] sm:$0xff] }
 0x12a   : > { %7373 = vmatprep.mubr.f32.mxu0 %v5498_v38  ;;  %7769 = vmatprep.mubr.f32.mxu1 %v5698_v39  ;;  %v9198_v12 = vpack.c.bf16 %v2738_v21, %v2737_v48  ;;  %v2740_v38 = vld [vmem:[%s11539_s1 + $0x68] sm:$0xff]  ;;  %v5786_v48 = vld [vmem:[%s11539_s1 + $0x190] sm:$0xff]  ;;  %v5787_v21 = vld [vmem:[%s11539_s1 + $0x198] sm:$0xff] }
 0x12b   : > { %9151 = vmatprep.subr.bf16.mxu0 %v9150_v55  ;;  %9439 = vmatprep.subr.bf16.mxu1 %v9150_v55  ;;  %v9202_v39 = vpack.c.bf16 %v2740_v38, %v2739_v13  ;;  %v9246_v13 = vpack.c.bf16 %v5787_v21, %v5786_v48  ;;  %v5788_v38 = vld [vmem:[%s11539_s1 + $0x1a0] sm:$0xff]  ;;  %v5813_v48 = vld [vmem:[%s11539_s1 + $0x228] sm:$0xff] }
 0x12c   : > { %7374 = vmatmul.mubr.f32.gmra.mrb[2].mxu0 %v5499_v17  ;;  %7770 = vmatmul.mubr.f32.gmra.mrb[2].mxu1 %v5699_v52  ;;  %v5760_v17 = vld [vmem:[%s11539_s1 + $0x100] sm:$0xff]  ;;  %v5761_v52 = vld [vmem:[%s11539_s1 + $0x108] sm:$0xff] }
 0x12d   : > { %9153 = vmatpush3.bf16.msra.mxu0 %v9150_v55  ;;  %9441 = vmatpush3.bf16.msra.mxu1 %v9150_v55  ;;  %v2741_v55 = vld [vmem:[%s11539_s1 + $0x70] sm:$0xff] }
 0x12e   : > { %7376 = vmatprep.mubr.f32.mxu0 %v5500_v53  ;;  %7772 = vmatprep.mubr.f32.mxu1 %v10584_v10  ;;  %v5503_v10 = vld [vmem:[%s10057_s7 + $0x82] sm:$0xff]  ;;  %v9206_v7 = vpack.c.bf16 %v2742_v51, %v2741_v55  ;;  %v9210_v53 = vpack.c.bf16 %v5761_v52, %v5760_v17  ;;  %v11044_v55 = vld [vmem:[%s10057_s7 + $0x13a] sm:$0xff]  ;;  %v5790_v17 = vld [vmem:[%s11539_s1 + $0x1b0] sm:$0xff] }
 0x12f   : > { %9155 = vmatprep.subr.bf16.mxu0 %v9154_v56  ;;  %9443 = vmatprep.subr.bf16.mxu1 %v9154_v56  ;;  %v11047_v51 = vld [vmem:[%s10057_s7 + $0x142] sm:$0xff]  ;;  %v5791_v52 = vld [vmem:[%s11539_s1 + $0x1b8] sm:$0xff] }
 0x130   : > { %7377 = vmatmul.mubr.f32.gmra.mrb[4].mxu0 %v5501_v60  ;;  %7773 = vmatmul.mubr.f32.gmra.mrb[4].mxu1 %v10587_v11  ;;  %v5928_v11 = vld [vmem:[%s10057_s7 + $0x121] sm:$0xff] }
 0x131   : > { %9157 = vmatpush3.bf16.msra.mxu0 %v9154_v56  ;;  %9445 = vmatpush3.bf16.msra.mxu1 %v9154_v56  ;;  %v5762_v56 = vld [vmem:[%s11539_s1 + $0x110] sm:$0xff]  ;;  %v10934_v60 = vld [vmem:[%s10057_s7 + $0x128] sm:$0xff] }
 0x132   : > { %7379 = vmatprep.mubr.f32.mxu0 %v5502_v1  ;;  %7775 = vmatprep.mubr.f32.mxu1 %v10788_v2  ;;  %v9214_v1 = vpack.c.bf16 %v5763_v57, %v5762_v56  ;;  %v11063_v56 = vld [vmem:[%s10057_s7 + $0x152] sm:$0xff]  ;;  %v11066_v57 = vld [vmem:[%s10057_s7 + $0xfa] sm:$0xff] }
 0x133   : > { %9159 = vmatprep.subr.bf16.mxu0 %v9158_v62  ;;  %9447 = vmatprep.subr.bf16.mxu1 %v9158_v62 }
 0x134   : > { %7380 = vmatmul.mubr.f32.gmra.mrb[6].mxu0 %v5503_v10  ;;  %7776 = vmatmul.mubr.f32.gmra.mrb[6].mxu1 %v10799_v5  ;;  %v10947_v10 = vld [vmem:[%s10057_s7 + $0x140] sm:$0xff] }
 0x135   : > { %9161 = vmatpush3.bf16.msra.mxu0 %v9158_v62  ;;  %9449 = vmatpush3.bf16.msra.mxu1 %v9158_v62  ;;  %v5764_v62 = vld [vmem:[%s11539_s1 + $0x120] sm:$0xff] }
 0x136   : > { %9163 = vmatprep.subr.bf16.mxu0 %v9162_v14  ;;  %9451 = vmatprep.subr.bf16.mxu1 %v9162_v14 }
 0x137   : > { %7810 = vmatprep.mubr.f32.mxu0 %v10511_v45  ;;  %8206 = vmatprep.mubr.f32.mxu1 %v5928_v11  ;;  %v9174_v45 = vpack.c.bf16 %v5751_v9, %v5750_v4  ;;  %v10960_v11 = vld [vmem:[%s10057_s7 + $0xf0] sm:$0xff]  ;;  %v10982_v4 = vld [vmem:[%s10057_s7 + $0x108] sm:$0xff] }
 0x138   : > { %v10985_v9 = vld [vmem:[%s10057_s7 + $0x168] sm:$0xff] }
 0x139   : > { %9165 = vmatpush3.bf16.msra.mxu0 %v9162_v14  ;;  %9453 = vmatpush3.bf16.msra.mxu1 %v9162_v14  ;;  %v9218_v14 = vpack.c.bf16 %v5765_v63, %v5764_v62  ;;  %v11082_v62 = vld [vmem:[%s10057_s7 + $0x10a] sm:$0xff] }
 0x13a   : > { %9167 = vmatprep.subr.bf16.mxu0 %v9166_v18  ;;  %9455 = vmatprep.subr.bf16.mxu1 %v9166_v18  ;;  %v11085_v63 = vld [vmem:[%s10057_s7 + $0x16a] sm:$0xff] }
 0x13d   : > { %9169 = vmatpush3.bf16.msra.mxu0 %v9166_v18  ;;  %9457 = vmatpush3.bf16.msra.mxu1 %v9166_v18  ;;  %v10963_v18 = vld [vmem:[%s10057_s7 + $0x150] sm:$0xff] }
 0x13e   : > { %9171 = vmatprep.subr.bf16.mxu0 %v9170_v3  ;;  %9459 = vmatprep.subr.bf16.mxu1 %v9170_v3 }
 0x141   : > { %9173 = vmatpush3.bf16.msra.mxu0 %v9170_v3  ;;  %9461 = vmatpush3.bf16.msra.mxu1 %v9170_v3  ;;  %v5769_v3 = vld [vmem:[%s11539_s1 + $0x148] sm:$0xff] }
 0x142   : > { %9175 = vmatprep.subr.bf16.mxu0 %v9174_v45  ;;  %9463 = vmatprep.subr.bf16.mxu1 %v9174_v45 }
 0x145   : > { %9177 = vmatpush3.bf16.msra.mxu0 %v9174_v45  ;;  %9465 = vmatpush3.bf16.msra.mxu1 %v9174_v45  ;;  %v10988_v45 = vld [vmem:[%s10057_s7 + $0x110] sm:$0xff] }
 0x146   : > { %9179 = vmatprep.subr.bf16.mxu0 %v9178_v24  ;;  %9467 = vmatprep.subr.bf16.mxu1 %v9178_v24 }
 0x148   : > { %7811 = vmatmul.mubr.f32.vlgmr.msra.gmra.mrb[8].mxu0 %v10517_v54  ;;  %8207 = vmatmul.mubr.f32.vlgmr.msra.gmra.mrb[8].mxu1 %v5929_v31  ;;  %v2734_v54 = vld [vmem:[%s11539_s1 + $0x38] sm:$0xff]  ;;  %v11005_v31 = vld [vmem:[%s10057_s7 + $0x122] sm:$0xff] }
 0x149   : > { %9181 = vmatpush3.bf16.msra.mxu0 %v9178_v24  ;;  %9469 = vmatpush3.bf16.msra.mxu1 %v9178_v24  ;;  %v5770_v24 = vld [vmem:[%s11539_s1 + $0x150] sm:$0xff] }
 0x14a   : > { %9183 = vmatprep.subr.bf16.mxu0 %v9182_v34  ;;  %9471 = vmatprep.subr.bf16.mxu1 %v9182_v34 }
 0x14b   : > { %7813 = vmatprep.mubr.f32.mxu0 %v10725_v19  ;;  %8209 = vmatprep.mubr.f32.mxu1 %v10844_v20  ;;  %v9190_v19 = vpack.c.bf16 %v2734_v54, %v2733_v46  ;;  %v5774_v46 = vld [vmem:[%s11539_s1 + $0x170] sm:$0xff]  ;;  %v5775_v54 = vld [vmem:[%s11539_s1 + $0x178] sm:$0xff] }
 0x14c   : > { %7814 = vmatmul.mubr.f32.gmra.mrb[10].mxu0 %v10729_v29  ;;  %8210 = vmatmul.mubr.f32.gmra.mrb[10].mxu1 %v10847_v58  ;;  %v2735_v29 = vld [vmem:[%s11539_s1 + $0x40] sm:$0xff] }
 0x14d   : > { %9185 = vmatpush3.bf16.msra.mxu0 %v9182_v34  ;;  %9473 = vmatpush3.bf16.msra.mxu1 %v9182_v34  ;;  %v9194_v47 = vpack.c.bf16 %v2736_v33, %v2735_v29  ;;  %v9230_v34 = vpack.c.bf16 %v5771_v25, %v5770_v24  ;;  %v5784_v29 = vld [vmem:[%s11539_s1 + $0x180] sm:$0xff]  ;;  %v5785_v33 = vld [vmem:[%s11539_s1 + $0x188] sm:$0xff] }
 0x14e   : > { %9187 = vmatprep.subr.bf16.mxu0 %v9186_v44  ;;  %9475 = vmatprep.subr.bf16.mxu1 %v9186_v44  ;;  %v5796_v24 = vld [vmem:[%s11539_s1 + $0x1e0] sm:$0xff]  ;;  %v5797_v25 = vld [vmem:[%s11539_s1 + $0x1e8] sm:$0xff] }
 0x14f   : > { %7816 = vmatprep.mubr.f32.mxu0 %v10860_v8  ;;  %8212 = vmatprep.mubr.f32.mxu1 %v10863_v32 }
 0x150   : > { %7817 = vmatmul.mubr.f32.gmra.mrb[12].mxu0 %v10866_v36  ;;  %8213 = vmatmul.mubr.f32.gmra.mrb[12].mxu1 %v10869_v37 }
 0x151   : > { %9189 = vmatpush3.bf16.msra.mxu0 %v9186_v44  ;;  %9477 = vmatpush3.bf16.msra.mxu1 %v9186_v44  ;;  %v9234_v44 = vpack.c.bf16 %v5773_v28, %v5772_v61  ;;  %v5799_v61 = vld [vmem:[%s11539_s1 + $0x1f8] sm:$0xff] }
 0x152   : > { %9191 = vmatprep.subr.bf16.mxu0 %v9190_v19  ;;  %9479 = vmatprep.subr.bf16.mxu1 %v9190_v19 }
 0x153   : > { %7819 = vmatprep.mubr.f32.mxu0 %v10882_v35  ;;  %8215 = vmatprep.mubr.f32.mxu1 %v10885_v40 }
 0x154   : > { %7820 = vmatmul.mubr.f32.gmra.mrb[14].mxu0 %v10888_v41  ;;  %8216 = vmatmul.mubr.f32.gmra.mrb[14].mxu1 %v10891_v42 }
 0x155   : > { %9193 = vmatpush3.bf16.msra.mxu0 %v9190_v19  ;;  %9481 = vmatpush3.bf16.msra.mxu1 %v9190_v19  ;;  %v9238_v19 = vpack.c.bf16 %v5775_v54, %v5774_v46  ;;  %v5810_v54 = vld [vmem:[%s11539_s1 + $0x210] sm:$0xff] }
 0x156   : > { %9195 = vmatprep.subr.bf16.mxu0 %v9194_v47  ;;  %9483 = vmatprep.subr.bf16.mxu1 %v9194_v47 }
 0x157   : > { %7854 = vmatprep.mubr.f32.mxu0 %v5720_v22  ;;  %8250 = vmatprep.mubr.f32.mxu1 %v10905_v49  ;;  %v5753_v22 = vld [vmem:[%s10057_s7 + $0xca] sm:$0xff] }
 0x159   : > { %9197 = vmatpush3.bf16.msra.mxu0 %v9194_v47  ;;  %9485 = vmatpush3.bf16.msra.mxu1 %v9194_v47  ;;  %v9242_v47 = vpack.c.bf16 %v5785_v33, %v5784_v29  ;;  %v5777_v29 = vld [vmem:[%s10057_s7 + $0xe0] sm:$0xff] }
 0x15a   : > { %9199 = vmatprep.subr.bf16.mxu0 %v9198_v12  ;;  %9487 = vmatprep.subr.bf16.mxu1 %v9198_v12 }
 0x15d   : > { %9201 = vmatpush3.bf16.msra.mxu0 %v9198_v12  ;;  %9489 = vmatpush3.bf16.msra.mxu1 %v9198_v12  ;;  %v11034_v12 = vld [vmem:[%s10057_s7 + $0x12a] sm:$0xff] }
 0x15e   : > { %9203 = vmatprep.subr.bf16.mxu0 %v9202_v39  ;;  %9491 = vmatprep.subr.bf16.mxu1 %v9202_v39 }
 0x161   : > { %9205 = vmatpush3.bf16.msra.mxu0 %v9202_v39  ;;  %9493 = vmatpush3.bf16.msra.mxu1 %v9202_v39  ;;  %v5789_v39 = vld [vmem:[%s11539_s1 + $0x1a8] sm:$0xff] }
 0x162   : > { %9207 = vmatprep.subr.bf16.mxu0 %v9206_v7  ;;  %9495 = vmatprep.subr.bf16.mxu1 %v9206_v7 }
 0x165   : > { %9209 = vmatpush3.bf16.msra.mxu0 %v9206_v7  ;;  %9497 = vmatpush3.bf16.msra.mxu1 %v9206_v7  ;;  %v9250_v7 = vpack.c.bf16 %v5789_v39, %v5788_v38  ;;  %v5816_v38 = vld [vmem:[%s11539_s1 + $0x240] sm:$0xff] }
 0x166   : > { %9211 = vmatprep.subr.bf16.mxu0 %v9210_v53  ;;  %9499 = vmatprep.subr.bf16.mxu1 %v9210_v53  ;;  %v5820_v39 = vld [vmem:[%s11539_s1 + $0x260] sm:$0xff] }
 0x168   : > { %7855 = vmatmul.mubr.f32.vlgmr.msra.gmra.mrb[8].mxu0 %v5721_v59  ;;  %8251 = vmatmul.mubr.f32.vlgmr.msra.gmra.mrb[8].mxu1 %v10934_v60  ;;  %v11069_v59 = vld [vmem:[%s10057_s7 + $0x15a] sm:$0xff] }
 0x169   : > { %9213 = vmatpush3.bf16.msra.mxu0 %v9210_v53  ;;  %9501 = vmatpush3.bf16.msra.mxu1 %v9210_v53  ;;  %v11060_v53 = vld [vmem:[%s10057_s7 + $0xf2] sm:$0xff] }
 0x16a   : > { %9215 = vmatprep.subr.bf16.mxu0 %v9214_v1  ;;  %9503 = vmatprep.subr.bf16.mxu1 %v9214_v1 }
 0x16b   : > { %7857 = vmatprep.mubr.f32.mxu0 %v10655_v43  ;;  %8253 = vmatprep.mubr.f32.mxu1 %v10944_v0  ;;  %v9222_v43 = vpack.c.bf16 %v5767_v6, %v5766_v15  ;;  %v11091_v15 = vld [vmem:[%s10057_s7 + $0x172] sm:$0xff] }
 0x16c   : > { %7858 = vmatmul.mubr.f32.gmra.mrb[10].mxu0 %v10659_v50  ;;  %8254 = vmatmul.mubr.f32.gmra.mrb[10].mxu1 %v10947_v10  ;;  %v5768_v50 = vld [vmem:[%s11539_s1 + $0x140] sm:$0xff] }
 0x16d   : > { %9217 = vmatpush3.bf16.msra.mxu0 %v9214_v1  ;;  %9505 = vmatpush3.bf16.msra.mxu1 %v9214_v1  ;;  %v9226_v27 = vpack.c.bf16 %v5769_v3, %v5768_v50  ;;  %v5793_v1 = vld [vmem:[%s11539_s1 + $0x1c8] sm:$0xff]  ;;  %v5795_v50 = vld [vmem:[%s11539_s1 + $0x1d8] sm:$0xff] }
 0x16e   : > { %9219 = vmatprep.subr.bf16.mxu0 %v9218_v14  ;;  %9507 = vmatprep.subr.bf16.mxu1 %v9218_v14  ;;  %v5776_v3 = vld [vmem:[%s10057_s7 + $0xd8] sm:$0xff] }
 0x16f   : > { %7860 = vmatprep.mubr.f32.mxu0 %v10960_v11  ;;  %8256 = vmatprep.mubr.f32.mxu1 %v10963_v18 }
 0x170   : > { %7861 = vmatmul.mubr.f32.gmra.mrb[12].mxu0 %v10966_v23  ;;  %8257 = vmatmul.mubr.f32.gmra.mrb[12].mxu1 %v10969_v26 }
 0x171   : > { %9221 = vmatpush3.bf16.msra.mxu0 %v9218_v14  ;;  %9509 = vmatpush3.bf16.msra.mxu1 %v9218_v14  ;;  %v11088_v14 = vld [vmem:[%s10057_s7 + $0x112] sm:$0xff] }
 0x172   : > { %9223 = vmatprep.subr.bf16.mxu0 %v9222_v43  ;;  %9511 = vmatprep.subr.bf16.mxu1 %v9222_v43 }
 0x173   : > { %7863 = vmatprep.mubr.f32.mxu0 %v10982_v4  ;;  %8259 = vmatprep.mubr.f32.mxu1 %v10985_v9 }
 0x174   : > { %7864 = vmatmul.mubr.f32.gmra.mrb[14].mxu0 %v10988_v45  ;;  %8260 = vmatmul.mubr.f32.gmra.mrb[14].mxu1 %v10991_v16 }
 0x175   : > { %9225 = vmatpush3.bf16.msra.mxu0 %v9222_v43  ;;  %9513 = vmatpush3.bf16.msra.mxu1 %v9222_v43  ;;  %v5794_v43 = vld [vmem:[%s11539_s1 + $0x1d0] sm:$0xff] }
 0x176   : > { %9227 = vmatprep.subr.bf16.mxu0 %v9226_v27  ;;  %9515 = vmatprep.subr.bf16.mxu1 %v9226_v27 }
 0x177   : > { %7898 = vmatprep.mubr.f32.mxu0 %v5752_v30  ;;  %8294 = vmatprep.mubr.f32.mxu1 %v11005_v31  ;;  %v9266_v30 = vpack.c.bf16 %v5797_v25, %v5796_v24  ;;  %v5838_v25 = vld [vmem:[%s11539_s1 + $0x2b0] sm:$0xff] }
 0x179   : > { %9229 = vmatpush3.bf16.msra.mxu0 %v9226_v27  ;;  %9517 = vmatpush3.bf16.msra.mxu1 %v9226_v27  ;;  %v9262_v27 = vpack.c.bf16 %v5795_v50, %v5794_v43  ;;  %v5801_v43 = vld [vmem:[%s10057_s7 + $0xe1] sm:$0xff] }
 0x17a   : > { %9231 = vmatprep.subr.bf16.mxu0 %v9230_v34  ;;  %9519 = vmatprep.subr.bf16.mxu1 %v9230_v34 }
 0x17d   : > { %9233 = vmatpush3.bf16.msra.mxu0 %v9230_v34  ;;  %9521 = vmatpush3.bf16.msra.mxu1 %v9230_v34  ;;  %v5798_v34 = vld [vmem:[%s11539_s1 + $0x1f0] sm:$0xff] }
 0x17e   : > { %9235 = vmatprep.subr.bf16.mxu0 %v9234_v44  ;;  %9523 = vmatprep.subr.bf16.mxu1 %v9234_v44  ;;  %v9270_v28 = vpack.c.bf16 %v5799_v61, %v5798_v34  ;;  %v5840_v34 = vld [vmem:[%s11539_s1 + $0x2c0] sm:$0xff]  ;;  %v11237_v61 = vld [vmem:[%s10057_s7 + $0x189] sm:$0xff] }
 0x181   : > { %9237 = vmatpush3.bf16.msra.mxu0 %v9234_v44  ;;  %9525 = vmatpush3.bf16.msra.mxu1 %v9234_v44  ;;  %v5809_v44 = vld [vmem:[%s11539_s1 + $0x208] sm:$0xff] }
 0x182   : > { %9239 = vmatprep.subr.bf16.mxu0 %v9238_v19  ;;  %9527 = vmatprep.subr.bf16.mxu1 %v9238_v19 }
 0x185   : > { %9241 = vmatpush3.bf16.msra.mxu0 %v9238_v19  ;;  %9529 = vmatpush3.bf16.msra.mxu1 %v9238_v19  ;;  %v5811_v19 = vld [vmem:[%s11539_s1 + $0x218] sm:$0xff] }
 0x186   : > { %9243 = vmatprep.subr.bf16.mxu0 %v9242_v47  ;;  %9531 = vmatprep.subr.bf16.mxu1 %v9242_v47  ;;  %v9278_v33 = vpack.c.bf16 %v5811_v19, %v5810_v54  ;;  %v5846_v54 = vld [vmem:[%s11539_s1 + $0x2f0] sm:$0xff]  ;;  %v5847_v19 = vld [vmem:[%s11539_s1 + $0x2f8] sm:$0xff] }
 0x188   : > { %7899 = vmatmul.mubr.f32.vlgmr.msra.gmra.mrb[8].mxu0 %v5753_v22  ;;  %8295 = vmatmul.mubr.f32.vlgmr.msra.gmra.mrb[8].mxu1 %v11034_v12  ;;  %v5814_v22 = vld [vmem:[%s11539_s1 + $0x230] sm:$0xff] }
 0x189   : > { %9245 = vmatpush3.bf16.msra.mxu0 %v9242_v47  ;;  %9533 = vmatpush3.bf16.msra.mxu1 %v9242_v47  ;;  %v5812_v47 = vld [vmem:[%s11539_s1 + $0x220] sm:$0xff] }
 0x18a   : > { %9247 = vmatprep.subr.bf16.mxu0 %v9246_v13  ;;  %9535 = vmatprep.subr.bf16.mxu1 %v9246_v13  ;;  %v9282_v21 = vpack.c.bf16 %v5813_v48, %v5812_v47  ;;  %v5858_v48 = vld [vmem:[%s11539_s1 + $0x310] sm:$0xff] }
 0x18b   : > { %7901 = vmatprep.mubr.f32.mxu0 %v10788_v2  ;;  %8297 = vmatprep.mubr.f32.mxu1 %v11044_v55  ;;  %v9254_v2 = vpack.c.bf16 %v5791_v52, %v5790_v17  ;;  %v5823_v17 = vld [vmem:[%s11539_s1 + $0x278] sm:$0xff] }
 0x18c   : > { %7902 = vmatmul.mubr.f32.gmra.mrb[10].mxu0 %v10799_v5  ;;  %8298 = vmatmul.mubr.f32.gmra.mrb[10].mxu1 %v11047_v51  ;;  %v5792_v5 = vld [vmem:[%s11539_s1 + $0x1c0] sm:$0xff] }
 0x18d   : > { %9249 = vmatpush3.bf16.msra.mxu0 %v9246_v13  ;;  %9537 = vmatpush3.bf16.msra.mxu1 %v9246_v13  ;;  %v9258_v6 = vpack.c.bf16 %v5793_v1, %v5792_v5  ;;  %v5815_v13 = vld [vmem:[%s11539_s1 + $0x238] sm:$0xff]  ;;  %v5834_v1 = vld [vmem:[%s11539_s1 + $0x290] sm:$0xff] }
 0x18e   : > { %9251 = vmatprep.subr.bf16.mxu0 %v9250_v7  ;;  %9539 = vmatprep.subr.bf16.mxu1 %v9250_v7 }
 0x18f   : > { %7904 = vmatprep.mubr.f32.mxu0 %v11060_v53  ;;  %8300 = vmatprep.mubr.f32.mxu1 %v11063_v56 }
 0x190   : > { %7905 = vmatmul.mubr.f32.gmra.mrb[12].mxu0 %v11066_v57  ;;  %8301 = vmatmul.mubr.f32.gmra.mrb[12].mxu1 %v11069_v59 }
 0x191   : > { %9253 = vmatpush3.bf16.msra.mxu0 %v9250_v7  ;;  %9541 = vmatpush3.bf16.msra.mxu1 %v9250_v7  ;;  %v5822_v7 = vld [vmem:[%s11539_s1 + $0x270] sm:$0xff] }
 0x192   : > { %9255 = vmatprep.subr.bf16.mxu0 %v9254_v2  ;;  %9543 = vmatprep.subr.bf16.mxu1 %v9254_v2  ;;  %v9302_v52 = vpack.c.bf16 %v5823_v17, %v5822_v7  ;;  %v5871_v7 = vld [vmem:[%s11539_s1 + $0x378] sm:$0xff] }
 0x193   : > { %7907 = vmatprep.mubr.f32.mxu0 %v11082_v62  ;;  %8303 = vmatprep.mubr.f32.mxu1 %v11085_v63 }
 0x194   : > { %7908 = vmatmul.mubr.f32.gmra.mrb[14].mxu0 %v11088_v14  ;;  %8304 = vmatmul.mubr.f32.gmra.mrb[14].mxu1 %v11091_v15 }
 0x195   : > { %9257 = vmatpush3.bf16.msra.mxu0 %v9254_v2  ;;  %9545 = vmatpush3.bf16.msra.mxu1 %v9254_v2  ;;  %v5833_v2 = vld [vmem:[%s11539_s1 + $0x288] sm:$0xff] }
 0x196   : > { %9259 = vmatprep.subr.bf16.mxu0 %v9258_v6  ;;  %9547 = vmatprep.subr.bf16.mxu1 %v9258_v6 }
 0x197   : > { %7942 = vmatprep.mubr.f32.mxu0 %v5776_v3  ;;  %8338 = vmatprep.mubr.f32.mxu1 %v10944_v0  ;;  %v5808_v0 = vld [vmem:[%s11539_s1 + $0x200] sm:$0xff] }
 0x198   : > { %v9274_v46 = vpack.c.bf16 %v5809_v44, %v5808_v0  ;;  %v5836_v3 = vld [vmem:[%s11539_s1 + $0x2a0] sm:$0xff]  ;;  %v5845_v44 = vld [vmem:[%s11539_s1 + $0x2e8] sm:$0xff] }
 0x199   : > { %9261 = vmatpush3.bf16.msra.mxu0 %v9258_v6  ;;  %9549 = vmatpush3.bf16.msra.mxu1 %v9258_v6  ;;  %v5835_v6 = vld [vmem:[%s11539_s1 + $0x298] sm:$0xff]  ;;  %v5844_v0 = vld [vmem:[%s11539_s1 + $0x2e0] sm:$0xff] }
 0x19a   : > { %9263 = vmatprep.subr.bf16.mxu0 %v9262_v27  ;;  %9551 = vmatprep.subr.bf16.mxu1 %v9262_v27  ;;  %v9310_v50 = vpack.c.bf16 %v5835_v6, %v5834_v1 }
 0x19d   : > { %9265 = vmatpush3.bf16.msra.mxu0 %v9262_v27  ;;  %9553 = vmatpush3.bf16.msra.mxu1 %v9262_v27  ;;  %v5837_v27 = vld [vmem:[%s11539_s1 + $0x2a8] sm:$0xff] }
 0x19e   : > { %9267 = vmatprep.subr.bf16.mxu0 %v9266_v30  ;;  %9555 = vmatprep.subr.bf16.mxu1 %v9266_v30  ;;  %v9314_v24 = vpack.c.bf16 %v5837_v27, %v5836_v3 }
 0x1a1   : > { %9269 = vmatpush3.bf16.msra.mxu0 %v9266_v30  ;;  %9557 = vmatpush3.bf16.msra.mxu1 %v9266_v30  ;;  %v5839_v30 = vld [vmem:[%s11539_s1 + $0x2b8] sm:$0xff] }
 0x1a2   : > { %9271 = vmatprep.subr.bf16.mxu0 %v9270_v28  ;;  %9559 = vmatprep.subr.bf16.mxu1 %v9270_v28 }
 0x1a5   : > { %9273 = vmatpush3.bf16.msra.mxu0 %v9270_v28  ;;  %9561 = vmatpush3.bf16.msra.mxu1 %v9270_v28 }
 0x1a6   : > { %9275 = vmatprep.subr.bf16.mxu0 %v9274_v46  ;;  %9563 = vmatprep.subr.bf16.mxu1 %v9274_v46 }
 0x1a8   : > { %7943 = vmatmul.mubr.f32.vlgmr.msra.gmra.mrb[8].mxu0 %v5777_v29  ;;  %8339 = vmatmul.mubr.f32.vlgmr.msra.gmra.mrb[8].mxu1 %v10947_v10  ;;  %v9286_v10 = vpack.c.bf16 %v5815_v13, %v5814_v22  ;;  %v9334_v29 = vpack.c.bf16 %v5847_v19, %v5846_v54  ;;  %v5825_v22 = vld [vmem:[%s10057_s7 + $0xe2] sm:$0xff] }
 0x1a9   : > { %9277 = vmatpush3.bf16.msra.mxu0 %v9274_v46  ;;  %9565 = vmatpush3.bf16.msra.mxu1 %v9274_v46  ;;  %v9330_v46 = vpack.c.bf16 %v5845_v44, %v5844_v0 }
 0x1aa   : > { %9279 = vmatprep.subr.bf16.mxu0 %v9278_v33  ;;  %9567 = vmatprep.subr.bf16.mxu1 %v9278_v33 }
 0x1ab   : > { %7945 = vmatprep.mubr.f32.mxu0 %v10960_v11  ;;  %8341 = vmatprep.mubr.f32.mxu1 %v10963_v18  ;;  %v5817_v11 = vld [vmem:[%s11539_s1 + $0x248] sm:$0xff]  ;;  %v11158_v18 = vld [vmem:[%s10057_s7 + $0x180] sm:$0xff] }
 0x1ac   : > { %7946 = vmatmul.mubr.f32.gmra.mrb[10].mxu0 %v10966_v23  ;;  %8342 = vmatmul.mubr.f32.gmra.mrb[10].mxu1 %v10969_v26  ;;  %v11161_v23 = vld [vmem:[%s10057_s7 + $0x188] sm:$0xff]  ;;  %v9290_v26 = vpack.c.bf16 %v5817_v11, %v5816_v38 }
 0x1ad   : > { %9281 = vmatpush3.bf16.msra.mxu0 %v9278_v33  ;;  %9569 = vmatpush3.bf16.msra.mxu1 %v9278_v33  ;;  %v5857_v33 = vld [vmem:[%s11539_s1 + $0x308] sm:$0xff] }
 0x1ae   : > { %9283 = vmatprep.subr.bf16.mxu0 %v9282_v21  ;;  %9571 = vmatprep.subr.bf16.mxu1 %v9282_v21  ;;  %v5861_v38 = vld [vmem:[%s11539_s1 + $0x328] sm:$0xff] }
 0x1af   : > { %7948 = vmatprep.mubr.f32.mxu0 %v10982_v4  ;;  %8344 = vmatprep.mubr.f32.mxu1 %v10985_v9  ;;  %v5818_v4 = vld [vmem:[%s11539_s1 + $0x250] sm:$0xff]  ;;  %v5819_v9 = vld [vmem:[%s11539_s1 + $0x258] sm:$0xff] }
 0x1b0   : > { %7949 = vmatmul.mubr.f32.gmra.mrb[12].mxu0 %v10988_v45  ;;  %8345 = vmatmul.mubr.f32.gmra.mrb[12].mxu1 %v10991_v16  ;;  %v5800_v45 = vld [vmem:[%s10057_s7 + $0xd9] sm:$0xff]  ;;  %v9294_v16 = vpack.c.bf16 %v5819_v9, %v5818_v4 }
 0x1b1   : > { %9285 = vmatpush3.bf16.msra.mxu0 %v9282_v21  ;;  %9573 = vmatpush3.bf16.msra.mxu1 %v9282_v21  ;;  %v5859_v21 = vld [vmem:[%s11539_s1 + $0x318] sm:$0xff] }
 0x1b2   : > { %9287 = vmatprep.subr.bf16.mxu0 %v9286_v10  ;;  %9575 = vmatprep.subr.bf16.mxu1 %v9286_v10  ;;  %v9342_v13 = vpack.c.bf16 %v5859_v21, %v5858_v48  ;;  %v5863_v4 = vld [vmem:[%s11539_s1 + $0x338] sm:$0xff] }
 0x1b3   : > { %7951 = vmatprep.mubr.f32.mxu0 %v10905_v49  ;;  %8347 = vmatprep.mubr.f32.mxu1 %v11158_v18  ;;  %v5821_v49 = vld [vmem:[%s11539_s1 + $0x268] sm:$0xff] }
 0x1b4   : > { %7952 = vmatmul.mubr.f32.gmra.mrb[14].mxu0 %v10934_v60  ;;  %8348 = vmatmul.mubr.f32.gmra.mrb[14].mxu1 %v11161_v23  ;;  %v9298_v60 = vpack.c.bf16 %v5821_v49, %v5820_v39 }
 0x1b5   : > { %9289 = vmatpush3.bf16.msra.mxu0 %v9286_v10  ;;  %9577 = vmatpush3.bf16.msra.mxu1 %v9286_v10  ;;  %v5860_v10 = vld [vmem:[%s11539_s1 + $0x320] sm:$0xff] }
 0x1b6   : > { %9291 = vmatprep.subr.bf16.mxu0 %v9290_v26  ;;  %9579 = vmatprep.subr.bf16.mxu1 %v9290_v26  ;;  %v9346_v11 = vpack.c.bf16 %v5861_v38, %v5860_v10 }
 0x1b7   : > { %7986 = vmatprep.mubr.f32.mxu0 %v5800_v45  ;;  %8382 = vmatprep.mubr.f32.mxu1 %v10844_v20  ;;  %v5832_v20 = vld [vmem:[%s11539_s1 + $0x280] sm:$0xff] }
 0x1b8   : > { %v9306_v5 = vpack.c.bf16 %v5833_v2, %v5832_v20 }
 0x1b9   : > { %9293 = vmatpush3.bf16.msra.mxu0 %v9290_v26  ;;  %9581 = vmatpush3.bf16.msra.mxu1 %v9290_v26  ;;  %v5862_v26 = vld [vmem:[%s11539_s1 + $0x330] sm:$0xff] }
 0x1ba   : > { %9295 = vmatprep.subr.bf16.mxu0 %v9294_v16  ;;  %9583 = vmatprep.subr.bf16.mxu1 %v9294_v16 }
 0x1bd   : > { %9297 = vmatpush3.bf16.msra.mxu0 %v9294_v16  ;;  %9585 = vmatpush3.bf16.msra.mxu1 %v9294_v16  ;;  %v5868_v16 = vld [vmem:[%s11539_s1 + $0x360] sm:$0xff] }
 0x1be   : > { %9299 = vmatprep.subr.bf16.mxu0 %v9298_v60  ;;  %9587 = vmatprep.subr.bf16.mxu1 %v9298_v60 }
 0x1c1   : > { %9301 = vmatpush3.bf16.msra.mxu0 %v9298_v60  ;;  %9589 = vmatpush3.bf16.msra.mxu1 %v9298_v60  ;;  %v5870_v60 = vld [vmem:[%s11539_s1 + $0x370] sm:$0xff] }
 0x1c2   : > { %9303 = vmatprep.subr.bf16.mxu0 %v9302_v52  ;;  %9591 = vmatprep.subr.bf16.mxu1 %v9302_v52 }
 0x1c5   : > { %9305 = vmatpush3.bf16.msra.mxu0 %v9302_v52  ;;  %9593 = vmatpush3.bf16.msra.mxu1 %v9302_v52 }
 0x1c6   : > { %9307 = vmatprep.subr.bf16.mxu0 %v9306_v5  ;;  %9595 = vmatprep.subr.bf16.mxu1 %v9306_v5 }
 0x1c8   : > { %7987 = vmatmul.mubr.f32.vlgmr.msra.gmra.mrb[8].mxu0 %v5801_v43  ;;  %8383 = vmatmul.mubr.f32.vlgmr.msra.gmra.mrb[8].mxu1 %v10847_v58  ;;  %v9318_v58 = vpack.c.bf16 %v5839_v30, %v5838_v25  ;;  %v5880_v30 = vld [vmem:[%s11539_s1 + $0x380] sm:$0xff] }
 0x1c9   : > { %9309 = vmatpush3.bf16.msra.mxu0 %v9306_v5  ;;  %9597 = vmatpush3.bf16.msra.mxu1 %v9306_v5 }
 0x1ca   : > { %9311 = vmatprep.subr.bf16.mxu0 %v9310_v50  ;;  %9599 = vmatprep.subr.bf16.mxu1 %v9310_v50 }
 0x1cb   : > { %7989 = vmatprep.mubr.f32.mxu0 %v10860_v8  ;;  %8385 = vmatprep.mubr.f32.mxu1 %v10863_v32  ;;  %v5841_v8 = vld [vmem:[%s11539_s1 + $0x2c8] sm:$0xff] }
 0x1cc   : > { %7990 = vmatmul.mubr.f32.gmra.mrb[10].mxu0 %v10866_v36  ;;  %8386 = vmatmul.mubr.f32.gmra.mrb[10].mxu1 %v10869_v37  ;;  %v11228_v32 = vld [vmem:[%s10057_s7 + $0x121] sm:$0xff]  ;;  %v11234_v37 = vld [vmem:[%s10057_s7 + $0x129] sm:$0xff] }
 0x1cd   : > { %9313 = vmatpush3.bf16.msra.mxu0 %v9310_v50  ;;  %9601 = vmatpush3.bf16.msra.mxu1 %v9310_v50  ;;  %v11231_v36 = vld [vmem:[%s10057_s7 + $0x181] sm:$0xff]  ;;  %v9366_v50 = vpack.c.bf16 %v5871_v7, %v5870_v60 }
 0x1ce   : > { %9315 = vmatprep.subr.bf16.mxu0 %v9314_v24  ;;  %9603 = vmatprep.subr.bf16.mxu1 %v9314_v24 }
 0x1cf   : > { %7992 = vmatprep.mubr.f32.mxu0 %v10882_v35  ;;  %8388 = vmatprep.mubr.f32.mxu1 %v10885_v40  ;;  %v9322_v35 = vpack.c.bf16 %v5841_v8, %v5840_v34  ;;  %v5842_v40 = vld [vmem:[%s11539_s1 + $0x2d0] sm:$0xff] }
 0x1d0   : > { %7993 = vmatmul.mubr.f32.gmra.mrb[12].mxu0 %v10888_v41  ;;  %8389 = vmatmul.mubr.f32.gmra.mrb[12].mxu1 %v10891_v42  ;;  %v5843_v41 = vld [vmem:[%s11539_s1 + $0x2d8] sm:$0xff] }
 0x1d1   : > { %9317 = vmatpush3.bf16.msra.mxu0 %v9314_v24  ;;  %9605 = vmatpush3.bf16.msra.mxu1 %v9314_v24  ;;  %v5824_v42 = vld [vmem:[%s10057_s7 + $0xda] sm:$0xff]  ;;  %v9326_v28 = vpack.c.bf16 %v5843_v41, %v5842_v40 }
 0x1d2   : > { %9319 = vmatprep.subr.bf16.mxu0 %v9318_v58  ;;  %9607 = vmatprep.subr.bf16.mxu1 %v9318_v58 }
 0x1d3   : > { %7995 = vmatprep.mubr.f32.mxu0 %v11228_v32  ;;  %8391 = vmatprep.mubr.f32.mxu1 %v11231_v36 }
 0x1d4   : > { %7996 = vmatmul.mubr.f32.gmra.mrb[14].mxu0 %v11234_v37  ;;  %8392 = vmatmul.mubr.f32.gmra.mrb[14].mxu1 %v11237_v61 }
 0x1d5   : > { %9321 = vmatpush3.bf16.msra.mxu0 %v9318_v58  ;;  %9609 = vmatpush3.bf16.msra.mxu1 %v9318_v58  ;;  %v5881_v58 = vld [vmem:[%s11539_s1 + $0x388] sm:$0xff] }
 0x1d6   : > { %9323 = vmatprep.subr.bf16.mxu0 %v9322_v35  ;;  %9611 = vmatprep.subr.bf16.mxu1 %v9322_v35  ;;  %v11359_v0 = vpack.c.bf16 %v5881_v58, %v5880_v30  ;;  %v5887_v30 = vld [vmem:[%s11539_s1 + $0x3b8] sm:$0xff]  ;;  %v5851_v58 = vld [vmem:[%s10057_s7 + $0x110] sm:$0xff] }
 0x1d7   : > { %8030 = vmatprep.mubr.f32.mxu0 %v5824_v42  ;;  %8426 = vmatprep.mubr.f32.mxu1 %v11044_v55  ;;  %v5856_v55 = vld [vmem:[%s11539_s1 + $0x300] sm:$0xff] }
 0x1d8   : > { %v9338_v47 = vpack.c.bf16 %v5857_v33, %v5856_v55  ;;  %v5882_v33 = vld [vmem:[%s11539_s1 + $0x390] sm:$0xff] }
 0x1d9   : > { %9325 = vmatpush3.bf16.msra.mxu0 %v9322_v35  ;;  %9613 = vmatpush3.bf16.msra.mxu1 %v9322_v35 }
 0x1da   : > { %9327 = vmatprep.subr.bf16.mxu0 %v9326_v28  ;;  %9615 = vmatprep.subr.bf16.mxu1 %v9326_v28 }
 0x1dd   : > { %9329 = vmatpush3.bf16.msra.mxu0 %v9326_v28  ;;  %9617 = vmatpush3.bf16.msra.mxu1 %v9326_v28 }
 0x1de   : > { %9331 = vmatprep.subr.bf16.mxu0 %v9330_v46  ;;  %9619 = vmatprep.subr.bf16.mxu1 %v9330_v46 }
 0x1e1   : > { %9333 = vmatpush3.bf16.msra.mxu0 %v9330_v46  ;;  %9621 = vmatpush3.bf16.msra.mxu1 %v9330_v46 }
 0x1e2   : > { %9335 = vmatprep.subr.bf16.mxu0 %v9334_v29  ;;  %9623 = vmatprep.subr.bf16.mxu1 %v9334_v29 }
 0x1e5   : > { %9337 = vmatpush3.bf16.msra.mxu0 %v9334_v29  ;;  %9625 = vmatpush3.bf16.msra.mxu1 %v9334_v29 }
 0x1e6   : > { %9339 = vmatprep.subr.bf16.mxu0 %v9338_v47  ;;  %9627 = vmatprep.subr.bf16.mxu1 %v9338_v47 }
 0x1e8   : > { %8031 = vmatmul.mubr.f32.vlgmr.msra.gmra.mrb[8].mxu0 %v5825_v22  ;;  %8427 = vmatmul.mubr.f32.vlgmr.msra.gmra.mrb[8].mxu1 %v11047_v51  ;;  %v9350_v51 = vpack.c.bf16 %v5863_v4, %v5862_v26  ;;  %v5849_v26 = vld [vmem:[%s10057_s7 + $0xf8] sm:$0xff]  ;;  %v5884_v4 = vld [vmem:[%s11539_s1 + $0x3a0] sm:$0xff] }
 0x1e9   : > { %9341 = vmatpush3.bf16.msra.mxu0 %v9338_v47  ;;  %9629 = vmatpush3.bf16.msra.mxu1 %v9338_v47  ;;  %v5883_v47 = vld [vmem:[%s11539_s1 + $0x398] sm:$0xff] }
 0x1ea   : > { %9343 = vmatprep.subr.bf16.mxu0 %v9342_v13  ;;  %9631 = vmatprep.subr.bf16.mxu1 %v9342_v13 }
 0x1eb   : > { %8033 = vmatprep.mubr.f32.mxu0 %v11060_v53  ;;  %8429 = vmatprep.mubr.f32.mxu1 %v11063_v56  ;;  %v5864_v53 = vld [vmem:[%s11539_s1 + $0x340] sm:$0xff]  ;;  %v5865_v56 = vld [vmem:[%s11539_s1 + $0x348] sm:$0xff] }
 0x1ec   : > { %8034 = vmatmul.mubr.f32.gmra.mrb[10].mxu0 %v11066_v57  ;;  %8430 = vmatmul.mubr.f32.gmra.mrb[10].mxu1 %v11069_v59  ;;  %v11309_v57 = vld [vmem:[%s10057_s7 + $0x182] sm:$0xff]  ;;  %v11312_v59 = vld [vmem:[%s10057_s7 + $0x18a] sm:$0xff]  ;;  %v9354_v9 = vpack.c.bf16 %v5865_v56, %v5864_v53 }
 0x1ed   : > { %9345 = vmatpush3.bf16.msra.mxu0 %v9342_v13  ;;  %9633 = vmatpush3.bf16.msra.mxu1 %v9342_v13 }
 0x1ee   : > { %9347 = vmatprep.subr.bf16.mxu0 %v9346_v11  ;;  %9635 = vmatprep.subr.bf16.mxu1 %v9346_v11 }
 0x1ef   : > { %8036 = vmatprep.mubr.f32.mxu0 %v11082_v62  ;;  %8432 = vmatprep.mubr.f32.mxu1 %v11085_v63  ;;  %v5866_v62 = vld [vmem:[%s11539_s1 + $0x350] sm:$0xff]  ;;  %v5867_v63 = vld [vmem:[%s11539_s1 + $0x358] sm:$0xff] }
 0x1f0   : > { %8037 = vmatmul.mubr.f32.gmra.mrb[12].mxu0 %v11088_v14  ;;  %8433 = vmatmul.mubr.f32.gmra.mrb[12].mxu1 %v11091_v15  ;;  %v5848_v14 = vld [vmem:[%s10057_s7 + $0xf0] sm:$0xff]  ;;  %v9358_v45 = vpack.c.bf16 %v5867_v63, %v5866_v62 }
 0x1f1   : > { %9349 = vmatpush3.bf16.msra.mxu0 %v9346_v11  ;;  %9637 = vmatpush3.bf16.msra.mxu1 %v9346_v11  ;;  %v6048_v15 = vld [vmem:[%s10057_s7 + $0x150] sm:$0xff] }
 0x1f2   : > { %9351 = vmatprep.subr.bf16.mxu0 %v9350_v51  ;;  %9639 = vmatprep.subr.bf16.mxu1 %v9350_v51 }
 0x1f3   : > { %8039 = vmatprep.mubr.f32.mxu0 %v11005_v31  ;;  %8435 = vmatprep.mubr.f32.mxu1 %v11309_v57  ;;  %v5869_v31 = vld [vmem:[%s11539_s1 + $0x368] sm:$0xff] }
 0x1f4   : > { %8040 = vmatmul.mubr.f32.gmra.mrb[14].mxu0 %v11034_v12  ;;  %8436 = vmatmul.mubr.f32.gmra.mrb[14].mxu1 %v11312_v59  ;;  %v9362_v12 = vpack.c.bf16 %v5869_v31, %v5868_v16  ;;  %v6049_v31 = vld [vmem:[%s10057_s7 + $0x158] sm:$0xff] }
 0x1f5   : > { %9353 = vmatpush3.bf16.msra.mxu0 %v9350_v51  ;;  %9641 = vmatpush3.bf16.msra.mxu1 %v9350_v51  ;;  %v5885_v51 = vld [vmem:[%s11539_s1 + $0x3a8] sm:$0xff] }
 0x1f6   : > { %9355 = vmatprep.subr.bf16.mxu0 %v9354_v9  ;;  %9643 = vmatprep.subr.bf16.mxu1 %v9354_v9  ;;  %v9378_v7 = vpack.c.bf16 %v5885_v51, %v5884_v4 }
 0x1f7   : > { %8074 = vmatprep.mubr.f32.mxu0 %v5848_v14  ;;  %8470 = vmatprep.mubr.f32.mxu1 %v6048_v15 }
 0x1f9   : > { %9357 = vmatpush3.bf16.msra.mxu0 %v9354_v9  ;;  %9645 = vmatpush3.bf16.msra.mxu1 %v9354_v9  ;;  %v9374_v9 = vpack.c.bf16 %v5883_v47, %v5882_v33  ;;  %v5853_v33 = vld [vmem:[%s10057_s7 + $0x128] sm:$0xff] }
 0x1fa   : > { %9359 = vmatprep.subr.bf16.mxu0 %v9358_v45  ;;  %9647 = vmatprep.subr.bf16.mxu1 %v9358_v45 }
 0x1fb   : > { %v7372_v39 = vpop.f32.mrb[0].mxu0  ;;  %v7768_v49 = vpop.f32.mrb[0].mxu1 }
 0x1fc   : > { %1411 = vst [vmem:[%s11337_s23 + $0x8] sm:$0xff] %v7372_v39  ;;  %v1433_v17 = vmul.f32 %v7372_v39, %v7372_v39  ;;  %2675 = vst [vmem:[%s11337_s23 + $0x48] sm:$0xff] %v7768_v49  ;;  %v2697_v52 = vmul.f32 %v7768_v49, %v7768_v49  ;;  %v1363_v20 = vpop.f32.mrb[1].mxu0  ;;  %v2627_v2 = vpop.f32.mrb[1].mxu1 }
 0x1fd   : > { %1410 = vst [vmem:[%s11337_s23] sm:$0xff] %v1363_v20  ;;  %v1418_v5 = vadd.f32 %v7372_v39, %v1363_v20  ;;  %v1432_v1 = vmul.f32 %v1363_v20, %v1363_v20  ;;  %2674 = vst [vmem:[%s11337_s23 + $0x40] sm:$0xff] %v2627_v2  ;;  %v2682_v6 = vadd.f32 %v7768_v49, %v2627_v2  ;;  %9361 = vmatpush3.bf16.msra.mxu0 %v9358_v45 }
 0x1fe   : > { %v2696_v43 = vmul.f32 %v2627_v2, %v2627_v2  ;;  %9649 = vmatpush3.bf16.msra.mxu1 %v9358_v45  ;;  %9363 = vmatprep.subr.bf16.mxu0 %v9362_v12 }
 0x1ff   : > { %v1440_v3 = vadd.f32 %v1433_v17, %v1432_v1  ;;  %v7375_v24 = vpop.f32.mrb[2].mxu0  ;;  %v7771_v25 = vpop.f32.mrb[2].mxu1  ;;  %9651 = vmatprep.subr.bf16.mxu1 %v9362_v12  ;;  %v5850_v17 = vld [vmem:[%s10057_s7 + $0x108] sm:$0xff] }
 0x200   : > { %v2704_v27 = vadd.f32 %v2697_v52, %v2696_v43  ;;  %1413 = vst [vmem:[%s11337_s23 + $0x18] sm:$0xff] %v7375_v24  ;;  %2677 = vst [vmem:[%s11337_s23 + $0x58] sm:$0xff] %v7771_v25  ;;  %v1373_v34 = vpop.f32.mrb[3].mxu0  ;;  %v2637_v8 = vpop.f32.mrb[3].mxu1  ;;  %v1435_v28 = vmul.f32 %v7375_v24, %v7375_v24  ;;  %v2699_v48 = vmul.f32 %v7771_v25, %v7771_v25  ;;  %v6050_v1 = vld [vmem:[%s10057_s7 + $0x168] sm:$0xff] }
 0x201   : > { %1412 = vst [vmem:[%s11337_s23 + $0x10] sm:$0xff] %v1373_v34  ;;  %v1419_v35 = vadd.f32 %v1418_v5, %v1373_v34  ;;  %v1434_v40 = vmul.f32 %v1373_v34, %v1373_v34  ;;  %2676 = vst [vmem:[%s11337_s23 + $0x50] sm:$0xff] %v2637_v8  ;;  %v2683_v41 = vadd.f32 %v2682_v6, %v2637_v8  ;;  %9365 = vmatpush3.bf16.msra.mxu0 %v9362_v12 }
 0x202   : > { %v2698_v42 = vmul.f32 %v2637_v8, %v2637_v8  ;;  %9653 = vmatpush3.bf16.msra.mxu1 %v9362_v12  ;;  %9367 = vmatprep.subr.bf16.mxu0 %v9366_v50 }
 0x203   : > { %v1441_v44 = vadd.f32 %v1440_v3, %v1434_v40  ;;  %v7378_v54 = vpop.f32.mrb[4].mxu0  ;;  %v7774_v19 = vpop.f32.mrb[4].mxu1  ;;  %v1420_v29 = vadd.f32 %v7375_v24, %v1419_v35  ;;  %v2684_v55 = vadd.f32 %v7771_v25, %v2683_v41  ;;  %9655 = vmatprep.subr.bf16.mxu1 %v9366_v50  ;;  %v5886_v25 = vld [vmem:[%s11539_s1 + $0x3b0] sm:$0xff]  ;;  %v5852_v35 = vld [vmem:[%s10057_s7 + $0x120] sm:$0xff] }
 0x204   : > { %v2705_v46 = vadd.f32 %v2704_v27, %v2698_v42  ;;  %1415 = vst [vmem:[%s11337_s23 + $0x28] sm:$0xff] %v7378_v54  ;;  %2679 = vst [vmem:[%s11337_s23 + $0x68] sm:$0xff] %v7774_v19  ;;  %v1383_v21 = vpop.f32.mrb[5].mxu0  ;;  %v2647_v22 = vpop.f32.mrb[5].mxu1  ;;  %v1437_v62 = vmul.f32 %v7378_v54, %v7378_v54  ;;  %v2701_v12 = vmul.f32 %v7774_v19, %v7774_v19 }
 0x205   : > { %1414 = vst [vmem:[%s11337_s23 + $0x20] sm:$0xff] %v1383_v21  ;;  %v1421_v13 = vadd.f32 %v1420_v29, %v1383_v21  ;;  %v1436_v10 = vmul.f32 %v1383_v21, %v1383_v21  ;;  %v1442_v38 = vadd.f32 %v1441_v44, %v1435_v28  ;;  %2678 = vst [vmem:[%s11337_s23 + $0x60] sm:$0xff] %v2647_v22  ;;  %9369 = vmatpush3.bf16.msra.mxu0 %v9366_v50  ;;  %v6051_v28 = vld [vmem:[%s10057_s7 + $0x170] sm:$0xff]  ;;  %v5888_v29 = vld [vmem:[%s11539_s1 + $0x3c0] sm:$0xff] }
 0x206   : > { %v2685_v11 = vadd.f32 %v2684_v55, %v2647_v22  ;;  %v2700_v53 = vmul.f32 %v2647_v22, %v2647_v22  ;;  %v2706_v56 = vadd.f32 %v2705_v46, %v2699_v48  ;;  %9657 = vmatpush3.bf16.msra.mxu1 %v9366_v50  ;;  %9371 = vmatprep.subr.bf16.mxu0 %v11359_v0  ;;  %v5889_v55 = vld [vmem:[%s11539_s1 + $0x3c8] sm:$0xff]  ;;  %v5854_v48 = vld [vmem:[%s10057_s7 + $0x138] sm:$0xff] }
 0x207   : > { %v1443_v63 = vadd.f32 %v1442_v38, %v1436_v10  ;;  %v7381_v14 = vpop.f32.mrb[6].mxu0  ;;  %v7777_v15 = vpop.f32.mrb[6].mxu1  ;;  %v1422_v45 = vadd.f32 %v7378_v54, %v1421_v13  ;;  %9659 = vmatprep.subr.bf16.mxu1 %v11359_v0  ;;  %v9382_v44 = vpack.c.bf16 %v5887_v30, %v5886_v25  ;;  %v9386_v38 = vpack.c.bf16 %v5889_v55, %v5888_v29  ;;  %v5906_v25 = vld [vmem:[%s11539_s1 + $0x410] sm:$0xff]  ;;  %v5907_v30 = vld [vmem:[%s11539_s1 + $0x418] sm:$0xff]  ;;  %v5912_v55 = vld [vmem:[%s11539_s1 + $0x440] sm:$0xff] }
 0x208   : > { %v2686_v16 = vadd.f32 %v7774_v19, %v2685_v11  ;;  %v2707_v39 = vadd.f32 %v2706_v56, %v2700_v53  ;;  %1417 = vst [vmem:[%s11337_s23 + $0x38] sm:$0xff] %v7381_v14  ;;  %2681 = vst [vmem:[%s11337_s23 + $0x78] sm:$0xff] %v7777_v15  ;;  %v1393_v49 = vpop.f32.mrb[7].mxu0  ;;  %v2657_v60 = vpop.f32.mrb[7].mxu1  ;;  %8075 = vmatmul.mubr.f32.vlgmr.msra.gmra.mrb[8].mxu0 %v5849_v26  ;;  %v1439_v6 = vmul.f32 %v7381_v14, %v7381_v14  ;;  %v6054_v11 = vld [vmem:[%s10057_s7 + $0x198] sm:$0xff]  ;;  %v5890_v53 = vld [vmem:[%s11539_s1 + $0x3d0] sm:$0xff] }
 0x209   : > { %1416 = vst [vmem:[%s11337_s23 + $0x30] sm:$0xff] %v1393_v49  ;;  %v1423_v52 = vadd.f32 %v1422_v45, %v1393_v49  ;;  %v1438_v20 = vmul.f32 %v1393_v49, %v1393_v49  ;;  %v1444_v2 = vadd.f32 %v1443_v63, %v1437_v62  ;;  %2680 = vst [vmem:[%s11337_s23 + $0x70] sm:$0xff] %v2657_v60  ;;  %9373 = vmatpush3.bf16.msra.mxu0 %v11359_v0  ;;  %v5891_v56 = vld [vmem:[%s11539_s1 + $0x3d8] sm:$0xff]  ;;  %v6055_v45 = vld [vmem:[%s10057_s7 + $0x1a0] sm:$0xff] }
 0x20a   : > { %v2687_v5 = vadd.f32 %v2686_v16, %v2657_v60  ;;  %v2702_v43 = vmul.f32 %v2657_v60, %v2657_v60  ;;  %v2708_v50 = vadd.f32 %v2707_v39, %v2701_v12  ;;  %8471 = vmatmul.mubr.f32.vlgmr.msra.gmra.mrb[8].mxu1 %v6049_v31  ;;  %9375 = vmatprep.subr.bf16.mxu0 %v9374_v9  ;;  %v5872_v62 = vld [vmem:[%s10057_s7 + $0xf1] sm:$0xff]  ;;  %v5878_v29 = vld [vmem:[%s10057_s7 + $0x139] sm:$0xff] }
 0x20b   : > { %v1424_v3 = vadd.f32 %v7381_v14, %v1423_v52  ;;  %v1445_v27 = vadd.f32 %v1444_v2, %v1438_v20  ;;  %9661 = vmatpush3.bf16.msra.mxu1 %v11359_v0  ;;  %8077 = vmatprep.mubr.f32.mxu0 %v5850_v17  ;;  %v2703_v34 = vmul.f32 %v7777_v15, %v7777_v15  ;;  %v6072_v12 = vld [vmem:[%s10057_s7 + $0x151] sm:$0xff] }
 0x20c   : > { %v2688_v24 = vadd.f32 %v7777_v15, %v2687_v5  ;;  %v2709_v8 = vadd.f32 %v2708_v50, %v2702_v43  ;;  %9663 = vmatprep.subr.bf16.mxu1 %v9374_v9  ;;  %8473 = vmatprep.mubr.f32.mxu1 %v6050_v1  ;;  %v9390_v31 = vpack.c.bf16 %v5891_v56, %v5890_v53  ;;  %v5894_v1 = vld [vmem:[%s11539_s1 + $0x3f0] sm:$0xff]  ;;  %v5897_v53 = vld [vmem:[%s10057_s7 + $0xfa] sm:$0xff] }
 0x20d   : > { %v1425_v40 = vrot.slane %v1424_v3, 4  ;;  %v1446_v41 = vadd.f32 %v1445_v27, %v1439_v6  ;;  %9377 = vmatpush3.bf16.msra.mxu0 %v9374_v9  ;;  %v5895_v6 = vld [vmem:[%s11539_s1 + $0x3f8] sm:$0xff]  ;;  %v5905_v27 = vld [vmem:[%s11539_s1 + $0x408] sm:$0xff] }
 0x20e   : > { %v2689_v42 = vrot.slane %v2688_v24, 4  ;;  %v2710_v0 = vadd.f32 %v2709_v8, %v2703_v34  ;;  %9379 = vmatprep.subr.bf16.mxu0 %v9378_v7  ;;  %8078 = vmatmul.mubr.f32.gmra.mrb[10].mxu0 %v5851_v58  ;;  %v9398_v50 = vpack.c.bf16 %v5895_v6, %v5894_v1  ;;  %v5873_v58 = vld [vmem:[%s10057_s7 + $0xf9] sm:$0xff]  ;;  %v9406_v34 = vpack.c.bf16 %v5907_v30, %v5906_v25  ;;  %v5874_v8 = vld [vmem:[%s10057_s7 + $0x109] sm:$0xff] }
 0x20f   : > { %v1426_v46 = vadd.f32 %v1425_v40, %v1424_v3  ;;  %v1447_v54 = vrot.slane %v1446_v41, 4  ;;  %9665 = vmatpush3.bf16.msra.mxu1 %v9374_v9  ;;  %8080 = vmatprep.mubr.f32.mxu0 %v5852_v35  ;;  %v5904_v3 = vld [vmem:[%s11539_s1 + $0x400] sm:$0xff]  ;;  %v5898_v56 = vld [vmem:[%s10057_s7 + $0x10a] sm:$0xff] }
 0x210   : > { %v2690_v19 = vadd.f32 %v2689_v42, %v2688_v24  ;;  %v2711_v47 = vrot.slane %v2710_v0, 4  ;;  %9667 = vmatprep.subr.bf16.mxu1 %v9378_v7  ;;  %8474 = vmatmul.mubr.f32.gmra.mrb[10].mxu1 %v6051_v28  ;;  %v9402_v24 = vpack.c.bf16 %v5905_v27, %v5904_v3  ;;  %v6073_v35 = vld [vmem:[%s10057_s7 + $0x159] sm:$0xff]  ;;  %v6074_v42 = vld [vmem:[%s10057_s7 + $0x169] sm:$0xff]  ;;  %v5875_v28 = vld [vmem:[%s10057_s7 + $0x111] sm:$0xff] }
 0x211   : > { %v1427_v21 = vrot.slane %v1426_v46, 2  ;;  %v1448_v22 = vadd.f32 %v1447_v54, %v1446_v41  ;;  %9381 = vmatpush3.bf16.msra.mxu0 %v9378_v7  ;;  %8476 = vmatprep.mubr.f32.mxu1 %v11158_v18  ;;  %v5855_v18 = vld [vmem:[%s10057_s7 + $0x140] sm:$0xff]  ;;  %v5909_v41 = vld [vmem:[%s11539_s1 + $0x428] sm:$0xff]  ;;  %v6075_v54 = vld [vmem:[%s10057_s7 + $0x171] sm:$0xff] }
 0x212   : > { %v2691_v13 = vrot.slane %v2690_v19, 2  ;;  %v2712_v10 = vadd.f32 %v2711_v47, %v2710_v0  ;;  %9383 = vmatprep.subr.bf16.mxu0 %v9382_v44  ;;  %8081 = vmatmul.mubr.f32.gmra.mrb[12].mxu0 %v5853_v33  ;;  %v5908_v40 = vld [vmem:[%s11539_s1 + $0x420] sm:$0xff]  ;;  %v5913_v33 = vld [vmem:[%s11539_s1 + $0x448] sm:$0xff] }
 0x213   : > { %v1428_v26 = vadd.f32 %v1427_v21, %v1426_v46  ;;  %v1449_v4 = vrot.slane %v1448_v22, 2  ;;  %9669 = vmatpush3.bf16.msra.mxu1 %v9378_v7  ;;  %8083 = vmatprep.mubr.f32.mxu0 %v5854_v48  ;;  %v5893_v7 = vld [vmem:[%s11539_s1 + $0x3e8] sm:$0xff]  ;;  %v9410_v0 = vpack.c.bf16 %v5909_v41, %v5908_v40  ;;  %v5911_v46 = vld [vmem:[%s11539_s1 + $0x438] sm:$0xff]  ;;  %v9418_v48 = vpack.c.bf16 %v5913_v33, %v5912_v55 }
 0x214   : > { %v2692_v51 = vadd.f32 %v2691_v13, %v2690_v19  ;;  %v2713_v9 = vrot.slane %v2712_v10, 2  ;;  %9671 = vmatprep.subr.bf16.mxu1 %v9382_v44  ;;  %8477 = vmatmul.mubr.f32.gmra.mrb[12].mxu1 %v11161_v23  ;;  %v5892_v23 = vld [vmem:[%s11539_s1 + $0x3e0] sm:$0xff]  ;;  %v5896_v21 = vld [vmem:[%s10057_s7 + $0xf2] sm:$0xff] }
 0x215   : > { %v1429_v63 = vrot.slane %v1428_v26, 1  ;;  %v1450_v14 = vadd.f32 %v1449_v4, %v1448_v22  ;;  %9385 = vmatpush3.bf16.msra.mxu0 %v9382_v44  ;;  %8479 = vmatprep.mubr.f32.mxu1 %v6054_v11  ;;  %v9394_v5 = vpack.c.bf16 %v5893_v7, %v5892_v23  ;;  %v5879_v47 = vld [vmem:[%s10057_s7 + $0x141] sm:$0xff]  ;;  %v5914_v22 = vld [vmem:[%s11539_s1 + $0x450] sm:$0xff]  ;;  %v5919_v4 = vld [vmem:[%s11539_s1 + $0x478] sm:$0xff] }
 0x216   : > { %v2693_v15 = vrot.slane %v2692_v51, 1  ;;  %v2714_v16 = vadd.f32 %v2713_v9, %v2712_v10  ;;  %9387 = vmatprep.subr.bf16.mxu0 %v9386_v38  ;;  %8084 = vmatmul.mubr.f32.gmra.mrb[14].mxu0 %v5855_v18  ;;  %v6096_v13 = vld [vmem:[%s10057_s7 + $0x152] sm:$0xff]  ;;  %v6097_v18 = vld [vmem:[%s10057_s7 + $0x15a] sm:$0xff]  ;;  %v6098_v9 = vld [vmem:[%s10057_s7 + $0x16a] sm:$0xff] }
 0x217   : > { %v1430_v39 = vadd.f32 %v1429_v63, %v1428_v26  ;;  %v1451_v49 = vrot.slane %v1450_v14, 1  ;;  %9673 = vmatpush3.bf16.msra.mxu1 %v9382_v44  ;;  %8118 = vmatprep.mubr.f32.mxu0 %v5872_v62  ;;  %v5910_v44 = vld [vmem:[%s11539_s1 + $0x430] sm:$0xff]  ;;  %v5900_v63 = vld [vmem:[%s10057_s7 + $0x122] sm:$0xff] }
 0x218   : > { %v2694_v60 = vadd.f32 %v2693_v15, %v2692_v51  ;;  %v2715_v17 = vrot.slane %v2714_v16, 1  ;;  %9675 = vmatprep.subr.bf16.mxu1 %v9386_v38  ;;  %8480 = vmatmul.mubr.f32.gmra.mrb[14].mxu1 %v6055_v45  ;;  %v9414_v19 = vpack.c.bf16 %v5911_v46, %v5910_v44  ;;  %v5918_v26 = vld [vmem:[%s11539_s1 + $0x470] sm:$0xff]  ;;  %v5902_v45 = vld [vmem:[%s10057_s7 + $0x13a] sm:$0xff] }
 0x219   : > { %v1452_v52 = vadd.f32 %v1451_v49, %v1450_v14  ;;  %9389 = vmatpush3.bf16.msra.mxu0 %v9386_v38  ;;  %8514 = vmatprep.mubr.f32.mxu1 %v6072_v12  ;;  %v9430_v51 = vpack.c.bf16 %v5919_v4, %v5918_v26  ;;  %v5899_v62 = vld [vmem:[%s10057_s7 + $0x112] sm:$0xff]  ;;  %v5901_v15 = vld [vmem:[%s10057_s7 + $0x12a] sm:$0xff]  ;;  %v6103_v12 = vld [vmem:[%s10057_s7 + $0x1a2] sm:$0xff] }
 0x21a   : > { %v11425_v20 = vadd.f32 %v2694_v60, %v1430_v39  ;;  %v2716_v2 = vadd.f32 %v2715_v17, %v2714_v16  ;;  %9391 = vmatprep.subr.bf16.mxu0 %v9390_v31  ;;  %v6099_v14 = vld [vmem:[%s10057_s7 + $0x172] sm:$0xff]  ;;  %v6102_v16 = vld [vmem:[%s10057_s7 + $0x19a] sm:$0xff] }
 0x21b   : > { %9677 = vmatpush3.bf16.msra.mxu1 %v9386_v38  ;;  %v5917_v38 = vld [vmem:[%s11539_s1 + $0x468] sm:$0xff] }
 0x21c   : > { %v11433_v43 = vadd.f32 %v2716_v2, %v1452_v52  ;;  %9679 = vmatprep.subr.bf16.mxu1 %v9390_v31 }
 0x21d   : > { %9393 = vmatpush3.bf16.msra.mxu0 %v9390_v31 }
 0x21e   : > { %9395 = vmatprep.subr.bf16.mxu0 %v9394_v5 }
 0x21f   : > { %9681 = vmatpush3.bf16.msra.mxu1 %v9390_v31  ;;  %v5903_v31 = vld [vmem:[%s10057_s7 + $0x142] sm:$0xff] }
 0x220   : > { %9683 = vmatprep.subr.bf16.mxu1 %v9394_v5 }
 0x221   : > { %9397 = vmatpush3.bf16.msra.mxu0 %v9394_v5 }
 0x222   : > { %9399 = vmatprep.subr.bf16.mxu0 %v9398_v50 }
 0x223   : > { %9685 = vmatpush3.bf16.msra.mxu1 %v9394_v5 }
 0x224   : > { %9687 = vmatprep.subr.bf16.mxu1 %v9398_v50 }
 0x225   : > { %9401 = vmatpush3.bf16.msra.mxu0 %v9398_v50 }
 0x226   : > { %9403 = vmatprep.subr.bf16.mxu0 %v9402_v24 }
 0x227   : > { %9689 = vmatpush3.bf16.msra.mxu1 %v9398_v50 }
 0x228   : > { %9691 = vmatprep.subr.bf16.mxu1 %v9402_v24  ;;  %8119 = vmatmul.mubr.f32.vlgmr.msra.gmra.mrb[8].mxu0 %v5873_v58 }
 0x229   : > { %9405 = vmatpush3.bf16.msra.mxu0 %v9402_v24  ;;  %8121 = vmatprep.mubr.f32.mxu0 %v5874_v8 }
 0x22a   : > { %8515 = vmatmul.mubr.f32.vlgmr.msra.gmra.mrb[8].mxu1 %v6073_v35  ;;  %9407 = vmatprep.subr.bf16.mxu0 %v9406_v34 }
 0x22b   : > { %9693 = vmatpush3.bf16.msra.mxu1 %v9402_v24  ;;  %8517 = vmatprep.mubr.f32.mxu1 %v6074_v42 }
 0x22c   : > { %9695 = vmatprep.subr.bf16.mxu1 %v9406_v34  ;;  %8122 = vmatmul.mubr.f32.gmra.mrb[10].mxu0 %v5875_v28 }
 0x22d   : > { %9409 = vmatpush3.bf16.msra.mxu0 %v9406_v34  ;;  %8124 = vmatprep.mubr.f32.mxu0 %v11228_v32  ;;  %v6078_v32 = vld [vmem:[%s10057_s7 + $0x199] sm:$0xff] }
 0x22e   : > { %9411 = vmatprep.subr.bf16.mxu0 %v9410_v0  ;;  %8518 = vmatmul.mubr.f32.gmra.mrb[10].mxu1 %v6075_v54 }
 0x22f   : > { %9697 = vmatpush3.bf16.msra.mxu1 %v9406_v34  ;;  %8520 = vmatprep.mubr.f32.mxu1 %v11231_v36  ;;  %v5915_v36 = vld [vmem:[%s11539_s1 + $0x458] sm:$0xff] }
 0x230   : > { %9699 = vmatprep.subr.bf16.mxu1 %v9410_v0  ;;  %8125 = vmatmul.mubr.f32.gmra.mrb[12].mxu0 %v11234_v37  ;;  %v6079_v37 = vld [vmem:[%s10057_s7 + $0x1a1] sm:$0xff]  ;;  %v9422_v10 = vpack.c.bf16 %v5915_v36, %v5914_v22  ;;  %s5343_s7 = sshll.u32 %s10045_s26, 1 }
 0x231   : > { %9413 = vmatpush3.bf16.msra.mxu0 %v9410_v0  ;;  %8127 = vmatprep.mubr.f32.mxu0 %v5878_v29  ;;  %s182_s24 = scalar_lea.vmem %s11541_s3, %s5343_s7 }
 0x232   : > { %9415 = vmatprep.subr.bf16.mxu0 %v9414_v19  ;;  %8521 = vmatmul.mubr.f32.gmra.mrb[12].mxu1 %v11237_v61  ;;  %v5916_v61 = vld [vmem:[%s11539_s1 + $0x460] sm:$0xff] }
 0x233   : > { %9701 = vmatpush3.bf16.msra.mxu1 %v9410_v0  ;;  %8523 = vmatprep.mubr.f32.mxu1 %v6078_v32  ;;  %v9426_v11 = vpack.c.bf16 %v5917_v38, %v5916_v61 }
 0x234   : > { %9703 = vmatprep.subr.bf16.mxu1 %v9414_v19  ;;  %8128 = vmatmul.mubr.f32.gmra.mrb[14].mxu0 %v5879_v47 }
 0x235   : > { %9417 = vmatpush3.bf16.msra.mxu0 %v9414_v19  ;;  %8162 = vmatprep.mubr.f32.mxu0 %v5896_v21 }
 0x236   : > { %9419 = vmatprep.subr.bf16.mxu0 %v9418_v48  ;;  %8524 = vmatmul.mubr.f32.gmra.mrb[14].mxu1 %v6079_v37 }
 0x237   : > { %9705 = vmatpush3.bf16.msra.mxu1 %v9414_v19  ;;  %8558 = vmatprep.mubr.f32.mxu1 %v6096_v13 }
 0x238   : > { %9707 = vmatprep.subr.bf16.mxu1 %v9418_v48 }
 0x239   : > { %9421 = vmatpush3.bf16.msra.mxu0 %v9418_v48 }
 0x23a   : > { %9423 = vmatprep.subr.bf16.mxu0 %v9422_v10 }
 0x23b   : > { %9709 = vmatpush3.bf16.msra.mxu1 %v9418_v48 }
 0x23c   : > { %9711 = vmatprep.subr.bf16.mxu1 %v9422_v10 }
 0x23d   : > { %9425 = vmatpush3.bf16.msra.mxu0 %v9422_v10 }
 0x23e   : > { %9427 = vmatprep.subr.bf16.mxu0 %v9426_v11 }
 0x23f   : > { %9713 = vmatpush3.bf16.msra.mxu1 %v9422_v10 }
 0x240   : > { %9715 = vmatprep.subr.bf16.mxu1 %v9426_v11 }
 0x241   : > { %9429 = vmatpush3.bf16.msra.mxu0 %v9426_v11 }
 0x242   : > { %9431 = vmatprep.subr.bf16.mxu0 %v9430_v51 }
 0x243   : > { %9717 = vmatpush3.bf16.msra.mxu1 %v9426_v11 }
 0x244   : > { %9719 = vmatprep.subr.bf16.mxu1 %v9430_v51 }
 0x245   : > { %9433 = vmatpush3.bf16.msra.mxu0 %v9430_v51 }
 0x247   : > { %9721 = vmatpush3.bf16.msra.mxu1 %v9430_v51 }
 0x248   : > { %8163 = vmatmul.mubr.f32.vlgmr.msra.gmra.mrb[8].mxu0 %v5897_v53 }
 0x249   : > { %8165 = vmatprep.mubr.f32.mxu0 %v5898_v56 }
 0x24a   : > { %8559 = vmatmul.mubr.f32.vlgmr.msra.gmra.mrb[8].mxu1 %v6097_v18 }
 0x24b   : > { %8561 = vmatprep.mubr.f32.mxu1 %v6098_v9 }
 0x24c   : > { %8166 = vmatmul.mubr.f32.gmra.mrb[10].mxu0 %v5899_v62 }
 0x24d   : > { %8168 = vmatprep.mubr.f32.mxu0 %v5900_v63 }
 0x24e   : > { %8562 = vmatmul.mubr.f32.gmra.mrb[10].mxu1 %v6099_v14 }
 0x24f   : > { %8564 = vmatprep.mubr.f32.mxu1 %v11309_v57 }
 0x250   : > { %8169 = vmatmul.mubr.f32.gmra.mrb[12].mxu0 %v5901_v15 }
 0x251   : > { %8171 = vmatprep.mubr.f32.mxu0 %v5902_v45 }
 0x252   : > { %8565 = vmatmul.mubr.f32.gmra.mrb[12].mxu1 %v11312_v59 }
 0x253   : > { %8567 = vmatprep.mubr.f32.mxu1 %v6102_v16 }
 0x254   : > { %8172 = vmatmul.mubr.f32.gmra.mrb[14].mxu0 %v5903_v31 }
 0x256   : > { %8568 = vmatmul.mubr.f32.gmra.mrb[14].mxu1 %v6103_v12 }
 0x31b   : > { %v8164_v39 = vpop.f32.mrb[8].mxu0 }
 0x31c   : > { %3939 = vst [vmem:[%s11337_s23 + $0x88] sm:$0xff] %v8164_v39  ;;  %v3961_v49 = vmul.f32 %v8164_v39, %v8164_v39  ;;  %v3891_v60 = vpop.f32.mrb[9].mxu0 }
 0x31d   : > { %v8560_v23 = vpop.f32.mrb[8].mxu1  ;;  %3938 = vst [vmem:[%s11337_s23 + $0x80] sm:$0xff] %v3891_v60  ;;  %v3946_v57 = vadd.f32 %v8164_v39, %v3891_v60  ;;  %v3960_v7 = vmul.f32 %v3891_v60, %v3891_v60 }
 0x31e   : > { %5203 = vst [vmem:[%s11337_s23 + $0xc8] sm:$0xff] %v8560_v23  ;;  %v5225_v17 = vmul.f32 %v8560_v23, %v8560_v23  ;;  %v5155_v52 = vpop.f32.mrb[9].mxu1 }
 0x31f   : > { %v3968_v59 = vadd.f32 %v3961_v49, %v3960_v7  ;;  %5202 = vst [vmem:[%s11337_s23 + $0xc0] sm:$0xff] %v5155_v52  ;;  %v5210_v2 = vadd.f32 %v8560_v23, %v5155_v52  ;;  %v5224_v5 = vmul.f32 %v5155_v52, %v5155_v52  ;;  %v8167_v1 = vpop.f32.mrb[10].mxu0 }
 0x320   : > { %3941 = vst [vmem:[%s11337_s23 + $0x98] sm:$0xff] %v8167_v1  ;;  %v3901_v6 = vpop.f32.mrb[11].mxu0  ;;  %v3963_v25 = vmul.f32 %v8167_v1, %v8167_v1 }
 0x321   : > { %v5232_v50 = vadd.f32 %v5225_v17, %v5224_v5  ;;  %v8563_v3 = vpop.f32.mrb[10].mxu1  ;;  %3940 = vst [vmem:[%s11337_s23 + $0x90] sm:$0xff] %v3901_v6  ;;  %v3947_v27 = vadd.f32 %v3946_v57, %v3901_v6  ;;  %v3962_v24 = vmul.f32 %v3901_v6, %v3901_v6 }
 0x322   : > { %5205 = vst [vmem:[%s11337_s23 + $0xd8] sm:$0xff] %v8563_v3  ;;  %v5165_v30 = vpop.f32.mrb[11].mxu1  ;;  %v5227_v41 = vmul.f32 %v8563_v3, %v8563_v3 }
 0x323   : > { %v3969_v58 = vadd.f32 %v3968_v59, %v3962_v24  ;;  %5204 = vst [vmem:[%s11337_s23 + $0xd0] sm:$0xff] %v5165_v30  ;;  %v5211_v34 = vadd.f32 %v5210_v2, %v5165_v30  ;;  %v5226_v8 = vmul.f32 %v5165_v30, %v5165_v30  ;;  %v8170_v35 = vpop.f32.mrb[12].mxu0  ;;  %v3948_v40 = vadd.f32 %v8167_v1, %v3947_v27 }
 0x324   : > { %3943 = vst [vmem:[%s11337_s23 + $0xa8] sm:$0xff] %v8170_v35  ;;  %v3911_v42 = vpop.f32.mrb[13].mxu0  ;;  %v3965_v19 = vmul.f32 %v8170_v35, %v8170_v35 }
 0x325   : > { %v5233_v28 = vadd.f32 %v5232_v50, %v5226_v8  ;;  %v8566_v0 = vpop.f32.mrb[12].mxu1  ;;  %3942 = vst [vmem:[%s11337_s23 + $0xa0] sm:$0xff] %v3911_v42  ;;  %v3949_v44 = vadd.f32 %v3948_v40, %v3911_v42  ;;  %v3964_v46 = vmul.f32 %v3911_v42, %v3911_v42  ;;  %v3970_v54 = vadd.f32 %v3969_v58, %v3963_v25 }
 0x326   : > { %5207 = vst [vmem:[%s11337_s23 + $0xe8] sm:$0xff] %v8566_v0  ;;  %v5175_v29 = vpop.f32.mrb[13].mxu1  ;;  %v5212_v55 = vadd.f32 %v8563_v3, %v5211_v34  ;;  %v5229_v22 = vmul.f32 %v8566_v0, %v8566_v0 }
 0x327   : > { %v3971_v33 = vadd.f32 %v3970_v54, %v3964_v46  ;;  %5206 = vst [vmem:[%s11337_s23 + $0xe0] sm:$0xff] %v5175_v29  ;;  %v5228_v32 = vmul.f32 %v5175_v29, %v5175_v29  ;;  %v5234_v47 = vadd.f32 %v5233_v28, %v5227_v41  ;;  %v8173_v48 = vpop.f32.mrb[14].mxu0  ;;  %v3950_v21 = vadd.f32 %v8170_v35, %v3949_v44 }
 0x328   : > { %v5213_v36 = vadd.f32 %v5212_v55, %v5175_v29  ;;  %3945 = vst [vmem:[%s11337_s23 + $0xb8] sm:$0xff] %v8173_v48  ;;  %v3921_v37 = vpop.f32.mrb[15].mxu0  ;;  %v3967_v26 = vmul.f32 %v8173_v48, %v8173_v48 }
 0x329   : > { %v5235_v13 = vadd.f32 %v5234_v47, %v5228_v32  ;;  %v8569_v10 = vpop.f32.mrb[14].mxu1  ;;  %3944 = vst [vmem:[%s11337_s23 + $0xb0] sm:$0xff] %v3921_v37  ;;  %v3951_v61 = vadd.f32 %v3950_v21, %v3921_v37  ;;  %v3966_v38 = vmul.f32 %v3921_v37, %v3921_v37  ;;  %v3972_v11 = vadd.f32 %v3971_v33, %v3965_v19 }
 0x32a   : > { %5209 = vst [vmem:[%s11337_s23 + $0xf8] sm:$0xff] %v8569_v10  ;;  %v5185_v4 = vpop.f32.mrb[15].mxu1  ;;  %v5214_v51 = vadd.f32 %v8566_v0, %v5213_v36  ;;  %v5231_v63 = vmul.f32 %v8569_v10, %v8569_v10 }
 0x32b   : > { %v3952_v53 = vadd.f32 %v8173_v48, %v3951_v61  ;;  %v3973_v56 = vadd.f32 %v3972_v11, %v3966_v38  ;;  %5208 = vst [vmem:[%s11337_s23 + $0xf0] sm:$0xff] %v5185_v4  ;;  %v5230_v18 = vmul.f32 %v5185_v4, %v5185_v4  ;;  %v5236_v9 = vadd.f32 %v5235_v13, %v5229_v22 }
 0x32c   : > { %v5215_v62 = vadd.f32 %v5214_v51, %v5185_v4 }
 0x32d   : > { %v3953_v14 = vrot.slane %v3952_v53, 4  ;;  %v3974_v15 = vadd.f32 %v3973_v56, %v3967_v26  ;;  %v5237_v45 = vadd.f32 %v5236_v9, %v5230_v18 }
 0x32e   : > { %v5216_v16 = vadd.f32 %v8569_v10, %v5215_v62 }
 0x32f   : > { %v3954_v31 = vadd.f32 %v3953_v14, %v3952_v53  ;;  %v3975_v12 = vrot.slane %v3974_v15, 4  ;;  %v5238_v39 = vadd.f32 %v5237_v45, %v5231_v63 }
 0x330   : > { %v5217_v49 = vrot.slane %v5216_v16, 4 }
 0x331   : > { %v3955_v60 = vrot.slane %v3954_v31, 2  ;;  %v3976_v23 = vadd.f32 %v3975_v12, %v3974_v15  ;;  %v5239_v57 = vrot.slane %v5238_v39, 4 }
 0x332   : > { %v5218_v7 = vadd.f32 %v5217_v49, %v5216_v16 }
 0x333   : > { %v3956_v17 = vadd.f32 %v3955_v60, %v3954_v31  ;;  %v3977_v52 = vrot.slane %v3976_v23, 2  ;;  %v5240_v59 = vadd.f32 %v5239_v57, %v5238_v39 }
 0x334   : > { %v5219_v2 = vrot.slane %v5218_v7, 2 }
 0x335   : > { %v3957_v5 = vrot.slane %v3956_v17, 1  ;;  %v3978_v1 = vadd.f32 %v3977_v52, %v3976_v23  ;;  %v5241_v6 = vrot.slane %v5240_v59, 2 }
 0x336   : > { %v5220_v50 = vadd.f32 %v5219_v2, %v5218_v7 }
 0x337   : > { %v3958_v3 = vadd.f32 %v3957_v5, %v3956_v17  ;;  %v3979_v27 = vrot.slane %v3978_v1, 1  ;;  %v5242_v24 = vadd.f32 %v5241_v6, %v5240_v59 }
 0x338   : > { %v5221_v25 = vrot.slane %v5220_v50, 1 }
 0x339   : > { %v3959_v30 = vadd.f32 %v3958_v3, %v11425_v20  ;;  %v3980_v58 = vadd.f32 %v3979_v27, %v3978_v1  ;;  %v5243_v34 = vrot.slane %v5242_v24, 1 }
 0x33a   : > { %v5222_v8 = vadd.f32 %v5221_v25, %v5220_v50 }
 0x33b   : > { %v3981_v35 = vadd.f32 %v3980_v58, %v11433_v43  ;;  %v5244_v40 = vadd.f32 %v5243_v34, %v5242_v24 }
 0x33c   : > { %v5223_v41 = vadd.f32 %v5222_v8, %v3959_v30 }
 0x33d   : > { %v5245_v42 = vadd.f32 %v5244_v40, %v3981_v35 }
 0x33e   : > { %5246 = vst [vmem:[%s182_s24] sm:$0x1] %v5223_v41 }
 0x33f   : > { %5247 = vst [vmem:[%s182_s24 + $0x1] sm:$0x1] %v5245_v42 }
 0x340 PF: > { %s14_s12 = sadd.s32 1, %s9993_s12  }
 0x341   : > { %p11_p5 = scmp.ge.s32.totalorder %s14_s12, 4  }
 0x343   :  { %13 = sbr.rel (!%p11_p5) target bundleno = 1 (0x1), region = 89 }

</bundles_post_ra>
